<compile_context>
chip_gen: v5e
topology: v5e:2x2
jax: 0.10.0
libtpu: 0.0.40
codegen_flags: <defaults>
</compile_context>

<pallas_src>
import jax
import jax.numpy as jnp
from jax import lax
from jax.experimental import pallas as pl
from jax.experimental.pallas import tpu as pltpu

# ---- model dimensions (from the PyTorch module) ----
VIS_DIM = 4096
AUD_DIM = 384
NUM_CLASSES = 5
VIS_HID = 512
VIS_RED = 256
LSTM_HIDDEN = 128            # bidirectional -> 256 output
AUD_HID = 128
AUD_OUT = 64
D_MODEL = VIS_RED + AUD_OUT  # 320
N_HEAD = 4
HEAD_DIM = D_MODEL // N_HEAD  # 80
FF_DIM = 512
HEAD_HID = 128
CHUNK = 128
LN_EPS = 1e-5

# ---- lane-aligned padded dimensions (zero padding -> numerically exact) ----
D_PAD = 384                   # 320 -> 3 * 128
HEAD_PAD = 128                # 80  -> 128
QKV_PAD = N_HEAD * HEAD_PAD   # 512 per q/k/v section
OUT_PAD = 128                 # logits 5 -> 128 (sliced back in the wrapper)

_VMEM_LIMIT = 48 * 1024 * 1024   # <= v7x physical 64 MiB, plenty on v5e/v6e


def _cp(dims=None):
  return pltpu.CompilerParams(dimension_semantics=dims,
                              vmem_limit_bytes=_VMEM_LIMIT)


def _round_up(n, m):
  return ((n + m - 1) // m) * m


def _layer_norm(x, gamma, beta):
  mu = jnp.mean(x, axis=-1, keepdims=True)
  var = jnp.mean((x - mu) ** 2, axis=-1, keepdims=True)
  return (x - mu) * lax.rsqrt(var + LN_EPS) * gamma + beta


# ----------------------------------------------------------------------------
# Kernel 1: visual dim reduction  Linear(4096,512) -> ReLU -> Linear(512,256)
#           (per-frame MLP, so it runs once over the whole sequence, row-tiled)
# ----------------------------------------------------------------------------
def vis_reduction_kernel(x_ref, w1_ref, b1_ref, w2_ref, b2_ref, o_ref):
  # TODO(synk): if the upstream feature producer can emit bf16, feed bf16 here and
  # halve the dominant (n,4096) HBM read (a standalone XLA cast pass would not help).
  x = x_ref[...].astype(jnp.bfloat16)                                # (tm, 4096)
  h = jnp.dot(x, w1_ref[...], preferred_element_type=jnp.float32) + b1_ref[...]
  h = jnp.maximum(h, 0.0)
  o_ref[...] = jnp.dot(h.astype(jnp.bfloat16), w2_ref[...],
                       preferred_element_type=jnp.float32) + b2_ref[...]


def vis_reduction(x, pp):
  n = x.shape[0]
  tm = 512 if n >= 512 else _round_up(n, 8)   # 512 keeps VMEM ~26 MiB (ok on v7x too)
  grid = (pl.cdiv(n, tm),)
  w_args = (pp["vw1"], pp["vb1"], pp["vw2"], pp["vb2"])
  in_specs = [pl.BlockSpec((tm, VIS_DIM), lambda i: (i, 0))] + [
      pl.BlockSpec(w.shape, lambda i, _nd=w.ndim: (0,) * _nd) for w in w_args]
  return pl.pallas_call(
      vis_reduction_kernel,
      grid=grid,
      in_specs=in_specs,
      out_specs=pl.BlockSpec((tm, VIS_RED), lambda i: (i, 0)),
      out_shape=jax.ShapeDtypeStruct((n, VIS_RED), jnp.float32),
      compiler_params=_cp(("parallel",)),
  )(x, *w_args)


# ----------------------------------------------------------------------------
# Kernel 2: bidirectional LSTM(256 -> 128), one grid step per 128-frame chunk.
#   Input  x: (nc*T*B, 256) time-major rows (row = t*B + b) within each chunk.
#   Output h: (nc*T, 2B, 128): rows 0:B forward h at time t, rows B:2B backward h.
# ----------------------------------------------------------------------------
def bilstm_kernel(x_ref, wih_ref, b_ref, whh_ref, o_ref, gx_ref, h2_ref, c_ref):
  T, twoB, H = o_ref.shape
  B = twoB // 2

  # input-side gate pre-activations for the whole chunk, both directions, one matmul:
  #   gx[t*B + b, 0:4H]  = forward  gates (i,f,g,o) at time t
  #   gx[t*B + b, 4H:8H] = backward gates at time t
  gx_ref[...] = jnp.dot(x_ref[...].astype(jnp.bfloat16), wih_ref[...],
                        preferred_element_type=jnp.float32) + b_ref[...]

  # h2 holds the recurrent state in block layout so ONE matmul serves both
  # directions:  rows 0:B -> [h_f, 0]    rows B:2B -> [0, h_b]
  h2_ref[...] = jnp.zeros(h2_ref.shape, h2_ref.dtype)                # (2B, 2H)
  c_ref[...] = jnp.zeros(c_ref.shape, c_ref.dtype)                   # (2B, H)

  def step(k, _):
    kr = T - 1 - k
    gf = gx_ref[pl.ds(k * B, B), 0:4 * H]          # forward gates at time k
    gb = gx_ref[pl.ds(kr * B, B), 4 * H:8 * H]     # backward gates at time kr
    g = jnp.concatenate([gf, gb], axis=0) + jnp.dot(
        h2_ref[...].astype(jnp.bfloat16), whh_ref[...],
        preferred_element_type=jnp.float32)                          # (2B, 4H)
    i_g = jax.nn.sigmoid(g[:, 0 * H:1 * H])
    f_g = jax.nn.sigmoid(g[:, 1 * H:2 * H])
    g_g = jnp.tanh(g[:, 2 * H:3 * H])
    o_g = jax.nn.sigmoid(g[:, 3 * H:4 * H])
    c_new = f_g * c_ref[...] + i_g * g_g
    h_new = o_g * jnp.tanh(c_new)                                    # (2B, H)
    c_ref[...] = c_new
    h2_ref[0:B, 0:H] = h_new[0:B]
    h2_ref[B:2 * B, H:2 * H] = h_new[B:2 * B]
    # two lane-dense stores per step straight into the time-major output block
    o_ref[pl.ds(k, 1), 0:B, :] = h_new[None, 0:B]          # forward h at time k
    o_ref[pl.ds(kr, 1), B:2 * B, :] = h_new[None, B:2 * B]  # backward h at time kr
    return 0

  lax.fori_loop(0, T, step, 0)


def bilstm(x_tm, pp, batch, t, nc):
  # TODO(synk): on v7x a further 2x is available by splitting fwd/bwd direction
  # across the two TensorCores when nc == 1; with nc >= 2 the "parallel" chunk
  # grid already shards the serial recurrence across cores.
  H = LSTM_HIDDEN
  w_args = (pp["l_wih"], pp["l_b"], pp["l_whh"])
  in_specs = [pl.BlockSpec((t * batch, VIS_RED), lambda c: (c, 0))] + [
      pl.BlockSpec(w.shape, lambda c, _nd=w.ndim: (0,) * _nd) for w in w_args]
  return pl.pallas_call(
      bilstm_kernel,
      grid=(nc,),
      in_specs=in_specs,
      out_specs=pl.BlockSpec((t, 2 * batch, H), lambda c: (c, 0, 0)),
      out_shape=jax.ShapeDtypeStruct((nc * t, 2 * batch, H), jnp.float32),
      scratch_shapes=[
          pltpu.VMEM((t * batch, 8 * H), jnp.float32),  # gate pre-activations
          pltpu.VMEM((2 * batch, 2 * H), jnp.float32),  # h (block layout)
          pltpu.VMEM((2 * batch, H), jnp.float32),      # c
      ],
      compiler_params=_cp(("parallel",)),
  )(x_tm, *w_args)


# ----------------------------------------------------------------------------
# Kernel 3 (fused): audio encoder + concat + pre-norm transformer layer + head
#                   grid = (num_chunks, batch), both parallel; weights resident.
# ----------------------------------------------------------------------------
def fused_tail_kernel(aud_ref, venc_ref,
                      aw1, ab1, ag1, abe1, aw2, ab2, ag2, abe2,
                      wqkv, bqkv, wout, bout, g1, be1, g2, be2,
                      wff1, bff1, wff2, bff2,
                      hw1, hb1, hg, hbe, hw2, hb2,
                      o_ref):
  bf16 = jnp.bfloat16
  t = aud_ref.shape[0]

  # ---- audio encoder: Linear->LN->ReLU->Linear->LN->ReLU ----
  a = aud_ref[...]                                                   # (t, 384)
  h = jnp.dot(a.astype(bf16), aw1[...], preferred_element_type=jnp.float32) + ab1[...]
  h = jnp.maximum(_layer_norm(h, ag1[...], abe1[...]), 0.0)
  h = jnp.dot(h.astype(bf16), aw2[...], preferred_element_type=jnp.float32) + ab2[...]
  aenc = jnp.maximum(_layer_norm(h, ag2[...], abe2[...]), 0.0)       # (t, 64)

  # ---- concat visual(256) + audio(64), zero-pad to 384 lanes ----
  v = venc_ref[...]                                                  # (t, 256)
  x = jnp.concatenate(
      [v, aenc, jnp.zeros((t, D_PAD - D_MODEL), jnp.float32)], axis=-1)  # (t, 384)

  # LayerNorm over the 320 real features of the padded 384-lane layout
  lane = lax.broadcasted_iota(jnp.int32, (1, D_PAD), 1)
  mask = (lane < D_MODEL).astype(jnp.float32)

  def masked_ln(z, gamma, beta):
    mu = jnp.sum(z * mask, axis=-1, keepdims=True) * (1.0 / D_MODEL)
    d = z - mu
    var = jnp.sum(d * d * mask, axis=-1, keepdims=True) * (1.0 / D_MODEL)
    return d * lax.rsqrt(var + LN_EPS) * gamma + beta

  # ---- self-attention block (norm_first) ----
  y = masked_ln(x, g1[...], be1[...])
  qkv = jnp.dot(y.astype(bf16), wqkv[...],
                preferred_element_type=jnp.float32) + bqkv[...]      # (t, 1536)
  scale = 1.0 / (HEAD_DIM ** 0.5)
  heads = []
  for hd in range(N_HEAD):
    q_h = qkv[:, hd * HEAD_PAD:(hd + 1) * HEAD_PAD]
    k_h = qkv[:, QKV_PAD + hd * HEAD_PAD:QKV_PAD + (hd + 1) * HEAD_PAD]
    v_h = qkv[:, 2 * QKV_PAD + hd * HEAD_PAD:2 * QKV_PAD + (hd + 1) * HEAD_PAD]
    s = lax.dot_general(q_h.astype(bf16), k_h.astype(bf16),
                        (((1,), (1,)), ((), ())),
                        preferred_element_type=jnp.float32) * scale  # (t, t)
    s = s - jnp.max(s, axis=-1, keepdims=True)
    p = jnp.exp(s)
    p = p * pl.reciprocal(jnp.sum(p, axis=-1, keepdims=True), approx=True)
    heads.append(jnp.dot(p.astype(bf16), v_h.astype(bf16),
                         preferred_element_type=jnp.float32))
  attn = jnp.concatenate(heads, axis=-1)                             # (t, 512)
  attn = jnp.dot(attn.astype(bf16), wout[...],
                 preferred_element_type=jnp.float32) + bout[...]     # (t, 384)
  x = x + attn

  # ---- feed-forward block (norm_first) ----
  z = masked_ln(x, g2[...], be2[...])
  ff = jnp.maximum(
      jnp.dot(z.astype(bf16), wff1[...], preferred_element_type=jnp.float32)
      + bff1[...], 0.0)
  ff = jnp.dot(ff.astype(bf16), wff2[...],
               preferred_element_type=jnp.float32) + bff2[...]
  x = x + ff                                                         # (t, 384)

  # ---- head: Linear(320,128)->LN->ReLU->Linear(128, 5 padded to 128) ----
  hh = jnp.dot(x.astype(bf16), hw1[...], preferred_element_type=jnp.float32) + hb1[...]
  hh = jnp.maximum(_layer_norm(hh, hg[...], hbe[...]), 0.0)
  o_ref[...] = jnp.dot(hh.astype(bf16), hw2[...],
                       preferred_element_type=jnp.float32) + hb2[...]


def fused_tail(aud, venc, pp, t):
  b, s_part, _ = aud.shape
  nc = s_part // t
  w_args = (pp["aw1"], pp["ab1"], pp["ag1"], pp["abe1"],
            pp["aw2"], pp["ab2"], pp["ag2"], pp["abe2"],
            pp["t_wqkv"], pp["t_bqkv"], pp["t_wout"], pp["t_bout"],
            pp["t_g1"], pp["t_be1"], pp["t_g2"], pp["t_be2"],
            pp["t_wff1"], pp["t_bff1"], pp["t_wff2"], pp["t_bff2"],
            pp["hw1"], pp["hb1"], pp["hg"], pp["hbe"], pp["hw2"], pp["hb2"])
  in_specs = [
      pl.BlockSpec((pl.Squeezed(), t, AUD_DIM), lambda c, bb: (bb, c, 0)),
      pl.BlockSpec((pl.Squeezed(), t, 2 * LSTM_HIDDEN), lambda c, bb: (bb, c, 0)),
  ] + [pl.BlockSpec(w.shape, lambda c, bb, _nd=w.ndim: (0,) * _nd) for w in w_args]
  return pl.pallas_call(
      fused_tail_kernel,
      grid=(nc, b),
      in_specs=in_specs,
      out_specs=pl.BlockSpec((pl.Squeezed(), t, OUT_PAD), lambda c, bb: (bb, c, 0)),
      out_shape=jax.ShapeDtypeStruct((b, s_part, OUT_PAD), jnp.float32),
      compiler_params=_cp(("parallel", "parallel")),
  )(aud, venc, *w_args)


# ----------------------------------------------------------------------------
# parameter init (deterministic; matches PyTorch shapes, weights stored as (in, out))
# ----------------------------------------------------------------------------
def _xavier(key, shape):
  fan_in, fan_out = shape
  lim = (6.0 / (fan_in + fan_out)) ** 0.5
  return jax.random.uniform(key, shape, jnp.float32, -lim, lim)


def _orthogonal_t(key, pt_shape):
  """Orthogonal init of a PyTorch-shaped (rows, cols) matrix, returned transposed."""
  a = jax.random.normal(key, pt_shape, jnp.float32)
  q, r = jnp.linalg.qr(a)
  q = q * jnp.sign(jnp.diagonal(r))
  return q.T


def init_params(key):
  ks = jax.random.split(key, 14)
  H = LSTM_HIDDEN
  z = lambda *s: jnp.zeros(s, jnp.float32)
  o = lambda *s: jnp.ones(s, jnp.float32)
  p = {}
  # vis_dim_reduction
  p["vw1"] = _xavier(ks[0], (VIS_DIM, VIS_HID)); p["vb1"] = z(1, VIS_HID)
  p["vw2"] = _xavier(ks[1], (VIS_HID, VIS_RED)); p["vb2"] = z(1, VIS_RED)
  # bidirectional LSTM (gate order i,f,g,o along the 4H axis, as in PyTorch)
  p["l_wih_f"] = _xavier(ks[2], (VIS_RED, 4 * H))
  p["l_whh_f"] = _orthogonal_t(ks[3], (4 * H, H))
  p["l_b_f"] = z(1, 4 * H)                      # b_ih + b_hh, both zero
  p["l_wih_b"] = _xavier(ks[4], (VIS_RED, 4 * H))
  p["l_whh_b"] = _orthogonal_t(ks[5], (4 * H, H))
  p["l_b_b"] = z(1, 4 * H)
  # audio encoder
  p["aw1"] = _xavier(ks[6], (AUD_DIM, AUD_HID)); p["ab1"] = z(1, AUD_HID)
  p["ag1"] = o(1, AUD_HID); p["abe1"] = z(1, AUD_HID)
  p["aw2"] = _xavier(ks[7], (AUD_HID, AUD_OUT)); p["ab2"] = z(1, AUD_OUT)
  p["ag2"] = o(1, AUD_OUT); p["abe2"] = z(1, AUD_OUT)
  # transformer encoder layer (pre-norm)
  p["t_wqkv"] = _xavier(ks[8], (D_MODEL, 3 * D_MODEL)); p["t_bqkv"] = z(1, 3 * D_MODEL)
  p["t_wout"] = _xavier(ks[9], (D_MODEL, D_MODEL)); p["t_bout"] = z(1, D_MODEL)
  p["t_g1"] = o(1, D_MODEL); p["t_be1"] = z(1, D_MODEL)
  p["t_g2"] = o(1, D_MODEL); p["t_be2"] = z(1, D_MODEL)
  p["t_wff1"] = _xavier(ks[10], (D_MODEL, FF_DIM)); p["t_bff1"] = z(1, FF_DIM)
  p["t_wff2"] = _xavier(ks[11], (FF_DIM, D_MODEL)); p["t_bff2"] = z(1, D_MODEL)
  # head
  p["hw1"] = _xavier(ks[12], (D_MODEL, HEAD_HID)); p["hb1"] = z(1, HEAD_HID)
  p["hg"] = o(1, HEAD_HID); p["hbe"] = z(1, HEAD_HID)
  p["hw2"] = _xavier(ks[13], (HEAD_HID, NUM_CLASSES)); p["hb2"] = z(1, NUM_CLASSES)
  return p


# ----------------------------------------------------------------------------
# prepare params: bf16 matmul weights, stacked LSTM weights, lane-aligned padding
# ----------------------------------------------------------------------------
def _pad_cols(a, width):
  return jnp.pad(a, ((0, 0), (0, width - a.shape[1])))


def _pad_rows(a, height):
  return jnp.pad(a, ((0, height - a.shape[0]), (0, 0)))


def prepare_params(p):
  bf = jnp.bfloat16
  q = {}
  # visual reduction
  q["vw1"], q["vb1"] = p["vw1"].astype(bf), p["vb1"]
  q["vw2"], q["vb2"] = p["vw2"].astype(bf), p["vb2"]
  # bilstm: stack forward/backward for one-shot input matmul and block recurrent matmul
  q["l_wih"] = jnp.concatenate([p["l_wih_f"], p["l_wih_b"]], axis=1).astype(bf)  # (256,1024)
  q["l_b"] = jnp.concatenate([p["l_b_f"], p["l_b_b"]], axis=1)                   # (1,1024)
  q["l_whh"] = jnp.concatenate([p["l_whh_f"], p["l_whh_b"]], axis=0).astype(bf)  # (256,512)
  # audio encoder
  q["aw1"], q["ab1"] = p["aw1"].astype(bf), p["ab1"]
  q["ag1"], q["abe1"] = p["ag1"], p["abe1"]
  q["aw2"], q["ab2"] = p["aw2"].astype(bf), p["ab2"]
  q["ag2"], q["abe2"] = p["ag2"], p["abe2"]
  # transformer: pad d_model 320->384 and per-head dim 80->128 (zeros -> exact)
  wqkv = jnp.zeros((D_PAD, 3 * QKV_PAD), jnp.float32)
  bqkv = jnp.zeros((1, 3 * QKV_PAD), jnp.float32)
  for sec in range(3):        # q, k, v sections
    for hd in range(N_HEAD):
      src_c = sec * D_MODEL + hd * HEAD_DIM
      dst_c = sec * QKV_PAD + hd * HEAD_PAD
      wqkv = wqkv.at[:D_MODEL, dst_c:dst_c + HEAD_DIM].set(
          p["t_wqkv"][:, src_c:src_c + HEAD_DIM])
      bqkv = bqkv.at[:, dst_c:dst_c + HEAD_DIM].set(
          p["t_bqkv"][:, src_c:src_c + HEAD_DIM])
  q["t_wqkv"], q["t_bqkv"] = wqkv.astype(bf), bqkv
  wout = jnp.zeros((QKV_PAD, D_PAD), jnp.float32)
  for hd in range(N_HEAD):
    wout = wout.at[hd * HEAD_PAD:hd * HEAD_PAD + HEAD_DIM, :D_MODEL].set(
        p["t_wout"][hd * HEAD_DIM:(hd + 1) * HEAD_DIM, :])
  q["t_wout"] = wout.astype(bf)
  q["t_bout"] = _pad_cols(p["t_bout"], D_PAD)
  q["t_g1"], q["t_be1"] = _pad_cols(p["t_g1"], D_PAD), _pad_cols(p["t_be1"], D_PAD)
  q["t_g2"], q["t_be2"] = _pad_cols(p["t_g2"], D_PAD), _pad_cols(p["t_be2"], D_PAD)
  q["t_wff1"] = _pad_rows(p["t_wff1"], D_PAD).astype(bf)
  q["t_bff1"] = p["t_bff1"]
  q["t_wff2"] = _pad_cols(p["t_wff2"], D_PAD).astype(bf)
  q["t_bff2"] = _pad_cols(p["t_bff2"], D_PAD)
  # head
  q["hw1"] = _pad_rows(p["hw1"], D_PAD).astype(bf)
  q["hb1"], q["hg"], q["hbe"] = p["hb1"], p["hg"], p["hbe"]
  q["hw2"] = _pad_cols(p["hw2"], OUT_PAD).astype(bf)
  q["hb2"] = _pad_cols(p["hb2"], OUT_PAD)
  return q


# ----------------------------------------------------------------------------
# full forward (mirrors AVSummarizer.forward, chunked along the sequence axis)
# ----------------------------------------------------------------------------
def _run_chunks(vred_part, aud_part, pp, b, t, nc):
  """Run BiLSTM + fused tail on nc chunks of length t (wrapper re-layouts are XLA)."""
  s_part = nc * t
  # time-major LSTM input: row index = t*B + b within each chunk
  x_tm = jnp.swapaxes(vred_part, 0, 1).reshape(s_part * b, VIS_RED)
  h_tm = bilstm(x_tm, pp, b, t, nc)                       # (s_part, 2B, 128)
  venc = jnp.swapaxes(
      jnp.concatenate([h_tm[:, :b, :], h_tm[:, b:, :]], axis=-1), 0, 1)  # (B, s_part, 256)
  logits_pad = fused_tail(aud_part, venc, pp, t)          # (B, s_part, 128)
  return logits_pad[..., :NUM_CLASSES]


def av_summarizer_forward(params, visual, audio):
  b, s = visual.shape[0], visual.shape[1]
  pp = prepare_params(params)

  # per-frame MLP -> run once over the whole sequence (chunking is irrelevant here)
  vred = vis_reduction(visual.reshape(b * s, VIS_DIM), pp).reshape(b, s, VIS_RED)

  outs = []
  num_full = s // CHUNK
  if num_full > 0:
    s_full = num_full * CHUNK
    outs.append(_run_chunks(vred[:, :s_full], audio[:, :s_full], pp,
                            b, CHUNK, num_full))
  rem = s - num_full * CHUNK
  if rem > 0:
    i = num_full * CHUNK
    outs.append(_run_chunks(vred[:, i:], audio[:, i:], pp, b, rem, 1))
  return outs[0] if len(outs) == 1 else jnp.concatenate(outs, axis=1)


if __name__ == "__main__":
  key = jax.random.PRNGKey(0)
  kv, ka, kp = jax.random.split(key, 3)
  B, S = 2, 8
  visual = jax.random.normal(kv, (B, S, VIS_DIM), jnp.float32)
  audio = jax.random.normal(ka, (B, S, AUD_DIM), jnp.float32)
  params = init_params(kp)

  out = av_summarizer_forward(params, visual, audio)
  out = jax.block_until_ready(out)
  assert out.shape == (B, S, NUM_CLASSES), out.shape
  assert bool(jnp.all(jnp.isfinite(out)))
  print("KERNEL_OK")
</pallas_src>

<mosaic_0001>
module attributes {stable_mosaic.version = 11 : i64} {
  func.func @vis_reduction_kernel(%arg0: i32, %arg1: memref<16x4096xf32, #tpu.memory_space<vmem>>, %arg2: memref<4096x512xbf16, #tpu.memory_space<vmem>>, %arg3: memref<1x512xf32, #tpu.memory_space<vmem>>, %arg4: memref<512x256xbf16, #tpu.memory_space<vmem>>, %arg5: memref<1x256xf32, #tpu.memory_space<vmem>>, %arg6: memref<16x256xf32, #tpu.memory_space<vmem>>) attributes {dimension_semantics = [#tpu.dimension_semantics<parallel>], iteration_bounds = array<i64: 1>, scalar_prefetch = 0 : i64, scratch_operands = 0 : i64, tpu.core_type = #tpu.core_type<tc>, window_params = [{transform_indices = @transform_0, window_bounds = array<i64: 16, 4096>}, {pipeline_mode = #tpu.pipeline_mode<synchronous>, transform_indices = @transform_1, window_bounds = array<i64: 4096, 512>}, {pipeline_mode = #tpu.pipeline_mode<synchronous>, transform_indices = @transform_2, window_bounds = array<i64: 1, 512>}, {pipeline_mode = #tpu.pipeline_mode<synchronous>, transform_indices = @transform_3, window_bounds = array<i64: 512, 256>}, {pipeline_mode = #tpu.pipeline_mode<synchronous>, transform_indices = @transform_4, window_bounds = array<i64: 1, 256>}, {transform_indices = @transform_5, window_bounds = array<i64: 16, 256>}]} {
    %c0 = arith.constant 0 : index
    %c0_0 = arith.constant 0 : index
    %0 = vector.load %arg1[%c0, %c0_0] : memref<16x4096xf32, #tpu.memory_space<vmem>>, vector<16x4096xf32>
    %1 = arith.truncf %0 : vector<16x4096xf32> to vector<16x4096xbf16>
    %c0_1 = arith.constant 0 : index
    %c0_2 = arith.constant 0 : index
    %2 = vector.load %arg2[%c0_1, %c0_2] : memref<4096x512xbf16, #tpu.memory_space<vmem>>, vector<4096x512xbf16>
    %cst = arith.constant dense<0.000000e+00> : vector<16x512xf32>
    %3 = tpu.matmul %1, %2, %cst {dimension_numbers = #tpu.dot_dimension_numbers<[1], [0], [0], [1], [0, 0, 1, 1], [], []>} : vector<16x4096xbf16>, vector<4096x512xbf16>, vector<16x512xf32> -> vector<16x512xf32>
    %c0_3 = arith.constant 0 : index
    %c0_4 = arith.constant 0 : index
    %4 = vector.load %arg3[%c0_3, %c0_4] : memref<1x512xf32, #tpu.memory_space<vmem>>, vector<1x512xf32>
    %5 = vector.broadcast %4 : vector<1x512xf32> to vector<16x512xf32>
    %6 = arith.addf %3, %5 : vector<16x512xf32>
    %cst_5 = arith.constant 0.000000e+00 : f32
    %7 = vector.broadcast %cst_5 : f32 to vector<16x512xf32>
    %8 = arith.maximumf %6, %7 : vector<16x512xf32>
    %9 = arith.truncf %8 : vector<16x512xf32> to vector<16x512xbf16>
    %c0_6 = arith.constant 0 : index
    %c0_7 = arith.constant 0 : index
    %10 = vector.load %arg4[%c0_6, %c0_7] : memref<512x256xbf16, #tpu.memory_space<vmem>>, vector<512x256xbf16>
    %cst_8 = arith.constant dense<0.000000e+00> : vector<16x256xf32>
    %11 = tpu.matmul %9, %10, %cst_8 {dimension_numbers = #tpu.dot_dimension_numbers<[1], [0], [0], [1], [0, 0, 1, 1], [], []>} : vector<16x512xbf16>, vector<512x256xbf16>, vector<16x256xf32> -> vector<16x256xf32>
    %c0_9 = arith.constant 0 : index
    %c0_10 = arith.constant 0 : index
    %12 = vector.load %arg5[%c0_9, %c0_10] : memref<1x256xf32, #tpu.memory_space<vmem>>, vector<1x256xf32>
    %13 = vector.broadcast %12 : vector<1x256xf32> to vector<16x256xf32>
    %14 = arith.addf %11, %13 : vector<16x256xf32>
    %c0_11 = arith.constant 0 : index
    %c0_12 = arith.constant 0 : index
    %15 = vector.load %arg6[%c0_11, %c0_12] : memref<16x256xf32, #tpu.memory_space<vmem>>, vector<16x256xf32>
    tpu.vector_store %arg6[%c0_11, %c0_12], %14 {strides = array<i32>} : memref<16x256xf32, #tpu.memory_space<vmem>>, vector<16x256xf32>,
    return
  }
  func.func @transform_0(%arg0: i32) -> (i32, i32) {
    %c0_i32 = arith.constant 0 : i32
    %c0_i32_0 = arith.constant 0 : i32
    return %arg0, %c0_i32 : i32, i32
  }
  func.func @transform_1(%arg0: i32) -> (i32, i32) {
    %c0_i32 = arith.constant 0 : i32
    %c0_i32_0 = arith.constant 0 : i32
    %c0_i32_1 = arith.constant 0 : i32
    return %c0_i32, %c0_i32_0 : i32, i32
  }
  func.func @transform_2(%arg0: i32) -> (i32, i32) {
    %c0_i32 = arith.constant 0 : i32
    %c0_i32_0 = arith.constant 0 : i32
    %c0_i32_1 = arith.constant 0 : i32
    return %c0_i32, %c0_i32_0 : i32, i32
  }
  func.func @transform_3(%arg0: i32) -> (i32, i32) {
    %c0_i32 = arith.constant 0 : i32
    %c0_i32_0 = arith.constant 0 : i32
    %c0_i32_1 = arith.constant 0 : i32
    return %c0_i32, %c0_i32_0 : i32, i32
  }
  func.func @transform_4(%arg0: i32) -> (i32, i32) {
    %c0_i32 = arith.constant 0 : i32
    %c0_i32_0 = arith.constant 0 : i32
    %c0_i32_1 = arith.constant 0 : i32
    return %c0_i32, %c0_i32_0 : i32, i32
  }
  func.func @transform_5(%arg0: i32) -> (i32, i32) {
    %c0_i32 = arith.constant 0 : i32
    %c0_i32_0 = arith.constant 0 : i32
    return %arg0, %c0_i32 : i32, i32
  }
}

</mosaic_0001>

<bundles_post_ra>
// kernel: tpu_custom_call.1
= control target key start
LH: loop header
LB: loop body
LE: loop exit
PB: predicated region body
PF: predicated region fallthrough
CT: control target
= control target key end

     0   :  { %10 = vsyncpa [#allocation3], 0  ;;  %s14996_s0 = inlined_call_operand.hbm [shape: f32[16,4096], index: 0, kind: input, shape index: {}]   ;;  %s14997_s1 = inlined_call_operand.hbm [shape: bf16[4096,512], index: 1, kind: input, shape index: {}]   ;;  %s14998_s2 = inlined_call_operand.hbm [shape: f32[1,512], index: 2, kind: input, shape index: {}]   ;;  %s14999_s3 = inlined_call_operand.hbm [shape: bf16[512,256], index: 3, kind: input, shape index: {}]   ;;  %s15000_s4 = inlined_call_operand.hbm [shape: f32[1,256], index: 4, kind: input, shape index: {}]   ;;  %s15001_s5 = inlined_call_operand.hbm [shape: f32[16,256], index: 5, kind: output, shape index: {}]  }
   0x1   :  { %11 = vsyncpa [#allocation6], 0 }
   0x2   :  { %12 = vsyncpa [#allocation9], 0  ;;  %s31_s20 = sshll.u32 %s14997_s1, 4  ;;  %s32_s20 = int_to_ptr.hbm [resolvable:$true] %s31_s20 }
   0x3   :  { %13 = vsyncpa [#allocation4], 0  ;;  %s14282_s21 = smov [#allocation5]   ;;  %s55_s25 = sshll.u32 %s14999_s3, 4  ;;  %s56_s25 = int_to_ptr.hbm [resolvable:$true] %s55_s25 }
   0x4   :  { %s33_s22 = sshll.u32 %s14282_s21, 4  ;;  %s14283_s26 = smov 256   ;;  %s34_s22 = int_to_ptr.vmem [resolvable:$true] %s33_s22 }
   0x5   :  { %s14284_s27 = smov 16   ;;  %s14285_s28 = smov [#allocation8]  }
   0x6   :  { %39 = dma.hbm_to_vmem [thread:$0]  %s32_s20, 131072, %s34_s22, [#allocation6], %s14283_s26, %s14283_s26, %s14284_s27  }
   0x7   :  { %s57_s29 = sshll.u32 %s14285_s28, 4  ;;  %s14286_s1 = smov 128   ;;  %s58_s29 = int_to_ptr.vmem [resolvable:$true] %s57_s29 }
   0x8   :  { %s14287_s30 = smov 8   ;;  %s18_s8 = sshll.u32 %s14996_s0, 4  ;;  %s19_s8 = int_to_ptr.hbm [resolvable:$true] %s18_s8 }
   0x9   :  { %63 = dma.hbm_to_vmem [thread:$0]  %s56_s25, 8192, %s58_s29, [#allocation9], %s14286_s1, %s14286_s1, %s14287_s30  }
   0xa   :  { %s14288_s9 = smov [#allocation2]   ;;  %s14289_s10 = smov 4096  }
   0xb   :  { %s20_s3 = sshll.u32 %s14288_s9, 4  ;;  %s45_s13 = sshll.u32 %s14998_s2, 4  ;;  %s21_s3 = int_to_ptr.vmem [resolvable:$true] %s20_s3  ;;  %s46_s13 = int_to_ptr.hbm [resolvable:$true] %s45_s13 }
   0xc   :  { %26 = dma.hbm_to_vmem [thread:$0]  %s19_s8, 8192, %s21_s3, [#allocation3], %s14289_s10, %s14289_s10, %s14283_s26  }
   0xd   :  { %s14290_s14 = smov [#allocation7]   ;;  %s69_s18 = sshll.u32 %s15000_s4, 4  ;;  %s70_s18 = int_to_ptr.hbm [resolvable:$true] %s69_s18 }
   0xe   :  { %s47_s15 = sshll.u32 %s14290_s14, 4  ;;  %s14291_s0 = smov [#allocation10]   ;;  %s48_s15 = int_to_ptr.vmem [resolvable:$true] %s47_s15 }
   0xf   :  { %50 = dma.hbm_to_vmem [thread:$0]  %s46_s13, 64, %s48_s15, [#allocation6]  }
  0x10   :  { %s71_s19 = sshll.u32 %s14291_s0, 4  ;;  %s72_s19 = int_to_ptr.vmem [resolvable:$true] %s71_s19 }
  0x11   :  { %74 = dma.hbm_to_vmem [thread:$0]  %s70_s18, 32, %s72_s19, [#allocation9]  }
  0x12   :  { %14274 = dma.done.wait [#allocation3], 8192  }
  0x13   :  { %14275 = vsyncadd [#allocation3], 4294959104 }
  0x14   :  { %14276 = dma.done.wait [#allocation6], 131136  }
  0x15   :  { %14277 = vsyncadd [#allocation6], 4294836160 }
  0x16   :  { %14278 = dma.done.wait [#allocation9], 8224  }
  0x17   :  { %14279 = vsyncadd [#allocation9], 4294959072  ;;  %v8790_v0 = vld [vmem:[#allocation5 + $0xe0] sm:$0xf]  ;;  %v13058_v1 = vld [vmem:[#allocation5 + $0xec] sm:$0xf0] }
  0x18   :  { %v8918_v2 = vld [vmem:[#allocation5 + $0x1e0] sm:$0xf]  ;;  %v8791_v3 = vor.u32 %v13058_v1, %v8790_v0  ;;  %v13090_v4 = vld [vmem:[#allocation5 + $0x1ec] sm:$0xf0]  ;;  %s14292_s2 = smov [#allocation11]   ;;  %s8661_s22 = sshll.u32 %s15001_s5, 4  ;;  %s8662_s22 = int_to_ptr.hbm [resolvable:$true] %s8661_s22 }
  0x19   :  { %v9046_v5 = vld [vmem:[#allocation5 + $0x2e0] sm:$0xf]  ;;  %v13122_v6 = vld [vmem:[#allocation5 + $0x2ec] sm:$0xf0]  ;;  %v8919_v7 = vor.u32 %v13090_v4, %v8918_v2  ;;  %s8659_s4 = sshll.u32 %s14292_s2, 4  ;;  %s8660_s4 = int_to_ptr.vmem [resolvable:$true] %s8659_s4 }
  0x1a   :  { %v9047_v8 = vor.u32 %v13122_v6, %v9046_v5  ;;  %v9174_v9 = vld [vmem:[#allocation5 + $0x3e0] sm:$0xf]  ;;  %v13154_v10 = vld [vmem:[#allocation5 + $0x3ec] sm:$0xf0]  ;;  %6345 = vmatpush.bf16.msra.mxu0 %v8791_v3 }
  0x1b   :  { %v8774_v11 = vld [vmem:[#allocation5 + $0xc0] sm:$0xf]  ;;  %v9175_v12 = vor.u32 %v13154_v10, %v9174_v9  ;;  %v13054_v13 = vld [vmem:[#allocation5 + $0xcc] sm:$0xf0]  ;;  %6359 = vmatpush.bf16.msra.mxu1 %v8919_v7 }
  0x1c   :  { %v8902_v14 = vld [vmem:[#allocation5 + $0x1c0] sm:$0xf]  ;;  %v13086_v15 = vld [vmem:[#allocation5 + $0x1cc] sm:$0xf0]  ;;  %6373 = vmatpush.bf16.msra.mxu2 %v9047_v8  ;;  %v8775_v16 = vor.u32 %v13054_v13, %v8774_v11 }
  0x1d   :  { %v8903_v17 = vor.u32 %v13086_v15, %v8902_v14  ;;  %v9030_v18 = vld [vmem:[#allocation5 + $0x2c0] sm:$0xf]  ;;  %v13118_v19 = vld [vmem:[#allocation5 + $0x2cc] sm:$0xf0]  ;;  %6387 = vmatpush.bf16.msra.mxu3 %v9175_v12 }
  0x1e   :  { %v9158_v20 = vld [vmem:[#allocation5 + $0x3c0] sm:$0xf]  ;;  %v9031_v21 = vor.u32 %v13118_v19, %v9030_v18  ;;  %v13150_v22 = vld [vmem:[#allocation5 + $0x3cc] sm:$0xf0]  ;;  %6346 = vmatpush.bf16.msra.mxu0 %v8775_v16 }
  0x1f   :  { %v8758_v23 = vld [vmem:[#allocation5 + $0xa0] sm:$0xf]  ;;  %v13050_v24 = vld [vmem:[#allocation5 + $0xac] sm:$0xf0]  ;;  %v9159_v25 = vor.u32 %v13150_v22, %v9158_v20  ;;  %6360 = vmatpush.bf16.msra.mxu1 %v8903_v17 }
  0x20   :  { %v8886_v26 = vld [vmem:[#allocation5 + $0x1a0] sm:$0xf]  ;;  %v13082_v27 = vld [vmem:[#allocation5 + $0x1ac] sm:$0xf0]  ;;  %v8759_v29 = vor.u32 %v13050_v24, %v8758_v23  ;;  %6374 = vmatpush.bf16.msra.mxu2 %v9031_v21 }
  0x21   :  { %v9014_v28 = vld [vmem:[#allocation5 + $0x2a0] sm:$0xf]  ;;  %v13114_v30 = vld [vmem:[#allocation5 + $0x2ac] sm:$0xf0]  ;;  %v8887_v33 = vor.u32 %v13082_v27, %v8886_v26  ;;  %6388 = vmatpush.bf16.msra.mxu3 %v9159_v25 }
  0x22   :  { %v9142_v31 = vld [vmem:[#allocation5 + $0x3a0] sm:$0xf]  ;;  %v13146_v32 = vld [vmem:[#allocation5 + $0x3ac] sm:$0xf0]  ;;  %v9015_v34 = vor.u32 %v13114_v30, %v9014_v28  ;;  %6347 = vmatpush.bf16.msra.mxu0 %v8759_v29 }
  0x23   :  { %v8742_v35 = vld [vmem:[#allocation5 + $0x80] sm:$0xf]  ;;  %v13046_v36 = vld [vmem:[#allocation5 + $0x8c] sm:$0xf0]  ;;  %v9143_v38 = vor.u32 %v13146_v32, %v9142_v31  ;;  %6361 = vmatpush.bf16.msra.mxu1 %v8887_v33 }
  0x24   :  { %v8870_v37 = vld [vmem:[#allocation5 + $0x180] sm:$0xf]  ;;  %v13078_v39 = vld [vmem:[#allocation5 + $0x18c] sm:$0xf0]  ;;  %v8743_v44 = vor.u32 %v13046_v36, %v8742_v35  ;;  %6375 = vmatpush.bf16.msra.mxu2 %v9015_v34 }
  0x25   :  { %v8998_v40 = vld [vmem:[#allocation5 + $0x280] sm:$0xf]  ;;  %v13110_v41 = vld [vmem:[#allocation5 + $0x28c] sm:$0xf0]  ;;  %v8871_v45 = vor.u32 %v13078_v39, %v8870_v37  ;;  %6389 = vmatpush.bf16.msra.mxu3 %v9143_v38 }
  0x26   :  { %v9126_v42 = vld [vmem:[#allocation5 + $0x380] sm:$0xf]  ;;  %v13142_v43 = vld [vmem:[#allocation5 + $0x38c] sm:$0xf0]  ;;  %v8999_v46 = vor.u32 %v13110_v41, %v8998_v40  ;;  %6348 = vmatpush.bf16.msra.mxu0 %v8743_v44 }
  0x27   :  { %v8726_v47 = vld [vmem:[#allocation5 + $0x60] sm:$0xf]  ;;  %v13042_v48 = vld [vmem:[#allocation5 + $0x6c] sm:$0xf0]  ;;  %v9127_v50 = vor.u32 %v13142_v43, %v9126_v42  ;;  %6362 = vmatpush.bf16.msra.mxu1 %v8871_v45 }
  0x28   :  { %v8854_v49 = vld [vmem:[#allocation5 + $0x160] sm:$0xf]  ;;  %v13074_v51 = vld [vmem:[#allocation5 + $0x16c] sm:$0xf0]  ;;  %v8727_v56 = vor.u32 %v13042_v48, %v8726_v47  ;;  %6376 = vmatpush.bf16.msra.mxu2 %v8999_v46 }
  0x29   :  { %v8982_v52 = vld [vmem:[#allocation5 + $0x260] sm:$0xf]  ;;  %v13106_v53 = vld [vmem:[#allocation5 + $0x26c] sm:$0xf0]  ;;  %v8855_v57 = vor.u32 %v13074_v51, %v8854_v49  ;;  %6390 = vmatpush.bf16.msra.mxu3 %v9127_v50 }
  0x2a   :  { %v9110_v54 = vld [vmem:[#allocation5 + $0x360] sm:$0xf]  ;;  %v13138_v55 = vld [vmem:[#allocation5 + $0x36c] sm:$0xf0]  ;;  %v8983_v58 = vor.u32 %v13106_v53, %v8982_v52  ;;  %6349 = vmatpush.bf16.msra.mxu0 %v8727_v56 }
  0x2b   :  { %v8710_v59 = vld [vmem:[#allocation5 + $0x40] sm:$0xf]  ;;  %v13038_v60 = vld [vmem:[#allocation5 + $0x4c] sm:$0xf0]  ;;  %v9111_v62 = vor.u32 %v13138_v55, %v9110_v54  ;;  %6363 = vmatpush.bf16.msra.mxu1 %v8855_v57 }
  0x2c   :  { %v8838_v61 = vld [vmem:[#allocation5 + $0x140] sm:$0xf]  ;;  %v13070_v63 = vld [vmem:[#allocation5 + $0x14c] sm:$0xf0]  ;;  %v8711_v4 = vor.u32 %v13038_v60, %v8710_v59  ;;  %6377 = vmatpush.bf16.msra.mxu2 %v8983_v58 }
  0x2d   :  { %v8966_v0 = vld [vmem:[#allocation5 + $0x240] sm:$0xf]  ;;  %v13102_v1 = vld [vmem:[#allocation5 + $0x24c] sm:$0xf0]  ;;  %v8839_v5 = vor.u32 %v13070_v63, %v8838_v61  ;;  %6391 = vmatpush.bf16.msra.mxu3 %v9111_v62 }
  0x2e   :  { %v9094_v2 = vld [vmem:[#allocation5 + $0x340] sm:$0xf]  ;;  %v13134_v3 = vld [vmem:[#allocation5 + $0x34c] sm:$0xf0]  ;;  %v8967_v6 = vor.u32 %v13102_v1, %v8966_v0  ;;  %6350 = vmatpush.bf16.msra.mxu0 %v8711_v4 }
  0x2f   :  { %v8694_v7 = vld [vmem:[#allocation5 + $0x20] sm:$0xf]  ;;  %v13034_v8 = vld [vmem:[#allocation5 + $0x2c] sm:$0xf0]  ;;  %v9095_v10 = vor.u32 %v13134_v3, %v9094_v2  ;;  %6364 = vmatpush.bf16.msra.mxu1 %v8839_v5 }
  0x30   :  { %v8822_v9 = vld [vmem:[#allocation5 + $0x120] sm:$0xf]  ;;  %v13066_v11 = vld [vmem:[#allocation5 + $0x12c] sm:$0xf0]  ;;  %v8695_v16 = vor.u32 %v13034_v8, %v8694_v7  ;;  %6378 = vmatpush.bf16.msra.mxu2 %v8967_v6  ;;  %v96_v6 = vld [vmem:[#allocation2 + $0x8] sm:$0xff] }
  0x31   :  { %v8950_v12 = vld [vmem:[#allocation5 + $0x220] sm:$0xf]  ;;  %v13098_v13 = vld [vmem:[#allocation5 + $0x22c] sm:$0xf0]  ;;  %v8823_v19 = vor.u32 %v13066_v11, %v8822_v9  ;;  %6392 = vmatpush.bf16.msra.mxu3 %v9095_v10  ;;  %v128_v7 = vld [vmem:[#allocation2 + $0x108] sm:$0xff] }
  0x32   :  { %v9078_v14 = vld [vmem:[#allocation5 + $0x320] sm:$0xf]  ;;  %v13130_v15 = vld [vmem:[#allocation5 + $0x32c] sm:$0xf0]  ;;  %v8951_v20 = vor.u32 %v13098_v13, %v8950_v12  ;;  %6351 = vmatpush.bf16.msra.mxu0 %v8695_v16  ;;  %v98_v8 = vld [vmem:[#allocation2 + $0x18] sm:$0xff]  ;;  %v14348_v10 = vpack.c.bf16 %v128_v7, %v96_v6 }
  0x33   :  { %v8678_v17 = vld [vmem:[#allocation5] sm:$0xf]  ;;  %v13030_v18 = vld [vmem:[#allocation5 + $0xc] sm:$0xf0]  ;;  %v9079_v24 = vor.u32 %v13130_v15, %v9078_v14  ;;  %6365 = vmatpush.bf16.msra.mxu1 %v8823_v19  ;;  %v130_v11 = vld [vmem:[#allocation2 + $0x118] sm:$0xff] }
  0x34   :  { %v8806_v21 = vld [vmem:[#allocation5 + $0x100] sm:$0xf]  ;;  %v13062_v22 = vld [vmem:[#allocation5 + $0x10c] sm:$0xf0]  ;;  %v8679_v31 = vor.u32 %v13030_v18, %v8678_v17  ;;  %6379 = vmatpush.bf16.msra.mxu2 %v8951_v20  ;;  %v14350_v17 = vpack.c.bf16 %v130_v11, %v98_v8 }
  0x35   :  { %v8934_v23 = vld [vmem:[#allocation5 + $0x200] sm:$0xf]  ;;  %v13094_v25 = vld [vmem:[#allocation5 + $0x20c] sm:$0xf0]  ;;  %v8807_v35 = vor.u32 %v13062_v22, %v8806_v21  ;;  %6393 = vmatpush.bf16.msra.mxu3 %v9079_v24 }
  0x36   :  { %v9062_v26 = vld [vmem:[#allocation5 + $0x300] sm:$0xf]  ;;  %v13126_v27 = vld [vmem:[#allocation5 + $0x30c] sm:$0xf0]  ;;  %v8935_v36 = vor.u32 %v13094_v25, %v8934_v23  ;;  %6352 = vmatpush.bf16.msra.mxu0 %v8679_v31 }
  0x37   :  { %v9302_v28 = vld [vmem:[#allocation5 + $0x4e0] sm:$0xf]  ;;  %v13186_v29 = vld [vmem:[#allocation5 + $0x4ec] sm:$0xf0]  ;;  %v9063_v39 = vor.u32 %v13126_v27, %v9062_v26  ;;  %6366 = vmatpush.bf16.msra.mxu1 %v8807_v35 }
  0x38   :  { %v9430_v30 = vld [vmem:[#allocation5 + $0x5e0] sm:$0xf]  ;;  %v13218_v32 = vld [vmem:[#allocation5 + $0x5ec] sm:$0xf0]  ;;  %v9303_v40 = vor.u32 %v13186_v29, %v9302_v28  ;;  %6380 = vmatpush.bf16.msra.mxu2 %v8935_v36 }
  0x39   :  { %v9558_v33 = vld [vmem:[#allocation5 + $0x6e0] sm:$0xf]  ;;  %v13250_v34 = vld [vmem:[#allocation5 + $0x6ec] sm:$0xf0]  ;;  %v9431_v43 = vor.u32 %v13218_v32, %v9430_v30  ;;  %6394 = vmatpush.bf16.msra.mxu3 %v9063_v39 }
  0x3a   :  { %v9686_v37 = vld [vmem:[#allocation5 + $0x7e0] sm:$0xf]  ;;  %v13282_v38 = vld [vmem:[#allocation5 + $0x7ec] sm:$0xf0]  ;;  %v9559_v44 = vor.u32 %v13250_v34, %v9558_v33  ;;  %6401 = vmatpush.bf16.msrb.mxu0 %v9303_v40  ;;  %6367 = vmatmul.bf16.vlgmr.msra.gmra.mxu1 %v14348_v10 }
  0x3b   :  { %v9286_v41 = vld [vmem:[#allocation5 + $0x4c0] sm:$0xf]  ;;  %v13182_v42 = vld [vmem:[#allocation5 + $0x4cc] sm:$0xf0]  ;;  %v9687_v48 = vor.u32 %v13282_v38, %v9686_v37  ;;  %6415 = vmatpush.bf16.msrb.mxu1 %v9431_v43 }
  0x3c   :  { %v9414_v45 = vld [vmem:[#allocation5 + $0x5c0] sm:$0xf]  ;;  %v13214_v46 = vld [vmem:[#allocation5 + $0x5cc] sm:$0xf0]  ;;  %v9287_v55 = vor.u32 %v13182_v42, %v9286_v41  ;;  %6429 = vmatpush.bf16.msrb.mxu2 %v9559_v44  ;;  %6395 = vmatmul.bf16.vlgmr.msra.gmra.mxu3 %v14350_v17 }
  0x3d   :  { %v9542_v47 = vld [vmem:[#allocation5 + $0x6c0] sm:$0xf]  ;;  %v13246_v49 = vld [vmem:[#allocation5 + $0x6cc] sm:$0xf0]  ;;  %v9415_v60 = vor.u32 %v13214_v46, %v9414_v45  ;;  %6443 = vmatpush.bf16.msrb.mxu3 %v9687_v48 }
  0x3e   :  { %v9670_v50 = vld [vmem:[#allocation5 + $0x7c0] sm:$0xf]  ;;  %v13278_v51 = vld [vmem:[#allocation5 + $0x7cc] sm:$0xf0]  ;;  %v9543_v61 = vor.u32 %v13246_v49, %v9542_v47  ;;  %6402 = vmatpush.bf16.msrb.mxu0 %v9287_v55 }
  0x3f   :  { %v95_v52 = vld [vmem:[#allocation2] sm:$0xff]  ;;  %v97_v54 = vld [vmem:[#allocation2 + $0x10] sm:$0xff]  ;;  %v9671_v2 = vor.u32 %v13278_v51, %v9670_v50  ;;  %6416 = vmatpush.bf16.msrb.mxu1 %v9415_v60 }
  0x40   :  { %v127_v53 = vld [vmem:[#allocation2 + $0x100] sm:$0xff]  ;;  %v13178_v57 = vld [vmem:[#allocation5 + $0x4ac] sm:$0xf0]  ;;  %6430 = vmatpush.bf16.msrb.mxu2 %v9543_v61 }
  0x41   :  { %v9270_v56 = vld [vmem:[#allocation5 + $0x4a0] sm:$0xf]  ;;  %v14342_v58 = vpack.c.bf16 %v127_v53, %v95_v52  ;;  %v129_v59 = vld [vmem:[#allocation2 + $0x110] sm:$0xff]  ;;  %6444 = vmatpush.bf16.msrb.mxu3 %v9671_v2 }
  0x42   :  { %v9398_v62 = vld [vmem:[#allocation5 + $0x5a0] sm:$0xf]  ;;  %v13210_v63 = vld [vmem:[#allocation5 + $0x5ac] sm:$0xf0]  ;;  %v14344_v1 = vpack.c.bf16 %v129_v59, %v97_v54  ;;  %v9271_v9 = vor.u32 %v13178_v57, %v9270_v56 }
  0x43   :  { %v9526_v0 = vld [vmem:[#allocation5 + $0x6a0] sm:$0xf]  ;;  %v13242_v3 = vld [vmem:[#allocation5 + $0x6ac] sm:$0xf0]  ;;  %6353 = vmatmul.bf16.vlgmr.msra.gmra.mxu0 %v14342_v58  ;;  %v9399_v12 = vor.u32 %v13210_v63, %v9398_v62 }
  0x44   :  { %v9654_v4 = vld [vmem:[#allocation5 + $0x7a0] sm:$0xf]  ;;  %v13274_v5 = vld [vmem:[#allocation5 + $0x7ac] sm:$0xf0]  ;;  %6381 = vmatmul.bf16.vlgmr.msra.gmra.mxu2 %v14344_v1  ;;  %v9527_v13 = vor.u32 %v13242_v3, %v9526_v0  ;;  %6403 = vmatpush.bf16.msrb.mxu0 %v9271_v9 }
  0x45   :  { %v9254_v14 = vld [vmem:[#allocation5 + $0x480] sm:$0xf]  ;;  %v13174_v15 = vld [vmem:[#allocation5 + $0x48c] sm:$0xf0]  ;;  %v9655_v18 = vor.u32 %v13274_v5, %v9654_v4  ;;  %6417 = vmatpush.bf16.msrb.mxu1 %v9399_v12 }
  0x46   :  { %v9382_v16 = vld [vmem:[#allocation5 + $0x580] sm:$0xf]  ;;  %v13206_v19 = vld [vmem:[#allocation5 + $0x58c] sm:$0xf0]  ;;  %v9255_v24 = vor.u32 %v13174_v15, %v9254_v14  ;;  %6431 = vmatpush.bf16.msrb.mxu2 %v9527_v13 }
  0x47   :  { %v9510_v20 = vld [vmem:[#allocation5 + $0x680] sm:$0xf]  ;;  %v13238_v21 = vld [vmem:[#allocation5 + $0x68c] sm:$0xf0]  ;;  %v9383_v25 = vor.u32 %v13206_v19, %v9382_v16  ;;  %6445 = vmatpush.bf16.msrb.mxu3 %v9655_v18 }
  0x48   :  { %v9638_v22 = vld [vmem:[#allocation5 + $0x780] sm:$0xf]  ;;  %v13270_v23 = vld [vmem:[#allocation5 + $0x78c] sm:$0xf0]  ;;  %v9511_v26 = vor.u32 %v13238_v21, %v9510_v20  ;;  %6404 = vmatpush.bf16.msrb.mxu0 %v9255_v24 }
  0x49   :  { %v9238_v27 = vld [vmem:[#allocation5 + $0x460] sm:$0xf]  ;;  %v13170_v28 = vld [vmem:[#allocation5 + $0x46c] sm:$0xf0]  ;;  %v9639_v30 = vor.u32 %v13270_v23, %v9638_v22  ;;  %6418 = vmatpush.bf16.msrb.mxu1 %v9383_v25 }
  0x4a   :  { %v9366_v29 = vld [vmem:[#allocation5 + $0x560] sm:$0xf]  ;;  %v13202_v31 = vld [vmem:[#allocation5 + $0x56c] sm:$0xf0]  ;;  %v9239_v36 = vor.u32 %v13170_v28, %v9238_v27  ;;  %6432 = vmatpush.bf16.msrb.mxu2 %v9511_v26  ;;  %v100_v27 = vld [vmem:[#allocation2 + $0x28] sm:$0xff] }
  0x4b   :  { %v9494_v32 = vld [vmem:[#allocation5 + $0x660] sm:$0xf]  ;;  %v13234_v33 = vld [vmem:[#allocation5 + $0x66c] sm:$0xf0]  ;;  %v9367_v37 = vor.u32 %v13202_v31, %v9366_v29  ;;  %6446 = vmatpush.bf16.msrb.mxu3 %v9639_v30  ;;  %v132_v30 = vld [vmem:[#allocation2 + $0x128] sm:$0xff] }
  0x4c   :  { %v9622_v34 = vld [vmem:[#allocation5 + $0x760] sm:$0xf]  ;;  %v13266_v35 = vld [vmem:[#allocation5 + $0x76c] sm:$0xf0]  ;;  %v9495_v38 = vor.u32 %v13234_v33, %v9494_v32  ;;  %6405 = vmatpush.bf16.msrb.mxu0 %v9239_v36  ;;  %v102_v31 = vld [vmem:[#allocation2 + $0x38] sm:$0xff] }
  0x4d   :  { %v9222_v39 = vld [vmem:[#allocation5 + $0x440] sm:$0xf]  ;;  %v13166_v40 = vld [vmem:[#allocation5 + $0x44c] sm:$0xf0]  ;;  %v9623_v42 = vor.u32 %v13266_v35, %v9622_v34  ;;  %6419 = vmatpush.bf16.msrb.mxu1 %v9367_v37  ;;  %v134_v32 = vld [vmem:[#allocation2 + $0x138] sm:$0xff] }
  0x4e   :  { %v9350_v41 = vld [vmem:[#allocation5 + $0x540] sm:$0xf]  ;;  %v13198_v43 = vld [vmem:[#allocation5 + $0x54c] sm:$0xf0]  ;;  %v9223_v48 = vor.u32 %v13166_v40, %v9222_v39  ;;  %6433 = vmatpush.bf16.msrb.mxu2 %v9495_v38 }
  0x4f   :  { %v9478_v44 = vld [vmem:[#allocation5 + $0x640] sm:$0xf]  ;;  %v13230_v45 = vld [vmem:[#allocation5 + $0x64c] sm:$0xf0]  ;;  %v9351_v50 = vor.u32 %v13198_v43, %v9350_v41  ;;  %6447 = vmatpush.bf16.msrb.mxu3 %v9623_v42 }
  0x50   :  { %v9606_v46 = vld [vmem:[#allocation5 + $0x740] sm:$0xf]  ;;  %v13262_v47 = vld [vmem:[#allocation5 + $0x74c] sm:$0xf0]  ;;  %v9479_v51 = vor.u32 %v13230_v45, %v9478_v44  ;;  %6406 = vmatpush.bf16.msrb.mxu0 %v9223_v48  ;;  %v14358_v44 = vpack.c.bf16 %v132_v30, %v100_v27 }
  0x51   :  { %v9206_v49 = vld [vmem:[#allocation5 + $0x420] sm:$0xf]  ;;  %v13162_v52 = vld [vmem:[#allocation5 + $0x42c] sm:$0xf0]  ;;  %v9607_v55 = vor.u32 %v13262_v47, %v9606_v46  ;;  %6420 = vmatpush.bf16.msrb.mxu1 %v9351_v50  ;;  %v14360_v47 = vpack.c.bf16 %v134_v32, %v102_v31 }
  0x52   :  { %v9334_v53 = vld [vmem:[#allocation5 + $0x520] sm:$0xf]  ;;  %v13194_v54 = vld [vmem:[#allocation5 + $0x52c] sm:$0xf0]  ;;  %v9207_v63 = vor.u32 %v13162_v52, %v9206_v49  ;;  %6434 = vmatpush.bf16.msrb.mxu2 %v9479_v51 }
  0x53   :  { %v9462_v56 = vld [vmem:[#allocation5 + $0x620] sm:$0xf]  ;;  %v13226_v57 = vld [vmem:[#allocation5 + $0x62c] sm:$0xf0]  ;;  %v9335_v5 = vor.u32 %v13194_v54, %v9334_v53  ;;  %6448 = vmatpush.bf16.msrb.mxu3 %v9607_v55 }
  0x54   :  { %v9590_v59 = vld [vmem:[#allocation5 + $0x720] sm:$0xf]  ;;  %v13258_v60 = vld [vmem:[#allocation5 + $0x72c] sm:$0xf0]  ;;  %v9463_v6 = vor.u32 %v13226_v57, %v9462_v56  ;;  %6407 = vmatpush.bf16.msrb.mxu0 %v9207_v63 }
  0x55   :  { %v9190_v61 = vld [vmem:[#allocation5 + $0x400] sm:$0xf]  ;;  %v13158_v62 = vld [vmem:[#allocation5 + $0x40c] sm:$0xf0]  ;;  %v9591_v11 = vor.u32 %v13258_v60, %v9590_v59  ;;  %6421 = vmatpush.bf16.msrb.mxu1 %v9335_v5 }
  0x56   :  { %v9318_v0 = vld [vmem:[#allocation5 + $0x500] sm:$0xf]  ;;  %v13190_v2 = vld [vmem:[#allocation5 + $0x50c] sm:$0xf0]  ;;  %v9191_v19 = vor.u32 %v13158_v62, %v9190_v61  ;;  %6435 = vmatpush.bf16.msrb.mxu2 %v9463_v6 }
  0x57   :  { %v9446_v3 = vld [vmem:[#allocation5 + $0x600] sm:$0xf]  ;;  %v13222_v4 = vld [vmem:[#allocation5 + $0x60c] sm:$0xf0]  ;;  %v9319_v23 = vor.u32 %v13190_v2, %v9318_v0  ;;  %6449 = vmatpush.bf16.msrb.mxu3 %v9591_v11 }
  0x58   :  { %v9574_v7 = vld [vmem:[#allocation5 + $0x700] sm:$0xf]  ;;  %v13254_v8 = vld [vmem:[#allocation5 + $0x70c] sm:$0xf0]  ;;  %v9447_v24 = vor.u32 %v13222_v4, %v9446_v3  ;;  %6408 = vmatpush.bf16.msrb.mxu0 %v9191_v19 }
  0x59   :  { %v9814_v9 = vld [vmem:[#allocation5 + $0x8e0] sm:$0xf]  ;;  %v13314_v12 = vld [vmem:[#allocation5 + $0x8ec] sm:$0xf0]  ;;  %v9575_v28 = vor.u32 %v13254_v8, %v9574_v7  ;;  %6422 = vmatpush.bf16.msrb.mxu1 %v9319_v23 }
  0x5a   :  { %v9942_v13 = vld [vmem:[#allocation5 + $0x9e0] sm:$0xf]  ;;  %v13346_v14 = vld [vmem:[#allocation5 + $0x9ec] sm:$0xf0]  ;;  %v9815_v29 = vor.u32 %v13314_v12, %v9814_v9  ;;  %6436 = vmatpush.bf16.msrb.mxu2 %v9447_v24 }
  0x5b   :  { %v10070_v15 = vld [vmem:[#allocation5 + $0xae0] sm:$0xf]  ;;  %v13378_v16 = vld [vmem:[#allocation5 + $0xaec] sm:$0xf0]  ;;  %v9943_v33 = vor.u32 %v13346_v14, %v9942_v13  ;;  %6450 = vmatpush.bf16.msrb.mxu3 %v9575_v28 }
  0x5c   :  { %v10198_v18 = vld [vmem:[#allocation5 + $0xbe0] sm:$0xf]  ;;  %v13410_v20 = vld [vmem:[#allocation5 + $0xbec] sm:$0xf0]  ;;  %v10071_v34 = vor.u32 %v13378_v16, %v10070_v15  ;;  %6457 = vmatpush.bf16.msra.mxu0 %v9815_v29  ;;  %6423 = vmatmul.bf16.vlgmr.msrb.gmra.mxu1 %v14358_v44 }
  0x5d   :  { %v99_v21 = vld [vmem:[#allocation2 + $0x20] sm:$0xff]  ;;  %v101_v25 = vld [vmem:[#allocation2 + $0x30] sm:$0xff]  ;;  %v10199_v38 = vor.u32 %v13410_v20, %v10198_v18  ;;  %6471 = vmatpush.bf16.msra.mxu1 %v9943_v33 }
  0x5e   :  { %v131_v22 = vld [vmem:[#allocation2 + $0x120] sm:$0xff]  ;;  %v133_v26 = vld [vmem:[#allocation2 + $0x130] sm:$0xff]  ;;  %6485 = vmatpush.bf16.msra.mxu2 %v10071_v34  ;;  %6451 = vmatmul.bf16.vlgmr.msrb.gmra.mxu3 %v14360_v47 }
  0x5f   :  { %v9798_v35 = vld [vmem:[#allocation5 + $0x8c0] sm:$0xf]  ;;  %v13310_v36 = vld [vmem:[#allocation5 + $0x8cc] sm:$0xf0]  ;;  %v14354_v39 = vpack.c.bf16 %v131_v22, %v99_v21  ;;  %v14356_v43 = vpack.c.bf16 %v133_v26, %v101_v25  ;;  %6499 = vmatpush.bf16.msra.mxu3 %v10199_v38 }
  0x60   :  { %v9926_v37 = vld [vmem:[#allocation5 + $0x9c0] sm:$0xf]  ;;  %v13342_v40 = vld [vmem:[#allocation5 + $0x9cc] sm:$0xf0]  ;;  %v9799_v48 = vor.u32 %v13310_v36, %v9798_v35 }
  0x61   :  { %v10054_v41 = vld [vmem:[#allocation5 + $0xac0] sm:$0xf]  ;;  %v13374_v42 = vld [vmem:[#allocation5 + $0xacc] sm:$0xf0]  ;;  %v9927_v49 = vor.u32 %v13342_v40, %v9926_v37  ;;  %6409 = vmatmul.bf16.vlgmr.msrb.gmra.mxu0 %v14354_v39  ;;  %6437 = vmatmul.bf16.vlgmr.msrb.gmra.mxu2 %v14356_v43 }
  0x62   :  { %v10182_v45 = vld [vmem:[#allocation5 + $0xbc0] sm:$0xf]  ;;  %v13406_v46 = vld [vmem:[#allocation5 + $0xbcc] sm:$0xf0]  ;;  %v10055_v50 = vor.u32 %v13374_v42, %v10054_v41  ;;  %6458 = vmatpush.bf16.msra.mxu0 %v9799_v48 }
  0x63   :  { %v9782_v51 = vld [vmem:[#allocation5 + $0x8a0] sm:$0xf]  ;;  %v13306_v52 = vld [vmem:[#allocation5 + $0x8ac] sm:$0xf0]  ;;  %v10183_v54 = vor.u32 %v13406_v46, %v10182_v45  ;;  %6472 = vmatpush.bf16.msra.mxu1 %v9927_v49 }
  0x64   :  { %v9910_v53 = vld [vmem:[#allocation5 + $0x9a0] sm:$0xf]  ;;  %v13338_v55 = vld [vmem:[#allocation5 + $0x9ac] sm:$0xf0]  ;;  %v9783_v61 = vor.u32 %v13306_v52, %v9782_v51  ;;  %6486 = vmatpush.bf16.msra.mxu2 %v10055_v50 }
  0x65   :  { %v10038_v56 = vld [vmem:[#allocation5 + $0xaa0] sm:$0xf]  ;;  %v13370_v57 = vld [vmem:[#allocation5 + $0xaac] sm:$0xf0]  ;;  %v9911_v62 = vor.u32 %v13338_v55, %v9910_v53  ;;  %6500 = vmatpush.bf16.msra.mxu3 %v10183_v54 }
  0x66   :  { %v10166_v59 = vld [vmem:[#allocation5 + $0xba0] sm:$0xf]  ;;  %v13402_v60 = vld [vmem:[#allocation5 + $0xbac] sm:$0xf0]  ;;  %v10039_v63 = vor.u32 %v13370_v57, %v10038_v56  ;;  %6459 = vmatpush.bf16.msra.mxu0 %v9783_v61 }
  0x67   :  { %v9766_v0 = vld [vmem:[#allocation5 + $0x880] sm:$0xf]  ;;  %v13302_v2 = vld [vmem:[#allocation5 + $0x88c] sm:$0xf0]  ;;  %v10167_v4 = vor.u32 %v13402_v60, %v10166_v59  ;;  %6473 = vmatpush.bf16.msra.mxu1 %v9911_v62 }
  0x68   :  { %v9894_v3 = vld [vmem:[#allocation5 + $0x980] sm:$0xf]  ;;  %v13334_v5 = vld [vmem:[#allocation5 + $0x98c] sm:$0xf0]  ;;  %v9767_v11 = vor.u32 %v13302_v2, %v9766_v0  ;;  %6487 = vmatpush.bf16.msra.mxu2 %v10039_v63 }
  0x69   :  { %v10022_v6 = vld [vmem:[#allocation5 + $0xa80] sm:$0xf]  ;;  %v13366_v7 = vld [vmem:[#allocation5 + $0xa8c] sm:$0xf0]  ;;  %v9895_v12 = vor.u32 %v13334_v5, %v9894_v3  ;;  %6501 = vmatpush.bf16.msra.mxu3 %v10167_v4 }
  0x6a   :  { %v10150_v8 = vld [vmem:[#allocation5 + $0xb80] sm:$0xf]  ;;  %v13398_v9 = vld [vmem:[#allocation5 + $0xb8c] sm:$0xf0]  ;;  %v10023_v13 = vor.u32 %v13366_v7, %v10022_v6  ;;  %6460 = vmatpush.bf16.msra.mxu0 %v9767_v11 }
  0x6b   :  { %v9750_v14 = vld [vmem:[#allocation5 + $0x860] sm:$0xf]  ;;  %v13298_v15 = vld [vmem:[#allocation5 + $0x86c] sm:$0xf0]  ;;  %v10151_v18 = vor.u32 %v13398_v9, %v10150_v8  ;;  %6474 = vmatpush.bf16.msra.mxu1 %v9895_v12 }
  0x6c   :  { %v9878_v16 = vld [vmem:[#allocation5 + $0x960] sm:$0xf]  ;;  %v13330_v19 = vld [vmem:[#allocation5 + $0x96c] sm:$0xf0]  ;;  %v9751_v24 = vor.u32 %v13298_v15, %v9750_v14  ;;  %6488 = vmatpush.bf16.msra.mxu2 %v10023_v13 }
  0x6d   :  { %v10006_v20 = vld [vmem:[#allocation5 + $0xa60] sm:$0xf]  ;;  %v13362_v21 = vld [vmem:[#allocation5 + $0xa6c] sm:$0xf0]  ;;  %v9879_v25 = vor.u32 %v13330_v19, %v9878_v16  ;;  %6502 = vmatpush.bf16.msra.mxu3 %v10151_v18  ;;  %v104_v19 = vld [vmem:[#allocation2 + $0x48] sm:$0xff] }
  0x6e   :  { %v10134_v22 = vld [vmem:[#allocation5 + $0xb60] sm:$0xf]  ;;  %v13394_v23 = vld [vmem:[#allocation5 + $0xb6c] sm:$0xf0]  ;;  %v10007_v26 = vor.u32 %v13362_v21, %v10006_v20  ;;  %6461 = vmatpush.bf16.msra.mxu0 %v9751_v24  ;;  %v138_v24 = vld [vmem:[#allocation2 + $0x158] sm:$0xff] }
  0x6f   :  { %v9734_v27 = vld [vmem:[#allocation5 + $0x840] sm:$0xf]  ;;  %v13294_v28 = vld [vmem:[#allocation5 + $0x84c] sm:$0xf0]  ;;  %v10135_v30 = vor.u32 %v13394_v23, %v10134_v22  ;;  %6475 = vmatpush.bf16.msra.mxu1 %v9879_v25  ;;  %v136_v22 = vld [vmem:[#allocation2 + $0x148] sm:$0xff] }
  0x70   :  { %v9862_v29 = vld [vmem:[#allocation5 + $0x940] sm:$0xf]  ;;  %v13326_v31 = vld [vmem:[#allocation5 + $0x94c] sm:$0xf0]  ;;  %v9735_v36 = vor.u32 %v13294_v28, %v9734_v27  ;;  %6489 = vmatpush.bf16.msra.mxu2 %v10007_v26  ;;  %v106_v23 = vld [vmem:[#allocation2 + $0x58] sm:$0xff] }
  0x71   :  { %v9990_v32 = vld [vmem:[#allocation5 + $0xa40] sm:$0xf]  ;;  %v13358_v33 = vld [vmem:[#allocation5 + $0xa4c] sm:$0xf0]  ;;  %v9863_v38 = vor.u32 %v13326_v31, %v9862_v29  ;;  %6503 = vmatpush.bf16.msra.mxu3 %v10135_v30 }
  0x72   :  { %v10118_v34 = vld [vmem:[#allocation5 + $0xb40] sm:$0xf]  ;;  %v13390_v35 = vld [vmem:[#allocation5 + $0xb4c] sm:$0xf0]  ;;  %v9991_v40 = vor.u32 %v13358_v33, %v9990_v32  ;;  %6462 = vmatpush.bf16.msra.mxu0 %v9735_v36  ;;  %v14370_v36 = vpack.c.bf16 %v136_v22, %v104_v19 }
  0x73   :  { %v9718_v37 = vld [vmem:[#allocation5 + $0x820] sm:$0xf]  ;;  %v13290_v41 = vld [vmem:[#allocation5 + $0x82c] sm:$0xf0]  ;;  %v10119_v46 = vor.u32 %v13390_v35, %v10118_v34  ;;  %6476 = vmatpush.bf16.msra.mxu1 %v9863_v38 }
  0x74   :  { %v9846_v42 = vld [vmem:[#allocation5 + $0x920] sm:$0xf]  ;;  %v13322_v45 = vld [vmem:[#allocation5 + $0x92c] sm:$0xf0]  ;;  %v9719_v54 = vor.u32 %v13290_v41, %v9718_v37  ;;  %6490 = vmatpush.bf16.msra.mxu2 %v9991_v40  ;;  %v14372_v40 = vpack.c.bf16 %v138_v24, %v106_v23 }
  0x75   :  { %v9974_v48 = vld [vmem:[#allocation5 + $0xa20] sm:$0xf]  ;;  %v13354_v49 = vld [vmem:[#allocation5 + $0xa2c] sm:$0xf0]  ;;  %v9847_v60 = vor.u32 %v13322_v45, %v9846_v42  ;;  %6504 = vmatpush.bf16.msra.mxu3 %v10119_v46 }
  0x76   :  { %v10102_v50 = vld [vmem:[#allocation5 + $0xb20] sm:$0xf]  ;;  %v13386_v51 = vld [vmem:[#allocation5 + $0xb2c] sm:$0xf0]  ;;  %v9975_v61 = vor.u32 %v13354_v49, %v9974_v48  ;;  %6463 = vmatpush.bf16.msra.mxu0 %v9719_v54 }
  0x77   :  { %v9702_v52 = vld [vmem:[#allocation5 + $0x800] sm:$0xf]  ;;  %v13286_v53 = vld [vmem:[#allocation5 + $0x80c] sm:$0xf0]  ;;  %v10103_v2 = vor.u32 %v13386_v51, %v10102_v50  ;;  %6477 = vmatpush.bf16.msra.mxu1 %v9847_v60 }
  0x78   :  { %v9830_v55 = vld [vmem:[#allocation5 + $0x900] sm:$0xf]  ;;  %v13318_v56 = vld [vmem:[#allocation5 + $0x90c] sm:$0xf0]  ;;  %v9703_v9 = vor.u32 %v13286_v53, %v9702_v52  ;;  %6491 = vmatpush.bf16.msra.mxu2 %v9975_v61 }
  0x79   :  { %v9958_v57 = vld [vmem:[#allocation5 + $0xa00] sm:$0xf]  ;;  %v13350_v59 = vld [vmem:[#allocation5 + $0xa0c] sm:$0xf0]  ;;  %v9831_v14 = vor.u32 %v13318_v56, %v9830_v55  ;;  %6505 = vmatpush.bf16.msra.mxu3 %v10103_v2 }
  0x7a   :  { %v10086_v62 = vld [vmem:[#allocation5 + $0xb00] sm:$0xf]  ;;  %v13382_v63 = vld [vmem:[#allocation5 + $0xb0c] sm:$0xf0]  ;;  %v9959_v15 = vor.u32 %v13350_v59, %v9958_v57  ;;  %6464 = vmatpush.bf16.msra.mxu0 %v9703_v9 }
  0x7b   :  { %v10326_v0 = vld [vmem:[#allocation5 + $0xce0] sm:$0xf]  ;;  %v13442_v3 = vld [vmem:[#allocation5 + $0xcec] sm:$0xf0]  ;;  %v10087_v20 = vor.u32 %v13382_v63, %v10086_v62  ;;  %6478 = vmatpush.bf16.msra.mxu1 %v9831_v14 }
  0x7c   :  { %v10454_v4 = vld [vmem:[#allocation5 + $0xde0] sm:$0xf]  ;;  %v13474_v5 = vld [vmem:[#allocation5 + $0xdec] sm:$0xf0]  ;;  %v10327_v21 = vor.u32 %v13442_v3, %v10326_v0  ;;  %6492 = vmatpush.bf16.msra.mxu2 %v9959_v15 }
  0x7d   :  { %v10582_v6 = vld [vmem:[#allocation5 + $0xee0] sm:$0xf]  ;;  %v13506_v7 = vld [vmem:[#allocation5 + $0xeec] sm:$0xf0]  ;;  %v10455_v25 = vor.u32 %v13474_v5, %v10454_v4  ;;  %6506 = vmatpush.bf16.msra.mxu3 %v10087_v20 }
  0x7e   :  { %v10710_v8 = vld [vmem:[#allocation5 + $0xfe0] sm:$0xf]  ;;  %v13538_v11 = vld [vmem:[#allocation5 + $0xfec] sm:$0xf0]  ;;  %v10583_v26 = vor.u32 %v13506_v7, %v10582_v6  ;;  %6513 = vmatpush.bf16.msrb.mxu0 %v10327_v21  ;;  %6479 = vmatmul.bf16.vlgmr.msra.gmra.mxu1 %v14370_v36 }
  0x7f   :  { %v103_v12 = vld [vmem:[#allocation2 + $0x40] sm:$0xff]  ;;  %v105_v16 = vld [vmem:[#allocation2 + $0x50] sm:$0xff]  ;;  %v10711_v30 = vor.u32 %v13538_v11, %v10710_v8  ;;  %6527 = vmatpush.bf16.msrb.mxu1 %v10455_v25 }
  0x80   :  { %v135_v13 = vld [vmem:[#allocation2 + $0x140] sm:$0xff]  ;;  %v137_v18 = vld [vmem:[#allocation2 + $0x150] sm:$0xff]  ;;  %6541 = vmatpush.bf16.msrb.mxu2 %v10583_v26  ;;  %6507 = vmatmul.bf16.vlgmr.msra.gmra.mxu3 %v14372_v40 }
  0x81   :  { %v10310_v27 = vld [vmem:[#allocation5 + $0xcc0] sm:$0xf]  ;;  %v13438_v28 = vld [vmem:[#allocation5 + $0xccc] sm:$0xf0]  ;;  %v14366_v31 = vpack.c.bf16 %v135_v13, %v103_v12  ;;  %v14368_v35 = vpack.c.bf16 %v137_v18, %v105_v16  ;;  %6555 = vmatpush.bf16.msrb.mxu3 %v10711_v30 }
  0x82   :  { %v10438_v29 = vld [vmem:[#allocation5 + $0xdc0] sm:$0xf]  ;;  %v13470_v32 = vld [vmem:[#allocation5 + $0xdcc] sm:$0xf0]  ;;  %v10311_v41 = vor.u32 %v13438_v28, %v10310_v27 }
  0x83   :  { %v10566_v33 = vld [vmem:[#allocation5 + $0xec0] sm:$0xf]  ;;  %v13502_v34 = vld [vmem:[#allocation5 + $0xecc] sm:$0xf0]  ;;  %v10439_v42 = vor.u32 %v13470_v32, %v10438_v29  ;;  %6465 = vmatmul.bf16.vlgmr.msra.gmra.mxu0 %v14366_v31  ;;  %6493 = vmatmul.bf16.vlgmr.msra.gmra.mxu2 %v14368_v35 }
  0x84   :  { %v10694_v37 = vld [vmem:[#allocation5 + $0xfc0] sm:$0xf]  ;;  %v13534_v38 = vld [vmem:[#allocation5 + $0xfcc] sm:$0xf0]  ;;  %v10567_v45 = vor.u32 %v13502_v34, %v10566_v33  ;;  %6514 = vmatpush.bf16.msrb.mxu0 %v10311_v41 }
  0x85   :  { %v10294_v46 = vld [vmem:[#allocation5 + $0xca0] sm:$0xf]  ;;  %v13434_v48 = vld [vmem:[#allocation5 + $0xcac] sm:$0xf0]  ;;  %v10695_v50 = vor.u32 %v13534_v38, %v10694_v37  ;;  %6528 = vmatpush.bf16.msrb.mxu1 %v10439_v42 }
  0x86   :  { %v10422_v49 = vld [vmem:[#allocation5 + $0xda0] sm:$0xf]  ;;  %v13466_v51 = vld [vmem:[#allocation5 + $0xdac] sm:$0xf0]  ;;  %v10295_v56 = vor.u32 %v13434_v48, %v10294_v46  ;;  %6542 = vmatpush.bf16.msrb.mxu2 %v10567_v45 }
  0x87   :  { %v10550_v52 = vld [vmem:[#allocation5 + $0xea0] sm:$0xf]  ;;  %v13498_v53 = vld [vmem:[#allocation5 + $0xeac] sm:$0xf0]  ;;  %v10423_v57 = vor.u32 %v13466_v51, %v10422_v49  ;;  %6556 = vmatpush.bf16.msrb.mxu3 %v10695_v50 }
  0x88   :  { %v10678_v54 = vld [vmem:[#allocation5 + $0xfa0] sm:$0xf]  ;;  %v13530_v55 = vld [vmem:[#allocation5 + $0xfac] sm:$0xf0]  ;;  %v10551_v59 = vor.u32 %v13498_v53, %v10550_v52  ;;  %6515 = vmatpush.bf16.msrb.mxu0 %v10295_v56 }
  0x89   :  { %v10278_v60 = vld [vmem:[#allocation5 + $0xc80] sm:$0xf]  ;;  %v13430_v61 = vld [vmem:[#allocation5 + $0xc8c] sm:$0xf0]  ;;  %v10679_v63 = vor.u32 %v13530_v55, %v10678_v54  ;;  %6529 = vmatpush.bf16.msrb.mxu1 %v10423_v57 }
  0x8a   :  { %v10406_v62 = vld [vmem:[#allocation5 + $0xd80] sm:$0xf]  ;;  %v13462_v0 = vld [vmem:[#allocation5 + $0xd8c] sm:$0xf0]  ;;  %v10279_v6 = vor.u32 %v13430_v61, %v10278_v60  ;;  %6543 = vmatpush.bf16.msrb.mxu2 %v10551_v59 }
  0x8b   :  { %v10534_v2 = vld [vmem:[#allocation5 + $0xe80] sm:$0xf]  ;;  %v13494_v3 = vld [vmem:[#allocation5 + $0xe8c] sm:$0xf0]  ;;  %v10407_v7 = vor.u32 %v13462_v0, %v10406_v62  ;;  %6557 = vmatpush.bf16.msrb.mxu3 %v10679_v63 }
  0x8c   :  { %v10662_v4 = vld [vmem:[#allocation5 + $0xf80] sm:$0xf]  ;;  %v13526_v5 = vld [vmem:[#allocation5 + $0xf8c] sm:$0xf0]  ;;  %v10535_v8 = vor.u32 %v13494_v3, %v10534_v2  ;;  %6516 = vmatpush.bf16.msrb.mxu0 %v10279_v6 }
  0x8d   :  { %v10262_v9 = vld [vmem:[#allocation5 + $0xc60] sm:$0xf]  ;;  %v13426_v11 = vld [vmem:[#allocation5 + $0xc6c] sm:$0xf0]  ;;  %v10663_v13 = vor.u32 %v13526_v5, %v10662_v4  ;;  %6530 = vmatpush.bf16.msrb.mxu1 %v10407_v7 }
  0x8e   :  { %v10390_v12 = vld [vmem:[#allocation5 + $0xd60] sm:$0xf]  ;;  %v13458_v14 = vld [vmem:[#allocation5 + $0xd6c] sm:$0xf0]  ;;  %v10263_v20 = vor.u32 %v13426_v11, %v10262_v9  ;;  %6544 = vmatpush.bf16.msrb.mxu2 %v10535_v8 }
  0x8f   :  { %v10518_v15 = vld [vmem:[#allocation5 + $0xe60] sm:$0xf]  ;;  %v13490_v16 = vld [vmem:[#allocation5 + $0xe6c] sm:$0xf0]  ;;  %v10391_v21 = vor.u32 %v13458_v14, %v10390_v12  ;;  %6558 = vmatpush.bf16.msrb.mxu3 %v10663_v13 }
  0x90   :  { %v10646_v18 = vld [vmem:[#allocation5 + $0xf60] sm:$0xf]  ;;  %v13522_v19 = vld [vmem:[#allocation5 + $0xf6c] sm:$0xf0]  ;;  %v10519_v22 = vor.u32 %v13490_v16, %v10518_v15  ;;  %6517 = vmatpush.bf16.msrb.mxu0 %v10263_v20 }
  0x91   :  { %v10246_v23 = vld [vmem:[#allocation5 + $0xc40] sm:$0xf]  ;;  %v13422_v24 = vld [vmem:[#allocation5 + $0xc4c] sm:$0xf0]  ;;  %v10647_v26 = vor.u32 %v13522_v19, %v10646_v18  ;;  %6531 = vmatpush.bf16.msrb.mxu1 %v10391_v21  ;;  %v108_v19 = vld [vmem:[#allocation2 + $0x68] sm:$0xff] }
  0x92   :  { %v10374_v25 = vld [vmem:[#allocation5 + $0xd40] sm:$0xf]  ;;  %v13454_v27 = vld [vmem:[#allocation5 + $0xd4c] sm:$0xf0]  ;;  %v10247_v33 = vor.u32 %v13422_v24, %v10246_v23  ;;  %6545 = vmatpush.bf16.msrb.mxu2 %v10519_v22  ;;  %v140_v22 = vld [vmem:[#allocation2 + $0x168] sm:$0xff] }
  0x93   :  { %v10502_v28 = vld [vmem:[#allocation5 + $0xe40] sm:$0xf]  ;;  %v13486_v29 = vld [vmem:[#allocation5 + $0xe4c] sm:$0xf0]  ;;  %v10375_v37 = vor.u32 %v13454_v27, %v10374_v25  ;;  %6559 = vmatpush.bf16.msrb.mxu3 %v10647_v26  ;;  %v110_v23 = vld [vmem:[#allocation2 + $0x78] sm:$0xff] }
  0x94   :  { %v10630_v30 = vld [vmem:[#allocation5 + $0xf40] sm:$0xf]  ;;  %v13518_v32 = vld [vmem:[#allocation5 + $0xf4c] sm:$0xf0]  ;;  %v10503_v38 = vor.u32 %v13486_v29, %v10502_v28  ;;  %6518 = vmatpush.bf16.msrb.mxu0 %v10247_v33  ;;  %v142_v24 = vld [vmem:[#allocation2 + $0x178] sm:$0xff] }
  0x95   :  { %v10230_v34 = vld [vmem:[#allocation5 + $0xc20] sm:$0xf]  ;;  %v13418_v41 = vld [vmem:[#allocation5 + $0xc2c] sm:$0xf0]  ;;  %v10631_v46 = vor.u32 %v13518_v32, %v10630_v30  ;;  %6532 = vmatpush.bf16.msrb.mxu1 %v10375_v37 }
  0x96   :  { %v10358_v42 = vld [vmem:[#allocation5 + $0xd20] sm:$0xf]  ;;  %v13450_v45 = vld [vmem:[#allocation5 + $0xd2c] sm:$0xf0]  ;;  %v10231_v54 = vor.u32 %v13418_v41, %v10230_v34  ;;  %6546 = vmatpush.bf16.msrb.mxu2 %v10503_v38  ;;  %v14382_v41 = vpack.c.bf16 %v140_v22, %v108_v19 }
  0x97   :  { %v10486_v48 = vld [vmem:[#allocation5 + $0xe20] sm:$0xf]  ;;  %v13482_v49 = vld [vmem:[#allocation5 + $0xe2c] sm:$0xf0]  ;;  %v10359_v60 = vor.u32 %v13450_v45, %v10358_v42  ;;  %6560 = vmatpush.bf16.msrb.mxu3 %v10631_v46  ;;  %v14384_v46 = vpack.c.bf16 %v142_v24, %v110_v23 }
  0x98   :  { %v10614_v50 = vld [vmem:[#allocation5 + $0xf20] sm:$0xf]  ;;  %v13514_v51 = vld [vmem:[#allocation5 + $0xf2c] sm:$0xf0]  ;;  %v10487_v61 = vor.u32 %v13482_v49, %v10486_v48  ;;  %6519 = vmatpush.bf16.msrb.mxu0 %v10231_v54 }
  0x99   :  { %v10214_v52 = vld [vmem:[#allocation5 + $0xc00] sm:$0xf]  ;;  %v13414_v53 = vld [vmem:[#allocation5 + $0xc0c] sm:$0xf0]  ;;  %v10615_v2 = vor.u32 %v13514_v51, %v10614_v50  ;;  %6533 = vmatpush.bf16.msrb.mxu1 %v10359_v60 }
  0x9a   :  { %v10342_v55 = vld [vmem:[#allocation5 + $0xd00] sm:$0xf]  ;;  %v13446_v56 = vld [vmem:[#allocation5 + $0xd0c] sm:$0xf0]  ;;  %v10215_v9 = vor.u32 %v13414_v53, %v10214_v52  ;;  %6547 = vmatpush.bf16.msrb.mxu2 %v10487_v61 }
  0x9b   :  { %v10470_v57 = vld [vmem:[#allocation5 + $0xe00] sm:$0xf]  ;;  %v13478_v59 = vld [vmem:[#allocation5 + $0xe0c] sm:$0xf0]  ;;  %v10343_v14 = vor.u32 %v13446_v56, %v10342_v55  ;;  %6561 = vmatpush.bf16.msrb.mxu3 %v10615_v2 }
  0x9c   :  { %v10598_v62 = vld [vmem:[#allocation5 + $0xf00] sm:$0xf]  ;;  %v13510_v63 = vld [vmem:[#allocation5 + $0xf0c] sm:$0xf0]  ;;  %v10471_v15 = vor.u32 %v13478_v59, %v10470_v57  ;;  %6520 = vmatpush.bf16.msrb.mxu0 %v10215_v9 }
  0x9d   :  { %v10838_v0 = vld [vmem:[#allocation5 + $0x10e0] sm:$0xf]  ;;  %v13570_v3 = vld [vmem:[#allocation5 + $0x10ec] sm:$0xf0]  ;;  %v10599_v20 = vor.u32 %v13510_v63, %v10598_v62  ;;  %6534 = vmatpush.bf16.msrb.mxu1 %v10343_v14 }
  0x9e   :  { %v10966_v4 = vld [vmem:[#allocation5 + $0x11e0] sm:$0xf]  ;;  %v13602_v5 = vld [vmem:[#allocation5 + $0x11ec] sm:$0xf0]  ;;  %v10839_v21 = vor.u32 %v13570_v3, %v10838_v0  ;;  %6548 = vmatpush.bf16.msrb.mxu2 %v10471_v15 }
  0x9f   :  { %v11094_v6 = vld [vmem:[#allocation5 + $0x12e0] sm:$0xf]  ;;  %v13634_v7 = vld [vmem:[#allocation5 + $0x12ec] sm:$0xf0]  ;;  %v10967_v25 = vor.u32 %v13602_v5, %v10966_v4  ;;  %6562 = vmatpush.bf16.msrb.mxu3 %v10599_v20 }
  0xa0   :  { %v11222_v8 = vld [vmem:[#allocation5 + $0x13e0] sm:$0xf]  ;;  %v13666_v11 = vld [vmem:[#allocation5 + $0x13ec] sm:$0xf0]  ;;  %v11095_v26 = vor.u32 %v13634_v7, %v11094_v6  ;;  %6569 = vmatpush.bf16.msra.mxu0 %v10839_v21  ;;  %6535 = vmatmul.bf16.vlgmr.msrb.gmra.mxu1 %v14382_v41 }
  0xa1   :  { %v107_v12 = vld [vmem:[#allocation2 + $0x60] sm:$0xff]  ;;  %v109_v16 = vld [vmem:[#allocation2 + $0x70] sm:$0xff]  ;;  %v11223_v30 = vor.u32 %v13666_v11, %v11222_v8  ;;  %6583 = vmatpush.bf16.msra.mxu1 %v10967_v25 }
  0xa2   :  { %v139_v13 = vld [vmem:[#allocation2 + $0x160] sm:$0xff]  ;;  %v141_v18 = vld [vmem:[#allocation2 + $0x170] sm:$0xff]  ;;  %6597 = vmatpush.bf16.msra.mxu2 %v11095_v26  ;;  %6563 = vmatmul.bf16.vlgmr.msrb.gmra.mxu3 %v14384_v46 }
  0xa3   :  { %v10822_v27 = vld [vmem:[#allocation5 + $0x10c0] sm:$0xf]  ;;  %v13566_v28 = vld [vmem:[#allocation5 + $0x10cc] sm:$0xf0]  ;;  %v14378_v32 = vpack.c.bf16 %v139_v13, %v107_v12  ;;  %v14380_v38 = vpack.c.bf16 %v141_v18, %v109_v16  ;;  %6611 = vmatpush.bf16.msra.mxu3 %v11223_v30 }
  0xa4   :  { %v10950_v29 = vld [vmem:[#allocation5 + $0x11c0] sm:$0xf]  ;;  %v13598_v33 = vld [vmem:[#allocation5 + $0x11cc] sm:$0xf0]  ;;  %v10823_v48 = vor.u32 %v13566_v28, %v10822_v27 }
  0xa5   :  { %v11078_v34 = vld [vmem:[#allocation5 + $0x12c0] sm:$0xf]  ;;  %v13630_v37 = vld [vmem:[#allocation5 + $0x12cc] sm:$0xf0]  ;;  %v10951_v49 = vor.u32 %v13598_v33, %v10950_v29  ;;  %6521 = vmatmul.bf16.vlgmr.msrb.gmra.mxu0 %v14378_v32  ;;  %6549 = vmatmul.bf16.vlgmr.msrb.gmra.mxu2 %v14380_v38 }
  0xa6   :  { %v11206_v42 = vld [vmem:[#allocation5 + $0x13c0] sm:$0xf]  ;;  %v13662_v45 = vld [vmem:[#allocation5 + $0x13cc] sm:$0xf0]  ;;  %v11079_v50 = vor.u32 %v13630_v37, %v11078_v34  ;;  %6570 = vmatpush.bf16.msra.mxu0 %v10823_v48 }
  0xa7   :  { %v10806_v51 = vld [vmem:[#allocation5 + $0x10a0] sm:$0xf]  ;;  %v13562_v52 = vld [vmem:[#allocation5 + $0x10ac] sm:$0xf0]  ;;  %v11207_v54 = vor.u32 %v13662_v45, %v11206_v42  ;;  %6584 = vmatpush.bf16.msra.mxu1 %v10951_v49 }
  0xa8   :  { %v10934_v53 = vld [vmem:[#allocation5 + $0x11a0] sm:$0xf]  ;;  %v13594_v55 = vld [vmem:[#allocation5 + $0x11ac] sm:$0xf0]  ;;  %v10807_v61 = vor.u32 %v13562_v52, %v10806_v51  ;;  %6598 = vmatpush.bf16.msra.mxu2 %v11079_v50 }
  0xa9   :  { %v11062_v56 = vld [vmem:[#allocation5 + $0x12a0] sm:$0xf]  ;;  %v13626_v57 = vld [vmem:[#allocation5 + $0x12ac] sm:$0xf0]  ;;  %v10935_v62 = vor.u32 %v13594_v55, %v10934_v53  ;;  %6612 = vmatpush.bf16.msra.mxu3 %v11207_v54 }
  0xaa   :  { %v11190_v59 = vld [vmem:[#allocation5 + $0x13a0] sm:$0xf]  ;;  %v13658_v60 = vld [vmem:[#allocation5 + $0x13ac] sm:$0xf0]  ;;  %v11063_v63 = vor.u32 %v13626_v57, %v11062_v56  ;;  %6571 = vmatpush.bf16.msra.mxu0 %v10807_v61 }
  0xab   :  { %v10790_v0 = vld [vmem:[#allocation5 + $0x1080] sm:$0xf]  ;;  %v13558_v2 = vld [vmem:[#allocation5 + $0x108c] sm:$0xf0]  ;;  %v11191_v4 = vor.u32 %v13658_v60, %v11190_v59  ;;  %6585 = vmatpush.bf16.msra.mxu1 %v10935_v62 }
  0xac   :  { %v10918_v3 = vld [vmem:[#allocation5 + $0x1180] sm:$0xf]  ;;  %v13590_v5 = vld [vmem:[#allocation5 + $0x118c] sm:$0xf0]  ;;  %v10791_v11 = vor.u32 %v13558_v2, %v10790_v0  ;;  %6599 = vmatpush.bf16.msra.mxu2 %v11063_v63 }
  0xad   :  { %v11046_v6 = vld [vmem:[#allocation5 + $0x1280] sm:$0xf]  ;;  %v13622_v7 = vld [vmem:[#allocation5 + $0x128c] sm:$0xf0]  ;;  %v10919_v12 = vor.u32 %v13590_v5, %v10918_v3  ;;  %6613 = vmatpush.bf16.msra.mxu3 %v11191_v4 }
  0xae   :  { %v11174_v8 = vld [vmem:[#allocation5 + $0x1380] sm:$0xf]  ;;  %v13654_v9 = vld [vmem:[#allocation5 + $0x138c] sm:$0xf0]  ;;  %v11047_v13 = vor.u32 %v13622_v7, %v11046_v6  ;;  %6572 = vmatpush.bf16.msra.mxu0 %v10791_v11 }
  0xaf   :  { %v10774_v14 = vld [vmem:[#allocation5 + $0x1060] sm:$0xf]  ;;  %v13554_v15 = vld [vmem:[#allocation5 + $0x106c] sm:$0xf0]  ;;  %v11175_v18 = vor.u32 %v13654_v9, %v11174_v8  ;;  %6586 = vmatpush.bf16.msra.mxu1 %v10919_v12 }
  0xb0   :  { %v10902_v16 = vld [vmem:[#allocation5 + $0x1160] sm:$0xf]  ;;  %v13586_v19 = vld [vmem:[#allocation5 + $0x116c] sm:$0xf0]  ;;  %v10775_v24 = vor.u32 %v13554_v15, %v10774_v14  ;;  %6600 = vmatpush.bf16.msra.mxu2 %v11047_v13 }
  0xb1   :  { %v11030_v20 = vld [vmem:[#allocation5 + $0x1260] sm:$0xf]  ;;  %v13618_v21 = vld [vmem:[#allocation5 + $0x126c] sm:$0xf0]  ;;  %v10903_v25 = vor.u32 %v13586_v19, %v10902_v16  ;;  %6614 = vmatpush.bf16.msra.mxu3 %v11175_v18 }
  0xb2   :  { %v11158_v22 = vld [vmem:[#allocation5 + $0x1360] sm:$0xf]  ;;  %v13650_v23 = vld [vmem:[#allocation5 + $0x136c] sm:$0xf0]  ;;  %v11031_v26 = vor.u32 %v13618_v21, %v11030_v20  ;;  %6573 = vmatpush.bf16.msra.mxu0 %v10775_v24 }
  0xb3   :  { %v10758_v27 = vld [vmem:[#allocation5 + $0x1040] sm:$0xf]  ;;  %v13550_v28 = vld [vmem:[#allocation5 + $0x104c] sm:$0xf0]  ;;  %v11159_v30 = vor.u32 %v13650_v23, %v11158_v22  ;;  %6587 = vmatpush.bf16.msra.mxu1 %v10903_v25 }
  0xb4   :  { %v10886_v29 = vld [vmem:[#allocation5 + $0x1140] sm:$0xf]  ;;  %v13582_v33 = vld [vmem:[#allocation5 + $0x114c] sm:$0xf0]  ;;  %v10759_v48 = vor.u32 %v13550_v28, %v10758_v27  ;;  %6601 = vmatpush.bf16.msra.mxu2 %v11031_v26  ;;  %v112_v27 = vld [vmem:[#allocation2 + $0x88] sm:$0xff] }
  0xb5   :  { %v11014_v34 = vld [vmem:[#allocation5 + $0x1240] sm:$0xf]  ;;  %v13614_v37 = vld [vmem:[#allocation5 + $0x124c] sm:$0xf0]  ;;  %v10887_v50 = vor.u32 %v13582_v33, %v10886_v29  ;;  %6615 = vmatpush.bf16.msra.mxu3 %v11159_v30  ;;  %v144_v30 = vld [vmem:[#allocation2 + $0x188] sm:$0xff] }
  0xb6   :  { %v11142_v42 = vld [vmem:[#allocation5 + $0x1340] sm:$0xf]  ;;  %v13646_v45 = vld [vmem:[#allocation5 + $0x134c] sm:$0xf0]  ;;  %v11015_v51 = vor.u32 %v13614_v37, %v11014_v34  ;;  %6574 = vmatpush.bf16.msra.mxu0 %v10759_v48  ;;  %v114_v33 = vld [vmem:[#allocation2 + $0x98] sm:$0xff] }
  0xb7   :  { %v10742_v49 = vld [vmem:[#allocation5 + $0x1020] sm:$0xf]  ;;  %v13546_v52 = vld [vmem:[#allocation5 + $0x102c] sm:$0xf0]  ;;  %v11143_v55 = vor.u32 %v13646_v45, %v11142_v42  ;;  %6588 = vmatpush.bf16.msra.mxu1 %v10887_v50  ;;  %v146_v34 = vld [vmem:[#allocation2 + $0x198] sm:$0xff] }
  0xb8   :  { %v10870_v53 = vld [vmem:[#allocation5 + $0x1120] sm:$0xf]  ;;  %v13578_v54 = vld [vmem:[#allocation5 + $0x112c] sm:$0xf0]  ;;  %v10743_v63 = vor.u32 %v13546_v52, %v10742_v49  ;;  %6602 = vmatpush.bf16.msra.mxu2 %v11015_v51 }
  0xb9   :  { %v10998_v56 = vld [vmem:[#allocation5 + $0x1220] sm:$0xf]  ;;  %v13610_v57 = vld [vmem:[#allocation5 + $0x122c] sm:$0xf0]  ;;  %v10871_v5 = vor.u32 %v13578_v54, %v10870_v53  ;;  %6616 = vmatpush.bf16.msra.mxu3 %v11143_v55 }
  0xba   :  { %v11126_v59 = vld [vmem:[#allocation5 + $0x1320] sm:$0xf]  ;;  %v13642_v60 = vld [vmem:[#allocation5 + $0x132c] sm:$0xf0]  ;;  %v10999_v6 = vor.u32 %v13610_v57, %v10998_v56  ;;  %6575 = vmatpush.bf16.msra.mxu0 %v10743_v63  ;;  %v14394_v56 = vpack.c.bf16 %v144_v30, %v112_v27 }
  0xbb   :  { %v10726_v61 = vld [vmem:[#allocation5 + $0x1000] sm:$0xf]  ;;  %v13542_v62 = vld [vmem:[#allocation5 + $0x100c] sm:$0xf0]  ;;  %v11127_v11 = vor.u32 %v13642_v60, %v11126_v59  ;;  %6589 = vmatpush.bf16.msra.mxu1 %v10871_v5  ;;  %v14396_v60 = vpack.c.bf16 %v146_v34, %v114_v33 }
  0xbc   :  { %v10854_v0 = vld [vmem:[#allocation5 + $0x1100] sm:$0xf]  ;;  %v13574_v2 = vld [vmem:[#allocation5 + $0x110c] sm:$0xf0]  ;;  %v10727_v19 = vor.u32 %v13542_v62, %v10726_v61  ;;  %6603 = vmatpush.bf16.msra.mxu2 %v10999_v6 }
  0xbd   :  { %v10982_v3 = vld [vmem:[#allocation5 + $0x1200] sm:$0xf]  ;;  %v13606_v4 = vld [vmem:[#allocation5 + $0x120c] sm:$0xf0]  ;;  %v10855_v23 = vor.u32 %v13574_v2, %v10854_v0  ;;  %6617 = vmatpush.bf16.msra.mxu3 %v11127_v11  ;;  %15017 = vst [vmem:[#allocation16_spill] sm:$0xff] %v14396_v60 }
  0xbe   :  { %v11110_v7 = vld [vmem:[#allocation5 + $0x1300] sm:$0xf]  ;;  %v13638_v8 = vld [vmem:[#allocation5 + $0x130c] sm:$0xf0]  ;;  %v10983_v24 = vor.u32 %v13606_v4, %v10982_v3  ;;  %6576 = vmatpush.bf16.msra.mxu0 %v10727_v19 }
  0xbf   :  { %v11350_v9 = vld [vmem:[#allocation5 + $0x14e0] sm:$0xf]  ;;  %v13698_v12 = vld [vmem:[#allocation5 + $0x14ec] sm:$0xf0]  ;;  %v11111_v28 = vor.u32 %v13638_v8, %v11110_v7  ;;  %6590 = vmatpush.bf16.msra.mxu1 %v10855_v23 }
  0xc0   :  { %v11478_v13 = vld [vmem:[#allocation5 + $0x15e0] sm:$0xf]  ;;  %v13730_v14 = vld [vmem:[#allocation5 + $0x15ec] sm:$0xf0]  ;;  %v11351_v29 = vor.u32 %v13698_v12, %v11350_v9  ;;  %6604 = vmatpush.bf16.msra.mxu2 %v10983_v24 }
  0xc1   :  { %v11606_v15 = vld [vmem:[#allocation5 + $0x16e0] sm:$0xf]  ;;  %v13762_v16 = vld [vmem:[#allocation5 + $0x16ec] sm:$0xf0]  ;;  %v11479_v37 = vor.u32 %v13730_v14, %v11478_v13  ;;  %6618 = vmatpush.bf16.msra.mxu3 %v11111_v28 }
  0xc2   :  { %v11734_v18 = vld [vmem:[#allocation5 + $0x17e0] sm:$0xf]  ;;  %v13794_v20 = vld [vmem:[#allocation5 + $0x17ec] sm:$0xf0]  ;;  %v11607_v42 = vor.u32 %v13762_v16, %v11606_v15  ;;  %6625 = vmatpush.bf16.msrb.mxu0 %v11351_v29  ;;  %6591 = vmatmul.bf16.vlgmr.msra.gmra.mxu1 %v14394_v56 }
  0xc3   :  { %v111_v21 = vld [vmem:[#allocation2 + $0x80] sm:$0xff]  ;;  %v113_v25 = vld [vmem:[#allocation2 + $0x90] sm:$0xff]  ;;  %v11735_v50 = vor.u32 %v13794_v20, %v11734_v18  ;;  %6639 = vmatpush.bf16.msrb.mxu1 %v11479_v37 }
  0xc4   :  { %v143_v22 = vld [vmem:[#allocation2 + $0x180] sm:$0xff]  ;;  %v145_v26 = vld [vmem:[#allocation2 + $0x190] sm:$0xff]  ;;  %6653 = vmatpush.bf16.msrb.mxu2 %v11607_v42  ;;  %6619 = vmatmul.bf16.vlgmr.msra.gmra.mxu3 %v14396_v60 }
  0xc5   :  { %v11334_v45 = vld [vmem:[#allocation5 + $0x14c0] sm:$0xf]  ;;  %v13694_v48 = vld [vmem:[#allocation5 + $0x14cc] sm:$0xf0]  ;;  %v14390_v51 = vpack.c.bf16 %v143_v22, %v111_v21  ;;  %v14392_v55 = vpack.c.bf16 %v145_v26, %v113_v25  ;;  %6667 = vmatpush.bf16.msrb.mxu3 %v11735_v50  ;;  %v6354_v26 = vpop.f32.mrf.mxu0 }
  0xc6   :  { %v11462_v49 = vld [vmem:[#allocation5 + $0x15c0] sm:$0xf]  ;;  %v13726_v52 = vld [vmem:[#allocation5 + $0x15cc] sm:$0xf0]  ;;  %v11335_v61 = vor.u32 %v13694_v48, %v11334_v45 }
  0xc7   :  { %v11590_v53 = vld [vmem:[#allocation5 + $0x16c0] sm:$0xf]  ;;  %v13758_v54 = vld [vmem:[#allocation5 + $0x16cc] sm:$0xf0]  ;;  %v11463_v63 = vor.u32 %v13726_v52, %v11462_v49  ;;  %6577 = vmatmul.bf16.vlgmr.msra.gmra.mxu0 %v14390_v51  ;;  %6605 = vmatmul.bf16.vlgmr.msra.gmra.mxu2 %v14392_v55 }
  0xc8   :  { %v11718_v57 = vld [vmem:[#allocation5 + $0x17c0] sm:$0xf]  ;;  %v13790_v59 = vld [vmem:[#allocation5 + $0x17cc] sm:$0xf0]  ;;  %v11591_v0 = vor.u32 %v13758_v54, %v11590_v53  ;;  %6626 = vmatpush.bf16.msrb.mxu0 %v11335_v61  ;;  %v6368_v53 = vpop.f32.mrf.mxu1 }
  0xc9   :  { %v11318_v62 = vld [vmem:[#allocation5 + $0x14a0] sm:$0xf]  ;;  %v13690_v2 = vld [vmem:[#allocation5 + $0x14ac] sm:$0xf0]  ;;  %v11719_v5 = vor.u32 %v13790_v59, %v11718_v57  ;;  %6640 = vmatpush.bf16.msrb.mxu1 %v11463_v63 }
  0xca   :  { %v11446_v3 = vld [vmem:[#allocation5 + $0x15a0] sm:$0xf]  ;;  %v13722_v6 = vld [vmem:[#allocation5 + $0x15ac] sm:$0xf0]  ;;  %v11319_v12 = vor.u32 %v13690_v2, %v11318_v62  ;;  %6654 = vmatpush.bf16.msrb.mxu2 %v11591_v0 }
  0xcb   :  { %v14398_v4 = vld [vmem:[#allocation7] sm:$0xf]  ;;  %v13754_v8 = vld [vmem:[#allocation5 + $0x16ac] sm:$0xf0]  ;;  %v11447_v14 = vor.u32 %v13722_v6, %v11446_v3  ;;  %6668 = vmatpush.bf16.msrb.mxu3 %v11719_v5 }
  0xcc   :  { %15018 = vst [vmem:[#allocation17_spill] sm:$0xff] %v14398_v4  ;;  %v11574_v7 = vld [vmem:[#allocation5 + $0x16a0] sm:$0xf]  ;;  %v13786_v11 = vld [vmem:[#allocation5 + $0x17ac] sm:$0xf0]  ;;  %v15002_v13 = vperm.slane %v14398_v4, 0  ;;  %6627 = vmatpush.bf16.msrb.mxu0 %v11319_v12 }
  0xcd   :  { %v11702_v9 = vld [vmem:[#allocation5 + $0x17a0] sm:$0xf]  ;;  %v11575_v15 = vor.u32 %v13754_v8, %v11574_v7  ;;  %v13686_v18 = vld [vmem:[#allocation5 + $0x148c] sm:$0xf0]  ;;  %6641 = vmatpush.bf16.msrb.mxu1 %v11447_v14  ;;  %v6382_v7 = vpop.f32.mrf.mxu2 }
  0xce   :  { %v11302_v16 = vld [vmem:[#allocation5 + $0x1480] sm:$0xf]  ;;  %v11703_v20 = vor.u32 %v13786_v11, %v11702_v9  ;;  %v13718_v21 = vld [vmem:[#allocation5 + $0x158c] sm:$0xf0]  ;;  %v6355_v28 = vadd.f32 %v6354_v26, %v15002_v13 }
  0xcf   :  { %v11430_v19 = vld [vmem:[#allocation5 + $0x1580] sm:$0xf]  ;;  %v13750_v23 = vld [vmem:[#allocation5 + $0x168c] sm:$0xf0]  ;;  %v11303_v27 = vor.u32 %v13686_v18, %v11302_v16  ;;  %6655 = vmatpush.bf16.msrb.mxu2 %v11575_v15 }
  0xd0   :  { %v11558_v22 = vld [vmem:[#allocation5 + $0x1680] sm:$0xf]  ;;  %v13782_v25 = vld [vmem:[#allocation5 + $0x178c] sm:$0xf0]  ;;  %v11431_v29 = vor.u32 %v13718_v21, %v11430_v19  ;;  %6669 = vmatpush.bf16.msrb.mxu3 %v11703_v20  ;;  %v6369_v57 = vadd.f32 %v6368_v53, %v6355_v28 }
  0xd1   :  { %v11686_v24 = vld [vmem:[#allocation5 + $0x1780] sm:$0xf]  ;;  %v11559_v30 = vor.u32 %v13750_v23, %v11558_v22  ;;  %v13682_v34 = vld [vmem:[#allocation5 + $0x146c] sm:$0xf0]  ;;  %6628 = vmatpush.bf16.msrb.mxu0 %v11303_v27 }
  0xd2   :  { %v11286_v33 = vld [vmem:[#allocation5 + $0x1460] sm:$0xf]  ;;  %v11687_v42 = vor.u32 %v13782_v25, %v11686_v24  ;;  %v13714_v45 = vld [vmem:[#allocation5 + $0x156c] sm:$0xf0]  ;;  %6642 = vmatpush.bf16.msrb.mxu1 %v11431_v29  ;;  %v6383_v11 = vadd.f32 %v6382_v7, %v6369_v57  ;;  %v6396_v25 = vpop.f32.mrf.mxu3 }
  0xd3   :  { %v11414_v37 = vld [vmem:[#allocation5 + $0x1560] sm:$0xf]  ;;  %v13746_v49 = vld [vmem:[#allocation5 + $0x166c] sm:$0xf0]  ;;  %v11287_v54 = vor.u32 %v13682_v34, %v11286_v33  ;;  %6656 = vmatpush.bf16.msrb.mxu2 %v11559_v30 }
  0xd4   :  { %v11542_v48 = vld [vmem:[#allocation5 + $0x1660] sm:$0xf]  ;;  %v13778_v52 = vld [vmem:[#allocation5 + $0x176c] sm:$0xf0]  ;;  %v11415_v59 = vor.u32 %v13714_v45, %v11414_v37  ;;  %6670 = vmatpush.bf16.msrb.mxu3 %v11687_v42  ;;  %v14407_v29 = vadd.f32 %v6396_v25, %v6383_v11  ;;  %v116_v11 = vld [vmem:[#allocation2 + $0xa8] sm:$0xff] }
  0xd5   :  { %v11670_v50 = vld [vmem:[#allocation5 + $0x1760] sm:$0xf]  ;;  %v11543_v61 = vor.u32 %v13746_v49, %v11542_v48  ;;  %v13678_v63 = vld [vmem:[#allocation5 + $0x144c] sm:$0xf0]  ;;  %6629 = vmatpush.bf16.msrb.mxu0 %v11287_v54 }
  0xd6   :  { %v11270_v62 = vld [vmem:[#allocation5 + $0x1440] sm:$0xf]  ;;  %v11671_v2 = vor.u32 %v13778_v52, %v11670_v50  ;;  %v13710_v3 = vld [vmem:[#allocation5 + $0x154c] sm:$0xf0]  ;;  %6643 = vmatpush.bf16.msrb.mxu1 %v11415_v59 }
  0xd7   :  { %v11398_v0 = vld [vmem:[#allocation5 + $0x1540] sm:$0xf]  ;;  %v13742_v6 = vld [vmem:[#allocation5 + $0x164c] sm:$0xf0]  ;;  %v11271_v12 = vor.u32 %v13678_v63, %v11270_v62  ;;  %6657 = vmatpush.bf16.msrb.mxu2 %v11543_v61 }
  0xd8   :  { %v11526_v5 = vld [vmem:[#allocation5 + $0x1640] sm:$0xf]  ;;  %v13774_v9 = vld [vmem:[#allocation5 + $0x174c] sm:$0xf0]  ;;  %v11399_v15 = vor.u32 %v13710_v3, %v11398_v0  ;;  %6671 = vmatpush.bf16.msrb.mxu3 %v11671_v2 }
  0xd9   :  { %v11654_v8 = vld [vmem:[#allocation5 + $0x1740] sm:$0xf]  ;;  %v11527_v16 = vor.u32 %v13742_v6, %v11526_v5  ;;  %v13674_v18 = vld [vmem:[#allocation5 + $0x142c] sm:$0xf0]  ;;  %6630 = vmatpush.bf16.msrb.mxu0 %v11271_v12 }
  0xda   :  { %v11254_v14 = vld [vmem:[#allocation5 + $0x1420] sm:$0xf]  ;;  %v13706_v20 = vld [vmem:[#allocation5 + $0x152c] sm:$0xf0]  ;;  %v11655_v21 = vor.u32 %v13774_v9, %v11654_v8  ;;  %6644 = vmatpush.bf16.msrb.mxu1 %v11399_v15  ;;  %v148_v15 = vld [vmem:[#allocation2 + $0x1a8] sm:$0xff] }
  0xdb   :  { %v11382_v19 = vld [vmem:[#allocation5 + $0x1520] sm:$0xf]  ;;  %v13738_v23 = vld [vmem:[#allocation5 + $0x162c] sm:$0xf0]  ;;  %v11255_v30 = vor.u32 %v13674_v18, %v11254_v14  ;;  %6658 = vmatpush.bf16.msrb.mxu2 %v11527_v16  ;;  %v118_v16 = vld [vmem:[#allocation2 + $0xb8] sm:$0xff] }
  0xdc   :  { %v11510_v22 = vld [vmem:[#allocation5 + $0x1620] sm:$0xf]  ;;  %v13770_v26 = vld [vmem:[#allocation5 + $0x172c] sm:$0xf0]  ;;  %v11383_v45 = vor.u32 %v13706_v20, %v11382_v19  ;;  %6672 = vmatpush.bf16.msrb.mxu3 %v11655_v21  ;;  %v150_v18 = vld [vmem:[#allocation2 + $0x1b8] sm:$0xff]  ;;  %v14409_v21 = vpop.f32.mrf.mxu0 }
  0xdd   :  { %v11638_v24 = vld [vmem:[#allocation5 + $0x1720] sm:$0xf]  ;;  %v13670_v28 = vld [vmem:[#allocation5 + $0x140c] sm:$0xf0]  ;;  %v11511_v48 = vor.u32 %v13738_v23, %v11510_v22  ;;  %6631 = vmatpush.bf16.msrb.mxu0 %v11255_v30  ;;  %15019 = vst [vmem:[#allocation18_spill] sm:$0xff] %v14409_v21 }
  0xde   :  { %v11238_v27 = vld [vmem:[#allocation5 + $0x1400] sm:$0xf]  ;;  %v13702_v34 = vld [vmem:[#allocation5 + $0x150c] sm:$0xf0]  ;;  %v11639_v53 = vor.u32 %v13770_v26, %v11638_v24  ;;  %6645 = vmatpush.bf16.msrb.mxu1 %v11383_v45  ;;  %v14417_v45 = vpop.f32.mrf.mxu1 }
  0xdf   :  { %v11366_v33 = vld [vmem:[#allocation5 + $0x1500] sm:$0xf]  ;;  %v13734_v42 = vld [vmem:[#allocation5 + $0x160c] sm:$0xf0]  ;;  %v11239_v0 = vor.u32 %v13670_v28, %v11238_v27  ;;  %6659 = vmatpush.bf16.msrb.mxu2 %v11511_v48  ;;  %15020 = vst [vmem:[#allocation19_spill] sm:$0xff] %v14417_v45  ;;  %v14419_v48 = vpack.c.bf16 %v150_v18, %v118_v16  ;;  %v158_v45 = vld [vmem:[#allocation2 + $0x1f8] sm:$0xff] }
  0xe0   :  { %v11494_v37 = vld [vmem:[#allocation5 + $0x1600] sm:$0xf]  ;;  %v13766_v50 = vld [vmem:[#allocation5 + $0x170c] sm:$0xf0]  ;;  %v11367_v6 = vor.u32 %v13702_v34, %v11366_v33  ;;  %6673 = vmatpush.bf16.msrb.mxu3 %v11639_v53  ;;  %v14415_v34 = vpack.c.bf16 %v148_v15, %v116_v11 }
  0xe1   :  { %v11622_v49 = vld [vmem:[#allocation5 + $0x1700] sm:$0xf]  ;;  %v13826_v54 = vld [vmem:[#allocation5 + $0x18ec] sm:$0xf0]  ;;  %v11495_v7 = vor.u32 %v13734_v42, %v11494_v37  ;;  %6632 = vmatpush.bf16.msrb.mxu0 %v11239_v0  ;;  %15021 = vst [vmem:[#allocation20_spill] sm:$0xff] %v14419_v48 }
  0xe2   :  { %v11862_v52 = vld [vmem:[#allocation5 + $0x18e0] sm:$0xf]  ;;  %v13858_v59 = vld [vmem:[#allocation5 + $0x19ec] sm:$0xf0]  ;;  %v11623_v12 = vor.u32 %v13766_v50, %v11622_v49  ;;  %6646 = vmatpush.bf16.msrb.mxu1 %v11367_v6 }
  0xe3   :  { %v11990_v57 = vld [vmem:[#allocation5 + $0x19e0] sm:$0xf]  ;;  %v13890_v62 = vld [vmem:[#allocation5 + $0x1aec] sm:$0xf0]  ;;  %v11863_v14 = vor.u32 %v13826_v54, %v11862_v52  ;;  %6660 = vmatpush.bf16.msrb.mxu2 %v11495_v7 }
  0xe4   :  { %v12118_v61 = vld [vmem:[#allocation5 + $0x1ae0] sm:$0xf]  ;;  %v13922_v2 = vld [vmem:[#allocation5 + $0x1bec] sm:$0xf0]  ;;  %v11991_v19 = vor.u32 %v13858_v59, %v11990_v57  ;;  %6674 = vmatpush.bf16.msrb.mxu3 %v11623_v12 }
  0xe5   :  { %v12246_v63 = vld [vmem:[#allocation5 + $0x1be0] sm:$0xf]  ;;  %v117_v8 = vld [vmem:[#allocation2 + $0xb0] sm:$0xff]  ;;  %v12119_v20 = vor.u32 %v13890_v62, %v12118_v61  ;;  %6681 = vmatpush.bf16.msra.mxu0 %v11863_v14  ;;  %6647 = vmatmul.bf16.vlgmr.msrb.gmra.mxu1 %v14415_v34  ;;  %v14427_v14 = vpop.f32.mrf.mxu3 }
  0xe6   :  { %v115_v3 = vld [vmem:[#allocation2 + $0xa0] sm:$0xff]  ;;  %v149_v9 = vld [vmem:[#allocation2 + $0x1b0] sm:$0xff]  ;;  %v12247_v25 = vor.u32 %v13922_v2, %v12246_v63  ;;  %6695 = vmatpush.bf16.msra.mxu1 %v11991_v19  ;;  %15023 = vst [vmem:[#allocation22_spill] sm:$0xff] %v14427_v14  ;;  %v6410_v19 = vpop.f32.mrf.mxu0 }
  0xe7   :  { %v147_v5 = vld [vmem:[#allocation2 + $0x1a0] sm:$0xff]  ;;  %v13822_v23 = vld [vmem:[#allocation5 + $0x18cc] sm:$0xf0]  ;;  %v14413_v33 = vpack.c.bf16 %v149_v9, %v117_v8  ;;  %6709 = vmatpush.bf16.msra.mxu2 %v12119_v20  ;;  %6675 = vmatmul.bf16.vlgmr.msrb.gmra.mxu3 %v14419_v48 }
  0xe8   :  { %v11846_v22 = vld [vmem:[#allocation5 + $0x18c0] sm:$0xf]  ;;  %v14411_v26 = vpack.c.bf16 %v147_v5, %v115_v3  ;;  %v13854_v27 = vld [vmem:[#allocation5 + $0x19cc] sm:$0xf0]  ;;  %6723 = vmatpush.bf16.msra.mxu3 %v12247_v25  ;;  %v14425_v5 = vpop.f32.mrf.mxu2 }
  0xe9   :  { %v11974_v24 = vld [vmem:[#allocation5 + $0x19c0] sm:$0xf]  ;;  %v13886_v30 = vld [vmem:[#allocation5 + $0x1acc] sm:$0xf0]  ;;  %v11847_v49 = vor.u32 %v13822_v23, %v11846_v22  ;;  %6661 = vmatmul.bf16.vlgmr.msrb.gmra.mxu2 %v14413_v33  ;;  %15022 = vst [vmem:[#allocation21_spill] sm:$0xff] %v14425_v5  ;;  %v6411_v23 = vadd.f32 %v6410_v19, %v14407_v29 }
  0xea   :  { %v12102_v28 = vld [vmem:[#allocation5 + $0x1ac0] sm:$0xf]  ;;  %v13918_v42 = vld [vmem:[#allocation5 + $0x1bcc] sm:$0xf0]  ;;  %v11975_v50 = vor.u32 %v13854_v27, %v11974_v24  ;;  %6633 = vmatmul.bf16.vlgmr.msrb.gmra.mxu0 %v14411_v26 }
  0xeb   :  { %v12230_v37 = vld [vmem:[#allocation5 + $0x1bc0] sm:$0xf]  ;;  %v12103_v52 = vor.u32 %v13886_v30, %v12102_v28  ;;  %v13818_v54 = vld [vmem:[#allocation5 + $0x18ac] sm:$0xf0]  ;;  %6682 = vmatpush.bf16.msra.mxu0 %v11847_v49  ;;  %v6424_v28 = vpop.f32.mrf.mxu1 }
  0xec   :  { %v11830_v53 = vld [vmem:[#allocation5 + $0x18a0] sm:$0xf]  ;;  %v12231_v59 = vor.u32 %v13918_v42, %v12230_v37  ;;  %v13850_v61 = vld [vmem:[#allocation5 + $0x19ac] sm:$0xf0]  ;;  %6696 = vmatpush.bf16.msra.mxu1 %v11975_v50  ;;  %v6425_v50 = vadd.f32 %v6424_v28, %v6411_v23 }
  0xed   :  { %v11958_v57 = vld [vmem:[#allocation5 + $0x19a0] sm:$0xf]  ;;  %v13882_v63 = vld [vmem:[#allocation5 + $0x1aac] sm:$0xf0]  ;;  %v11831_v3 = vor.u32 %v13818_v54, %v11830_v53  ;;  %6710 = vmatpush.bf16.msra.mxu2 %v12103_v52 }
  0xee   :  { %v12086_v62 = vld [vmem:[#allocation5 + $0x1aa0] sm:$0xf]  ;;  %v13914_v2 = vld [vmem:[#allocation5 + $0x1bac] sm:$0xf0]  ;;  %v11959_v6 = vor.u32 %v13850_v61, %v11958_v57  ;;  %6724 = vmatpush.bf16.msra.mxu3 %v12231_v59 }
  0xef   :  { %v12214_v0 = vld [vmem:[#allocation5 + $0x1ba0] sm:$0xf]  ;;  %v12087_v7 = vor.u32 %v13882_v63, %v12086_v62  ;;  %v13814_v9 = vld [vmem:[#allocation5 + $0x188c] sm:$0xf0]  ;;  %6683 = vmatpush.bf16.msra.mxu0 %v11831_v3 }
  0xf0   :  { %v11814_v8 = vld [vmem:[#allocation5 + $0x1880] sm:$0xf]  ;;  %v12215_v12 = vor.u32 %v13914_v2, %v12214_v0  ;;  %v13846_v15 = vld [vmem:[#allocation5 + $0x198c] sm:$0xf0]  ;;  %6697 = vmatpush.bf16.msra.mxu1 %v11959_v6  ;;  %v6438_v6 = vpop.f32.mrf.mxu2 }
  0xf1   :  { %v11942_v11 = vld [vmem:[#allocation5 + $0x1980] sm:$0xf]  ;;  %v13878_v18 = vld [vmem:[#allocation5 + $0x1a8c] sm:$0xf0]  ;;  %v11815_v24 = vor.u32 %v13814_v9, %v11814_v8  ;;  %6711 = vmatpush.bf16.msra.mxu2 %v12087_v7 }
  0xf2   :  { %v12070_v16 = vld [vmem:[#allocation5 + $0x1a80] sm:$0xf]  ;;  %v13910_v22 = vld [vmem:[#allocation5 + $0x1b8c] sm:$0xf0]  ;;  %v11943_v25 = vor.u32 %v13846_v15, %v11942_v11  ;;  %6725 = vmatpush.bf16.msra.mxu3 %v12215_v12  ;;  %v6439_v11 = vadd.f32 %v6438_v6, %v6425_v50 }
  0xf3   :  { %v12198_v20 = vld [vmem:[#allocation5 + $0x1b80] sm:$0xf]  ;;  %v12071_v27 = vor.u32 %v13878_v18, %v12070_v16  ;;  %v13810_v37 = vld [vmem:[#allocation5 + $0x186c] sm:$0xf0]  ;;  %6684 = vmatpush.bf16.msra.mxu0 %v11815_v24  ;;  %v6452_v16 = vpop.f32.mrf.mxu3 }
  0xf4   :  { %v11798_v30 = vld [vmem:[#allocation5 + $0x1860] sm:$0xf]  ;;  %v12199_v49 = vor.u32 %v13910_v22, %v12198_v20  ;;  %v13842_v52 = vld [vmem:[#allocation5 + $0x196c] sm:$0xf0]  ;;  %6698 = vmatpush.bf16.msra.mxu1 %v11943_v25  ;;  %v14430_v20 = vadd.f32 %v6452_v16, %v6439_v11 }
  0xf5   :  { %v11926_v42 = vld [vmem:[#allocation5 + $0x1960] sm:$0xf]  ;;  %v13874_v54 = vld [vmem:[#allocation5 + $0x1a6c] sm:$0xf0]  ;;  %v11799_v61 = vor.u32 %v13810_v37, %v11798_v30  ;;  %6712 = vmatpush.bf16.msra.mxu2 %v12071_v27 }
  0xf6   :  { %v12054_v53 = vld [vmem:[#allocation5 + $0x1a60] sm:$0xf]  ;;  %v13906_v59 = vld [vmem:[#allocation5 + $0x1b6c] sm:$0xf0]  ;;  %v11927_v29 = vor.u32 %v13842_v52, %v11926_v42  ;;  %6726 = vmatpush.bf16.msra.mxu3 %v12199_v49 }
  0xf7   :  { %v12182_v57 = vld [vmem:[#allocation5 + $0x1b60] sm:$0xf]  ;;  %v12055_v62 = vor.u32 %v13874_v54, %v12054_v53  ;;  %v13806_v0 = vld [vmem:[#allocation5 + $0x184c] sm:$0xf0]  ;;  %6685 = vmatpush.bf16.msra.mxu0 %v11799_v61 }
  0xf8   :  { %v11782_v63 = vld [vmem:[#allocation5 + $0x1840] sm:$0xf]  ;;  %v12183_v3 = vor.u32 %v13906_v59, %v12182_v57  ;;  %v13838_v7 = vld [vmem:[#allocation5 + $0x194c] sm:$0xf0]  ;;  %6699 = vmatpush.bf16.msra.mxu1 %v11927_v29 }
  0xf9   :  { %v11910_v2 = vld [vmem:[#allocation5 + $0x1940] sm:$0xf]  ;;  %v13870_v9 = vld [vmem:[#allocation5 + $0x1a4c] sm:$0xf0]  ;;  %v11783_v18 = vor.u32 %v13806_v0, %v11782_v63  ;;  %6713 = vmatpush.bf16.msra.mxu2 %v12055_v62 }
  0xfa   :  { %v12038_v8 = vld [vmem:[#allocation5 + $0x1a40] sm:$0xf]  ;;  %v13902_v15 = vld [vmem:[#allocation5 + $0x1b4c] sm:$0xf0]  ;;  %v11911_v22 = vor.u32 %v13838_v7, %v11910_v2  ;;  %6727 = vmatpush.bf16.msra.mxu3 %v12183_v3 }
  0xfb   :  { %v12166_v12 = vld [vmem:[#allocation5 + $0x1b40] sm:$0xf]  ;;  %v12039_v23 = vor.u32 %v13870_v9, %v12038_v8  ;;  %v13802_v24 = vld [vmem:[#allocation5 + $0x182c] sm:$0xf0]  ;;  %6686 = vmatpush.bf16.msra.mxu0 %v11783_v18 }
  0xfc   :  { %v11766_v19 = vld [vmem:[#allocation5 + $0x1820] sm:$0xf]  ;;  %v13834_v27 = vld [vmem:[#allocation5 + $0x192c] sm:$0xf0]  ;;  %v12167_v28 = vor.u32 %v13902_v15, %v12166_v12  ;;  %6700 = vmatpush.bf16.msra.mxu1 %v11911_v22 }
  0xfd   :  { %v11894_v25 = vld [vmem:[#allocation5 + $0x1920] sm:$0xf]  ;;  %v13866_v37 = vld [vmem:[#allocation5 + $0x1a2c] sm:$0xf0]  ;;  %v11767_v53 = vor.u32 %v13802_v24, %v11766_v19  ;;  %6714 = vmatpush.bf16.msra.mxu2 %v12039_v23 }
  0xfe   :  { %v12022_v30 = vld [vmem:[#allocation5 + $0x1a20] sm:$0xf]  ;;  %v13898_v49 = vld [vmem:[#allocation5 + $0x1b2c] sm:$0xf0]  ;;  %v11895_v29 = vor.u32 %v13834_v27, %v11894_v25  ;;  %6728 = vmatpush.bf16.msra.mxu3 %v12167_v28  ;;  %v120_v27 = vld [vmem:[#allocation2 + $0xc8] sm:$0xff] }
  0xff   :  { %v12150_v42 = vld [vmem:[#allocation5 + $0x1b20] sm:$0xf]  ;;  %v13798_v52 = vld [vmem:[#allocation5 + $0x180c] sm:$0xf0]  ;;  %v12023_v62 = vor.u32 %v13866_v37, %v12022_v30  ;;  %6687 = vmatpush.bf16.msra.mxu0 %v11767_v53  ;;  %v152_v37 = vld [vmem:[#allocation2 + $0x1c8] sm:$0xff] }
 0x100   :  { %v11750_v50 = vld [vmem:[#allocation5 + $0x1800] sm:$0xf]  ;;  %v13830_v57 = vld [vmem:[#allocation5 + $0x190c] sm:$0xf0]  ;;  %v12151_v3 = vor.u32 %v13898_v49, %v12150_v42  ;;  %6701 = vmatpush.bf16.msra.mxu1 %v11895_v29  ;;  %v122_v42 = vld [vmem:[#allocation2 + $0xd8] sm:$0xff] }
 0x101   :  { %v11878_v54 = vld [vmem:[#allocation5 + $0x1900] sm:$0xf]  ;;  %v13862_v61 = vld [vmem:[#allocation5 + $0x1a0c] sm:$0xf0]  ;;  %v11751_v15 = vor.u32 %v13798_v52, %v11750_v50  ;;  %6715 = vmatpush.bf16.msra.mxu2 %v12023_v62  ;;  %v154_v49 = vld [vmem:[#allocation2 + $0x1d8] sm:$0xff] }
 0x102   :  { %v12006_v59 = vld [vmem:[#allocation5 + $0x1a00] sm:$0xf]  ;;  %v13894_v0 = vld [vmem:[#allocation5 + $0x1b0c] sm:$0xf0]  ;;  %v11879_v22 = vor.u32 %v13830_v57, %v11878_v54  ;;  %6729 = vmatpush.bf16.msra.mxu3 %v12151_v3  ;;  %v14440_v3 = vpop.f32.mrf.mxu1 }
 0x103   :  { %v12134_v63 = vld [vmem:[#allocation5 + $0x1b00] sm:$0xf]  ;;  %v13954_v6 = vld [vmem:[#allocation5 + $0x1cec] sm:$0xf0]  ;;  %v12007_v23 = vor.u32 %v13862_v61, %v12006_v59  ;;  %6688 = vmatpush.bf16.msra.mxu0 %v11751_v15  ;;  %v14434_v61 = vpop.f32.mrf.mxu0  ;;  %15028 = vst [vmem:[#allocation27_spill] sm:$0xff] %v14440_v3 }
 0x104   :  { %v12374_v2 = vld [vmem:[#allocation5 + $0x1ce0] sm:$0xf]  ;;  %v13986_v8 = vld [vmem:[#allocation5 + $0x1dec] sm:$0xf0]  ;;  %v12135_v28 = vor.u32 %v13894_v0, %v12134_v63  ;;  %15025 = vst [vmem:[#allocation24_spill] sm:$0xff] %v14434_v61  ;;  %6702 = vmatpush.bf16.msra.mxu1 %v11879_v22  ;;  %v14438_v63 = vpack.c.bf16 %v152_v37, %v120_v27 }
 0x105   :  { %v12502_v7 = vld [vmem:[#allocation5 + $0x1de0] sm:$0xf]  ;;  %v14018_v11 = vld [vmem:[#allocation5 + $0x1eec] sm:$0xf0]  ;;  %v12375_v30 = vor.u32 %v13954_v6, %v12374_v2  ;;  %6716 = vmatpush.bf16.msra.mxu2 %v12007_v23  ;;  %v14442_v6 = vpack.c.bf16 %v154_v49, %v122_v42 }
 0x106   :  { %v12630_v9 = vld [vmem:[#allocation5 + $0x1ee0] sm:$0xf]  ;;  %v14050_v16 = vld [vmem:[#allocation5 + $0x1fec] sm:$0xf0]  ;;  %v12503_v13 = vor.u32 %v13986_v8, %v12502_v7  ;;  %15027 = vst [vmem:[#allocation26_spill] sm:$0xff] %v14438_v63  ;;  %6730 = vmatpush.bf16.msra.mxu3 %v12135_v28 }
 0x107   :  { %v12758_v12 = vld [vmem:[#allocation5 + $0x1fe0] sm:$0xf]  ;;  %v121_v24 = vld [vmem:[#allocation2 + $0xd0] sm:$0xff]  ;;  %v12631_v14 = vor.u32 %v14018_v11, %v12630_v9  ;;  %6737 = vmatpush.bf16.msrb.mxu0 %v12375_v30  ;;  %15029 = vst [vmem:[#allocation28_spill] sm:$0xff] %v14442_v6  ;;  %6703 = vmatmul.bf16.vlgmr.msra.gmra.mxu1 %v14438_v63  ;;  %v14448_v30 = vpop.f32.mrf.mxu2 }
 0x108   :  { %v119_v18 = vld [vmem:[#allocation2 + $0xc0] sm:$0xff]  ;;  %v153_v25 = vld [vmem:[#allocation2 + $0x1d0] sm:$0xff]  ;;  %v12759_v5 = vor.u32 %v14050_v16, %v12758_v12  ;;  %6751 = vmatpush.bf16.msrb.mxu1 %v12503_v13  ;;  %15030 = vst [vmem:[#allocation29_spill] sm:$0xff] %v14448_v30 }
 0x109   :  { %v151_v19 = vld [vmem:[#allocation2 + $0x1c0] sm:$0xff]  ;;  %v13950_v50 = vld [vmem:[#allocation5 + $0x1ccc] sm:$0xf0]  ;;  %v14436_v62 = vpack.c.bf16 %v153_v25, %v121_v24  ;;  %6765 = vmatpush.bf16.msrb.mxu2 %v12631_v14  ;;  %6731 = vmatmul.bf16.vlgmr.msra.gmra.mxu3 %v14442_v6  ;;  %v9048_v30 = vld [vmem:[#allocation5 + $0x2f0] sm:$0xf0] }
 0x10a   :  { %v12358_v53 = vld [vmem:[#allocation5 + $0x1cc0] sm:$0xf]  ;;  %v14432_v29 = vpack.c.bf16 %v151_v19, %v119_v18  ;;  %v13982_v54 = vld [vmem:[#allocation5 + $0x1dcc] sm:$0xf0]  ;;  %6779 = vmatpush.bf16.msrb.mxu3 %v12759_v5 }
 0x10b   :  { %v12486_v52 = vld [vmem:[#allocation5 + $0x1dc0] sm:$0xf]  ;;  %v14014_v59 = vld [vmem:[#allocation5 + $0x1ecc] sm:$0xf0]  ;;  %15026 = vst [vmem:[#allocation25_spill] sm:$0xff] %v14436_v62  ;;  %v12359_v7 = vor.u32 %v13950_v50, %v12358_v53  ;;  %6717 = vmatmul.bf16.vlgmr.msra.gmra.mxu2 %v14436_v62  ;;  %v14450_v50 = vpop.f32.mrf.mxu3 }
 0x10c   :  { %15024 = vst [vmem:[#allocation23_spill] sm:$0xff] %v14432_v29  ;;  %v12614_v57 = vld [vmem:[#allocation5 + $0x1ec0] sm:$0xf]  ;;  %v14046_v2 = vld [vmem:[#allocation5 + $0x1fcc] sm:$0xf0]  ;;  %v12487_v8 = vor.u32 %v13982_v54, %v12486_v52  ;;  %6689 = vmatmul.bf16.vlgmr.msra.gmra.mxu0 %v14432_v29  ;;  %v6466_v52 = vpop.f32.mrf.mxu0 }
 0x10d   :  { %v12742_v0 = vld [vmem:[#allocation5 + $0x1fc0] sm:$0xf]  ;;  %v12615_v9 = vor.u32 %v14014_v59, %v12614_v57  ;;  %v13946_v12 = vld [vmem:[#allocation5 + $0x1cac] sm:$0xf0]  ;;  %6738 = vmatpush.bf16.msrb.mxu0 %v12359_v7  ;;  %15031 = vst [vmem:[#allocation30_spill] sm:$0xff] %v14450_v50  ;;  %v6467_v59 = vadd.f32 %v6466_v52, %v14430_v20 }
 0x10e   :  { %v12342_v11 = vld [vmem:[#allocation5 + $0x1ca0] sm:$0xf]  ;;  %v12743_v16 = vor.u32 %v14046_v2, %v12742_v0  ;;  %v13978_v18 = vld [vmem:[#allocation5 + $0x1dac] sm:$0xf0]  ;;  %6752 = vmatpush.bf16.msrb.mxu1 %v12487_v8  ;;  %v6480_v2 = vpop.f32.mrf.mxu1  ;;  %v13120_v50 = vld [vmem:[#allocation5 + $0x2e4] sm:$0xf] }
 0x10f   :  { %v12470_v15 = vld [vmem:[#allocation5 + $0x1da0] sm:$0xf]  ;;  %v14010_v22 = vld [vmem:[#allocation5 + $0x1eac] sm:$0xf0]  ;;  %v12343_v13 = vor.u32 %v13946_v12, %v12342_v11  ;;  %6766 = vmatpush.bf16.msrb.mxu2 %v12615_v9  ;;  %v9051_v4 = vor.u32 %v13120_v50, %v9048_v30  ;;  %v9160_v30 = vld [vmem:[#allocation5 + $0x3d0] sm:$0xf0] }
 0x110   :  { %v12598_v19 = vld [vmem:[#allocation5 + $0x1ea0] sm:$0xf]  ;;  %v14042_v24 = vld [vmem:[#allocation5 + $0x1fac] sm:$0xf0]  ;;  %v12471_v14 = vor.u32 %v13978_v18, %v12470_v15  ;;  %6780 = vmatpush.bf16.msrb.mxu3 %v12743_v16  ;;  %v6481_v16 = vadd.f32 %v6480_v2, %v6467_v59 }
 0x111   :  { %v12726_v23 = vld [vmem:[#allocation5 + $0x1fa0] sm:$0xf]  ;;  %v12599_v5 = vor.u32 %v14010_v22, %v12598_v19  ;;  %v13942_v27 = vld [vmem:[#allocation5 + $0x1c8c] sm:$0xf0]  ;;  %6739 = vmatpush.bf16.msrb.mxu0 %v12343_v13 }
 0x112   :  { %v12326_v25 = vld [vmem:[#allocation5 + $0x1c80] sm:$0xf]  ;;  %v12727_v37 = vor.u32 %v14042_v24, %v12726_v23  ;;  %v13974_v42 = vld [vmem:[#allocation5 + $0x1d8c] sm:$0xf0]  ;;  %6753 = vmatpush.bf16.msrb.mxu1 %v12471_v14 }
 0x113   :  { %v12454_v28 = vld [vmem:[#allocation5 + $0x1d80] sm:$0xf]  ;;  %v14006_v53 = vld [vmem:[#allocation5 + $0x1e8c] sm:$0xf0]  ;;  %v12327_v0 = vor.u32 %v13942_v27, %v12326_v25  ;;  %6767 = vmatpush.bf16.msrb.mxu2 %v12599_v5 }
 0x114   :  { %v12582_v49 = vld [vmem:[#allocation5 + $0x1e80] sm:$0xf]  ;;  %v14038_v57 = vld [vmem:[#allocation5 + $0x1f8c] sm:$0xf0]  ;;  %v12455_v7 = vor.u32 %v13974_v42, %v12454_v28  ;;  %6781 = vmatpush.bf16.msrb.mxu3 %v12727_v37  ;;  %v6494_v42 = vpop.f32.mrf.mxu2 }
 0x115   :  { %v12710_v54 = vld [vmem:[#allocation5 + $0x1f80] sm:$0xf]  ;;  %v12583_v8 = vor.u32 %v14006_v53, %v12582_v49  ;;  %v13938_v11 = vld [vmem:[#allocation5 + $0x1c6c] sm:$0xf0]  ;;  %6740 = vmatpush.bf16.msrb.mxu0 %v12327_v0  ;;  %v6495_v52 = vadd.f32 %v6494_v42, %v6481_v16 }
 0x116   :  { %v12310_v9 = vld [vmem:[#allocation5 + $0x1c60] sm:$0xf]  ;;  %v12711_v15 = vor.u32 %v14038_v57, %v12710_v54  ;;  %v13970_v18 = vld [vmem:[#allocation5 + $0x1d6c] sm:$0xf0]  ;;  %6754 = vmatpush.bf16.msrb.mxu1 %v12455_v7  ;;  %v6508_v54 = vpop.f32.mrf.mxu3  ;;  %v14463_v50 = vpop.f32.mrf.mxu1 }
 0x117   :  { %v12438_v12 = vld [vmem:[#allocation5 + $0x1d60] sm:$0xf]  ;;  %v14002_v22 = vld [vmem:[#allocation5 + $0x1e6c] sm:$0xf0]  ;;  %v12311_v13 = vor.u32 %v13938_v11, %v12310_v9  ;;  %6768 = vmatpush.bf16.msrb.mxu2 %v12583_v8  ;;  %v14453_v7 = vadd.f32 %v6508_v54, %v6495_v52  ;;  %v8792_v54 = vld [vmem:[#allocation5 + $0xf0] sm:$0xf0] }
 0x118   :  { %v12566_v19 = vld [vmem:[#allocation5 + $0x1e60] sm:$0xf]  ;;  %v14034_v24 = vld [vmem:[#allocation5 + $0x1f6c] sm:$0xf0]  ;;  %v12439_v20 = vor.u32 %v13970_v18, %v12438_v12  ;;  %6782 = vmatpush.bf16.msrb.mxu3 %v12711_v15  ;;  %15036 = vst [vmem:[#allocation35_spill] sm:$0xff] %v14463_v50 }
 0x119   :  { %v12694_v23 = vld [vmem:[#allocation5 + $0x1f60] sm:$0xf]  ;;  %v12567_v14 = vor.u32 %v14002_v22, %v12566_v19  ;;  %v13934_v25 = vld [vmem:[#allocation5 + $0x1c4c] sm:$0xf0]  ;;  %6741 = vmatpush.bf16.msrb.mxu0 %v12311_v13  ;;  %v9544_v50 = vld [vmem:[#allocation5 + $0x6d0] sm:$0xf0] }
 0x11a   :  { %v12294_v5 = vld [vmem:[#allocation5 + $0x1c40] sm:$0xf]  ;;  %v12695_v28 = vor.u32 %v14034_v24, %v12694_v23  ;;  %v13966_v37 = vld [vmem:[#allocation5 + $0x1d4c] sm:$0xf0]  ;;  %6755 = vmatpush.bf16.msrb.mxu1 %v12439_v20 }
 0x11b   :  { %v12422_v27 = vld [vmem:[#allocation5 + $0x1d40] sm:$0xf]  ;;  %v13998_v53 = vld [vmem:[#allocation5 + $0x1e4c] sm:$0xf0]  ;;  %v12295_v0 = vor.u32 %v13934_v25, %v12294_v5  ;;  %6769 = vmatpush.bf16.msrb.mxu2 %v12567_v14 }
 0x11c   :  { %v12550_v49 = vld [vmem:[#allocation5 + $0x1e40] sm:$0xf]  ;;  %v14030_v59 = vld [vmem:[#allocation5 + $0x1f4c] sm:$0xf0]  ;;  %v12423_v8 = vor.u32 %v13966_v37, %v12422_v27  ;;  %6783 = vmatpush.bf16.msrb.mxu3 %v12695_v28  ;;  %v13056_v28 = vld [vmem:[#allocation5 + $0xe4] sm:$0xf] }
 0x11d   :  { %v12678_v57 = vld [vmem:[#allocation5 + $0x1f40] sm:$0xf]  ;;  %v12551_v9 = vor.u32 %v13998_v53, %v12550_v49  ;;  %v13930_v11 = vld [vmem:[#allocation5 + $0x1c2c] sm:$0xf0]  ;;  %6742 = vmatpush.bf16.msrb.mxu0 %v12295_v0  ;;  %v13152_v0 = vld [vmem:[#allocation5 + $0x3e4] sm:$0xf] }
 0x11e   :  { %v12278_v2 = vld [vmem:[#allocation5 + $0x1c20] sm:$0xf]  ;;  %v13962_v15 = vld [vmem:[#allocation5 + $0x1d2c] sm:$0xf0]  ;;  %v12679_v18 = vor.u32 %v14030_v59, %v12678_v57  ;;  %6756 = vmatpush.bf16.msrb.mxu1 %v12423_v8  ;;  %v13088_v57 = vld [vmem:[#allocation5 + $0x1e4] sm:$0xf] }
 0x11f   :  { %v12406_v12 = vld [vmem:[#allocation5 + $0x1d20] sm:$0xf]  ;;  %v13994_v22 = vld [vmem:[#allocation5 + $0x1e2c] sm:$0xf0]  ;;  %v12279_v13 = vor.u32 %v13930_v11, %v12278_v2  ;;  %6770 = vmatpush.bf16.msrb.mxu2 %v12551_v9  ;;  %v8920_v59 = vld [vmem:[#allocation5 + $0x1f0] sm:$0xf0] }
 0x120   :  { %v12534_v19 = vld [vmem:[#allocation5 + $0x1e20] sm:$0xf]  ;;  %v14026_v23 = vld [vmem:[#allocation5 + $0x1f2c] sm:$0xf0]  ;;  %v12407_v27 = vor.u32 %v13962_v15, %v12406_v12  ;;  %6784 = vmatpush.bf16.msrb.mxu3 %v12679_v18  ;;  %v9176_v11 = vld [vmem:[#allocation5 + $0x3f0] sm:$0xf0]  ;;  %v8923_v21 = vor.u32 %v13088_v57, %v8920_v59 }
 0x121   :  { %v12662_v16 = vld [vmem:[#allocation5 + $0x1f20] sm:$0xf]  ;;  %v13926_v42 = vld [vmem:[#allocation5 + $0x1c0c] sm:$0xf0]  ;;  %v12535_v37 = vor.u32 %v13994_v22, %v12534_v19  ;;  %6743 = vmatpush.bf16.msrb.mxu0 %v12279_v13  ;;  %v124_v19 = vld [vmem:[#allocation2 + $0xe8] sm:$0xff]  ;;  %v8795_v22 = vor.u32 %v13056_v28, %v8792_v54  ;;  %v9179_v6 = vor.u32 %v13152_v0, %v9176_v11 }
 0x122   :  { %v12262_v24 = vld [vmem:[#allocation5 + $0x1c00] sm:$0xf]  ;;  %v13958_v20 = vld [vmem:[#allocation5 + $0x1d0c] sm:$0xf0]  ;;  %v12663_v52 = vor.u32 %v14026_v23, %v12662_v16  ;;  %6757 = vmatpush.bf16.msrb.mxu1 %v12407_v27  ;;  %v156_v16 = vld [vmem:[#allocation2 + $0x1e8] sm:$0xff] }
 0x123   :  { %v12390_v5 = vld [vmem:[#allocation5 + $0x1d00] sm:$0xf]  ;;  %v13990_v25 = vld [vmem:[#allocation5 + $0x1e0c] sm:$0xf0]  ;;  %v12263_v2 = vor.u32 %v13926_v42, %v12262_v24  ;;  %6771 = vmatpush.bf16.msrb.mxu2 %v12535_v37  ;;  %v126_v23 = vld [vmem:[#allocation2 + $0xf8] sm:$0xff] }
 0x124   :  { %v12518_v14 = vld [vmem:[#allocation5 + $0x1e00] sm:$0xf]  ;;  %v14022_v53 = vld [vmem:[#allocation5 + $0x1f0c] sm:$0xf0]  ;;  %v12391_v8 = vor.u32 %v13958_v20, %v12390_v5  ;;  %6785 = vmatpush.bf16.msrb.mxu3 %v12663_v52  ;;  %v13052_v13 = vld [vmem:[#allocation5 + $0xc4] sm:$0xf]  ;;  %v14465_v28 = vpack.c.bf16 %v158_v45, %v126_v23 }
 0x125   :  { %v12646_v49 = vld [vmem:[#allocation5 + $0x1f00] sm:$0xf]  ;;  %v12519_v9 = vor.u32 %v13990_v25, %v12518_v14  ;;  %v125_v12 = vld [vmem:[#allocation2 + $0xf0] sm:$0xff]  ;;  %v13084_v42 = vld [vmem:[#allocation5 + $0x1c4] sm:$0xf]  ;;  %6744 = vmatpush.bf16.msrb.mxu0 %v12263_v2  ;;  %v14457_v25 = vpop.f32.mrf.mxu0 }
 0x126   :  { %v123_v3 = vld [vmem:[#allocation2 + $0xe0] sm:$0xff]  ;;  %v157_v15 = vld [vmem:[#allocation2 + $0x1f0] sm:$0xff]  ;;  %v12647_v18 = vor.u32 %v14022_v53, %v12646_v49  ;;  %15033 = vst [vmem:[#allocation32_spill] sm:$0xff] %v14457_v25  ;;  %6758 = vmatpush.bf16.msrb.mxu1 %v12391_v8  ;;  %v14461_v49 = vpack.c.bf16 %v156_v16, %v124_v19 }
 0x127   :  { %v155_v61 = vld [vmem:[#allocation2 + $0x1e0] sm:$0xff]  ;;  %v8776_v24 = vld [vmem:[#allocation5 + $0xd0] sm:$0xf0]  ;;  %6772 = vmatpush.bf16.msrb.mxu2 %v12519_v9  ;;  %v14459_v37 = vpack.c.bf16 %v157_v15, %v125_v12  ;;  %15037 = vst [vmem:[#allocation36_spill] sm:$0xff] %v14465_v28 }
 0x128   :  { %v14455_v27 = vpack.c.bf16 %v155_v61, %v123_v3  ;;  %v8904_v5 = vld [vmem:[#allocation5 + $0x1d0] sm:$0xf0]  ;;  %v13116_v20 = vld [vmem:[#allocation5 + $0x2c4] sm:$0xf]  ;;  %15035 = vst [vmem:[#allocation34_spill] sm:$0xff] %v14461_v49  ;;  %6786 = vmatpush.bf16.msrb.mxu3 %v12647_v18  ;;  %v8779_v61 = vor.u32 %v13052_v13, %v8776_v24  ;;  %v14471_v18 = vpop.f32.mrf.mxu2  ;;  %v14473_v24 = vpop.f32.mrf.mxu3 }
 0x129   :  { %v9032_v14 = vld [vmem:[#allocation5 + $0x2d0] sm:$0xf0]  ;;  %15034 = vst [vmem:[#allocation33_spill] sm:$0xff] %v14459_v37  ;;  %v13148_v53 = vld [vmem:[#allocation5 + $0x3c4] sm:$0xf]  ;;  %6793 = vmatpush.bf16.msra.mxu0 %v8795_v22  ;;  %v8907_v3 = vor.u32 %v13084_v42, %v8904_v5  ;;  %6759 = vmatmul.bf16.vlgmr.msrb.gmra.mxu1 %v14461_v49 }
 0x12a   :  { %15032 = vst [vmem:[#allocation31_spill] sm:$0xff] %v14455_v27  ;;  %6807 = vmatpush.bf16.msra.mxu1 %v8923_v21  ;;  %v9035_v52 = vor.u32 %v13116_v20, %v9032_v14  ;;  %v13048_v54 = vld [vmem:[#allocation5 + $0xa4] sm:$0xf]  ;;  %v8760_v57 = vld [vmem:[#allocation5 + $0xb0] sm:$0xf0]  ;;  %6745 = vmatmul.bf16.vlgmr.msrb.gmra.mxu0 %v14455_v27  ;;  %v9163_v0 = vor.u32 %v13148_v53, %v9160_v30  ;;  %v6536_v30 = vpop.f32.mrf.mxu1 }
 0x12b   :  { %6821 = vmatpush.bf16.msra.mxu2 %v9051_v4  ;;  %v13080_v59 = vld [vmem:[#allocation5 + $0x1a4] sm:$0xf]  ;;  %v8888_v2 = vld [vmem:[#allocation5 + $0x1b0] sm:$0xf0]  ;;  %6787 = vmatmul.bf16.vlgmr.msrb.gmra.mxu3 %v14465_v28  ;;  %v8763_v4 = vor.u32 %v13048_v54, %v8760_v57  ;;  %15038 = vst [vmem:[#allocation37_spill] sm:$0xff] %v14471_v18 }
 0x12c   :  { %6835 = vmatpush.bf16.msra.mxu3 %v9179_v6  ;;  %v13112_v11 = vld [vmem:[#allocation5 + $0x2a4] sm:$0xf]  ;;  %v9016_v8 = vld [vmem:[#allocation5 + $0x2b0] sm:$0xf0]  ;;  %6773 = vmatmul.bf16.vlgmr.msrb.gmra.mxu2 %v14459_v37  ;;  %v8891_v21 = vor.u32 %v13080_v59, %v8888_v2  ;;  %15039 = vst [vmem:[#allocation38_spill] sm:$0xff] %v14473_v24 }
 0x12d   :  { %v13144_v45 = vld [vmem:[#allocation5 + $0x3a4] sm:$0xf]  ;;  %v9144_v9 = vld [vmem:[#allocation5 + $0x3b0] sm:$0xf0]  ;;  %6794 = vmatpush.bf16.msra.mxu0 %v8779_v61  ;;  %v9019_v6 = vor.u32 %v13112_v11, %v9016_v8  ;;  %v6522_v42 = vpop.f32.mrf.mxu0 }
 0x12e   :  { %6808 = vmatpush.bf16.msra.mxu1 %v8907_v3  ;;  %v13044_v12 = vld [vmem:[#allocation5 + $0x84] sm:$0xf]  ;;  %v8744_v15 = vld [vmem:[#allocation5 + $0x90] sm:$0xf0]  ;;  %v9147_v22 = vor.u32 %v13144_v45, %v9144_v9  ;;  %v6523_v14 = vadd.f32 %v6522_v42, %v14453_v7 }
 0x12f   :  { %6822 = vmatpush.bf16.msra.mxu2 %v9035_v52  ;;  %v13076_v19 = vld [vmem:[#allocation5 + $0x184] sm:$0xf]  ;;  %v8872_v16 = vld [vmem:[#allocation5 + $0x190] sm:$0xf0]  ;;  %v8747_v53 = vor.u32 %v13044_v12, %v8744_v15 }
 0x130   :  { %6836 = vmatpush.bf16.msra.mxu3 %v9163_v0  ;;  %v13108_v23 = vld [vmem:[#allocation5 + $0x284] sm:$0xf]  ;;  %v9000_v13 = vld [vmem:[#allocation5 + $0x290] sm:$0xf0]  ;;  %v8875_v61 = vor.u32 %v13076_v19, %v8872_v16  ;;  %v6537_v0 = vadd.f32 %v6536_v30, %v6523_v14  ;;  %v6550_v16 = vpop.f32.mrf.mxu2 }
 0x131   :  { %v13140_v5 = vld [vmem:[#allocation5 + $0x384] sm:$0xf]  ;;  %v9128_v20 = vld [vmem:[#allocation5 + $0x390] sm:$0xf0]  ;;  %6795 = vmatpush.bf16.msra.mxu0 %v8763_v4  ;;  %v9003_v3 = vor.u32 %v13108_v23, %v9000_v13 }
 0x132   :  { %6809 = vmatpush.bf16.msra.mxu1 %v8891_v21  ;;  %v13040_v52 = vld [vmem:[#allocation5 + $0x64] sm:$0xf]  ;;  %v8728_v54 = vld [vmem:[#allocation5 + $0x70] sm:$0xf0]  ;;  %v9131_v59 = vor.u32 %v13140_v5, %v9128_v20  ;;  %v6551_v42 = vadd.f32 %v6550_v16, %v6537_v0  ;;  %v6564_v5 = vpop.f32.mrf.mxu3 }
 0x133   :  { %6823 = vmatpush.bf16.msra.mxu2 %v9019_v6  ;;  %v13072_v57 = vld [vmem:[#allocation5 + $0x164] sm:$0xf]  ;;  %v8856_v2 = vld [vmem:[#allocation5 + $0x170] sm:$0xf0]  ;;  %v8731_v4 = vor.u32 %v13040_v52, %v8728_v54 }
 0x134   :  { %6837 = vmatpush.bf16.msra.mxu3 %v9147_v22  ;;  %v13104_v11 = vld [vmem:[#allocation5 + $0x264] sm:$0xf]  ;;  %v8984_v8 = vld [vmem:[#allocation5 + $0x270] sm:$0xf0]  ;;  %v8859_v7 = vor.u32 %v13072_v57, %v8856_v2  ;;  %v14476_v30 = vadd.f32 %v6564_v5, %v6551_v42 }
 0x135   :  { %v13136_v45 = vld [vmem:[#allocation5 + $0x364] sm:$0xf]  ;;  %v9112_v9 = vld [vmem:[#allocation5 + $0x370] sm:$0xf0]  ;;  %6796 = vmatpush.bf16.msra.mxu0 %v8747_v53  ;;  %v8987_v21 = vor.u32 %v13104_v11, %v8984_v8  ;;  %v14478_v25 = vpop.f32.mrf.mxu0 }
 0x136   :  { %6810 = vmatpush.bf16.msra.mxu1 %v8875_v61  ;;  %v13036_v6 = vld [vmem:[#allocation5 + $0x44] sm:$0xf]  ;;  %v8712_v12 = vld [vmem:[#allocation5 + $0x50] sm:$0xf0]  ;;  %v9115_v19 = vor.u32 %v13136_v45, %v9112_v9  ;;  %15040 = vst [vmem:[#allocation39_spill] sm:$0xff] %v14478_v25 }
 0x137   :  { %6824 = vmatpush.bf16.msra.mxu2 %v9003_v3  ;;  %v13068_v15 = vld [vmem:[#allocation5 + $0x144] sm:$0xf]  ;;  %v8840_v22 = vld [vmem:[#allocation5 + $0x150] sm:$0xf0]  ;;  %v8715_v53 = vor.u32 %v13036_v6, %v8712_v12 }
 0x138   :  { %6838 = vmatpush.bf16.msra.mxu3 %v9131_v59  ;;  %v13100_v23 = vld [vmem:[#allocation5 + $0x244] sm:$0xf]  ;;  %v8968_v13 = vld [vmem:[#allocation5 + $0x250] sm:$0xf0]  ;;  %v8843_v61 = vor.u32 %v13068_v15, %v8840_v22 }
 0x139   :  { %v13132_v20 = vld [vmem:[#allocation5 + $0x344] sm:$0xf]  ;;  %v9096_v14 = vld [vmem:[#allocation5 + $0x350] sm:$0xf0]  ;;  %6797 = vmatpush.bf16.msra.mxu0 %v8731_v4  ;;  %v8971_v3 = vor.u32 %v13100_v23, %v8968_v13 }
 0x13a   :  { %6811 = vmatpush.bf16.msra.mxu1 %v8859_v7  ;;  %v13032_v52 = vld [vmem:[#allocation5 + $0x24] sm:$0xf]  ;;  %v8696_v54 = vld [vmem:[#allocation5 + $0x30] sm:$0xf0]  ;;  %v9099_v59 = vor.u32 %v13132_v20, %v9096_v14 }
 0x13b   :  { %6825 = vmatpush.bf16.msra.mxu2 %v8987_v21  ;;  %v13064_v57 = vld [vmem:[#allocation5 + $0x124] sm:$0xf]  ;;  %v8824_v2 = vld [vmem:[#allocation5 + $0x130] sm:$0xf0]  ;;  %v8699_v9 = vor.u32 %v13032_v52, %v8696_v54 }
 0x13c   :  { %6839 = vmatpush.bf16.msra.mxu3 %v9115_v19  ;;  %v13096_v11 = vld [vmem:[#allocation5 + $0x224] sm:$0xf]  ;;  %v8952_v8 = vld [vmem:[#allocation5 + $0x230] sm:$0xf0]  ;;  %v8827_v7 = vor.u32 %v13064_v57, %v8824_v2 }
 0x13d   :  { %v13128_v0 = vld [vmem:[#allocation5 + $0x324] sm:$0xf]  ;;  %v9080_v45 = vld [vmem:[#allocation5 + $0x330] sm:$0xf0]  ;;  %6798 = vmatpush.bf16.msra.mxu0 %v8715_v53  ;;  %v8955_v21 = vor.u32 %v13096_v11, %v8952_v8 }
 0x13e   :  { %v13028_v4 = vld [vmem:[#allocation5 + $0x4] sm:$0xf]  ;;  %v8680_v6 = vld [vmem:[#allocation5 + $0x10] sm:$0xf0]  ;;  %6812 = vmatpush.bf16.msra.mxu1 %v8843_v61  ;;  %v9083_v22 = vor.u32 %v13128_v0, %v9080_v45 }
 0x13f   :  { %6826 = vmatpush.bf16.msra.mxu2 %v8971_v3  ;;  %v13060_v12 = vld [vmem:[#allocation5 + $0x104] sm:$0xf]  ;;  %v8808_v15 = vld [vmem:[#allocation5 + $0x110] sm:$0xf0]  ;;  %v8683_v14 = vor.u32 %v13028_v4, %v8680_v6 }
 0x140   :  { %v13092_v16 = vld [vmem:[#allocation5 + $0x204] sm:$0xf]  ;;  %6840 = vmatpush.bf16.msra.mxu3 %v9099_v59  ;;  %v8936_v19 = vld [vmem:[#allocation5 + $0x210] sm:$0xf0]  ;;  %v8811_v61 = vor.u32 %v13060_v12, %v8808_v15  ;;  %v14480_v12 = vpop.f32.mrf.mxu1 }
 0x141   :  { %v13124_v23 = vld [vmem:[#allocation5 + $0x304] sm:$0xf]  ;;  %v9064_v13 = vld [vmem:[#allocation5 + $0x310] sm:$0xf0]  ;;  %6799 = vmatpush.bf16.msra.mxu0 %v8699_v9  ;;  %v8939_v3 = vor.u32 %v13092_v16, %v8936_v19  ;;  %15041 = vst [vmem:[#allocation40_spill] sm:$0xff] %v14480_v12 }
 0x142   :  { %v13184_v42 = vld [vmem:[#allocation5 + $0x4e4] sm:$0xf]  ;;  %v9304_v5 = vld [vmem:[#allocation5 + $0x4f0] sm:$0xf0]  ;;  %6813 = vmatpush.bf16.msra.mxu1 %v8827_v7  ;;  %v9067_v59 = vor.u32 %v13124_v23, %v9064_v13 }
 0x143   :  { %v13216_v20 = vld [vmem:[#allocation5 + $0x5e4] sm:$0xf]  ;;  %v9432_v53 = vld [vmem:[#allocation5 + $0x5f0] sm:$0xf0]  ;;  %6827 = vmatpush.bf16.msra.mxu2 %v8955_v21  ;;  %v9307_v11 = vor.u32 %v13184_v42, %v9304_v5 }
 0x144   :  { %v13248_v52 = vld [vmem:[#allocation5 + $0x6e4] sm:$0xf]  ;;  %v9560_v54 = vld [vmem:[#allocation5 + $0x6f0] sm:$0xf0]  ;;  %6841 = vmatpush.bf16.msra.mxu3 %v9083_v22  ;;  %v9435_v8 = vor.u32 %v13216_v20, %v9432_v53 }
 0x145   :  { %v13280_v57 = vld [vmem:[#allocation5 + $0x7e4] sm:$0xf]  ;;  %v9688_v2 = vld [vmem:[#allocation5 + $0x7f0] sm:$0xf0]  ;;  %v9563_v0 = vor.u32 %v13248_v52, %v9560_v54  ;;  %6800 = vmatpush.bf16.msra.mxu0 %v8683_v14 }
 0x146   :  { %v13180_v45 = vld [vmem:[#allocation5 + $0x4c4] sm:$0xf]  ;;  %v9288_v24 = vld [vmem:[#allocation5 + $0x4d0] sm:$0xf0]  ;;  %v9691_v9 = vor.u32 %v13280_v57, %v9688_v2  ;;  %6814 = vmatpush.bf16.msra.mxu1 %v8811_v61  ;;  %v14486_v57 = vpop.f32.mrf.mxu2 }
 0x147   :  { %v13212_v18 = vld [vmem:[#allocation5 + $0x5c4] sm:$0xf]  ;;  %v9416_v4 = vld [vmem:[#allocation5 + $0x5d0] sm:$0xf0]  ;;  %6828 = vmatpush.bf16.msra.mxu2 %v8939_v3  ;;  %v9291_v15 = vor.u32 %v13180_v45, %v9288_v24  ;;  %15042 = vst [vmem:[#allocation41_spill] sm:$0xff] %v14486_v57  ;;  %v6578_v45 = vpop.f32.mrf.mxu0 }
 0x148   :  { %v13244_v6 = vld [vmem:[#allocation5 + $0x6c4] sm:$0xf]  ;;  %v9672_v21 = vld [vmem:[#allocation5 + $0x7d0] sm:$0xf0]  ;;  %6842 = vmatpush.bf16.msra.mxu3 %v9067_v59  ;;  %v9419_v16 = vor.u32 %v13212_v18, %v9416_v4  ;;  %6801 = vmatmul.bf16.vlgmr.msra.gmra.mxu0 %v14342_v58 }
 0x149   :  { %v13276_v7 = vld [vmem:[#allocation5 + $0x7c4] sm:$0xf]  ;;  %6849 = vmatpush.bf16.msrb.mxu0 %v9307_v11  ;;  %v9547_v22 = vor.u32 %v13244_v6, %v9544_v50  ;;  %v9272_v23 = vld [vmem:[#allocation5 + $0x4b0] sm:$0xf0]  ;;  %6815 = vmatmul.bf16.vlgmr.msra.gmra.mxu1 %v14348_v10  ;;  %v6579_v6 = vadd.f32 %v6578_v45, %v14476_v30 }
 0x14a   :  { %6863 = vmatpush.bf16.msrb.mxu1 %v9435_v8  ;;  %v13176_v19 = vld [vmem:[#allocation5 + $0x4a4] sm:$0xf]  ;;  %v9675_v42 = vor.u32 %v13276_v7, %v9672_v21  ;;  %v9400_v5 = vld [vmem:[#allocation5 + $0x5b0] sm:$0xf0]  ;;  %6829 = vmatmul.bf16.vlgmr.msra.gmra.mxu2 %v14344_v1  ;;  %v6592_v21 = vpop.f32.mrf.mxu1 }
 0x14b   :  { %6877 = vmatpush.bf16.msrb.mxu2 %v9563_v0  ;;  %v13208_v13 = vld [vmem:[#allocation5 + $0x5a4] sm:$0xf]  ;;  %v9528_v14 = vld [vmem:[#allocation5 + $0x6b0] sm:$0xf0]  ;;  %v9275_v24 = vor.u32 %v13176_v19, %v9272_v23  ;;  %6843 = vmatmul.bf16.vlgmr.msra.gmra.mxu3 %v14350_v17  ;;  %v14488_v0 = vpop.f32.mrf.mxu3 }
 0x14c   :  { %6891 = vmatpush.bf16.msrb.mxu3 %v9691_v9  ;;  %v13240_v20 = vld [vmem:[#allocation5 + $0x6a4] sm:$0xf]  ;;  %v9656_v52 = vld [vmem:[#allocation5 + $0x7b0] sm:$0xf0]  ;;  %v9403_v50 = vor.u32 %v13208_v13, %v9400_v5  ;;  %15043 = vst [vmem:[#allocation42_spill] sm:$0xff] %v14488_v0 }
 0x14d   :  { %v13272_v53 = vld [vmem:[#allocation5 + $0x7a4] sm:$0xf]  ;;  %6850 = vmatpush.bf16.msrb.mxu0 %v9291_v15  ;;  %v9531_v18 = vor.u32 %v13240_v20, %v9528_v14  ;;  %v9256_v61 = vld [vmem:[#allocation5 + $0x490] sm:$0xf0] }
 0x14e   :  { %6864 = vmatpush.bf16.msrb.mxu1 %v9419_v16  ;;  %v13172_v54 = vld [vmem:[#allocation5 + $0x484] sm:$0xf]  ;;  %v9659_v2 = vor.u32 %v13272_v53, %v9656_v52  ;;  %v9384_v59 = vld [vmem:[#allocation5 + $0x590] sm:$0xf0] }
 0x14f   :  { %6878 = vmatpush.bf16.msrb.mxu2 %v9547_v22  ;;  %v13204_v3 = vld [vmem:[#allocation5 + $0x584] sm:$0xf]  ;;  %v9512_v8 = vld [vmem:[#allocation5 + $0x690] sm:$0xf0]  ;;  %v9259_v7 = vor.u32 %v13172_v54, %v9256_v61  ;;  %v14493_v25 = vpop.f32.mrf.mxu0 }
 0x150   :  { %6892 = vmatpush.bf16.msrb.mxu3 %v9675_v42  ;;  %v13236_v11 = vld [vmem:[#allocation5 + $0x684] sm:$0xf]  ;;  %v9640_v4 = vld [vmem:[#allocation5 + $0x790] sm:$0xf0]  ;;  %v9387_v15 = vor.u32 %v13204_v3, %v9384_v59  ;;  %v6593_v42 = vadd.f32 %v6592_v21, %v6579_v6  ;;  %v6606_v59 = vpop.f32.mrf.mxu2  ;;  %15044 = vst [vmem:[#allocation43_spill] sm:$0xff] %v14493_v25 }
 0x151   :  { %v13268_v9 = vld [vmem:[#allocation5 + $0x784] sm:$0xf]  ;;  %6851 = vmatpush.bf16.msrb.mxu0 %v9275_v24  ;;  %v9515_v16 = vor.u32 %v13236_v11, %v9512_v8  ;;  %v9240_v19 = vld [vmem:[#allocation5 + $0x470] sm:$0xf0] }
 0x152   :  { %6865 = vmatpush.bf16.msrb.mxu1 %v9403_v50  ;;  %v13168_v22 = vld [vmem:[#allocation5 + $0x464] sm:$0xf]  ;;  %v9643_v13 = vor.u32 %v13268_v9, %v9640_v4  ;;  %v9368_v5 = vld [vmem:[#allocation5 + $0x570] sm:$0xf0]  ;;  %v6607_v45 = vadd.f32 %v6606_v59, %v6593_v42 }
 0x153   :  { %6879 = vmatpush.bf16.msrb.mxu2 %v9531_v18  ;;  %v13200_v23 = vld [vmem:[#allocation5 + $0x564] sm:$0xf]  ;;  %v9496_v14 = vld [vmem:[#allocation5 + $0x670] sm:$0xf0]  ;;  %v9243_v24 = vor.u32 %v13168_v22, %v9240_v19  ;;  %v6620_v9 = vpop.f32.mrf.mxu3 }
 0x154   :  { %6893 = vmatpush.bf16.msrb.mxu3 %v9659_v2  ;;  %v13232_v20 = vld [vmem:[#allocation5 + $0x664] sm:$0xf]  ;;  %v9624_v52 = vld [vmem:[#allocation5 + $0x770] sm:$0xf0]  ;;  %v9371_v30 = vor.u32 %v13200_v23, %v9368_v5  ;;  %v14491_v21 = vadd.f32 %v6620_v9, %v6607_v45 }
 0x155   :  { %v13264_v53 = vld [vmem:[#allocation5 + $0x764] sm:$0xf]  ;;  %6852 = vmatpush.bf16.msrb.mxu0 %v9259_v7  ;;  %v9499_v50 = vor.u32 %v13232_v20, %v9496_v14  ;;  %v9224_v54 = vld [vmem:[#allocation5 + $0x450] sm:$0xf0] }
 0x156   :  { %6866 = vmatpush.bf16.msrb.mxu1 %v9387_v15  ;;  %v13164_v18 = vld [vmem:[#allocation5 + $0x444] sm:$0xf]  ;;  %v9627_v3 = vor.u32 %v13264_v53, %v9624_v52  ;;  %v9352_v2 = vld [vmem:[#allocation5 + $0x550] sm:$0xf0] }
 0x157   :  { %6880 = vmatpush.bf16.msrb.mxu2 %v9515_v16  ;;  %v13196_v61 = vld [vmem:[#allocation5 + $0x544] sm:$0xf]  ;;  %v9480_v8 = vld [vmem:[#allocation5 + $0x650] sm:$0xf0]  ;;  %v9227_v7 = vor.u32 %v13164_v18, %v9224_v54 }
 0x158   :  { %6894 = vmatpush.bf16.msrb.mxu3 %v9643_v13  ;;  %v13228_v11 = vld [vmem:[#allocation5 + $0x644] sm:$0xf]  ;;  %v9608_v6 = vld [vmem:[#allocation5 + $0x750] sm:$0xf0]  ;;  %v9355_v15 = vor.u32 %v13196_v61, %v9352_v2 }
 0x159   :  { %v13260_v4 = vld [vmem:[#allocation5 + $0x744] sm:$0xf]  ;;  %6853 = vmatpush.bf16.msrb.mxu0 %v9243_v24  ;;  %v9483_v16 = vor.u32 %v13228_v11, %v9480_v8  ;;  %v9208_v19 = vld [vmem:[#allocation5 + $0x430] sm:$0xf0] }
 0x15a   :  { %6867 = vmatpush.bf16.msrb.mxu1 %v9371_v30  ;;  %v13160_v22 = vld [vmem:[#allocation5 + $0x424] sm:$0xf]  ;;  %v9611_v13 = vor.u32 %v13260_v4, %v9608_v6  ;;  %v9336_v5 = vld [vmem:[#allocation5 + $0x530] sm:$0xf0] }
 0x15b   :  { %6881 = vmatpush.bf16.msrb.mxu2 %v9499_v50  ;;  %v13192_v23 = vld [vmem:[#allocation5 + $0x524] sm:$0xf]  ;;  %v9464_v14 = vld [vmem:[#allocation5 + $0x630] sm:$0xf0]  ;;  %v9211_v52 = vor.u32 %v13160_v22, %v9208_v19 }
 0x15c   :  { %6895 = vmatpush.bf16.msrb.mxu3 %v9627_v3  ;;  %v13224_v20 = vld [vmem:[#allocation5 + $0x624] sm:$0xf]  ;;  %v9592_v53 = vld [vmem:[#allocation5 + $0x730] sm:$0xf0]  ;;  %v9339_v30 = vor.u32 %v13192_v23, %v9336_v5 }
 0x15d   :  { %v13256_v42 = vld [vmem:[#allocation5 + $0x724] sm:$0xf]  ;;  %6854 = vmatpush.bf16.msrb.mxu0 %v9227_v7  ;;  %v9192_v18 = vld [vmem:[#allocation5 + $0x410] sm:$0xf0]  ;;  %v9467_v50 = vor.u32 %v13224_v20, %v9464_v14 }
 0x15e   :  { %v13156_v24 = vld [vmem:[#allocation5 + $0x404] sm:$0xf]  ;;  %6868 = vmatpush.bf16.msrb.mxu1 %v9355_v15  ;;  %v9320_v61 = vld [vmem:[#allocation5 + $0x510] sm:$0xf0]  ;;  %v9595_v2 = vor.u32 %v13256_v42, %v9592_v53 }
 0x15f   :  { %6882 = vmatpush.bf16.msrb.mxu2 %v9483_v16  ;;  %v13188_v54 = vld [vmem:[#allocation5 + $0x504] sm:$0xf]  ;;  %v9448_v3 = vld [vmem:[#allocation5 + $0x610] sm:$0xf0]  ;;  %v9195_v6 = vor.u32 %v13156_v24, %v9192_v18 }
 0x160   :  { %v13220_v59 = vld [vmem:[#allocation5 + $0x604] sm:$0xf]  ;;  %6896 = vmatpush.bf16.msrb.mxu3 %v9611_v13  ;;  %v9576_v8 = vld [vmem:[#allocation5 + $0x710] sm:$0xf0]  ;;  %v9323_v15 = vor.u32 %v13188_v54, %v9320_v61  ;;  %v14495_v54 = vpop.f32.mrf.mxu1 }
 0x161   :  { %v13252_v11 = vld [vmem:[#allocation5 + $0x704] sm:$0xf]  ;;  %v9816_v9 = vld [vmem:[#allocation5 + $0x8f0] sm:$0xf0]  ;;  %6855 = vmatpush.bf16.msrb.mxu0 %v9211_v52  ;;  %v9451_v16 = vor.u32 %v13220_v59, %v9448_v3  ;;  %15045 = vst [vmem:[#allocation44_spill] sm:$0xff] %v14495_v54 }
 0x162   :  { %v13312_v45 = vld [vmem:[#allocation5 + $0x8e4] sm:$0xf]  ;;  %v9944_v7 = vld [vmem:[#allocation5 + $0x9f0] sm:$0xf0]  ;;  %6869 = vmatpush.bf16.msrb.mxu1 %v9339_v30  ;;  %v9579_v13 = vor.u32 %v13252_v11, %v9576_v8 }
 0x163   :  { %v13344_v4 = vld [vmem:[#allocation5 + $0x9e4] sm:$0xf]  ;;  %v10072_v19 = vld [vmem:[#allocation5 + $0xaf0] sm:$0xf0]  ;;  %6883 = vmatpush.bf16.msrb.mxu2 %v9467_v50  ;;  %v9819_v20 = vor.u32 %v13312_v45, %v9816_v9 }
 0x164   :  { %v13376_v22 = vld [vmem:[#allocation5 + $0xae4] sm:$0xf]  ;;  %v10200_v5 = vld [vmem:[#allocation5 + $0xbf0] sm:$0xf0]  ;;  %6897 = vmatpush.bf16.msrb.mxu3 %v9595_v2  ;;  %v9947_v14 = vor.u32 %v13344_v4, %v9944_v7 }
 0x165   :  { %v13408_v23 = vld [vmem:[#allocation5 + $0xbe4] sm:$0xf]  ;;  %v10075_v42 = vor.u32 %v13376_v22, %v10072_v19  ;;  %v9800_v0 = vld [vmem:[#allocation5 + $0x8d0] sm:$0xf0]  ;;  %6856 = vmatpush.bf16.msrb.mxu0 %v9195_v6 }
 0x166   :  { %v13308_v53 = vld [vmem:[#allocation5 + $0x8c4] sm:$0xf]  ;;  %v10203_v52 = vor.u32 %v13408_v23, %v10200_v5  ;;  %v9928_v24 = vld [vmem:[#allocation5 + $0x9d0] sm:$0xf0]  ;;  %6870 = vmatpush.bf16.msrb.mxu1 %v9323_v15  ;;  %v14501_v23 = vpop.f32.mrf.mxu2 }
 0x167   :  { %v13340_v57 = vld [vmem:[#allocation5 + $0x9c4] sm:$0xf]  ;;  %v10056_v12 = vld [vmem:[#allocation5 + $0xad0] sm:$0xf0]  ;;  %6884 = vmatpush.bf16.msrb.mxu2 %v9451_v16  ;;  %v9803_v61 = vor.u32 %v13308_v53, %v9800_v0  ;;  %15046 = vst [vmem:[#allocation45_spill] sm:$0xff] %v14501_v23  ;;  %v6634_v53 = vpop.f32.mrf.mxu0 }
 0x168   :  { %v13372_v18 = vld [vmem:[#allocation5 + $0xac4] sm:$0xf]  ;;  %v10184_v50 = vld [vmem:[#allocation5 + $0xbd0] sm:$0xf0]  ;;  %6898 = vmatpush.bf16.msrb.mxu3 %v9579_v13  ;;  %v9931_v59 = vor.u32 %v13340_v57, %v9928_v24  ;;  %6857 = vmatmul.bf16.vlgmr.msrb.gmra.mxu0 %v14354_v39 }
 0x169   :  { %v13404_v30 = vld [vmem:[#allocation5 + $0xbc4] sm:$0xf]  ;;  %6905 = vmatpush.bf16.msra.mxu0 %v9819_v20  ;;  %v10059_v2 = vor.u32 %v13372_v18, %v10056_v12  ;;  %v9784_v11 = vld [vmem:[#allocation5 + $0x8b0] sm:$0xf0]  ;;  %6871 = vmatmul.bf16.vlgmr.msrb.gmra.mxu1 %v14358_v44  ;;  %v6635_v18 = vadd.f32 %v6634_v53, %v14491_v21 }
 0x16a   :  { %6919 = vmatpush.bf16.msra.mxu1 %v9947_v14  ;;  %v13304_v3 = vld [vmem:[#allocation5 + $0x8a4] sm:$0xf]  ;;  %v10187_v45 = vor.u32 %v13404_v30, %v10184_v50  ;;  %v9912_v9 = vld [vmem:[#allocation5 + $0x9b0] sm:$0xf0]  ;;  %6885 = vmatmul.bf16.vlgmr.msrb.gmra.mxu2 %v14356_v43  ;;  %v6648_v50 = vpop.f32.mrf.mxu1 }
 0x16b   :  { %6933 = vmatpush.bf16.msra.mxu2 %v10075_v42  ;;  %v13336_v8 = vld [vmem:[#allocation5 + $0x9a4] sm:$0xf]  ;;  %v10040_v6 = vld [vmem:[#allocation5 + $0xab0] sm:$0xf0]  ;;  %6899 = vmatmul.bf16.vlgmr.msrb.gmra.mxu3 %v14360_v47  ;;  %v9787_v12 = vor.u32 %v13304_v3, %v9784_v11  ;;  %v14503_v42 = vpop.f32.mrf.mxu3 }
 0x16c   :  { %6947 = vmatpush.bf16.msra.mxu3 %v10203_v52  ;;  %v13368_v4 = vld [vmem:[#allocation5 + $0xaa4] sm:$0xf]  ;;  %v10168_v0 = vld [vmem:[#allocation5 + $0xbb0] sm:$0xf0]  ;;  %v9915_v57 = vor.u32 %v13336_v8, %v9912_v9  ;;  %15047 = vst [vmem:[#allocation46_spill] sm:$0xff] %v14503_v42 }
 0x16d   :  { %v13400_v7 = vld [vmem:[#allocation5 + $0xba4] sm:$0xf]  ;;  %6906 = vmatpush.bf16.msra.mxu0 %v9803_v61  ;;  %v10043_v22 = vor.u32 %v13368_v4, %v10040_v6  ;;  %v9768_v15 = vld [vmem:[#allocation5 + $0x890] sm:$0xf0] }
 0x16e   :  { %6920 = vmatpush.bf16.msra.mxu1 %v9931_v59  ;;  %v13300_v19 = vld [vmem:[#allocation5 + $0x884] sm:$0xf]  ;;  %v10171_v5 = vor.u32 %v13400_v7, %v10168_v0  ;;  %v9896_v13 = vld [vmem:[#allocation5 + $0x990] sm:$0xf0] }
 0x16f   :  { %6934 = vmatpush.bf16.msra.mxu2 %v10059_v2  ;;  %v13332_v16 = vld [vmem:[#allocation5 + $0x984] sm:$0xf]  ;;  %v10024_v14 = vld [vmem:[#allocation5 + $0xa90] sm:$0xf0]  ;;  %v9771_v30 = vor.u32 %v13300_v19, %v9768_v15  ;;  %v14508_v25 = vpop.f32.mrf.mxu0 }
 0x170   :  { %6948 = vmatpush.bf16.msra.mxu3 %v10187_v45  ;;  %v13364_v20 = vld [vmem:[#allocation5 + $0xa84] sm:$0xf]  ;;  %v10152_v24 = vld [vmem:[#allocation5 + $0xb90] sm:$0xf0]  ;;  %v9899_v61 = vor.u32 %v13332_v16, %v9896_v13  ;;  %v6649_v45 = vadd.f32 %v6648_v50, %v6635_v18  ;;  %v6662_v13 = vpop.f32.mrf.mxu2  ;;  %15048 = vst [vmem:[#allocation47_spill] sm:$0xff] %v14508_v25 }
 0x171   :  { %v13396_v52 = vld [vmem:[#allocation5 + $0xb84] sm:$0xf]  ;;  %6907 = vmatpush.bf16.msra.mxu0 %v9787_v12  ;;  %v10027_v59 = vor.u32 %v13364_v20, %v10024_v14  ;;  %v9752_v3 = vld [vmem:[#allocation5 + $0x870] sm:$0xf0] }
 0x172   :  { %6921 = vmatpush.bf16.msra.mxu1 %v9915_v57  ;;  %v13296_v2 = vld [vmem:[#allocation5 + $0x864] sm:$0xf]  ;;  %v10155_v8 = vor.u32 %v13396_v52, %v10152_v24  ;;  %v9880_v9 = vld [vmem:[#allocation5 + $0x970] sm:$0xf0]  ;;  %v6663_v53 = vadd.f32 %v6662_v13, %v6649_v45 }
 0x173   :  { %6935 = vmatpush.bf16.msra.mxu2 %v10043_v22  ;;  %v13328_v11 = vld [vmem:[#allocation5 + $0x964] sm:$0xf]  ;;  %v10008_v6 = vld [vmem:[#allocation5 + $0xa70] sm:$0xf0]  ;;  %v9755_v12 = vor.u32 %v13296_v2, %v9752_v3  ;;  %v6676_v52 = vpop.f32.mrf.mxu3 }
 0x174   :  { %6949 = vmatpush.bf16.msra.mxu3 %v10171_v5  ;;  %v13360_v4 = vld [vmem:[#allocation5 + $0xa64] sm:$0xf]  ;;  %v10136_v0 = vld [vmem:[#allocation5 + $0xb70] sm:$0xf0]  ;;  %v9883_v21 = vor.u32 %v13328_v11, %v9880_v9  ;;  %v14506_v50 = vadd.f32 %v6676_v52, %v6663_v53 }
 0x175   :  { %v13392_v7 = vld [vmem:[#allocation5 + $0xb64] sm:$0xf]  ;;  %6908 = vmatpush.bf16.msra.mxu0 %v9771_v30  ;;  %v10011_v57 = vor.u32 %v13360_v4, %v10008_v6  ;;  %v9736_v19 = vld [vmem:[#allocation5 + $0x850] sm:$0xf0] }
 0x176   :  { %6922 = vmatpush.bf16.msra.mxu1 %v9899_v61  ;;  %v13292_v22 = vld [vmem:[#allocation5 + $0x844] sm:$0xf]  ;;  %v10139_v16 = vor.u32 %v13392_v7, %v10136_v0  ;;  %v9864_v5 = vld [vmem:[#allocation5 + $0x950] sm:$0xf0] }
 0x177   :  { %6936 = vmatpush.bf16.msra.mxu2 %v10027_v59  ;;  %v13324_v15 = vld [vmem:[#allocation5 + $0x944] sm:$0xf]  ;;  %v9992_v14 = vld [vmem:[#allocation5 + $0xa50] sm:$0xf0]  ;;  %v9739_v30 = vor.u32 %v13292_v22, %v9736_v19 }
 0x178   :  { %6950 = vmatpush.bf16.msra.mxu3 %v10155_v8  ;;  %v13356_v20 = vld [vmem:[#allocation5 + $0xa44] sm:$0xf]  ;;  %v10120_v18 = vld [vmem:[#allocation5 + $0xb50] sm:$0xf0]  ;;  %v9867_v61 = vor.u32 %v13324_v15, %v9864_v5 }
 0x179   :  { %v13388_v24 = vld [vmem:[#allocation5 + $0xb44] sm:$0xf]  ;;  %6909 = vmatpush.bf16.msra.mxu0 %v9755_v12  ;;  %v9995_v59 = vor.u32 %v13356_v20, %v9992_v14  ;;  %v9720_v3 = vld [vmem:[#allocation5 + $0x830] sm:$0xf0] }
 0x17a   :  { %6923 = vmatpush.bf16.msra.mxu1 %v9883_v21  ;;  %v13288_v2 = vld [vmem:[#allocation5 + $0x824] sm:$0xf]  ;;  %v10123_v8 = vor.u32 %v13388_v24, %v10120_v18  ;;  %v9848_v9 = vld [vmem:[#allocation5 + $0x930] sm:$0xf0] }
 0x17b   :  { %6937 = vmatpush.bf16.msra.mxu2 %v10011_v57  ;;  %v13320_v11 = vld [vmem:[#allocation5 + $0x924] sm:$0xf]  ;;  %v9976_v6 = vld [vmem:[#allocation5 + $0xa30] sm:$0xf0]  ;;  %v9723_v0 = vor.u32 %v13288_v2, %v9720_v3 }
 0x17c   :  { %6951 = vmatpush.bf16.msra.mxu3 %v10139_v16  ;;  %v13352_v4 = vld [vmem:[#allocation5 + $0xa24] sm:$0xf]  ;;  %v10104_v7 = vld [vmem:[#allocation5 + $0xb30] sm:$0xf0]  ;;  %v9851_v21 = vor.u32 %v13320_v11, %v9848_v9 }
 0x17d   :  { %v13384_v45 = vld [vmem:[#allocation5 + $0xb24] sm:$0xf]  ;;  %6910 = vmatpush.bf16.msra.mxu0 %v9739_v30  ;;  %v9704_v22 = vld [vmem:[#allocation5 + $0x810] sm:$0xf0]  ;;  %v9979_v57 = vor.u32 %v13352_v4, %v9976_v6 }
 0x17e   :  { %v13284_v12 = vld [vmem:[#allocation5 + $0x804] sm:$0xf]  ;;  %6924 = vmatpush.bf16.msra.mxu1 %v9867_v61  ;;  %v9832_v15 = vld [vmem:[#allocation5 + $0x910] sm:$0xf0]  ;;  %v10107_v5 = vor.u32 %v13384_v45, %v10104_v7 }
 0x17f   :  { %6938 = vmatpush.bf16.msra.mxu2 %v9995_v59  ;;  %v13316_v19 = vld [vmem:[#allocation5 + $0x904] sm:$0xf]  ;;  %v9960_v16 = vld [vmem:[#allocation5 + $0xa10] sm:$0xf0]  ;;  %v9707_v18 = vor.u32 %v13284_v12, %v9704_v22 }
 0x180   :  { %v13348_v13 = vld [vmem:[#allocation5 + $0xa04] sm:$0xf]  ;;  %6952 = vmatpush.bf16.msra.mxu3 %v10123_v8  ;;  %v10088_v14 = vld [vmem:[#allocation5 + $0xb10] sm:$0xf0]  ;;  %v9835_v61 = vor.u32 %v13316_v19, %v9832_v15  ;;  %v14510_v19 = vpop.f32.mrf.mxu1 }
 0x181   :  { %v13380_v20 = vld [vmem:[#allocation5 + $0xb04] sm:$0xf]  ;;  %v10328_v52 = vld [vmem:[#allocation5 + $0xcf0] sm:$0xf0]  ;;  %6911 = vmatpush.bf16.msra.mxu0 %v9723_v0  ;;  %v9963_v59 = vor.u32 %v13348_v13, %v9960_v16  ;;  %15049 = vst [vmem:[#allocation48_spill] sm:$0xff] %v14510_v19 }
 0x182   :  { %v13440_v53 = vld [vmem:[#allocation5 + $0xce4] sm:$0xf]  ;;  %v10456_v30 = vld [vmem:[#allocation5 + $0xdf0] sm:$0xf0]  ;;  %6925 = vmatpush.bf16.msra.mxu1 %v9851_v21  ;;  %v10091_v8 = vor.u32 %v13380_v20, %v10088_v14 }
 0x183   :  { %v13472_v24 = vld [vmem:[#allocation5 + $0xde4] sm:$0xf]  ;;  %v10584_v3 = vld [vmem:[#allocation5 + $0xef0] sm:$0xf0]  ;;  %6939 = vmatpush.bf16.msra.mxu2 %v9979_v57  ;;  %v10331_v4 = vor.u32 %v13440_v53, %v10328_v52 }
 0x184   :  { %v13504_v2 = vld [vmem:[#allocation5 + $0xee4] sm:$0xf]  ;;  %v10712_v9 = vld [vmem:[#allocation5 + $0xff0] sm:$0xf0]  ;;  %6953 = vmatpush.bf16.msra.mxu3 %v10107_v5  ;;  %v10459_v6 = vor.u32 %v13472_v24, %v10456_v30 }
 0x185   :  { %v13536_v11 = vld [vmem:[#allocation5 + $0xfe4] sm:$0xf]  ;;  %v10587_v45 = vor.u32 %v13504_v2, %v10584_v3  ;;  %v10312_v42 = vld [vmem:[#allocation5 + $0xcd0] sm:$0xf0]  ;;  %6912 = vmatpush.bf16.msra.mxu0 %v9707_v18 }
 0x186   :  { %v13436_v7 = vld [vmem:[#allocation5 + $0xcc4] sm:$0xf]  ;;  %v10715_v0 = vor.u32 %v13536_v11, %v10712_v9  ;;  %v10440_v12 = vld [vmem:[#allocation5 + $0xdd0] sm:$0xf0]  ;;  %6926 = vmatpush.bf16.msra.mxu1 %v9835_v61  ;;  %v14516_v11 = vpop.f32.mrf.mxu2 }
 0x187   :  { %v13468_v23 = vld [vmem:[#allocation5 + $0xdc4] sm:$0xf]  ;;  %v10568_v54 = vld [vmem:[#allocation5 + $0xed0] sm:$0xf0]  ;;  %6940 = vmatpush.bf16.msra.mxu2 %v9963_v59  ;;  %v10315_v15 = vor.u32 %v13436_v7, %v10312_v42  ;;  %15050 = vst [vmem:[#allocation49_spill] sm:$0xff] %v14516_v11 }
 0x188   :  { %v13500_v22 = vld [vmem:[#allocation5 + $0xec4] sm:$0xf]  ;;  %v10696_v57 = vld [vmem:[#allocation5 + $0xfd0] sm:$0xf0]  ;;  %6954 = vmatpush.bf16.msra.mxu3 %v10091_v8  ;;  %v10443_v13 = vor.u32 %v13468_v23, %v10440_v12  ;;  %6913 = vmatmul.bf16.vlgmr.msra.gmra.mxu0 %v14366_v31 }
 0x189   :  { %v13532_v21 = vld [vmem:[#allocation5 + $0xfc4] sm:$0xf]  ;;  %6961 = vmatpush.bf16.msrb.mxu0 %v10331_v4  ;;  %v10571_v5 = vor.u32 %v13500_v22, %v10568_v54  ;;  %v10296_v20 = vld [vmem:[#allocation5 + $0xcb0] sm:$0xf0]  ;;  %6927 = vmatmul.bf16.vlgmr.msra.gmra.mxu1 %v14370_v36  ;;  %v6690_v7 = vpop.f32.mrf.mxu0 }
 0x18a   :  { %6975 = vmatpush.bf16.msrb.mxu1 %v10459_v6  ;;  %v13432_v16 = vld [vmem:[#allocation5 + $0xca4] sm:$0xf]  ;;  %v10699_v53 = vor.u32 %v13532_v21, %v10696_v57  ;;  %v10424_v52 = vld [vmem:[#allocation5 + $0xdb0] sm:$0xf0]  ;;  %6941 = vmatmul.bf16.vlgmr.msra.gmra.mxu2 %v14368_v35  ;;  %v6691_v22 = vadd.f32 %v6690_v7, %v14506_v50  ;;  %v6704_v57 = vpop.f32.mrf.mxu1 }
 0x18b   :  { %6989 = vmatpush.bf16.msrb.mxu2 %v10587_v45  ;;  %v13464_v14 = vld [vmem:[#allocation5 + $0xda4] sm:$0xf]  ;;  %v10552_v18 = vld [vmem:[#allocation5 + $0xeb0] sm:$0xf0]  ;;  %6955 = vmatmul.bf16.vlgmr.msra.gmra.mxu3 %v14372_v40  ;;  %v10299_v54 = vor.u32 %v13432_v16, %v10296_v20  ;;  %v14518_v45 = vpop.f32.mrf.mxu3 }
 0x18c   :  { %7003 = vmatpush.bf16.msrb.mxu3 %v10715_v0  ;;  %v13496_v24 = vld [vmem:[#allocation5 + $0xea4] sm:$0xf]  ;;  %v10680_v42 = vld [vmem:[#allocation5 + $0xfb0] sm:$0xf0]  ;;  %v10427_v23 = vor.u32 %v13464_v14, %v10424_v52  ;;  %15051 = vst [vmem:[#allocation50_spill] sm:$0xff] %v14518_v45 }
 0x18d   :  { %v13528_v30 = vld [vmem:[#allocation5 + $0xfa4] sm:$0xf]  ;;  %6962 = vmatpush.bf16.msrb.mxu0 %v10315_v15  ;;  %v10555_v2 = vor.u32 %v13496_v24, %v10552_v18  ;;  %v10280_v61 = vld [vmem:[#allocation5 + $0xc90] sm:$0xf0] }
 0x18e   :  { %6976 = vmatpush.bf16.msrb.mxu1 %v10443_v13  ;;  %v13428_v3 = vld [vmem:[#allocation5 + $0xc84] sm:$0xf]  ;;  %v10683_v9 = vor.u32 %v13528_v30, %v10680_v42  ;;  %v10408_v8 = vld [vmem:[#allocation5 + $0xd90] sm:$0xf0] }
 0x18f   :  { %6990 = vmatpush.bf16.msrb.mxu2 %v10571_v5  ;;  %v13460_v59 = vld [vmem:[#allocation5 + $0xd84] sm:$0xf]  ;;  %v10536_v6 = vld [vmem:[#allocation5 + $0xe90] sm:$0xf0]  ;;  %v10283_v21 = vor.u32 %v13428_v3, %v10280_v61 }
 0x190   :  { %7004 = vmatpush.bf16.msrb.mxu3 %v10699_v53  ;;  %v13492_v4 = vld [vmem:[#allocation5 + $0xe84] sm:$0xf]  ;;  %v10664_v12 = vld [vmem:[#allocation5 + $0xf90] sm:$0xf0]  ;;  %v10411_v15 = vor.u32 %v13460_v59, %v10408_v8  ;;  %v6705_v53 = vadd.f32 %v6704_v57, %v6691_v22  ;;  %v6718_v8 = vpop.f32.mrf.mxu2 }
 0x191   :  { %v13524_v0 = vld [vmem:[#allocation5 + $0xf84] sm:$0xf]  ;;  %6963 = vmatpush.bf16.msrb.mxu0 %v10299_v54  ;;  %v10539_v13 = vor.u32 %v13492_v4, %v10536_v6  ;;  %v10264_v16 = vld [vmem:[#allocation5 + $0xc70] sm:$0xf0]  ;;  %v14523_v25 = vpop.f32.mrf.mxu0 }
 0x192   :  { %6977 = vmatpush.bf16.msrb.mxu1 %v10427_v23  ;;  %v13424_v5 = vld [vmem:[#allocation5 + $0xc64] sm:$0xf]  ;;  %v10667_v14 = vor.u32 %v13524_v0, %v10664_v12  ;;  %v10392_v52 = vld [vmem:[#allocation5 + $0xd70] sm:$0xf0]  ;;  %v6719_v7 = vadd.f32 %v6718_v8, %v6705_v53  ;;  %15052 = vst [vmem:[#allocation51_spill] sm:$0xff] %v14523_v25 }
 0x193   :  { %6991 = vmatpush.bf16.msrb.mxu2 %v10555_v2  ;;  %v13456_v20 = vld [vmem:[#allocation5 + $0xd64] sm:$0xf]  ;;  %v10520_v18 = vld [vmem:[#allocation5 + $0xe70] sm:$0xf0]  ;;  %v10267_v54 = vor.u32 %v13424_v5, %v10264_v16  ;;  %v6732_v0 = vpop.f32.mrf.mxu3 }
 0x194   :  { %7005 = vmatpush.bf16.msrb.mxu3 %v10683_v9  ;;  %v13488_v24 = vld [vmem:[#allocation5 + $0xe64] sm:$0xf]  ;;  %v10648_v42 = vld [vmem:[#allocation5 + $0xf70] sm:$0xf0]  ;;  %v10395_v50 = vor.u32 %v13456_v20, %v10392_v52  ;;  %v14521_v57 = vadd.f32 %v6732_v0, %v6719_v7 }
 0x195   :  { %v13520_v30 = vld [vmem:[#allocation5 + $0xf64] sm:$0xf]  ;;  %6964 = vmatpush.bf16.msrb.mxu0 %v10283_v21  ;;  %v10523_v23 = vor.u32 %v13488_v24, %v10520_v18  ;;  %v10248_v3 = vld [vmem:[#allocation5 + $0xc50] sm:$0xf0] }
 0x196   :  { %6978 = vmatpush.bf16.msrb.mxu1 %v10411_v15  ;;  %v13420_v2 = vld [vmem:[#allocation5 + $0xc44] sm:$0xf]  ;;  %v10651_v59 = vor.u32 %v13520_v30, %v10648_v42  ;;  %v10376_v9 = vld [vmem:[#allocation5 + $0xd50] sm:$0xf0] }
 0x197   :  { %6992 = vmatpush.bf16.msrb.mxu2 %v10539_v13  ;;  %v13452_v61 = vld [vmem:[#allocation5 + $0xd44] sm:$0xf]  ;;  %v10504_v6 = vld [vmem:[#allocation5 + $0xe50] sm:$0xf0]  ;;  %v10251_v21 = vor.u32 %v13420_v2, %v10248_v3 }
 0x198   :  { %7006 = vmatpush.bf16.msrb.mxu3 %v10667_v14  ;;  %v13484_v4 = vld [vmem:[#allocation5 + $0xe44] sm:$0xf]  ;;  %v10632_v22 = vld [vmem:[#allocation5 + $0xf50] sm:$0xf0]  ;;  %v10379_v15 = vor.u32 %v13452_v61, %v10376_v9 }
 0x199   :  { %v13516_v12 = vld [vmem:[#allocation5 + $0xf44] sm:$0xf]  ;;  %6965 = vmatpush.bf16.msrb.mxu0 %v10267_v54  ;;  %v10507_v13 = vor.u32 %v13484_v4, %v10504_v6  ;;  %v10232_v16 = vld [vmem:[#allocation5 + $0xc30] sm:$0xf0] }
 0x19a   :  { %6979 = vmatpush.bf16.msrb.mxu1 %v10395_v50  ;;  %v13416_v5 = vld [vmem:[#allocation5 + $0xc24] sm:$0xf]  ;;  %v10635_v14 = vor.u32 %v13516_v12, %v10632_v22  ;;  %v10360_v52 = vld [vmem:[#allocation5 + $0xd30] sm:$0xf0] }
 0x19b   :  { %6993 = vmatpush.bf16.msrb.mxu2 %v10523_v23  ;;  %v13448_v20 = vld [vmem:[#allocation5 + $0xd24] sm:$0xf]  ;;  %v10488_v18 = vld [vmem:[#allocation5 + $0xe30] sm:$0xf0]  ;;  %v10235_v42 = vor.u32 %v13416_v5, %v10232_v16 }
 0x19c   :  { %7007 = vmatpush.bf16.msrb.mxu3 %v10651_v59  ;;  %v13480_v24 = vld [vmem:[#allocation5 + $0xe24] sm:$0xf]  ;;  %v10616_v30 = vld [vmem:[#allocation5 + $0xf30] sm:$0xf0]  ;;  %v10363_v50 = vor.u32 %v13448_v20, %v10360_v52 }
 0x19d   :  { %v13512_v53 = vld [vmem:[#allocation5 + $0xf24] sm:$0xf]  ;;  %6966 = vmatpush.bf16.msrb.mxu0 %v10251_v21  ;;  %v10216_v2 = vld [vmem:[#allocation5 + $0xc10] sm:$0xf0]  ;;  %v10491_v23 = vor.u32 %v13480_v24, %v10488_v18 }
 0x19e   :  { %v13412_v54 = vld [vmem:[#allocation5 + $0xc04] sm:$0xf]  ;;  %6980 = vmatpush.bf16.msrb.mxu1 %v10379_v15  ;;  %v10344_v61 = vld [vmem:[#allocation5 + $0xd10] sm:$0xf0]  ;;  %v10619_v9 = vor.u32 %v13512_v53, %v10616_v30 }
 0x19f   :  { %6994 = vmatpush.bf16.msrb.mxu2 %v10507_v13  ;;  %v13444_v3 = vld [vmem:[#allocation5 + $0xd04] sm:$0xf]  ;;  %v10472_v59 = vld [vmem:[#allocation5 + $0xe10] sm:$0xf0]  ;;  %v10219_v22 = vor.u32 %v13412_v54, %v10216_v2 }
 0x1a0   :  { %v13476_v8 = vld [vmem:[#allocation5 + $0xe04] sm:$0xf]  ;;  %7008 = vmatpush.bf16.msrb.mxu3 %v10635_v14  ;;  %v10600_v6 = vld [vmem:[#allocation5 + $0xf10] sm:$0xf0]  ;;  %v10347_v15 = vor.u32 %v13444_v3, %v10344_v61  ;;  %v14525_v3 = vpop.f32.mrf.mxu1 }
 0x1a1   :  { %v13508_v4 = vld [vmem:[#allocation5 + $0xf04] sm:$0xf]  ;;  %v10840_v0 = vld [vmem:[#allocation5 + $0x10f0] sm:$0xf0]  ;;  %6967 = vmatpush.bf16.msrb.mxu0 %v10235_v42  ;;  %v10475_v13 = vor.u32 %v13476_v8, %v10472_v59  ;;  %15053 = vst [vmem:[#allocation52_spill] sm:$0xff] %v14525_v3 }
 0x1a2   :  { %v13568_v7 = vld [vmem:[#allocation5 + $0x10e4] sm:$0xf]  ;;  %v10968_v21 = vld [vmem:[#allocation5 + $0x11f0] sm:$0xf0]  ;;  %6981 = vmatpush.bf16.msrb.mxu1 %v10363_v50  ;;  %v10603_v14 = vor.u32 %v13508_v4, %v10600_v6 }
 0x1a3   :  { %v13600_v12 = vld [vmem:[#allocation5 + $0x11e4] sm:$0xf]  ;;  %v11096_v16 = vld [vmem:[#allocation5 + $0x12f0] sm:$0xf0]  ;;  %6995 = vmatpush.bf16.msrb.mxu2 %v10491_v23  ;;  %v10843_v24 = vor.u32 %v13568_v7, %v10840_v0 }
 0x1a4   :  { %v13632_v5 = vld [vmem:[#allocation5 + $0x12e4] sm:$0xf]  ;;  %v11224_v52 = vld [vmem:[#allocation5 + $0x13f0] sm:$0xf0]  ;;  %7009 = vmatpush.bf16.msrb.mxu3 %v10619_v9  ;;  %v10971_v18 = vor.u32 %v13600_v12, %v10968_v21 }
 0x1a5   :  { %v13664_v20 = vld [vmem:[#allocation5 + $0x13e4] sm:$0xf]  ;;  %v11099_v53 = vor.u32 %v13632_v5, %v11096_v16  ;;  %v10824_v45 = vld [vmem:[#allocation5 + $0x10d0] sm:$0xf0]  ;;  %6968 = vmatpush.bf16.msrb.mxu0 %v10219_v22 }
 0x1a6   :  { %v13564_v30 = vld [vmem:[#allocation5 + $0x10c4] sm:$0xf]  ;;  %v11227_v42 = vor.u32 %v13664_v20, %v11224_v52  ;;  %v10952_v54 = vld [vmem:[#allocation5 + $0x11d0] sm:$0xf0]  ;;  %6982 = vmatpush.bf16.msrb.mxu1 %v10347_v15  ;;  %v14531_v20 = vpop.f32.mrf.mxu2 }
 0x1a7   :  { %v13596_v11 = vld [vmem:[#allocation5 + $0x11c4] sm:$0xf]  ;;  %v11080_v19 = vld [vmem:[#allocation5 + $0x12d0] sm:$0xf0]  ;;  %6996 = vmatpush.bf16.msrb.mxu2 %v10475_v13  ;;  %v10827_v61 = vor.u32 %v13564_v30, %v10824_v45  ;;  %15054 = vst [vmem:[#allocation53_spill] sm:$0xff] %v14531_v20  ;;  %v6746_v30 = vpop.f32.mrf.mxu0 }
 0x1a8   :  { %v13628_v2 = vld [vmem:[#allocation5 + $0x12c4] sm:$0xf]  ;;  %v11208_v23 = vld [vmem:[#allocation5 + $0x13d0] sm:$0xf0]  ;;  %7010 = vmatpush.bf16.msrb.mxu3 %v10603_v14  ;;  %v10955_v8 = vor.u32 %v13596_v11, %v10952_v54  ;;  %6969 = vmatmul.bf16.vlgmr.msrb.gmra.mxu0 %v14378_v32 }
 0x1a9   :  { %v13660_v50 = vld [vmem:[#allocation5 + $0x13c4] sm:$0xf]  ;;  %7017 = vmatpush.bf16.msra.mxu0 %v10843_v24  ;;  %v11083_v9 = vor.u32 %v13628_v2, %v11080_v19  ;;  %v10808_v4 = vld [vmem:[#allocation5 + $0x10b0] sm:$0xf0]  ;;  %6983 = vmatmul.bf16.vlgmr.msrb.gmra.mxu1 %v14382_v41  ;;  %v6747_v2 = vadd.f32 %v6746_v30, %v14521_v57 }
 0x1aa   :  { %7031 = vmatpush.bf16.msra.mxu1 %v10971_v18  ;;  %v13560_v59 = vld [vmem:[#allocation5 + $0x10a4] sm:$0xf]  ;;  %v11211_v7 = vor.u32 %v13660_v50, %v11208_v23  ;;  %v10936_v0 = vld [vmem:[#allocation5 + $0x11b0] sm:$0xf0]  ;;  %6997 = vmatmul.bf16.vlgmr.msrb.gmra.mxu2 %v14380_v38  ;;  %v6760_v23 = vpop.f32.mrf.mxu1 }
 0x1ab   :  { %7045 = vmatpush.bf16.msra.mxu2 %v11099_v53  ;;  %v13592_v6 = vld [vmem:[#allocation5 + $0x11a4] sm:$0xf]  ;;  %v11064_v22 = vld [vmem:[#allocation5 + $0x12b0] sm:$0xf0]  ;;  %7011 = vmatmul.bf16.vlgmr.msrb.gmra.mxu3 %v14384_v46  ;;  %v10811_v19 = vor.u32 %v13560_v59, %v10808_v4  ;;  %v14533_v53 = vpop.f32.mrf.mxu3 }
 0x1ac   :  { %7059 = vmatpush.bf16.msra.mxu3 %v11227_v42  ;;  %v13624_v12 = vld [vmem:[#allocation5 + $0x12a4] sm:$0xf]  ;;  %v11192_v45 = vld [vmem:[#allocation5 + $0x13b0] sm:$0xf0]  ;;  %v10939_v11 = vor.u32 %v13592_v6, %v10936_v0  ;;  %15055 = vst [vmem:[#allocation54_spill] sm:$0xff] %v14533_v53 }
 0x1ad   :  { %v13656_v21 = vld [vmem:[#allocation5 + $0x13a4] sm:$0xf]  ;;  %7018 = vmatpush.bf16.msra.mxu0 %v10827_v61  ;;  %v11067_v5 = vor.u32 %v13624_v12, %v11064_v22  ;;  %v10792_v15 = vld [vmem:[#allocation5 + $0x1090] sm:$0xf0] }
 0x1ae   :  { %7032 = vmatpush.bf16.msra.mxu1 %v10955_v8  ;;  %v13556_v16 = vld [vmem:[#allocation5 + $0x1084] sm:$0xf]  ;;  %v11195_v52 = vor.u32 %v13656_v21, %v11192_v45  ;;  %v10920_v14 = vld [vmem:[#allocation5 + $0x1190] sm:$0xf0] }
 0x1af   :  { %7046 = vmatpush.bf16.msra.mxu2 %v11083_v9  ;;  %v13588_v13 = vld [vmem:[#allocation5 + $0x1184] sm:$0xf]  ;;  %v11048_v18 = vld [vmem:[#allocation5 + $0x1290] sm:$0xf0]  ;;  %v10795_v50 = vor.u32 %v13556_v16, %v10792_v15  ;;  %v14538_v3 = vpop.f32.mrf.mxu0 }
 0x1b0   :  { %7060 = vmatpush.bf16.msra.mxu3 %v11211_v7  ;;  %v13620_v24 = vld [vmem:[#allocation5 + $0x1284] sm:$0xf]  ;;  %v11176_v54 = vld [vmem:[#allocation5 + $0x1390] sm:$0xf0]  ;;  %v10923_v61 = vor.u32 %v13588_v13, %v10920_v14  ;;  %v6761_v7 = vadd.f32 %v6760_v23, %v6747_v2  ;;  %v6774_v14 = vpop.f32.mrf.mxu2  ;;  %15057 = vst [vmem:[#allocation56_spill] sm:$0xff] %v14538_v3 }
 0x1b1   :  { %v13652_v42 = vld [vmem:[#allocation5 + $0x1384] sm:$0xf]  ;;  %7019 = vmatpush.bf16.msra.mxu0 %v10811_v19  ;;  %v11051_v8 = vor.u32 %v13620_v24, %v11048_v18  ;;  %v10776_v59 = vld [vmem:[#allocation5 + $0x1070] sm:$0xf0] }
 0x1b2   :  { %7033 = vmatpush.bf16.msra.mxu1 %v10939_v11  ;;  %v13552_v9 = vld [vmem:[#allocation5 + $0x1064] sm:$0xf]  ;;  %v11179_v6 = vor.u32 %v13652_v42, %v11176_v54  ;;  %v10904_v0 = vld [vmem:[#allocation5 + $0x1170] sm:$0xf0]  ;;  %v6775_v30 = vadd.f32 %v6774_v14, %v6761_v7 }
 0x1b3   :  { %7047 = vmatpush.bf16.msra.mxu2 %v11067_v5  ;;  %v13584_v4 = vld [vmem:[#allocation5 + $0x1164] sm:$0xf]  ;;  %v11032_v22 = vld [vmem:[#allocation5 + $0x1270] sm:$0xf0]  ;;  %v10779_v19 = vor.u32 %v13552_v9, %v10776_v59  ;;  %v6788_v42 = vpop.f32.mrf.mxu3 }
 0x1b4   :  { %7061 = vmatpush.bf16.msra.mxu3 %v11195_v52  ;;  %v13616_v12 = vld [vmem:[#allocation5 + $0x1264] sm:$0xf]  ;;  %v11160_v45 = vld [vmem:[#allocation5 + $0x1370] sm:$0xf0]  ;;  %v10907_v57 = vor.u32 %v13584_v4, %v10904_v0  ;;  %v14536_v23 = vadd.f32 %v6788_v42, %v6775_v30 }
 0x1b5   :  { %v13648_v21 = vld [vmem:[#allocation5 + $0x1364] sm:$0xf]  ;;  %7020 = vmatpush.bf16.msra.mxu0 %v10795_v50  ;;  %v11035_v11 = vor.u32 %v13616_v12, %v11032_v22  ;;  %v10760_v16 = vld [vmem:[#allocation5 + $0x1050] sm:$0xf0] }
 0x1b6   :  { %7034 = vmatpush.bf16.msra.mxu1 %v10923_v61  ;;  %v13548_v5 = vld [vmem:[#allocation5 + $0x1044] sm:$0xf]  ;;  %v11163_v13 = vor.u32 %v13648_v21, %v11160_v45  ;;  %v10888_v52 = vld [vmem:[#allocation5 + $0x1150] sm:$0xf0]  ;;  %15056 = vst [vmem:[#allocation55_spill] sm:$0xff] %v14536_v23 }
 0x1b7   :  { %7048 = vmatpush.bf16.msra.mxu2 %v11051_v8  ;;  %v13580_v15 = vld [vmem:[#allocation5 + $0x1144] sm:$0xf]  ;;  %v11016_v18 = vld [vmem:[#allocation5 + $0x1250] sm:$0xf0]  ;;  %v10763_v50 = vor.u32 %v13548_v5, %v10760_v16 }
 0x1b8   :  { %7062 = vmatpush.bf16.msra.mxu3 %v11179_v6  ;;  %v13612_v24 = vld [vmem:[#allocation5 + $0x1244] sm:$0xf]  ;;  %v11144_v2 = vld [vmem:[#allocation5 + $0x1350] sm:$0xf0]  ;;  %v10891_v61 = vor.u32 %v13580_v15, %v10888_v52 }
 0x1b9   :  { %v13644_v54 = vld [vmem:[#allocation5 + $0x1344] sm:$0xf]  ;;  %7021 = vmatpush.bf16.msra.mxu0 %v10779_v19  ;;  %v11019_v8 = vor.u32 %v13612_v24, %v11016_v18  ;;  %v10744_v59 = vld [vmem:[#allocation5 + $0x1030] sm:$0xf0] }
 0x1ba   :  { %7035 = vmatpush.bf16.msra.mxu1 %v10907_v57  ;;  %v13544_v9 = vld [vmem:[#allocation5 + $0x1024] sm:$0xf]  ;;  %v11147_v6 = vor.u32 %v13644_v54, %v11144_v2  ;;  %v10872_v0 = vld [vmem:[#allocation5 + $0x1130] sm:$0xf0] }
 0x1bb   :  { %7049 = vmatpush.bf16.msra.mxu2 %v11035_v11  ;;  %v13576_v4 = vld [vmem:[#allocation5 + $0x1124] sm:$0xf]  ;;  %v11000_v22 = vld [vmem:[#allocation5 + $0x1230] sm:$0xf0]  ;;  %v10747_v45 = vor.u32 %v13544_v9, %v10744_v59 }
 0x1bc   :  { %7063 = vmatpush.bf16.msra.mxu3 %v11163_v13  ;;  %v13608_v12 = vld [vmem:[#allocation5 + $0x1224] sm:$0xf]  ;;  %v11128_v21 = vld [vmem:[#allocation5 + $0x1330] sm:$0xf0]  ;;  %v10875_v57 = vor.u32 %v13576_v4, %v10872_v0 }
 0x1bd   :  { %v13640_v7 = vld [vmem:[#allocation5 + $0x1324] sm:$0xf]  ;;  %7022 = vmatpush.bf16.msra.mxu0 %v10763_v50  ;;  %v10728_v5 = vld [vmem:[#allocation5 + $0x1010] sm:$0xf0]  ;;  %v11003_v11 = vor.u32 %v13608_v12, %v11000_v22 }
 0x1be   :  { %v13540_v19 = vld [vmem:[#allocation5 + $0x1004] sm:$0xf]  ;;  %7036 = vmatpush.bf16.msra.mxu1 %v10891_v61  ;;  %v10856_v15 = vld [vmem:[#allocation5 + $0x1110] sm:$0xf0]  ;;  %v11131_v52 = vor.u32 %v13640_v7, %v11128_v21 }
 0x1bf   :  { %7050 = vmatpush.bf16.msra.mxu2 %v11019_v8  ;;  %v13572_v16 = vld [vmem:[#allocation5 + $0x1104] sm:$0xf]  ;;  %v10984_v13 = vld [vmem:[#allocation5 + $0x1210] sm:$0xf0]  ;;  %v10731_v2 = vor.u32 %v13540_v19, %v10728_v5 }
 0x1c0   :  { %v13604_v14 = vld [vmem:[#allocation5 + $0x1204] sm:$0xf]  ;;  %7064 = vmatpush.bf16.msra.mxu3 %v11147_v6  ;;  %v11112_v18 = vld [vmem:[#allocation5 + $0x1310] sm:$0xf0]  ;;  %v10859_v61 = vor.u32 %v13572_v16, %v10856_v15  ;;  %v14540_v15 = vpop.f32.mrf.mxu1 }
 0x1c1   :  { %v13636_v24 = vld [vmem:[#allocation5 + $0x1304] sm:$0xf]  ;;  %v11352_v42 = vld [vmem:[#allocation5 + $0x14f0] sm:$0xf0]  ;;  %7023 = vmatpush.bf16.msra.mxu0 %v10747_v45  ;;  %v10987_v8 = vor.u32 %v13604_v14, %v10984_v13  ;;  %15058 = vst [vmem:[#allocation57_spill] sm:$0xff] %v14540_v15 }
 0x1c2   :  { %v13696_v30 = vld [vmem:[#allocation5 + $0x14e4] sm:$0xf]  ;;  %v11480_v50 = vld [vmem:[#allocation5 + $0x15f0] sm:$0xf0]  ;;  %7037 = vmatpush.bf16.msra.mxu1 %v10875_v57  ;;  %v11115_v6 = vor.u32 %v13636_v24, %v11112_v18 }
 0x1c3   :  { %v13728_v54 = vld [vmem:[#allocation5 + $0x15e4] sm:$0xf]  ;;  %v11608_v59 = vld [vmem:[#allocation5 + $0x16f0] sm:$0xf0]  ;;  %7051 = vmatpush.bf16.msra.mxu2 %v11003_v11  ;;  %v11355_v12 = vor.u32 %v13696_v30, %v11352_v42 }
 0x1c4   :  { %v13760_v9 = vld [vmem:[#allocation5 + $0x16e4] sm:$0xf]  ;;  %v11736_v0 = vld [vmem:[#allocation5 + $0x17f0] sm:$0xf0]  ;;  %7065 = vmatpush.bf16.msra.mxu3 %v11131_v52  ;;  %v11483_v22 = vor.u32 %v13728_v54, %v11480_v50 }
 0x1c5   :  { %v13792_v4 = vld [vmem:[#allocation5 + $0x17e4] sm:$0xf]  ;;  %v11611_v7 = vor.u32 %v13760_v9, %v11608_v59  ;;  %v11336_v23 = vld [vmem:[#allocation5 + $0x14d0] sm:$0xf0]  ;;  %7024 = vmatpush.bf16.msra.mxu0 %v10731_v2 }
 0x1c6   :  { %v13692_v21 = vld [vmem:[#allocation5 + $0x14c4] sm:$0xf]  ;;  %v11739_v45 = vor.u32 %v13792_v4, %v11736_v0  ;;  %v11464_v19 = vld [vmem:[#allocation5 + $0x15d0] sm:$0xf0]  ;;  %7038 = vmatpush.bf16.msra.mxu1 %v10859_v61 }
 0x1c7   :  { %v13724_v53 = vld [vmem:[#allocation5 + $0x15c4] sm:$0xf]  ;;  %v11592_v20 = vld [vmem:[#allocation5 + $0x16d0] sm:$0xf0]  ;;  %7052 = vmatpush.bf16.msra.mxu2 %v10987_v8  ;;  %v11339_v16 = vor.u32 %v13692_v21, %v11336_v23 }
 0x1c8   :  { %v13756_v5 = vld [vmem:[#allocation5 + $0x16c4] sm:$0xf]  ;;  %v11720_v11 = vld [vmem:[#allocation5 + $0x17d0] sm:$0xf0]  ;;  %7066 = vmatpush.bf16.msra.mxu3 %v11115_v6  ;;  %v11467_v14 = vor.u32 %v13724_v53, %v11464_v19  ;;  %7025 = vmatmul.bf16.vlgmr.msra.gmra.mxu0 %v14390_v51  ;;  %v14546_v53 = vld [vmem:[#allocation7] sm:$0xf]  ;;  %v14549_v6 = vpop.f32.mrf.mxu2 }
 0x1c9   :  { %v13788_v57 = vld [vmem:[#allocation5 + $0x17c4] sm:$0xf]  ;;  %7073 = vmatpush.bf16.msrb.mxu0 %v11355_v12  ;;  %v11595_v52 = vor.u32 %v13756_v5, %v11592_v20  ;;  %v11320_v24 = vld [vmem:[#allocation5 + $0x14b0] sm:$0xf0]  ;;  %7039 = vmatmul.bf16.vlgmr.msra.gmra.mxu1 %v14394_v56  ;;  %15059 = vst [vmem:[#allocation58_spill] sm:$0xff] %v14546_v53  ;;  %v15006_v9 = vperm.slane %v14546_v53, 1  ;;  %v6802_v5 = vpop.f32.mrf.mxu0 }
 0x1ca   :  { %7087 = vmatpush.bf16.msrb.mxu1 %v11483_v22  ;;  %v13688_v13 = vld [vmem:[#allocation5 + $0x14a4] sm:$0xf]  ;;  %v11723_v30 = vor.u32 %v13788_v57, %v11720_v11  ;;  %v11448_v42 = vld [vmem:[#allocation5 + $0x15b0] sm:$0xf0]  ;;  %7053 = vmatmul.bf16.vlgmr.msra.gmra.mxu2 %v14392_v55  ;;  %15060 = vst [vmem:[#allocation59_spill] sm:$0xff] %v14549_v6  ;;  %v14551_v57 = vpop.f32.mrf.mxu3 }
 0x1cb   :  { %7101 = vmatpush.bf16.msrb.mxu2 %v11611_v7  ;;  %v13720_v18 = vld [vmem:[#allocation5 + $0x15a4] sm:$0xf]  ;;  %v11576_v2 = vld [vmem:[#allocation5 + $0x16b0] sm:$0xf0]  ;;  %7067 = vmatmul.bf16.vlgmr.msra.gmra.mxu3 %v14396_v60  ;;  %v11323_v20 = vor.u32 %v13688_v13, %v11320_v24  ;;  %15061 = vst [vmem:[#allocation60_spill] sm:$0xff] %v14551_v57 }
 0x1cc   :  { %7115 = vmatpush.bf16.msrb.mxu3 %v11739_v45  ;;  %v13752_v54 = vld [vmem:[#allocation5 + $0x16a4] sm:$0xf]  ;;  %v11704_v50 = vld [vmem:[#allocation5 + $0x17b0] sm:$0xf0]  ;;  %v11451_v59 = vor.u32 %v13720_v18, %v11448_v42 }
 0x1cd   :  { %v13784_v23 = vld [vmem:[#allocation5 + $0x17a4] sm:$0xf]  ;;  %7074 = vmatpush.bf16.msrb.mxu0 %v11339_v16  ;;  %v11579_v61 = vor.u32 %v13752_v54, %v11576_v2  ;;  %v11304_v4 = vld [vmem:[#allocation5 + $0x1490] sm:$0xf0]  ;;  %v6803_v16 = vadd.f32 %v6802_v5, %v15006_v9 }
 0x1ce   :  { %7088 = vmatpush.bf16.msrb.mxu1 %v11467_v14  ;;  %v13684_v8 = vld [vmem:[#allocation5 + $0x1484] sm:$0xf]  ;;  %v11707_v12 = vor.u32 %v13784_v23, %v11704_v50  ;;  %v11432_v22 = vld [vmem:[#allocation5 + $0x1590] sm:$0xf0] }
 0x1cf   :  { %7102 = vmatpush.bf16.msrb.mxu2 %v11595_v52  ;;  %v13716_v0 = vld [vmem:[#allocation5 + $0x1584] sm:$0xf]  ;;  %v11560_v21 = vld [vmem:[#allocation5 + $0x1690] sm:$0xf0]  ;;  %v11307_v11 = vor.u32 %v13684_v8, %v11304_v4 }
 0x1d0   :  { %7116 = vmatpush.bf16.msrb.mxu3 %v11723_v30  ;;  %v13748_v7 = vld [vmem:[#allocation5 + $0x1684] sm:$0xf]  ;;  %v11688_v19 = vld [vmem:[#allocation5 + $0x1790] sm:$0xf0]  ;;  %v11435_v14 = vor.u32 %v13716_v0, %v11432_v22  ;;  %v6816_v30 = vpop.f32.mrf.mxu1 }
 0x1d1   :  { %v13780_v45 = vld [vmem:[#allocation5 + $0x1784] sm:$0xf]  ;;  %7075 = vmatpush.bf16.msrb.mxu0 %v11323_v20  ;;  %v11563_v52 = vor.u32 %v13748_v7, %v11560_v21  ;;  %v11288_v24 = vld [vmem:[#allocation5 + $0x1470] sm:$0xf0]  ;;  %v6817_v50 = vadd.f32 %v6816_v30, %v6803_v16 }
 0x1d2   :  { %7089 = vmatpush.bf16.msrb.mxu1 %v11451_v59  ;;  %v13680_v13 = vld [vmem:[#allocation5 + $0x1464] sm:$0xf]  ;;  %v11691_v42 = vor.u32 %v13780_v45, %v11688_v19  ;;  %v11416_v54 = vld [vmem:[#allocation5 + $0x1570] sm:$0xf0]  ;;  %v6830_v19 = vpop.f32.mrf.mxu2 }
 0x1d3   :  { %7103 = vmatpush.bf16.msrb.mxu2 %v11579_v61  ;;  %v13712_v18 = vld [vmem:[#allocation5 + $0x1564] sm:$0xf]  ;;  %v11544_v23 = vld [vmem:[#allocation5 + $0x1670] sm:$0xf0]  ;;  %v11291_v8 = vor.u32 %v13680_v13, %v11288_v24  ;;  %v6831_v16 = vadd.f32 %v6830_v19, %v6817_v50 }
 0x1d4   :  { %7117 = vmatpush.bf16.msrb.mxu3 %v11707_v12  ;;  %v13744_v2 = vld [vmem:[#allocation5 + $0x1664] sm:$0xf]  ;;  %v11672_v20 = vld [vmem:[#allocation5 + $0x1770] sm:$0xf0]  ;;  %v11419_v59 = vor.u32 %v13712_v18, %v11416_v54 }
 0x1d5   :  { %v13776_v57 = vld [vmem:[#allocation5 + $0x1764] sm:$0xf]  ;;  %7076 = vmatpush.bf16.msrb.mxu0 %v11307_v11  ;;  %v11547_v61 = vor.u32 %v13744_v2, %v11544_v23  ;;  %v11272_v0 = vld [vmem:[#allocation5 + $0x1450] sm:$0xf0]  ;;  %v6844_v11 = vpop.f32.mrf.mxu3 }
 0x1d6   :  { %7090 = vmatpush.bf16.msrb.mxu1 %v11435_v14  ;;  %v13676_v4 = vld [vmem:[#allocation5 + $0x1444] sm:$0xf]  ;;  %v11675_v7 = vor.u32 %v13776_v57, %v11672_v20  ;;  %v11400_v21 = vld [vmem:[#allocation5 + $0x1550] sm:$0xf0]  ;;  %v14555_v54 = vadd.f32 %v6844_v11, %v6831_v16 }
 0x1d7   :  { %7104 = vmatpush.bf16.msrb.mxu2 %v11563_v52  ;;  %v13708_v22 = vld [vmem:[#allocation5 + $0x1544] sm:$0xf]  ;;  %v11528_v45 = vld [vmem:[#allocation5 + $0x1650] sm:$0xf0]  ;;  %v11275_v30 = vor.u32 %v13676_v4, %v11272_v0 }
 0x1d8   :  { %7118 = vmatpush.bf16.msrb.mxu3 %v11691_v42  ;;  %v13740_v12 = vld [vmem:[#allocation5 + $0x1644] sm:$0xf]  ;;  %v11656_v9 = vld [vmem:[#allocation5 + $0x1750] sm:$0xf0]  ;;  %v11403_v14 = vor.u32 %v13708_v22, %v11400_v21 }
 0x1d9   :  { %v13772_v5 = vld [vmem:[#allocation5 + $0x1744] sm:$0xf]  ;;  %7077 = vmatpush.bf16.msrb.mxu0 %v11291_v8  ;;  %v11531_v52 = vor.u32 %v13740_v12, %v11528_v45  ;;  %v11256_v24 = vld [vmem:[#allocation5 + $0x1430] sm:$0xf0] }
 0x1da   :  { %7091 = vmatpush.bf16.msrb.mxu1 %v11419_v59  ;;  %v13672_v13 = vld [vmem:[#allocation5 + $0x1424] sm:$0xf]  ;;  %v11659_v57 = vor.u32 %v13772_v5, %v11656_v9  ;;  %v11384_v42 = vld [vmem:[#allocation5 + $0x1530] sm:$0xf0] }
 0x1db   :  { %7105 = vmatpush.bf16.msrb.mxu2 %v11547_v61  ;;  %v13704_v18 = vld [vmem:[#allocation5 + $0x1524] sm:$0xf]  ;;  %v11512_v23 = vld [vmem:[#allocation5 + $0x1630] sm:$0xf0]  ;;  %v11259_v50 = vor.u32 %v13672_v13, %v11256_v24 }
 0x1dc   :  { %7119 = vmatpush.bf16.msrb.mxu3 %v11675_v7  ;;  %v13736_v2 = vld [vmem:[#allocation5 + $0x1624] sm:$0xf]  ;;  %v11640_v6 = vld [vmem:[#allocation5 + $0x1730] sm:$0xf0]  ;;  %v11387_v59 = vor.u32 %v13704_v18, %v11384_v42 }
 0x1dd   :  { %v13768_v20 = vld [vmem:[#allocation5 + $0x1724] sm:$0xf]  ;;  %7078 = vmatpush.bf16.msrb.mxu0 %v11275_v30  ;;  %v11240_v4 = vld [vmem:[#allocation5 + $0x1410] sm:$0xf0]  ;;  %v11515_v61 = vor.u32 %v13736_v2, %v11512_v23 }
 0x1de   :  { %v13668_v8 = vld [vmem:[#allocation5 + $0x1404] sm:$0xf]  ;;  %7092 = vmatpush.bf16.msrb.mxu1 %v11403_v14  ;;  %v11368_v22 = vld [vmem:[#allocation5 + $0x1510] sm:$0xf0]  ;;  %v11643_v12 = vor.u32 %v13768_v20, %v11640_v6  ;;  %v14557_v20 = vpop.f32.mrf.mxu0 }
 0x1df   :  { %7106 = vmatpush.bf16.msrb.mxu2 %v11531_v52  ;;  %v13700_v0 = vld [vmem:[#allocation5 + $0x1504] sm:$0xf]  ;;  %v11496_v7 = vld [vmem:[#allocation5 + $0x1610] sm:$0xf0]  ;;  %v11243_v30 = vor.u32 %v13668_v8, %v11240_v4  ;;  %15062 = vst [vmem:[#allocation61_spill] sm:$0xff] %v14557_v20 }
 0x1e0   :  { %v13732_v21 = vld [vmem:[#allocation5 + $0x1604] sm:$0xf]  ;;  %7120 = vmatpush.bf16.msrb.mxu3 %v11659_v57  ;;  %v11624_v45 = vld [vmem:[#allocation5 + $0x1710] sm:$0xf0]  ;;  %v11371_v14 = vor.u32 %v13700_v0, %v11368_v22  ;;  %v14559_v22 = vpop.f32.mrf.mxu1 }
 0x1e1   :  { %v13764_v9 = vld [vmem:[#allocation5 + $0x1704] sm:$0xf]  ;;  %v11864_v5 = vld [vmem:[#allocation5 + $0x18f0] sm:$0xf0]  ;;  %7079 = vmatpush.bf16.msrb.mxu0 %v11259_v50  ;;  %v11499_v52 = vor.u32 %v13732_v21, %v11496_v7  ;;  %15063 = vst [vmem:[#allocation62_spill] sm:$0xff] %v14559_v22 }
 0x1e2   :  { %v13824_v19 = vld [vmem:[#allocation5 + $0x18e4] sm:$0xf]  ;;  %v11992_v11 = vld [vmem:[#allocation5 + $0x19f0] sm:$0xf0]  ;;  %7093 = vmatpush.bf16.msrb.mxu1 %v11387_v59  ;;  %v11627_v57 = vor.u32 %v13764_v9, %v11624_v45 }
 0x1e3   :  { %v13856_v16 = vld [vmem:[#allocation5 + $0x19e4] sm:$0xf]  ;;  %v12120_v24 = vld [vmem:[#allocation5 + $0x1af0] sm:$0xf0]  ;;  %7107 = vmatpush.bf16.msrb.mxu2 %v11515_v61  ;;  %v11867_v6 = vor.u32 %v13824_v19, %v11864_v5 }
 0x1e4   :  { %v13888_v13 = vld [vmem:[#allocation5 + $0x1ae4] sm:$0xf]  ;;  %v12248_v42 = vld [vmem:[#allocation5 + $0x1bf0] sm:$0xf0]  ;;  %7121 = vmatpush.bf16.msrb.mxu3 %v11643_v12  ;;  %v11995_v2 = vor.u32 %v13856_v16, %v11992_v11 }
 0x1e5   :  { %v13920_v18 = vld [vmem:[#allocation5 + $0x1be4] sm:$0xf]  ;;  %v12123_v23 = vor.u32 %v13888_v13, %v12120_v24  ;;  %v11848_v3 = vld [vmem:[#allocation5 + $0x18d0] sm:$0xf0]  ;;  %7080 = vmatpush.bf16.msrb.mxu0 %v11243_v30 }
 0x1e6   :  { %v13820_v15 = vld [vmem:[#allocation5 + $0x18c4] sm:$0xf]  ;;  %v12251_v8 = vor.u32 %v13920_v18, %v12248_v42  ;;  %v11976_v4 = vld [vmem:[#allocation5 + $0x19d0] sm:$0xf0]  ;;  %7094 = vmatpush.bf16.msrb.mxu1 %v11371_v14 }
 0x1e7   :  { %v13852_v50 = vld [vmem:[#allocation5 + $0x19c4] sm:$0xf]  ;;  %v12104_v59 = vld [vmem:[#allocation5 + $0x1ad0] sm:$0xf0]  ;;  %7108 = vmatpush.bf16.msrb.mxu2 %v11499_v52  ;;  %v11851_v21 = vor.u32 %v13820_v15, %v11848_v3  ;;  %v14565_v15 = vpop.f32.mrf.mxu2 }
 0x1e8   :  { %v13884_v25 = vld [vmem:[#allocation5 + $0x1ac4] sm:$0xf]  ;;  %v12232_v0 = vld [vmem:[#allocation5 + $0x1bd0] sm:$0xf0]  ;;  %7122 = vmatpush.bf16.msrb.mxu3 %v11627_v57  ;;  %v11979_v12 = vor.u32 %v13852_v50, %v11976_v4  ;;  %7081 = vmatmul.bf16.vlgmr.msrb.gmra.mxu0 %v14411_v26  ;;  %15064 = vst [vmem:[#allocation63_spill] sm:$0xff] %v14565_v15 }
 0x1e9   :  { %v13916_v61 = vld [vmem:[#allocation5 + $0x1bc4] sm:$0xf]  ;;  %7129 = vmatpush.bf16.msra.mxu0 %v11867_v6  ;;  %v12107_v7 = vor.u32 %v13884_v25, %v12104_v59  ;;  %v11832_v45 = vld [vmem:[#allocation5 + $0x18b0] sm:$0xf0]  ;;  %7095 = vmatmul.bf16.vlgmr.msrb.gmra.mxu1 %v14415_v34  ;;  %v14567_v6 = vpop.f32.mrf.mxu3 }
 0x1ea   :  { %7143 = vmatpush.bf16.msra.mxu1 %v11995_v2  ;;  %v13816_v9 = vld [vmem:[#allocation5 + $0x18a4] sm:$0xf]  ;;  %v12235_v5 = vor.u32 %v13916_v61, %v12232_v0  ;;  %v11960_v16 = vld [vmem:[#allocation5 + $0x19b0] sm:$0xf0]  ;;  %7109 = vmatmul.bf16.vlgmr.msrb.gmra.mxu2 %v14413_v33  ;;  %15065 = vst [vmem:[#allocation64_spill] sm:$0xff] %v14567_v6 }
 0x1eb   :  { %7157 = vmatpush.bf16.msra.mxu2 %v12123_v23  ;;  %v13848_v19 = vld [vmem:[#allocation5 + $0x19a4] sm:$0xf]  ;;  %v12088_v11 = vld [vmem:[#allocation5 + $0x1ab0] sm:$0xf0]  ;;  %7123 = vmatmul.bf16.vlgmr.msrb.gmra.mxu3 %v14419_v48  ;;  %v11835_v25 = vor.u32 %v13816_v9, %v11832_v45 }
 0x1ec   :  { %7171 = vmatpush.bf16.msra.mxu3 %v12251_v8  ;;  %v13880_v30 = vld [vmem:[#allocation5 + $0x1aa4] sm:$0xf]  ;;  %v12216_v3 = vld [vmem:[#allocation5 + $0x1bb0] sm:$0xf0]  ;;  %v11963_v24 = vor.u32 %v13848_v19, %v11960_v16  ;;  %v6858_v8 = vpop.f32.mrf.mxu0 }
 0x1ed   :  { %v13912_v13 = vld [vmem:[#allocation5 + $0x1ba4] sm:$0xf]  ;;  %7130 = vmatpush.bf16.msra.mxu0 %v11851_v21  ;;  %v12091_v14 = vor.u32 %v13880_v30, %v12088_v11  ;;  %v11816_v18 = vld [vmem:[#allocation5 + $0x1890] sm:$0xf0]  ;;  %v6859_v61 = vadd.f32 %v6858_v8, %v14555_v54 }
 0x1ee   :  { %7144 = vmatpush.bf16.msra.mxu1 %v11979_v12  ;;  %v13812_v52 = vld [vmem:[#allocation5 + $0x1884] sm:$0xf]  ;;  %v12219_v57 = vor.u32 %v13912_v13, %v12216_v3  ;;  %v11944_v2 = vld [vmem:[#allocation5 + $0x1990] sm:$0xf0] }
 0x1ef   :  { %7158 = vmatpush.bf16.msra.mxu2 %v12107_v7  ;;  %v13844_v42 = vld [vmem:[#allocation5 + $0x1984] sm:$0xf]  ;;  %v12072_v50 = vld [vmem:[#allocation5 + $0x1a90] sm:$0xf0]  ;;  %v11819_v0 = vor.u32 %v13812_v52, %v11816_v18  ;;  %v6872_v7 = vpop.f32.mrf.mxu1 }
 0x1f0   :  { %7172 = vmatpush.bf16.msra.mxu3 %v12235_v5  ;;  %v13876_v23 = vld [vmem:[#allocation5 + $0x1a84] sm:$0xf]  ;;  %v12200_v59 = vld [vmem:[#allocation5 + $0x1b90] sm:$0xf0]  ;;  %v11947_v21 = vor.u32 %v13844_v42, %v11944_v2  ;;  %v6873_v16 = vadd.f32 %v6872_v7, %v6859_v61  ;;  %v6886_v2 = vpop.f32.mrf.mxu2 }
 0x1f1   :  { %v13908_v4 = vld [vmem:[#allocation5 + $0x1b84] sm:$0xf]  ;;  %7131 = vmatpush.bf16.msra.mxu0 %v11835_v25  ;;  %v12075_v12 = vor.u32 %v13876_v23, %v12072_v50  ;;  %v11800_v45 = vld [vmem:[#allocation5 + $0x1870] sm:$0xf0]  ;;  %v6900_v61 = vpop.f32.mrf.mxu3 }
 0x1f2   :  { %7145 = vmatpush.bf16.msra.mxu1 %v11963_v24  ;;  %v13808_v9 = vld [vmem:[#allocation5 + $0x1864] sm:$0xf]  ;;  %v12203_v5 = vor.u32 %v13908_v4, %v12200_v59  ;;  %v11928_v30 = vld [vmem:[#allocation5 + $0x1970] sm:$0xf0]  ;;  %v6887_v8 = vadd.f32 %v6886_v2, %v6873_v16 }
 0x1f3   :  { %7159 = vmatpush.bf16.msra.mxu2 %v12091_v14  ;;  %v13840_v19 = vld [vmem:[#allocation5 + $0x1964] sm:$0xf]  ;;  %v12056_v13 = vld [vmem:[#allocation5 + $0x1a70] sm:$0xf0]  ;;  %v11803_v25 = vor.u32 %v13808_v9, %v11800_v45 }
 0x1f4   :  { %7173 = vmatpush.bf16.msra.mxu3 %v12219_v57  ;;  %v13872_v11 = vld [vmem:[#allocation5 + $0x1a64] sm:$0xf]  ;;  %v12184_v6 = vld [vmem:[#allocation5 + $0x1b70] sm:$0xf0]  ;;  %v11931_v54 = vor.u32 %v13840_v19, %v11928_v30  ;;  %v14572_v53 = vpop.f32.mrf.mxu0 }
 0x1f5   :  { %v13904_v3 = vld [vmem:[#allocation5 + $0x1b64] sm:$0xf]  ;;  %7132 = vmatpush.bf16.msra.mxu0 %v11819_v0  ;;  %v12059_v24 = vor.u32 %v13872_v11, %v12056_v13  ;;  %v11784_v52 = vld [vmem:[#allocation5 + $0x1850] sm:$0xf0]  ;;  %15066 = vst [vmem:[#allocation65_spill] sm:$0xff] %v14572_v53 }
 0x1f6   :  { %7146 = vmatpush.bf16.msra.mxu1 %v11947_v21  ;;  %v13804_v14 = vld [vmem:[#allocation5 + $0x1844] sm:$0xf]  ;;  %v12187_v42 = vor.u32 %v13904_v3, %v12184_v6  ;;  %v11912_v57 = vld [vmem:[#allocation5 + $0x1950] sm:$0xf0]  ;;  %v14570_v21 = vadd.f32 %v6900_v61, %v6887_v8  ;;  %v13119_v53 = vld [vmem:[#allocation5 + $0x2d4] sm:$0xf0] }
 0x1f7   :  { %7160 = vmatpush.bf16.msra.mxu2 %v12075_v12  ;;  %v13836_v18 = vld [vmem:[#allocation5 + $0x1944] sm:$0xf]  ;;  %v12040_v50 = vld [vmem:[#allocation5 + $0x1a50] sm:$0xf0]  ;;  %v11787_v0 = vor.u32 %v13804_v14, %v11784_v52 }
 0x1f8   :  { %7174 = vmatpush.bf16.msra.mxu3 %v12203_v5  ;;  %v13868_v23 = vld [vmem:[#allocation5 + $0x1a44] sm:$0xf]  ;;  %v12168_v59 = vld [vmem:[#allocation5 + $0x1b50] sm:$0xf0]  ;;  %v11915_v12 = vor.u32 %v13836_v18, %v11912_v57 }
 0x1f9   :  { %v13900_v4 = vld [vmem:[#allocation5 + $0x1b44] sm:$0xf]  ;;  %7133 = vmatpush.bf16.msra.mxu0 %v11803_v25  ;;  %v12043_v7 = vor.u32 %v13868_v23, %v12040_v50  ;;  %v11768_v45 = vld [vmem:[#allocation5 + $0x1830] sm:$0xf0] }
 0x1fa   :  { %7147 = vmatpush.bf16.msra.mxu1 %v11931_v54  ;;  %v13800_v9 = vld [vmem:[#allocation5 + $0x1824] sm:$0xf]  ;;  %v12171_v6 = vor.u32 %v13900_v4, %v12168_v59  ;;  %v11896_v5 = vld [vmem:[#allocation5 + $0x1930] sm:$0xf0] }
 0x1fb   :  { %7161 = vmatpush.bf16.msra.mxu2 %v12059_v24  ;;  %v13832_v19 = vld [vmem:[#allocation5 + $0x1924] sm:$0xf]  ;;  %v12024_v11 = vld [vmem:[#allocation5 + $0x1a30] sm:$0xf0]  ;;  %v11771_v3 = vor.u32 %v13800_v9, %v11768_v45 }
 0x1fc   :  { %7175 = vmatpush.bf16.msra.mxu3 %v12187_v42  ;;  %v13864_v30 = vld [vmem:[#allocation5 + $0x1a24] sm:$0xf]  ;;  %v12152_v13 = vld [vmem:[#allocation5 + $0x1b30] sm:$0xf0]  ;;  %v11899_v54 = vor.u32 %v13832_v19, %v11896_v5 }
 0x1fd   :  { %v13896_v16 = vld [vmem:[#allocation5 + $0x1b24] sm:$0xf]  ;;  %7134 = vmatpush.bf16.msra.mxu0 %v11787_v0  ;;  %v11752_v14 = vld [vmem:[#allocation5 + $0x1810] sm:$0xf0]  ;;  %v12027_v24 = vor.u32 %v13864_v30, %v12024_v11 }
 0x1fe   :  { %v13796_v25 = vld [vmem:[#allocation5 + $0x1804] sm:$0xf]  ;;  %7148 = vmatpush.bf16.msra.mxu1 %v11915_v12  ;;  %v11880_v18 = vld [vmem:[#allocation5 + $0x1910] sm:$0xf0]  ;;  %v12155_v57 = vor.u32 %v13896_v16, %v12152_v13 }
 0x1ff   :  { %7162 = vmatpush.bf16.msra.mxu2 %v12043_v7  ;;  %v13828_v52 = vld [vmem:[#allocation5 + $0x1904] sm:$0xf]  ;;  %v12008_v42 = vld [vmem:[#allocation5 + $0x1a10] sm:$0xf0]  ;;  %v11755_v61 = vor.u32 %v13796_v25, %v11752_v14 }
 0x200   :  { %v13860_v2 = vld [vmem:[#allocation5 + $0x1a04] sm:$0xf]  ;;  %7176 = vmatpush.bf16.msra.mxu3 %v12171_v6  ;;  %v12136_v50 = vld [vmem:[#allocation5 + $0x1b10] sm:$0xf0]  ;;  %v11883_v12 = vor.u32 %v13828_v52, %v11880_v18  ;;  %v14574_v52 = vpop.f32.mrf.mxu1 }
 0x201   :  { %v13892_v23 = vld [vmem:[#allocation5 + $0x1b04] sm:$0xf]  ;;  %v12376_v4 = vld [vmem:[#allocation5 + $0x1cf0] sm:$0xf0]  ;;  %7135 = vmatpush.bf16.msra.mxu0 %v11771_v3  ;;  %v12011_v7 = vor.u32 %v13860_v2, %v12008_v42  ;;  %15067 = vst [vmem:[#allocation66_spill] sm:$0xff] %v14574_v52 }
 0x202   :  { %v13952_v8 = vld [vmem:[#allocation5 + $0x1ce4] sm:$0xf]  ;;  %v12504_v0 = vld [vmem:[#allocation5 + $0x1df0] sm:$0xf0]  ;;  %7149 = vmatpush.bf16.msra.mxu1 %v11899_v54  ;;  %v12139_v6 = vor.u32 %v13892_v23, %v12136_v50  ;;  %v8910_v52 = vld [vmem:[#allocation5 + $0x1c8] sm:$0xf] }
 0x203   :  { %v13984_v59 = vld [vmem:[#allocation5 + $0x1de4] sm:$0xf]  ;;  %v12632_v45 = vld [vmem:[#allocation5 + $0x1ef0] sm:$0xf0]  ;;  %7163 = vmatpush.bf16.msra.mxu2 %v12027_v24  ;;  %v12379_v30 = vor.u32 %v13952_v8, %v12376_v4 }
 0x204   :  { %v14016_v9 = vld [vmem:[#allocation5 + $0x1ee4] sm:$0xf]  ;;  %v12760_v5 = vld [vmem:[#allocation5 + $0x1ff0] sm:$0xf0]  ;;  %7177 = vmatpush.bf16.msra.mxu3 %v12155_v57  ;;  %v12507_v11 = vor.u32 %v13984_v59, %v12504_v0 }
 0x205   :  { %v14048_v19 = vld [vmem:[#allocation5 + $0x1fe4] sm:$0xf]  ;;  %v12635_v16 = vor.u32 %v14016_v9, %v12632_v45  ;;  %v12360_v15 = vld [vmem:[#allocation5 + $0x1cd0] sm:$0xf0]  ;;  %7136 = vmatpush.bf16.msra.mxu0 %v11755_v61 }
 0x206   :  { %v13948_v13 = vld [vmem:[#allocation5 + $0x1cc4] sm:$0xf]  ;;  %v12763_v3 = vor.u32 %v14048_v19, %v12760_v5  ;;  %v12488_v25 = vld [vmem:[#allocation5 + $0x1dd0] sm:$0xf0]  ;;  %7150 = vmatpush.bf16.msra.mxu1 %v11883_v12  ;;  %v14580_v5 = vpop.f32.mrf.mxu2 }
 0x207   :  { %v13980_v22 = vld [vmem:[#allocation5 + $0x1dc4] sm:$0xf]  ;;  %v12616_v20 = vld [vmem:[#allocation5 + $0x1ed0] sm:$0xf0]  ;;  %7164 = vmatpush.bf16.msra.mxu2 %v12011_v7  ;;  %v12363_v18 = vor.u32 %v13948_v13, %v12360_v15  ;;  %15069 = vst [vmem:[#allocation67_spill] sm:$0xff] %v14580_v5  ;;  %v14582_v13 = vpop.f32.mrf.mxu3 }
 0x208   :  { %v14012_v14 = vld [vmem:[#allocation5 + $0x1ec4] sm:$0xf]  ;;  %v12744_v24 = vld [vmem:[#allocation5 + $0x1fd0] sm:$0xf0]  ;;  %7178 = vmatpush.bf16.msra.mxu3 %v12139_v6  ;;  %v12491_v2 = vor.u32 %v13980_v22, %v12488_v25  ;;  %7137 = vmatmul.bf16.vlgmr.msra.gmra.mxu0 %v14432_v29  ;;  %15070 = vst [vmem:[#allocation68_spill] sm:$0xff] %v14582_v13 }
 0x209   :  { %v14044_v54 = vld [vmem:[#allocation5 + $0x1fc4] sm:$0xf]  ;;  %7185 = vmatpush.bf16.msrb.mxu0 %v12379_v30  ;;  %v12619_v57 = vor.u32 %v14012_v14, %v12616_v20  ;;  %v12344_v23 = vld [vmem:[#allocation5 + $0x1cb0] sm:$0xf0]  ;;  %7151 = vmatmul.bf16.vlgmr.msra.gmra.mxu1 %v14438_v63  ;;  %v13055_v5 = vld [vmem:[#allocation5 + $0xd4] sm:$0xf0] }
 0x20a   :  { %7199 = vmatpush.bf16.msrb.mxu1 %v12507_v11  ;;  %v13944_v42 = vld [vmem:[#allocation5 + $0x1ca4] sm:$0xf]  ;;  %v12747_v8 = vor.u32 %v14044_v54, %v12744_v24  ;;  %v12472_v4 = vld [vmem:[#allocation5 + $0x1db0] sm:$0xf0]  ;;  %7165 = vmatmul.bf16.vlgmr.msra.gmra.mxu2 %v14436_v62 }
 0x20b   :  { %7213 = vmatpush.bf16.msrb.mxu2 %v12635_v16  ;;  %v13976_v50 = vld [vmem:[#allocation5 + $0x1da4] sm:$0xf]  ;;  %v12600_v61 = vld [vmem:[#allocation5 + $0x1eb0] sm:$0xf0]  ;;  %v12347_v20 = vor.u32 %v13944_v42, %v12344_v23 }
 0x20c   :  { %7227 = vmatpush.bf16.msrb.mxu3 %v12763_v3  ;;  %v14008_v59 = vld [vmem:[#allocation5 + $0x1ea4] sm:$0xf]  ;;  %v12728_v15 = vld [vmem:[#allocation5 + $0x1fb0] sm:$0xf0]  ;;  %v12475_v22 = vor.u32 %v13976_v50, %v12472_v4  ;;  %v6914_v3 = vpop.f32.mrf.mxu0 }
 0x20d   :  { %v14040_v0 = vld [vmem:[#allocation5 + $0x1fa4] sm:$0xf]  ;;  %7186 = vmatpush.bf16.msrb.mxu0 %v12363_v18  ;;  %v12603_v45 = vor.u32 %v14008_v59, %v12600_v61  ;;  %v12328_v7 = vld [vmem:[#allocation5 + $0x1c90] sm:$0xf0]  ;;  %v6915_v54 = vadd.f32 %v6914_v3, %v14570_v21  ;;  %v6928_v18 = vpop.f32.mrf.mxu1 }
 0x20e   :  { %v15068_v9 = vld [vmem:[#allocation28_spill] sm:$0xff]  ;;  %7200 = vmatpush.bf16.msrb.mxu1 %v12491_v2  ;;  %v12731_v6 = vor.u32 %v14040_v0, %v12728_v15  ;;  %v12456_v30 = vld [vmem:[#allocation5 + $0x1d90] sm:$0xf0] }
 0x20f   :  { %7179 = vmatmul.bf16.vlgmr.msra.gmra.mxu3 %v15068_v9  ;;  %7214 = vmatpush.bf16.msrb.mxu2 %v12619_v57  ;;  %v13940_v12 = vld [vmem:[#allocation5 + $0x1c84] sm:$0xf]  ;;  %v12584_v16 = vld [vmem:[#allocation5 + $0x1e90] sm:$0xf0]  ;;  %v6929_v4 = vadd.f32 %v6928_v18, %v6915_v54 }
 0x210   :  { %v13972_v19 = vld [vmem:[#allocation5 + $0x1d84] sm:$0xf]  ;;  %7228 = vmatpush.bf16.msrb.mxu3 %v12747_v8  ;;  %v12712_v14 = vld [vmem:[#allocation5 + $0x1f90] sm:$0xf0]  ;;  %v12331_v24 = vor.u32 %v13940_v12, %v12328_v7 }
 0x211   :  { %v14004_v11 = vld [vmem:[#allocation5 + $0x1e84] sm:$0xf]  ;;  %7187 = vmatpush.bf16.msrb.mxu0 %v12347_v20  ;;  %v12459_v2 = vor.u32 %v13972_v19, %v12456_v30  ;;  %v12312_v23 = vld [vmem:[#allocation5 + $0x1c70] sm:$0xf0]  ;;  %v6942_v30 = vpop.f32.mrf.mxu2 }
 0x212   :  { %v14036_v25 = vld [vmem:[#allocation5 + $0x1f84] sm:$0xf]  ;;  %7201 = vmatpush.bf16.msrb.mxu1 %v12475_v22  ;;  %v12587_v57 = vor.u32 %v14004_v11, %v12584_v16  ;;  %v12440_v59 = vld [vmem:[#allocation5 + $0x1d70] sm:$0xf0]  ;;  %v6943_v3 = vadd.f32 %v6942_v30, %v6929_v4 }
 0x213   :  { %7215 = vmatpush.bf16.msrb.mxu2 %v12603_v45  ;;  %v13936_v42 = vld [vmem:[#allocation5 + $0x1c64] sm:$0xf]  ;;  %v12715_v8 = vor.u32 %v14036_v25, %v12712_v14  ;;  %v12568_v0 = vld [vmem:[#allocation5 + $0x1e70] sm:$0xf0]  ;;  %v6956_v25 = vpop.f32.mrf.mxu3 }
 0x214   :  { %v13968_v50 = vld [vmem:[#allocation5 + $0x1d64] sm:$0xf]  ;;  %7229 = vmatpush.bf16.msrb.mxu3 %v12731_v6  ;;  %v12696_v13 = vld [vmem:[#allocation5 + $0x1f70] sm:$0xf0]  ;;  %v12315_v20 = vor.u32 %v13936_v42, %v12312_v23  ;;  %v14585_v18 = vadd.f32 %v6956_v25, %v6943_v3  ;;  %v8798_v3 = vld [vmem:[#allocation5 + $0xe8] sm:$0xf]  ;;  %v14587_v9 = vpop.f32.mrf.mxu0 }
 0x215   :  { %v14000_v61 = vld [vmem:[#allocation5 + $0x1e64] sm:$0xf]  ;;  %7188 = vmatpush.bf16.msrb.mxu0 %v12331_v24  ;;  %v12443_v21 = vor.u32 %v13968_v50, %v12440_v59  ;;  %v12296_v12 = vld [vmem:[#allocation5 + $0x1c50] sm:$0xf0]  ;;  %v13059_v25 = vld [vmem:[#allocation5 + $0xf4] sm:$0xf0] }
 0x216   :  { %v14032_v15 = vld [vmem:[#allocation5 + $0x1f64] sm:$0xf]  ;;  %7202 = vmatpush.bf16.msrb.mxu1 %v12459_v2  ;;  %v12571_v22 = vor.u32 %v14000_v61, %v12568_v0  ;;  %v12424_v6 = vld [vmem:[#allocation5 + $0x1d50] sm:$0xf0]  ;;  %15071 = vst [vmem:[#allocation69_spill] sm:$0xff] %v14587_v9 }
 0x217   :  { %7216 = vmatpush.bf16.msrb.mxu2 %v12587_v57  ;;  %v13932_v45 = vld [vmem:[#allocation5 + $0x1c44] sm:$0xf]  ;;  %v12699_v19 = vor.u32 %v14032_v15, %v12696_v13  ;;  %v12552_v16 = vld [vmem:[#allocation5 + $0x1e50] sm:$0xf0] }
 0x218   :  { %v13964_v7 = vld [vmem:[#allocation5 + $0x1d44] sm:$0xf]  ;;  %7230 = vmatpush.bf16.msrb.mxu3 %v12715_v8  ;;  %v12680_v54 = vld [vmem:[#allocation5 + $0x1f50] sm:$0xf0]  ;;  %v12299_v24 = vor.u32 %v13932_v45, %v12296_v12 }
 0x219   :  { %v13996_v11 = vld [vmem:[#allocation5 + $0x1e44] sm:$0xf]  ;;  %7189 = vmatpush.bf16.msrb.mxu0 %v12315_v20  ;;  %v12427_v2 = vor.u32 %v13964_v7, %v12424_v6  ;;  %v12280_v23 = vld [vmem:[#allocation5 + $0x1c30] sm:$0xf0] }
 0x21a   :  { %v14028_v14 = vld [vmem:[#allocation5 + $0x1f44] sm:$0xf]  ;;  %7203 = vmatpush.bf16.msrb.mxu1 %v12443_v21  ;;  %v12555_v57 = vor.u32 %v13996_v11, %v12552_v16  ;;  %v12408_v8 = vld [vmem:[#allocation5 + $0x1d30] sm:$0xf0] }
 0x21b   :  { %7217 = vmatpush.bf16.msrb.mxu2 %v12571_v22  ;;  %v13928_v42 = vld [vmem:[#allocation5 + $0x1c24] sm:$0xf]  ;;  %v12683_v13 = vor.u32 %v14028_v14, %v12680_v54  ;;  %v12536_v61 = vld [vmem:[#allocation5 + $0x1e30] sm:$0xf0]  ;;  %v8926_v14 = vld [vmem:[#allocation5 + $0x1e8] sm:$0xf] }
 0x21c   :  { %v13960_v50 = vld [vmem:[#allocation5 + $0x1d24] sm:$0xf]  ;;  %7231 = vmatpush.bf16.msrb.mxu3 %v12699_v19  ;;  %v12664_v0 = vld [vmem:[#allocation5 + $0x1f30] sm:$0xf0]  ;;  %v12283_v15 = vor.u32 %v13928_v42, %v12280_v23  ;;  %v9054_v42 = vld [vmem:[#allocation5 + $0x2e8] sm:$0xf] }
 0x21d   :  { %v13992_v59 = vld [vmem:[#allocation5 + $0x1e24] sm:$0xf]  ;;  %7190 = vmatpush.bf16.msrb.mxu0 %v12299_v24  ;;  %v12264_v45 = vld [vmem:[#allocation5 + $0x1c10] sm:$0xf0]  ;;  %v12411_v21 = vor.u32 %v13960_v50, %v12408_v8  ;;  %v13091_v24 = vld [vmem:[#allocation5 + $0x1f4] sm:$0xf0] }
 0x21e   :  { %v14024_v4 = vld [vmem:[#allocation5 + $0x1f24] sm:$0xf]  ;;  %7204 = vmatpush.bf16.msrb.mxu1 %v12427_v2  ;;  %v12539_v22 = vor.u32 %v13992_v59, %v12536_v61  ;;  %v12392_v7 = vld [vmem:[#allocation5 + $0x1d10] sm:$0xf0]  ;;  %v13123_v23 = vld [vmem:[#allocation5 + $0x2f4] sm:$0xf0]  ;;  %v8799_v59 = vor.u32 %v13059_v25, %v8798_v3  ;;  %v8927_v61 = vor.u32 %v13091_v24, %v8926_v14 }
 0x21f   :  { %v13924_v20 = vld [vmem:[#allocation5 + $0x1c04] sm:$0xf]  ;;  %7218 = vmatpush.bf16.msrb.mxu2 %v12555_v57  ;;  %v12667_v6 = vor.u32 %v14024_v4, %v12664_v0  ;;  %v12520_v19 = vld [vmem:[#allocation5 + $0x1e10] sm:$0xf0]  ;;  %v9182_v50 = vld [vmem:[#allocation5 + $0x3e8] sm:$0xf]  ;;  %v9055_v4 = vor.u32 %v13123_v23, %v9054_v42 }
 0x220   :  { %v13956_v12 = vld [vmem:[#allocation5 + $0x1d04] sm:$0xf]  ;;  %7232 = vmatpush.bf16.msrb.mxu3 %v12683_v13  ;;  %v12648_v16 = vld [vmem:[#allocation5 + $0x1f10] sm:$0xf0]  ;;  %v12267_v54 = vor.u32 %v13924_v20, %v12264_v45  ;;  %v13155_v8 = vld [vmem:[#allocation5 + $0x3f4] sm:$0xf0] }
 0x221   :  { %v13988_v30 = vld [vmem:[#allocation5 + $0x1e04] sm:$0xf]  ;;  %7191 = vmatpush.bf16.msrb.mxu0 %v12283_v15  ;;  %v12395_v2 = vor.u32 %v13956_v12, %v12392_v7  ;;  %v8782_v0 = vld [vmem:[#allocation5 + $0xc8] sm:$0xf]  ;;  %v9183_v15 = vor.u32 %v13155_v8, %v9182_v50  ;;  %v13087_v20 = vld [vmem:[#allocation5 + $0x1d4] sm:$0xf0]  ;;  %v14589_v12 = vpop.f32.mrf.mxu1  ;;  %v14595_v50 = vpop.f32.mrf.mxu2 }
 0x222   :  { %v14020_v11 = vld [vmem:[#allocation5 + $0x1f04] sm:$0xf]  ;;  %7205 = vmatpush.bf16.msrb.mxu1 %v12411_v21  ;;  %v12523_v57 = vor.u32 %v13988_v30, %v12520_v19  ;;  %v9038_v45 = vld [vmem:[#allocation5 + $0x2c8] sm:$0xf]  ;;  %15072 = vst [vmem:[#allocation70_spill] sm:$0xff] %v14589_v12  ;;  %v8783_v7 = vor.u32 %v13055_v5, %v8782_v0  ;;  %v8911_v30 = vor.u32 %v13087_v20, %v8910_v52 }
 0x223   :  { %7219 = vmatpush.bf16.msrb.mxu2 %v12539_v22  ;;  %v12651_v13 = vor.u32 %v14020_v11, %v12648_v16  ;;  %v9166_v21 = vld [vmem:[#allocation5 + $0x3c8] sm:$0xf]  ;;  %v13151_v22 = vld [vmem:[#allocation5 + $0x3d4] sm:$0xf0]  ;;  %15073 = vst [vmem:[#allocation71_spill] sm:$0xff] %v14595_v50 }
 0x224   :  { %7233 = vmatpush.bf16.msrb.mxu3 %v12667_v6  ;;  %v9039_v6 = vor.u32 %v13119_v53, %v9038_v45  ;;  %v8766_v19 = vld [vmem:[#allocation5 + $0xa8] sm:$0xf]  ;;  %v13051_v11 = vld [vmem:[#allocation5 + $0xb4] sm:$0xf0]  ;;  %v9167_v3 = vor.u32 %v13151_v22, %v9166_v21 }
 0x225   :  { %7192 = vmatpush.bf16.msrb.mxu0 %v12267_v54  ;;  %v8894_v16 = vld [vmem:[#allocation5 + $0x1a8] sm:$0xf]  ;;  %v13083_v25 = vld [vmem:[#allocation5 + $0x1b4] sm:$0xf0]  ;;  %v8767_v53 = vor.u32 %v13051_v11, %v8766_v19  ;;  %v6970_v0 = vpop.f32.mrf.mxu0 }
 0x226   :  { %7206 = vmatpush.bf16.msrb.mxu1 %v12395_v2  ;;  %v9022_v14 = vld [vmem:[#allocation5 + $0x2a8] sm:$0xf]  ;;  %v13115_v54 = vld [vmem:[#allocation5 + $0x2b4] sm:$0xf0]  ;;  %v8895_v52 = vor.u32 %v13083_v25, %v8894_v16  ;;  %v6971_v45 = vadd.f32 %v6970_v0, %v14585_v18 }
 0x227   :  { %7220 = vmatpush.bf16.msrb.mxu2 %v12523_v57  ;;  %v9150_v24 = vld [vmem:[#allocation5 + $0x3a8] sm:$0xf]  ;;  %v13147_v5 = vld [vmem:[#allocation5 + $0x3b4] sm:$0xf0]  ;;  %v9023_v42 = vor.u32 %v13115_v54, %v9022_v14 }
 0x228   :  { %7234 = vmatpush.bf16.msrb.mxu3 %v12651_v13  ;;  %7193 = vmatmul.bf16.vlgmr.msrb.gmra.mxu0 %v14455_v27  ;;  %v8750_v23 = vld [vmem:[#allocation5 + $0x88] sm:$0xf]  ;;  %v13047_v2 = vld [vmem:[#allocation5 + $0x94] sm:$0xf0]  ;;  %v9151_v8 = vor.u32 %v13147_v5, %v9150_v24 }
 0x229   :  { %7241 = vmatpush.bf16.msra.mxu0 %v8799_v59  ;;  %7207 = vmatmul.bf16.vlgmr.msrb.gmra.mxu1 %v14461_v49  ;;  %v8878_v57 = vld [vmem:[#allocation5 + $0x188] sm:$0xf]  ;;  %v13079_v13 = vld [vmem:[#allocation5 + $0x194] sm:$0xf0]  ;;  %v8751_v21 = vor.u32 %v13047_v2, %v8750_v23  ;;  %v6984_v22 = vpop.f32.mrf.mxu1 }
 0x22a   :  { %7255 = vmatpush.bf16.msra.mxu1 %v8927_v61  ;;  %7221 = vmatmul.bf16.vlgmr.msrb.gmra.mxu2 %v14459_v37  ;;  %v9006_v59 = vld [vmem:[#allocation5 + $0x288] sm:$0xf]  ;;  %v13111_v61 = vld [vmem:[#allocation5 + $0x294] sm:$0xf0] }
 0x22b   :  { %7269 = vmatpush.bf16.msra.mxu2 %v9055_v4  ;;  %7235 = vmatmul.bf16.vlgmr.msrb.gmra.mxu3 %v14465_v28  ;;  %v14597_v4 = vpop.f32.mrf.mxu3  ;;  %v13143_v20 = vld [vmem:[#allocation5 + $0x394] sm:$0xf0]  ;;  %v8862_v11 = vld [vmem:[#allocation5 + $0x168] sm:$0xf] }
 0x22c   :  { %7283 = vmatpush.bf16.msra.mxu3 %v9183_v15  ;;  %15074 = vst [vmem:[#allocation72_spill] sm:$0xff] %v14597_v4  ;;  %v9134_v15 = vld [vmem:[#allocation5 + $0x388] sm:$0xf]  ;;  %v13043_v19 = vld [vmem:[#allocation5 + $0x74] sm:$0xf0] }
 0x22d   :  { %7242 = vmatpush.bf16.msra.mxu0 %v8783_v7  ;;  %v8879_v7 = vor.u32 %v13079_v13, %v8878_v57  ;;  %v9135_v16 = vor.u32 %v13143_v20, %v9134_v15  ;;  %v13075_v25 = vld [vmem:[#allocation5 + $0x174] sm:$0xf0]  ;;  %v8990_v14 = vld [vmem:[#allocation5 + $0x268] sm:$0xf]  ;;  %v6998_v13 = vpop.f32.mrf.mxu2  ;;  %v14602_v9 = vpop.f32.mrf.mxu0 }
 0x22e   :  { %7256 = vmatpush.bf16.msra.mxu1 %v8911_v30  ;;  %v9007_v30 = vor.u32 %v13111_v61, %v9006_v59  ;;  %v13107_v54 = vld [vmem:[#allocation5 + $0x274] sm:$0xf0]  ;;  %v9118_v24 = vld [vmem:[#allocation5 + $0x368] sm:$0xf]  ;;  %v8863_v18 = vor.u32 %v13075_v25, %v8862_v11  ;;  %15075 = vst [vmem:[#allocation73_spill] sm:$0xff] %v14602_v9 }
 0x22f   :  { %7270 = vmatpush.bf16.msra.mxu2 %v9039_v6  ;;  %v8734_v6 = vld [vmem:[#allocation5 + $0x68] sm:$0xf]  ;;  %v13139_v5 = vld [vmem:[#allocation5 + $0x374] sm:$0xf0] }
 0x230   :  { %7284 = vmatpush.bf16.msra.mxu3 %v9167_v3  ;;  %v6985_v3 = vadd.f32 %v6984_v22, %v6971_v45  ;;  %v13039_v23 = vld [vmem:[#allocation5 + $0x54] sm:$0xf0]  ;;  %v8846_v2 = vld [vmem:[#allocation5 + $0x148] sm:$0xf]  ;;  %v9119_v57 = vor.u32 %v13139_v5, %v9118_v24 }
 0x231   :  { %7243 = vmatpush.bf16.msra.mxu0 %v8767_v53  ;;  %v8735_v53 = vor.u32 %v13043_v19, %v8734_v6  ;;  %v8974_v59 = vld [vmem:[#allocation5 + $0x248] sm:$0xf]  ;;  %v13103_v61 = vld [vmem:[#allocation5 + $0x254] sm:$0xf0] }
 0x232   :  { %7257 = vmatpush.bf16.msra.mxu1 %v8895_v52  ;;  %v8991_v52 = vor.u32 %v13107_v54, %v8990_v14  ;;  %v6999_v0 = vadd.f32 %v6998_v13, %v6985_v3  ;;  %v9102_v20 = vld [vmem:[#allocation5 + $0x348] sm:$0xf]  ;;  %v13135_v45 = vld [vmem:[#allocation5 + $0x354] sm:$0xf0] }
 0x233   :  { %7271 = vmatpush.bf16.msra.mxu2 %v9023_v42  ;;  %v8718_v42 = vld [vmem:[#allocation5 + $0x48] sm:$0xf]  ;;  %v7012_v15 = vpop.f32.mrf.mxu3  ;;  %v13035_v19 = vld [vmem:[#allocation5 + $0x34] sm:$0xf0] }
 0x234   :  { %7285 = vmatpush.bf16.msra.mxu3 %v9151_v8  ;;  %v13071_v8 = vld [vmem:[#allocation5 + $0x154] sm:$0xf0]  ;;  %v14600_v22 = vadd.f32 %v7012_v15, %v6999_v0  ;;  %v8702_v6 = vld [vmem:[#allocation5 + $0x28] sm:$0xf] }
 0x235   :  { %7244 = vmatpush.bf16.msra.mxu0 %v8751_v21  ;;  %v8719_v21 = vor.u32 %v13039_v23, %v8718_v42  ;;  %v8830_v11 = vld [vmem:[#allocation5 + $0x128] sm:$0xf]  ;;  %v13067_v25 = vld [vmem:[#allocation5 + $0x134] sm:$0xf0]  ;;  %v8703_v5 = vor.u32 %v13035_v19, %v8702_v6 }
 0x236   :  { %7258 = vmatpush.bf16.msra.mxu1 %v8879_v7  ;;  %v8847_v7 = vor.u32 %v13071_v8, %v8846_v2  ;;  %v8958_v14 = vld [vmem:[#allocation5 + $0x228] sm:$0xf]  ;;  %v13099_v54 = vld [vmem:[#allocation5 + $0x234] sm:$0xf0] }
 0x237   :  { %7272 = vmatpush.bf16.msra.mxu2 %v9007_v30  ;;  %v8975_v30 = vor.u32 %v13103_v61, %v8974_v59  ;;  %v9086_v3 = vld [vmem:[#allocation5 + $0x328] sm:$0xf]  ;;  %v13131_v24 = vld [vmem:[#allocation5 + $0x334] sm:$0xf0] }
 0x238   :  { %7286 = vmatpush.bf16.msra.mxu3 %v9135_v16  ;;  %v9103_v16 = vor.u32 %v13135_v45, %v9102_v20  ;;  %v13031_v42 = vld [vmem:[#allocation5 + $0x14] sm:$0xf0]  ;;  %v8814_v23 = vld [vmem:[#allocation5 + $0x108] sm:$0xf]  ;;  %v9087_v8 = vor.u32 %v13131_v24, %v9086_v3 }
 0x239   :  { %7245 = vmatpush.bf16.msra.mxu0 %v8735_v53  ;;  %v8686_v53 = vld [vmem:[#allocation5 + $0x8] sm:$0xf]  ;;  %v13063_v2 = vld [vmem:[#allocation5 + $0x114] sm:$0xf0] }
 0x23a   :  { %7259 = vmatpush.bf16.msra.mxu1 %v8863_v18  ;;  %v8831_v18 = vor.u32 %v13067_v25, %v8830_v11  ;;  %v8942_v13 = vld [vmem:[#allocation5 + $0x208] sm:$0xf]  ;;  %v13127_v61 = vld [vmem:[#allocation5 + $0x314] sm:$0xf0]  ;;  %v8687_v45 = vor.u32 %v13031_v42, %v8686_v53 }
 0x23b   :  { %7273 = vmatpush.bf16.msra.mxu2 %v8991_v52  ;;  %v8959_v52 = vor.u32 %v13099_v54, %v8958_v14  ;;  %v9070_v59 = vld [vmem:[#allocation5 + $0x308] sm:$0xf]  ;;  %v13187_v15 = vld [vmem:[#allocation5 + $0x4f4] sm:$0xf0] }
 0x23c   :  { %7287 = vmatpush.bf16.msra.mxu3 %v9119_v57  ;;  %v13095_v57 = vld [vmem:[#allocation5 + $0x214] sm:$0xf0]  ;;  %v9310_v0 = vld [vmem:[#allocation5 + $0x4e8] sm:$0xf] }
 0x23d   :  { %7246 = vmatpush.bf16.msra.mxu0 %v8719_v21  ;;  %v9438_v20 = vld [vmem:[#allocation5 + $0x5e8] sm:$0xf]  ;;  %v13219_v21 = vld [vmem:[#allocation5 + $0x5f4] sm:$0xf0]  ;;  %v9311_v14 = vor.u32 %v13187_v15, %v9310_v0 }
 0x23e   :  { %7260 = vmatpush.bf16.msra.mxu1 %v8847_v7  ;;  %v9566_v6 = vld [vmem:[#allocation5 + $0x6e8] sm:$0xf]  ;;  %v13251_v19 = vld [vmem:[#allocation5 + $0x6f4] sm:$0xf0]  ;;  %v8815_v7 = vor.u32 %v13063_v2, %v8814_v23  ;;  %v9439_v54 = vor.u32 %v13219_v21, %v9438_v20  ;;  %v14604_v23 = vpop.f32.mrf.mxu1 }
 0x23f   :  { %7274 = vmatpush.bf16.msra.mxu2 %v8975_v30  ;;  %v8943_v30 = vor.u32 %v13095_v57, %v8942_v13  ;;  %v9694_v11 = vld [vmem:[#allocation5 + $0x7e8] sm:$0xf]  ;;  %v13283_v25 = vld [vmem:[#allocation5 + $0x7f4] sm:$0xf0]  ;;  %v9567_v3 = vor.u32 %v13251_v19, %v9566_v6  ;;  %15076 = vst [vmem:[#allocation74_spill] sm:$0xff] %v14604_v23 }
 0x240   :  { %7288 = vmatpush.bf16.msra.mxu3 %v9103_v16  ;;  %v9071_v16 = vor.u32 %v13127_v61, %v9070_v59  ;;  %v9294_v24 = vld [vmem:[#allocation5 + $0x4c8] sm:$0xf]  ;;  %v13183_v4 = vld [vmem:[#allocation5 + $0x4d4] sm:$0xf0] }
 0x241   :  { %7247 = vmatpush.bf16.msra.mxu0 %v8703_v5  ;;  %v9422_v50 = vld [vmem:[#allocation5 + $0x5c8] sm:$0xf]  ;;  %v9695_v5 = vor.u32 %v13283_v25, %v9694_v11  ;;  %v13215_v53 = vld [vmem:[#allocation5 + $0x5d4] sm:$0xf0]  ;;  %v9295_v2 = vor.u32 %v13183_v4, %v9294_v24  ;;  %v14610_v11 = vpop.f32.mrf.mxu2 }
 0x242   :  { %7261 = vmatpush.bf16.msra.mxu1 %v8831_v18  ;;  %v9550_v42 = vld [vmem:[#allocation5 + $0x6c8] sm:$0xf]  ;;  %v13247_v12 = vld [vmem:[#allocation5 + $0x6d4] sm:$0xf0]  ;;  %v9423_v13 = vor.u32 %v13215_v53, %v9422_v50  ;;  %15077 = vst [vmem:[#allocation75_spill] sm:$0xff] %v14610_v11 }
 0x243   :  { %7275 = vmatpush.bf16.msra.mxu2 %v8959_v52  ;;  %v9678_v18 = vld [vmem:[#allocation5 + $0x7c8] sm:$0xf]  ;;  %v13279_v52 = vld [vmem:[#allocation5 + $0x7d4] sm:$0xf0] }
 0x244   :  { %7289 = vmatpush.bf16.msra.mxu3 %v9087_v8  ;;  %v9551_v8 = vor.u32 %v13247_v12, %v9550_v42  ;;  %v9278_v57 = vld [vmem:[#allocation5 + $0x4a8] sm:$0xf]  ;;  %v13179_v59 = vld [vmem:[#allocation5 + $0x4b4] sm:$0xf0]  ;;  %v9679_v0 = vor.u32 %v13279_v52, %v9678_v18 }
 0x245   :  { %7248 = vmatpush.bf16.msra.mxu0 %v8687_v45  ;;  %v9406_v61 = vld [vmem:[#allocation5 + $0x5a8] sm:$0xf]  ;;  %v13211_v15 = vld [vmem:[#allocation5 + $0x5b4] sm:$0xf0]  ;;  %v9279_v4 = vor.u32 %v13179_v59, %v9278_v57  ;;  %v7026_v24 = vpop.f32.mrf.mxu0 }
 0x246   :  { %7262 = vmatpush.bf16.msra.mxu1 %v8815_v7  ;;  %v9534_v20 = vld [vmem:[#allocation5 + $0x6a8] sm:$0xf]  ;;  %v13243_v45 = vld [vmem:[#allocation5 + $0x6b4] sm:$0xf0]  ;;  %v9407_v12 = vor.u32 %v13211_v15, %v9406_v61  ;;  %v7027_v42 = vadd.f32 %v7026_v24, %v14600_v22  ;;  %v7040_v52 = vpop.f32.mrf.mxu1 }
 0x247   :  { %7276 = vmatpush.bf16.msra.mxu2 %v8943_v30  ;;  %v9662_v21 = vld [vmem:[#allocation5 + $0x7a8] sm:$0xf]  ;;  %v13275_v6 = vld [vmem:[#allocation5 + $0x7b4] sm:$0xf0]  ;;  %v9535_v50 = vor.u32 %v13243_v45, %v9534_v20 }
 0x248   :  { %7290 = vmatpush.bf16.msra.mxu3 %v9071_v16  ;;  %7249 = vmatmul.bf16.vlgmr.msra.gmra.mxu0 %v14342_v58  ;;  %v9262_v19 = vld [vmem:[#allocation5 + $0x488] sm:$0xf]  ;;  %v13175_v7 = vld [vmem:[#allocation5 + $0x494] sm:$0xf0]  ;;  %v9663_v25 = vor.u32 %v13275_v6, %v9662_v21 }
 0x249   :  { %7297 = vmatpush.bf16.msrb.mxu0 %v9311_v14  ;;  %7263 = vmatmul.bf16.vlgmr.msra.gmra.mxu1 %v14348_v10  ;;  %v9390_v30 = vld [vmem:[#allocation5 + $0x588] sm:$0xf]  ;;  %v13207_v16 = vld [vmem:[#allocation5 + $0x594] sm:$0xf0]  ;;  %v9263_v18 = vor.u32 %v13175_v7, %v9262_v19 }
 0x24a   :  { %7311 = vmatpush.bf16.msrb.mxu1 %v9439_v54  ;;  %7277 = vmatmul.bf16.vlgmr.msra.gmra.mxu2 %v14344_v1  ;;  %v9518_v14 = vld [vmem:[#allocation5 + $0x688] sm:$0xf]  ;;  %v13239_v54 = vld [vmem:[#allocation5 + $0x694] sm:$0xf0] }
 0x24b   :  { %7325 = vmatpush.bf16.msrb.mxu2 %v9567_v3  ;;  %7291 = vmatmul.bf16.vlgmr.msra.gmra.mxu3 %v14350_v17  ;;  %v14612_v3 = vpop.f32.mrf.mxu3  ;;  %v13271_v53 = vld [vmem:[#allocation5 + $0x794] sm:$0xf0]  ;;  %v9374_v59 = vld [vmem:[#allocation5 + $0x568] sm:$0xf] }
 0x24c   :  { %7339 = vmatpush.bf16.msrb.mxu3 %v9695_v5  ;;  %15078 = vst [vmem:[#allocation76_spill] sm:$0xff] %v14612_v3  ;;  %v9646_v5 = vld [vmem:[#allocation5 + $0x788] sm:$0xf]  ;;  %v13171_v57 = vld [vmem:[#allocation5 + $0x474] sm:$0xf0] }
 0x24d   :  { %7298 = vmatpush.bf16.msrb.mxu0 %v9295_v2  ;;  %v9391_v2 = vor.u32 %v13207_v16, %v9390_v30  ;;  %v9647_v61 = vor.u32 %v13271_v53, %v9646_v5  ;;  %v13203_v15 = vld [vmem:[#allocation5 + $0x574] sm:$0xf0]  ;;  %v9502_v20 = vld [vmem:[#allocation5 + $0x668] sm:$0xf]  ;;  %v7054_v16 = vpop.f32.mrf.mxu2  ;;  %v14617_v9 = vpop.f32.mrf.mxu0 }
 0x24e   :  { %7312 = vmatpush.bf16.msrb.mxu1 %v9423_v13  ;;  %v9519_v13 = vor.u32 %v13239_v54, %v9518_v14  ;;  %v13235_v45 = vld [vmem:[#allocation5 + $0x674] sm:$0xf0]  ;;  %v9630_v21 = vld [vmem:[#allocation5 + $0x768] sm:$0xf]  ;;  %v9375_v22 = vor.u32 %v13203_v15, %v9374_v59  ;;  %15079 = vst [vmem:[#allocation77_spill] sm:$0xff] %v14617_v9 }
 0x24f   :  { %7326 = vmatpush.bf16.msrb.mxu2 %v9551_v8  ;;  %v9246_v8 = vld [vmem:[#allocation5 + $0x468] sm:$0xf]  ;;  %v13267_v6 = vld [vmem:[#allocation5 + $0x774] sm:$0xf0] }
 0x250   :  { %7340 = vmatpush.bf16.msrb.mxu3 %v9679_v0  ;;  %v7041_v0 = vadd.f32 %v7040_v52, %v7027_v42  ;;  %v13167_v19 = vld [vmem:[#allocation5 + $0x454] sm:$0xf0]  ;;  %v9358_v7 = vld [vmem:[#allocation5 + $0x548] sm:$0xf]  ;;  %v9631_v30 = vor.u32 %v13267_v6, %v9630_v21 }
 0x251   :  { %7299 = vmatpush.bf16.msrb.mxu0 %v9279_v4  ;;  %v9247_v4 = vor.u32 %v13171_v57, %v9246_v8  ;;  %v9486_v14 = vld [vmem:[#allocation5 + $0x648] sm:$0xf]  ;;  %v13231_v54 = vld [vmem:[#allocation5 + $0x654] sm:$0xf0] }
 0x252   :  { %7313 = vmatpush.bf16.msrb.mxu1 %v9407_v12  ;;  %v9503_v12 = vor.u32 %v13235_v45, %v9502_v20  ;;  %v7055_v24 = vadd.f32 %v7054_v16, %v7041_v0  ;;  %v9614_v53 = vld [vmem:[#allocation5 + $0x748] sm:$0xf]  ;;  %v13263_v42 = vld [vmem:[#allocation5 + $0x754] sm:$0xf0] }
 0x253   :  { %7327 = vmatpush.bf16.msrb.mxu2 %v9535_v50  ;;  %v9230_v50 = vld [vmem:[#allocation5 + $0x448] sm:$0xf]  ;;  %v7068_v5 = vpop.f32.mrf.mxu3  ;;  %v13163_v57 = vld [vmem:[#allocation5 + $0x434] sm:$0xf0] }
 0x254   :  { %7341 = vmatpush.bf16.msrb.mxu3 %v9663_v25  ;;  %v13199_v25 = vld [vmem:[#allocation5 + $0x554] sm:$0xf0]  ;;  %v14615_v52 = vadd.f32 %v7068_v5, %v7055_v24  ;;  %v9214_v8 = vld [vmem:[#allocation5 + $0x428] sm:$0xf] }
 0x255   :  { %7300 = vmatpush.bf16.msrb.mxu0 %v9263_v18  ;;  %v9231_v18 = vor.u32 %v13167_v19, %v9230_v50  ;;  %v9342_v59 = vld [vmem:[#allocation5 + $0x528] sm:$0xf]  ;;  %v13195_v15 = vld [vmem:[#allocation5 + $0x534] sm:$0xf0]  ;;  %v9215_v6 = vor.u32 %v13163_v57, %v9214_v8 }
 0x256   :  { %7314 = vmatpush.bf16.msrb.mxu1 %v9391_v2  ;;  %v9359_v2 = vor.u32 %v13199_v25, %v9358_v7  ;;  %v9470_v20 = vld [vmem:[#allocation5 + $0x628] sm:$0xf]  ;;  %v13227_v45 = vld [vmem:[#allocation5 + $0x634] sm:$0xf0] }
 0x257   :  { %7328 = vmatpush.bf16.msrb.mxu2 %v9519_v13  ;;  %v9487_v13 = vor.u32 %v13231_v54, %v9486_v14  ;;  %v9598_v0 = vld [vmem:[#allocation5 + $0x728] sm:$0xf]  ;;  %v13259_v21 = vld [vmem:[#allocation5 + $0x734] sm:$0xf0] }
 0x258   :  { %7342 = vmatpush.bf16.msrb.mxu3 %v9647_v61  ;;  %v9615_v61 = vor.u32 %v13263_v42, %v9614_v53  ;;  %v13159_v50 = vld [vmem:[#allocation5 + $0x414] sm:$0xf0]  ;;  %v9326_v19 = vld [vmem:[#allocation5 + $0x508] sm:$0xf]  ;;  %v9599_v25 = vor.u32 %v13259_v21, %v9598_v0 }
 0x259   :  { %7301 = vmatpush.bf16.msrb.mxu0 %v9247_v4  ;;  %v9198_v4 = vld [vmem:[#allocation5 + $0x408] sm:$0xf]  ;;  %v13191_v7 = vld [vmem:[#allocation5 + $0x514] sm:$0xf0] }
 0x25a   :  { %7315 = vmatpush.bf16.msrb.mxu1 %v9375_v22  ;;  %v9343_v22 = vor.u32 %v13195_v15, %v9342_v59  ;;  %v9454_v16 = vld [vmem:[#allocation5 + $0x608] sm:$0xf]  ;;  %v13255_v54 = vld [vmem:[#allocation5 + $0x714] sm:$0xf0]  ;;  %v9199_v42 = vor.u32 %v13159_v50, %v9198_v4 }
 0x25b   :  { %7329 = vmatpush.bf16.msrb.mxu2 %v9503_v12  ;;  %v9471_v12 = vor.u32 %v13227_v45, %v9470_v20  ;;  %v9582_v14 = vld [vmem:[#allocation5 + $0x708] sm:$0xf]  ;;  %v13315_v5 = vld [vmem:[#allocation5 + $0x8f4] sm:$0xf0] }
 0x25c   :  { %7343 = vmatpush.bf16.msrb.mxu3 %v9631_v30  ;;  %v13223_v30 = vld [vmem:[#allocation5 + $0x614] sm:$0xf0]  ;;  %v9822_v24 = vld [vmem:[#allocation5 + $0x8e8] sm:$0xf] }
 0x25d   :  { %7302 = vmatpush.bf16.msrb.mxu0 %v9231_v18  ;;  %v9950_v53 = vld [vmem:[#allocation5 + $0x9e8] sm:$0xf]  ;;  %v13347_v18 = vld [vmem:[#allocation5 + $0x9f4] sm:$0xf0]  ;;  %v9823_v20 = vor.u32 %v13315_v5, %v9822_v24 }
 0x25e   :  { %7316 = vmatpush.bf16.msrb.mxu1 %v9359_v2  ;;  %v10078_v8 = vld [vmem:[#allocation5 + $0xae8] sm:$0xf]  ;;  %v13379_v57 = vld [vmem:[#allocation5 + $0xaf4] sm:$0xf0]  ;;  %v9327_v2 = vor.u32 %v13191_v7, %v9326_v19  ;;  %v9951_v45 = vor.u32 %v13347_v18, %v9950_v53  ;;  %v14619_v19 = vpop.f32.mrf.mxu1 }
 0x25f   :  { %7330 = vmatpush.bf16.msrb.mxu2 %v9487_v13  ;;  %v9455_v13 = vor.u32 %v13223_v30, %v9454_v16  ;;  %v10206_v59 = vld [vmem:[#allocation5 + $0xbe8] sm:$0xf]  ;;  %v13411_v15 = vld [vmem:[#allocation5 + $0xbf4] sm:$0xf0]  ;;  %v10079_v0 = vor.u32 %v13379_v57, %v10078_v8  ;;  %15080 = vst [vmem:[#allocation78_spill] sm:$0xff] %v14619_v19 }
 0x260   :  { %7344 = vmatpush.bf16.msrb.mxu3 %v9615_v61  ;;  %v9583_v61 = vor.u32 %v13255_v54, %v9582_v14  ;;  %v9806_v21 = vld [vmem:[#allocation5 + $0x8c8] sm:$0xf]  ;;  %v13311_v3 = vld [vmem:[#allocation5 + $0x8d4] sm:$0xf0] }
 0x261   :  { %7303 = vmatpush.bf16.msrb.mxu0 %v9215_v6  ;;  %v9934_v11 = vld [vmem:[#allocation5 + $0x9c8] sm:$0xf]  ;;  %v10207_v6 = vor.u32 %v13411_v15, %v10206_v59  ;;  %v13343_v4 = vld [vmem:[#allocation5 + $0x9d4] sm:$0xf0]  ;;  %v9807_v7 = vor.u32 %v13311_v3, %v9806_v21  ;;  %v14625_v59 = vpop.f32.mrf.mxu2 }
 0x262   :  { %7317 = vmatpush.bf16.msrb.mxu1 %v9343_v22  ;;  %v10062_v50 = vld [vmem:[#allocation5 + $0xac8] sm:$0xf]  ;;  %v13375_v23 = vld [vmem:[#allocation5 + $0xad4] sm:$0xf0]  ;;  %v9935_v16 = vor.u32 %v13343_v4, %v9934_v11  ;;  %15081 = vst [vmem:[#allocation79_spill] sm:$0xff] %v14625_v59 }
 0x263   :  { %7331 = vmatpush.bf16.msrb.mxu2 %v9471_v12  ;;  %v10190_v22 = vld [vmem:[#allocation5 + $0xbc8] sm:$0xf]  ;;  %v13407_v12 = vld [vmem:[#allocation5 + $0xbd4] sm:$0xf0] }
 0x264   :  { %7345 = vmatpush.bf16.msrb.mxu3 %v9599_v25  ;;  %v10063_v25 = vor.u32 %v13375_v23, %v10062_v50  ;;  %v9790_v30 = vld [vmem:[#allocation5 + $0x8a8] sm:$0xf]  ;;  %v13307_v14 = vld [vmem:[#allocation5 + $0x8b4] sm:$0xf0]  ;;  %v10191_v24 = vor.u32 %v13407_v12, %v10190_v22 }
 0x265   :  { %7304 = vmatpush.bf16.msrb.mxu0 %v9199_v42  ;;  %v9918_v54 = vld [vmem:[#allocation5 + $0x9a8] sm:$0xf]  ;;  %v13339_v5 = vld [vmem:[#allocation5 + $0x9b4] sm:$0xf0]  ;;  %v9791_v23 = vor.u32 %v13307_v14, %v9790_v30  ;;  %v7082_v21 = vpop.f32.mrf.mxu0 }
 0x266   :  { %7318 = vmatpush.bf16.msrb.mxu1 %v9327_v2  ;;  %v10046_v53 = vld [vmem:[#allocation5 + $0xaa8] sm:$0xf]  ;;  %v13371_v42 = vld [vmem:[#allocation5 + $0xab4] sm:$0xf0]  ;;  %v9919_v11 = vor.u32 %v13339_v5, %v9918_v54  ;;  %v7083_v50 = vadd.f32 %v7082_v21, %v14615_v52  ;;  %v7096_v12 = vpop.f32.mrf.mxu1 }
 0x267   :  { %7332 = vmatpush.bf16.msrb.mxu2 %v9455_v13  ;;  %v10174_v18 = vld [vmem:[#allocation5 + $0xba8] sm:$0xf]  ;;  %v13403_v3 = vld [vmem:[#allocation5 + $0xbb4] sm:$0xf0]  ;;  %v10047_v8 = vor.u32 %v13371_v42, %v10046_v53 }
 0x268   :  { %7346 = vmatpush.bf16.msrb.mxu3 %v9583_v61  ;;  %7305 = vmatmul.bf16.vlgmr.msrb.gmra.mxu0 %v14354_v39  ;;  %v9774_v57 = vld [vmem:[#allocation5 + $0x888] sm:$0xf]  ;;  %v13303_v2 = vld [vmem:[#allocation5 + $0x894] sm:$0xf0]  ;;  %v10175_v15 = vor.u32 %v13403_v3, %v10174_v18 }
 0x269   :  { %7353 = vmatpush.bf16.msra.mxu0 %v9823_v20  ;;  %7319 = vmatmul.bf16.vlgmr.msrb.gmra.mxu1 %v14358_v44  ;;  %v9902_v13 = vld [vmem:[#allocation5 + $0x988] sm:$0xf]  ;;  %v13335_v61 = vld [vmem:[#allocation5 + $0x994] sm:$0xf0]  ;;  %v9775_v22 = vor.u32 %v13303_v2, %v9774_v57 }
 0x26a   :  { %7367 = vmatpush.bf16.msra.mxu1 %v9951_v45  ;;  %7333 = vmatmul.bf16.vlgmr.msrb.gmra.mxu2 %v14356_v43  ;;  %v10030_v20 = vld [vmem:[#allocation5 + $0xa88] sm:$0xf]  ;;  %v13367_v45 = vld [vmem:[#allocation5 + $0xa94] sm:$0xf0] }
 0x26b   :  { %7381 = vmatpush.bf16.msra.mxu2 %v10079_v0  ;;  %7347 = vmatmul.bf16.vlgmr.msrb.gmra.mxu3 %v14360_v47  ;;  %v14627_v0 = vpop.f32.mrf.mxu3  ;;  %v13399_v4 = vld [vmem:[#allocation5 + $0xb94] sm:$0xf0]  ;;  %v9886_v14 = vld [vmem:[#allocation5 + $0x968] sm:$0xf] }
 0x26c   :  { %7395 = vmatpush.bf16.msra.mxu3 %v10207_v6  ;;  %15082 = vst [vmem:[#allocation80_spill] sm:$0xff] %v14627_v0  ;;  %v10158_v6 = vld [vmem:[#allocation5 + $0xb88] sm:$0xf]  ;;  %v13299_v30 = vld [vmem:[#allocation5 + $0x874] sm:$0xf0] }
 0x26d   :  { %7354 = vmatpush.bf16.msra.mxu0 %v9807_v7  ;;  %v9903_v7 = vor.u32 %v13335_v61, %v9902_v13  ;;  %v10159_v54 = vor.u32 %v13399_v4, %v10158_v6  ;;  %v13331_v5 = vld [vmem:[#allocation5 + $0x974] sm:$0xf0]  ;;  %v10014_v53 = vld [vmem:[#allocation5 + $0xa68] sm:$0xf]  ;;  %v7110_v61 = vpop.f32.mrf.mxu2  ;;  %v14632_v9 = vpop.f32.mrf.mxu0 }
 0x26e   :  { %7368 = vmatpush.bf16.msra.mxu1 %v9935_v16  ;;  %v10031_v16 = vor.u32 %v13367_v45, %v10030_v20  ;;  %v13363_v42 = vld [vmem:[#allocation5 + $0xa74] sm:$0xf0]  ;;  %v10142_v18 = vld [vmem:[#allocation5 + $0xb68] sm:$0xf]  ;;  %v9887_v52 = vor.u32 %v13331_v5, %v9886_v14  ;;  %15083 = vst [vmem:[#allocation81_spill] sm:$0xff] %v14632_v9 }
 0x26f   :  { %7382 = vmatpush.bf16.msra.mxu2 %v10063_v25  ;;  %v9758_v25 = vld [vmem:[#allocation5 + $0x868] sm:$0xf]  ;;  %v13395_v3 = vld [vmem:[#allocation5 + $0xb74] sm:$0xf0] }
 0x270   :  { %7396 = vmatpush.bf16.msra.mxu3 %v10191_v24  ;;  %v7097_v24 = vadd.f32 %v7096_v12, %v7083_v50  ;;  %v13295_v57 = vld [vmem:[#allocation5 + $0x854] sm:$0xf0]  ;;  %v9870_v2 = vld [vmem:[#allocation5 + $0x948] sm:$0xf]  ;;  %v10143_v13 = vor.u32 %v13395_v3, %v10142_v18 }
 0x271   :  { %7355 = vmatpush.bf16.msra.mxu0 %v9791_v23  ;;  %v9759_v23 = vor.u32 %v13299_v30, %v9758_v25  ;;  %v9998_v20 = vld [vmem:[#allocation5 + $0xa48] sm:$0xf]  ;;  %v13359_v45 = vld [vmem:[#allocation5 + $0xa54] sm:$0xf0] }
 0x272   :  { %7369 = vmatpush.bf16.msra.mxu1 %v9919_v11  ;;  %v10015_v11 = vor.u32 %v13363_v42, %v10014_v53  ;;  %v7111_v21 = vadd.f32 %v7110_v61, %v7097_v24  ;;  %v10126_v4 = vld [vmem:[#allocation5 + $0xb48] sm:$0xf]  ;;  %v13391_v50 = vld [vmem:[#allocation5 + $0xb54] sm:$0xf0] }
 0x273   :  { %7383 = vmatpush.bf16.msra.mxu2 %v10047_v8  ;;  %v9742_v8 = vld [vmem:[#allocation5 + $0x848] sm:$0xf]  ;;  %v7124_v6 = vpop.f32.mrf.mxu3  ;;  %v13291_v30 = vld [vmem:[#allocation5 + $0x834] sm:$0xf0] }
 0x274   :  { %7397 = vmatpush.bf16.msra.mxu3 %v10175_v15  ;;  %v13327_v15 = vld [vmem:[#allocation5 + $0x954] sm:$0xf0]  ;;  %v14630_v12 = vadd.f32 %v7124_v6, %v7111_v21  ;;  %v9726_v25 = vld [vmem:[#allocation5 + $0x828] sm:$0xf] }
 0x275   :  { %7356 = vmatpush.bf16.msra.mxu0 %v9775_v22  ;;  %v9743_v22 = vor.u32 %v13295_v57, %v9742_v8  ;;  %v9854_v14 = vld [vmem:[#allocation5 + $0x928] sm:$0xf]  ;;  %v13323_v5 = vld [vmem:[#allocation5 + $0x934] sm:$0xf0]  ;;  %v9727_v3 = vor.u32 %v13291_v30, %v9726_v25 }
 0x276   :  { %7370 = vmatpush.bf16.msra.mxu1 %v9903_v7  ;;  %v9871_v7 = vor.u32 %v13327_v15, %v9870_v2  ;;  %v9982_v53 = vld [vmem:[#allocation5 + $0xa28] sm:$0xf]  ;;  %v13355_v42 = vld [vmem:[#allocation5 + $0xa34] sm:$0xf0] }
 0x277   :  { %7384 = vmatpush.bf16.msra.mxu2 %v10031_v16  ;;  %v9999_v16 = vor.u32 %v13359_v45, %v9998_v20  ;;  %v10110_v24 = vld [vmem:[#allocation5 + $0xb28] sm:$0xf]  ;;  %v13387_v18 = vld [vmem:[#allocation5 + $0xb34] sm:$0xf0] }
 0x278   :  { %7398 = vmatpush.bf16.msra.mxu3 %v10159_v54  ;;  %v10127_v54 = vor.u32 %v13391_v50, %v10126_v4  ;;  %v13287_v8 = vld [vmem:[#allocation5 + $0x814] sm:$0xf0]  ;;  %v9838_v57 = vld [vmem:[#allocation5 + $0x908] sm:$0xf]  ;;  %v10111_v15 = vor.u32 %v13387_v18, %v10110_v24 }
 0x279   :  { %7357 = vmatpush.bf16.msra.mxu0 %v9759_v23  ;;  %v9710_v23 = vld [vmem:[#allocation5 + $0x808] sm:$0xf]  ;;  %v13319_v2 = vld [vmem:[#allocation5 + $0x914] sm:$0xf0] }
 0x27a   :  { %7371 = vmatpush.bf16.msra.mxu1 %v9887_v52  ;;  %v9855_v52 = vor.u32 %v13323_v5, %v9854_v14  ;;  %v9966_v61 = vld [vmem:[#allocation5 + $0xa08] sm:$0xf]  ;;  %v13383_v45 = vld [vmem:[#allocation5 + $0xb14] sm:$0xf0]  ;;  %v9711_v50 = vor.u32 %v13287_v8, %v9710_v23 }
 0x27b   :  { %7385 = vmatpush.bf16.msra.mxu2 %v10015_v11  ;;  %v9983_v11 = vor.u32 %v13355_v42, %v9982_v53  ;;  %v10094_v20 = vld [vmem:[#allocation5 + $0xb08] sm:$0xf]  ;;  %v13443_v6 = vld [vmem:[#allocation5 + $0xcf4] sm:$0xf0] }
 0x27c   :  { %7399 = vmatpush.bf16.msra.mxu3 %v10143_v13  ;;  %v13351_v13 = vld [vmem:[#allocation5 + $0xa14] sm:$0xf0]  ;;  %v10334_v21 = vld [vmem:[#allocation5 + $0xce8] sm:$0xf] }
 0x27d   :  { %7358 = vmatpush.bf16.msra.mxu0 %v9743_v22  ;;  %v10462_v4 = vld [vmem:[#allocation5 + $0xde8] sm:$0xf]  ;;  %v13475_v22 = vld [vmem:[#allocation5 + $0xdf4] sm:$0xf0]  ;;  %v10335_v53 = vor.u32 %v13443_v6, %v10334_v21 }
 0x27e   :  { %7372 = vmatpush.bf16.msra.mxu1 %v9871_v7  ;;  %v10590_v25 = vld [vmem:[#allocation5 + $0xee8] sm:$0xf]  ;;  %v13507_v30 = vld [vmem:[#allocation5 + $0xef4] sm:$0xf0]  ;;  %v9839_v7 = vor.u32 %v13319_v2, %v9838_v57  ;;  %v10463_v42 = vor.u32 %v13475_v22, %v10462_v4  ;;  %v14634_v57 = vpop.f32.mrf.mxu1 }
 0x27f   :  { %7386 = vmatpush.bf16.msra.mxu2 %v9999_v16  ;;  %v9967_v16 = vor.u32 %v13351_v13, %v9966_v61  ;;  %v10718_v14 = vld [vmem:[#allocation5 + $0xfe8] sm:$0xf]  ;;  %v13539_v5 = vld [vmem:[#allocation5 + $0xff4] sm:$0xf0]  ;;  %v10591_v24 = vor.u32 %v13507_v30, %v10590_v25  ;;  %15084 = vst [vmem:[#allocation82_spill] sm:$0xff] %v14634_v57 }
 0x280   :  { %7400 = vmatpush.bf16.msra.mxu3 %v10127_v54  ;;  %v10095_v54 = vor.u32 %v13383_v45, %v10094_v20  ;;  %v10318_v18 = vld [vmem:[#allocation5 + $0xcc8] sm:$0xf]  ;;  %v13439_v0 = vld [vmem:[#allocation5 + $0xcd4] sm:$0xf0] }
 0x281   :  { %7359 = vmatpush.bf16.msra.mxu0 %v9727_v3  ;;  %v10446_v59 = vld [vmem:[#allocation5 + $0xdc8] sm:$0xf]  ;;  %v10719_v3 = vor.u32 %v13539_v5, %v10718_v14  ;;  %v13471_v23 = vld [vmem:[#allocation5 + $0xdd4] sm:$0xf0]  ;;  %v10319_v2 = vor.u32 %v13439_v0, %v10318_v18  ;;  %v14640_v14 = vpop.f32.mrf.mxu2 }
 0x282   :  { %7373 = vmatpush.bf16.msra.mxu1 %v9855_v52  ;;  %v10574_v8 = vld [vmem:[#allocation5 + $0xec8] sm:$0xf]  ;;  %v13503_v19 = vld [vmem:[#allocation5 + $0xed4] sm:$0xf0]  ;;  %v10447_v61 = vor.u32 %v13471_v23, %v10446_v59  ;;  %15085 = vst [vmem:[#allocation83_spill] sm:$0xff] %v14640_v14 }
 0x283   :  { %7387 = vmatpush.bf16.msra.mxu2 %v9983_v11  ;;  %v10702_v52 = vld [vmem:[#allocation5 + $0xfc8] sm:$0xf]  ;;  %v13535_v11 = vld [vmem:[#allocation5 + $0xfd4] sm:$0xf0] }
 0x284   :  { %7401 = vmatpush.bf16.msra.mxu3 %v10111_v15  ;;  %v10575_v15 = vor.u32 %v13503_v19, %v10574_v8  ;;  %v10302_v13 = vld [vmem:[#allocation5 + $0xca8] sm:$0xf]  ;;  %v13435_v20 = vld [vmem:[#allocation5 + $0xcb4] sm:$0xf0]  ;;  %v10703_v21 = vor.u32 %v13535_v11, %v10702_v52 }
 0x285   :  { %7360 = vmatpush.bf16.msra.mxu0 %v9711_v50  ;;  %v10430_v45 = vld [vmem:[#allocation5 + $0xda8] sm:$0xf]  ;;  %v13467_v6 = vld [vmem:[#allocation5 + $0xdb4] sm:$0xf0]  ;;  %v10303_v19 = vor.u32 %v13435_v20, %v10302_v13  ;;  %v7138_v18 = vpop.f32.mrf.mxu0 }
 0x286   :  { %7374 = vmatpush.bf16.msra.mxu1 %v9839_v7  ;;  %v10558_v4 = vld [vmem:[#allocation5 + $0xea8] sm:$0xf]  ;;  %v13499_v50 = vld [vmem:[#allocation5 + $0xeb4] sm:$0xf0]  ;;  %v10431_v59 = vor.u32 %v13467_v6, %v10430_v45  ;;  %v7139_v8 = vadd.f32 %v7138_v18, %v14630_v12  ;;  %v7152_v11 = vpop.f32.mrf.mxu1 }
 0x287   :  { %7388 = vmatpush.bf16.msra.mxu2 %v9967_v16  ;;  %v10686_v22 = vld [vmem:[#allocation5 + $0xfa8] sm:$0xf]  ;;  %v13531_v0 = vld [vmem:[#allocation5 + $0xfb4] sm:$0xf0]  ;;  %v10559_v25 = vor.u32 %v13499_v50, %v10558_v4 }
 0x288   :  { %7402 = vmatpush.bf16.msra.mxu3 %v10095_v54  ;;  %7361 = vmatmul.bf16.vlgmr.msra.gmra.mxu0 %v14366_v31  ;;  %v10286_v30 = vld [vmem:[#allocation5 + $0xc88] sm:$0xf]  ;;  %v13431_v7 = vld [vmem:[#allocation5 + $0xc94] sm:$0xf0]  ;;  %v10687_v5 = vor.u32 %v13531_v0, %v10686_v22 }
 0x289   :  { %7409 = vmatpush.bf16.msrb.mxu0 %v10335_v53  ;;  %7375 = vmatmul.bf16.vlgmr.msra.gmra.mxu1 %v14370_v36  ;;  %v10414_v16 = vld [vmem:[#allocation5 + $0xd88] sm:$0xf]  ;;  %v13463_v54 = vld [vmem:[#allocation5 + $0xd94] sm:$0xf0]  ;;  %v10287_v52 = vor.u32 %v13431_v7, %v10286_v30 }
 0x28a   :  { %7423 = vmatpush.bf16.msrb.mxu1 %v10463_v42  ;;  %7389 = vmatmul.bf16.vlgmr.msra.gmra.mxu2 %v14368_v35  ;;  %v10542_v53 = vld [vmem:[#allocation5 + $0xe88] sm:$0xf]  ;;  %v13495_v42 = vld [vmem:[#allocation5 + $0xe94] sm:$0xf0] }
 0x28b   :  { %7437 = vmatpush.bf16.msrb.mxu2 %v10591_v24  ;;  %7403 = vmatmul.bf16.vlgmr.msra.gmra.mxu3 %v14372_v40  ;;  %v14642_v24 = vpop.f32.mrf.mxu3  ;;  %v13527_v23 = vld [vmem:[#allocation5 + $0xf94] sm:$0xf0]  ;;  %v10398_v20 = vld [vmem:[#allocation5 + $0xd68] sm:$0xf] }
 0x28c   :  { %7451 = vmatpush.bf16.msrb.mxu3 %v10719_v3  ;;  %15086 = vst [vmem:[#allocation84_spill] sm:$0xff] %v14642_v24  ;;  %v10670_v3 = vld [vmem:[#allocation5 + $0xf88] sm:$0xf]  ;;  %v13427_v13 = vld [vmem:[#allocation5 + $0xc74] sm:$0xf0] }
 0x28d   :  { %7410 = vmatpush.bf16.msrb.mxu0 %v10319_v2  ;;  %v10415_v2 = vor.u32 %v13463_v54, %v10414_v16  ;;  %v10671_v45 = vor.u32 %v13527_v23, %v10670_v3  ;;  %v13459_v6 = vld [vmem:[#allocation5 + $0xd74] sm:$0xf0]  ;;  %v10526_v4 = vld [vmem:[#allocation5 + $0xe68] sm:$0xf]  ;;  %v7166_v54 = vpop.f32.mrf.mxu2  ;;  %v14647_v9 = vpop.f32.mrf.mxu0 }
 0x28e   :  { %7424 = vmatpush.bf16.msrb.mxu1 %v10447_v61  ;;  %v10543_v61 = vor.u32 %v13495_v42, %v10542_v53  ;;  %v13491_v50 = vld [vmem:[#allocation5 + $0xe74] sm:$0xf0]  ;;  %v10654_v22 = vld [vmem:[#allocation5 + $0xf68] sm:$0xf]  ;;  %v10399_v12 = vor.u32 %v13459_v6, %v10398_v20  ;;  %15087 = vst [vmem:[#allocation85_spill] sm:$0xff] %v14647_v9 }
 0x28f   :  { %7438 = vmatpush.bf16.msrb.mxu2 %v10575_v15  ;;  %v10270_v15 = vld [vmem:[#allocation5 + $0xc68] sm:$0xf]  ;;  %v13523_v0 = vld [vmem:[#allocation5 + $0xf74] sm:$0xf0] }
 0x290   :  { %7452 = vmatpush.bf16.msrb.mxu3 %v10703_v21  ;;  %v7153_v21 = vadd.f32 %v7152_v11, %v7139_v8  ;;  %v13423_v30 = vld [vmem:[#allocation5 + $0xc54] sm:$0xf0]  ;;  %v10382_v7 = vld [vmem:[#allocation5 + $0xd48] sm:$0xf]  ;;  %v10655_v16 = vor.u32 %v13523_v0, %v10654_v22 }
 0x291   :  { %7411 = vmatpush.bf16.msrb.mxu0 %v10303_v19  ;;  %v10271_v19 = vor.u32 %v13427_v13, %v10270_v15  ;;  %v10510_v53 = vld [vmem:[#allocation5 + $0xe48] sm:$0xf]  ;;  %v13487_v42 = vld [vmem:[#allocation5 + $0xe54] sm:$0xf0] }
 0x292   :  { %7425 = vmatpush.bf16.msrb.mxu1 %v10431_v59  ;;  %v10527_v59 = vor.u32 %v13491_v50, %v10526_v4  ;;  %v7167_v18 = vadd.f32 %v7166_v54, %v7153_v21  ;;  %v10638_v23 = vld [vmem:[#allocation5 + $0xf48] sm:$0xf]  ;;  %v13519_v8 = vld [vmem:[#allocation5 + $0xf54] sm:$0xf0] }
 0x293   :  { %7439 = vmatpush.bf16.msrb.mxu2 %v10559_v25  ;;  %v10254_v25 = vld [vmem:[#allocation5 + $0xc48] sm:$0xf]  ;;  %v7180_v3 = vpop.f32.mrf.mxu3  ;;  %v13419_v13 = vld [vmem:[#allocation5 + $0xc34] sm:$0xf0] }
 0x294   :  { %7453 = vmatpush.bf16.msrb.mxu3 %v10687_v5  ;;  %v13455_v5 = vld [vmem:[#allocation5 + $0xd54] sm:$0xf0]  ;;  %v14645_v11 = vadd.f32 %v7180_v3, %v7167_v18  ;;  %v10238_v15 = vld [vmem:[#allocation5 + $0xc28] sm:$0xf] }
 0x295   :  { %7412 = vmatpush.bf16.msrb.mxu0 %v10287_v52  ;;  %v10255_v52 = vor.u32 %v13423_v30, %v10254_v25  ;;  %v10366_v20 = vld [vmem:[#allocation5 + $0xd28] sm:$0xf]  ;;  %v13451_v6 = vld [vmem:[#allocation5 + $0xd34] sm:$0xf0]  ;;  %v10239_v0 = vor.u32 %v13419_v13, %v10238_v15 }
 0x296   :  { %7426 = vmatpush.bf16.msrb.mxu1 %v10415_v2  ;;  %v10383_v2 = vor.u32 %v13455_v5, %v10382_v7  ;;  %v10494_v4 = vld [vmem:[#allocation5 + $0xe28] sm:$0xf]  ;;  %v13483_v50 = vld [vmem:[#allocation5 + $0xe34] sm:$0xf0] }
 0x297   :  { %7440 = vmatpush.bf16.msrb.mxu2 %v10543_v61  ;;  %v10511_v61 = vor.u32 %v13487_v42, %v10510_v53  ;;  %v10622_v21 = vld [vmem:[#allocation5 + $0xf28] sm:$0xf]  ;;  %v13515_v22 = vld [vmem:[#allocation5 + $0xf34] sm:$0xf0] }
 0x298   :  { %7454 = vmatpush.bf16.msrb.mxu3 %v10671_v45  ;;  %v10639_v45 = vor.u32 %v13519_v8, %v10638_v23  ;;  %v13415_v25 = vld [vmem:[#allocation5 + $0xc14] sm:$0xf0]  ;;  %v10350_v30 = vld [vmem:[#allocation5 + $0xd08] sm:$0xf]  ;;  %v10623_v5 = vor.u32 %v13515_v22, %v10622_v21 }
 0x299   :  { %7413 = vmatpush.bf16.msrb.mxu0 %v10271_v19  ;;  %v10222_v19 = vld [vmem:[#allocation5 + $0xc08] sm:$0xf]  ;;  %v13447_v7 = vld [vmem:[#allocation5 + $0xd14] sm:$0xf0] }
 0x29a   :  { %7427 = vmatpush.bf16.msrb.mxu1 %v10399_v12  ;;  %v10367_v12 = vor.u32 %v13451_v6, %v10366_v20  ;;  %v10478_v54 = vld [vmem:[#allocation5 + $0xe08] sm:$0xf]  ;;  %v13511_v42 = vld [vmem:[#allocation5 + $0xf14] sm:$0xf0]  ;;  %v10223_v8 = vor.u32 %v13415_v25, %v10222_v19 }
 0x29b   :  { %7441 = vmatpush.bf16.msrb.mxu2 %v10527_v59  ;;  %v10495_v59 = vor.u32 %v13483_v50, %v10494_v4  ;;  %v10606_v53 = vld [vmem:[#allocation5 + $0xf08] sm:$0xf]  ;;  %v13571_v3 = vld [vmem:[#allocation5 + $0x10f4] sm:$0xf0] }
 0x29c   :  { %7455 = vmatpush.bf16.msrb.mxu3 %v10655_v16  ;;  %v13479_v16 = vld [vmem:[#allocation5 + $0xe14] sm:$0xf0]  ;;  %v10846_v18 = vld [vmem:[#allocation5 + $0x10e8] sm:$0xf] }
 0x29d   :  { %7414 = vmatpush.bf16.msrb.mxu0 %v10255_v52  ;;  %v10974_v23 = vld [vmem:[#allocation5 + $0x11e8] sm:$0xf]  ;;  %v13603_v52 = vld [vmem:[#allocation5 + $0x11f4] sm:$0xf0]  ;;  %v10847_v4 = vor.u32 %v13571_v3, %v10846_v18 }
 0x29e   :  { %7428 = vmatpush.bf16.msrb.mxu1 %v10383_v2  ;;  %v11102_v15 = vld [vmem:[#allocation5 + $0x12e8] sm:$0xf]  ;;  %v13635_v13 = vld [vmem:[#allocation5 + $0x12f4] sm:$0xf0]  ;;  %v10351_v2 = vor.u32 %v13447_v7, %v10350_v30  ;;  %v10975_v50 = vor.u32 %v13603_v52, %v10974_v23  ;;  %v14649_v30 = vpop.f32.mrf.mxu1 }
 0x29f   :  { %7442 = vmatpush.bf16.msrb.mxu2 %v10511_v61  ;;  %v10479_v61 = vor.u32 %v13479_v16, %v10478_v54  ;;  %v11230_v20 = vld [vmem:[#allocation5 + $0x13e8] sm:$0xf]  ;;  %v13667_v6 = vld [vmem:[#allocation5 + $0x13f4] sm:$0xf0]  ;;  %v11103_v21 = vor.u32 %v13635_v13, %v11102_v15  ;;  %15088 = vst [vmem:[#allocation86_spill] sm:$0xff] %v14649_v30 }
 0x2a0   :  { %7456 = vmatpush.bf16.msrb.mxu3 %v10639_v45  ;;  %v10607_v45 = vor.u32 %v13511_v42, %v10606_v53  ;;  %v10830_v22 = vld [vmem:[#allocation5 + $0x10c8] sm:$0xf]  ;;  %v13567_v24 = vld [vmem:[#allocation5 + $0x10d4] sm:$0xf0] }
 0x2a1   :  { %7415 = vmatpush.bf16.msrb.mxu0 %v10239_v0  ;;  %v10958_v14 = vld [vmem:[#allocation5 + $0x11c8] sm:$0xf]  ;;  %v11231_v0 = vor.u32 %v13667_v6, %v11230_v20  ;;  %v13599_v19 = vld [vmem:[#allocation5 + $0x11d4] sm:$0xf0]  ;;  %v10831_v7 = vor.u32 %v13567_v24, %v10830_v22  ;;  %v14655_v20 = vpop.f32.mrf.mxu2 }
 0x2a2   :  { %7429 = vmatpush.bf16.msrb.mxu1 %v10367_v12  ;;  %v11086_v25 = vld [vmem:[#allocation5 + $0x12c8] sm:$0xf]  ;;  %v13631_v57 = vld [vmem:[#allocation5 + $0x12d4] sm:$0xf0]  ;;  %v10959_v54 = vor.u32 %v13599_v19, %v10958_v14  ;;  %15089 = vst [vmem:[#allocation87_spill] sm:$0xff] %v14655_v20 }
 0x2a3   :  { %7443 = vmatpush.bf16.msrb.mxu2 %v10495_v59  ;;  %v11214_v12 = vld [vmem:[#allocation5 + $0x13c8] sm:$0xf]  ;;  %v13663_v59 = vld [vmem:[#allocation5 + $0x13d4] sm:$0xf0] }
 0x2a4   :  { %7457 = vmatpush.bf16.msrb.mxu3 %v10623_v5  ;;  %v11087_v5 = vor.u32 %v13631_v57, %v11086_v25  ;;  %v10814_v16 = vld [vmem:[#allocation5 + $0x10a8] sm:$0xf]  ;;  %v13563_v53 = vld [vmem:[#allocation5 + $0x10b4] sm:$0xf0]  ;;  %v11215_v18 = vor.u32 %v13663_v59, %v11214_v12 }
 0x2a5   :  { %7416 = vmatpush.bf16.msrb.mxu0 %v10223_v8  ;;  %v10942_v42 = vld [vmem:[#allocation5 + $0x11a8] sm:$0xf]  ;;  %v13595_v3 = vld [vmem:[#allocation5 + $0x11b4] sm:$0xf0]  ;;  %v10815_v57 = vor.u32 %v13563_v53, %v10814_v16  ;;  %v7194_v22 = vpop.f32.mrf.mxu0 }
 0x2a6   :  { %7430 = vmatpush.bf16.msrb.mxu1 %v10351_v2  ;;  %v11070_v23 = vld [vmem:[#allocation5 + $0x12a8] sm:$0xf]  ;;  %v13627_v8 = vld [vmem:[#allocation5 + $0x12b4] sm:$0xf0]  ;;  %v10943_v14 = vor.u32 %v13595_v3, %v10942_v42  ;;  %v7195_v25 = vadd.f32 %v7194_v22, %v14645_v11  ;;  %v7208_v59 = vpop.f32.mrf.mxu1 }
 0x2a7   :  { %7444 = vmatpush.bf16.msrb.mxu2 %v10479_v61  ;;  %v11198_v52 = vld [vmem:[#allocation5 + $0x13a8] sm:$0xf]  ;;  %v13659_v24 = vld [vmem:[#allocation5 + $0x13b4] sm:$0xf0]  ;;  %v11071_v15 = vor.u32 %v13627_v8, %v11070_v23 }
 0x2a8   :  { %7458 = vmatpush.bf16.msrb.mxu3 %v10607_v45  ;;  %7417 = vmatmul.bf16.vlgmr.msrb.gmra.mxu0 %v14378_v32  ;;  %v10798_v13 = vld [vmem:[#allocation5 + $0x1088] sm:$0xf]  ;;  %v13559_v2 = vld [vmem:[#allocation5 + $0x1094] sm:$0xf0]  ;;  %v11199_v6 = vor.u32 %v13659_v24, %v11198_v52 }
 0x2a9   :  { %7465 = vmatpush.bf16.msra.mxu0 %v10847_v4  ;;  %7431 = vmatmul.bf16.vlgmr.msrb.gmra.mxu1 %v14382_v41  ;;  %v10926_v61 = vld [vmem:[#allocation5 + $0x1188] sm:$0xf]  ;;  %v13591_v45 = vld [vmem:[#allocation5 + $0x1194] sm:$0xf0]  ;;  %v10799_v12 = vor.u32 %v13559_v2, %v10798_v13 }
 0x2aa   :  { %7479 = vmatpush.bf16.msra.mxu1 %v10975_v50  ;;  %7445 = vmatmul.bf16.vlgmr.msrb.gmra.mxu2 %v14380_v38  ;;  %v11054_v4 = vld [vmem:[#allocation5 + $0x1288] sm:$0xf]  ;;  %v13623_v50 = vld [vmem:[#allocation5 + $0x1294] sm:$0xf0] }
 0x2ab   :  { %7493 = vmatpush.bf16.msra.mxu2 %v11103_v21  ;;  %7459 = vmatmul.bf16.vlgmr.msrb.gmra.mxu3 %v14384_v46  ;;  %v14657_v21 = vpop.f32.mrf.mxu3  ;;  %v13655_v19 = vld [vmem:[#allocation5 + $0x1394] sm:$0xf0]  ;;  %v10910_v53 = vld [vmem:[#allocation5 + $0x1168] sm:$0xf] }
 0x2ac   :  { %7507 = vmatpush.bf16.msra.mxu3 %v11231_v0  ;;  %15090 = vst [vmem:[#allocation88_spill] sm:$0xff] %v14657_v21  ;;  %v11182_v0 = vld [vmem:[#allocation5 + $0x1388] sm:$0xf]  ;;  %v13555_v16 = vld [vmem:[#allocation5 + $0x1074] sm:$0xf0] }
 0x2ad   :  { %7466 = vmatpush.bf16.msra.mxu0 %v10831_v7  ;;  %v10927_v7 = vor.u32 %v13591_v45, %v10926_v61  ;;  %v11183_v42 = vor.u32 %v13655_v19, %v11182_v0  ;;  %v13587_v3 = vld [vmem:[#allocation5 + $0x1174] sm:$0xf0]  ;;  %v11038_v23 = vld [vmem:[#allocation5 + $0x1268] sm:$0xf]  ;;  %v7222_v45 = vpop.f32.mrf.mxu2  ;;  %v14662_v30 = vpop.f32.mrf.mxu0 }
 0x2ae   :  { %7480 = vmatpush.bf16.msra.mxu1 %v10959_v54  ;;  %v11055_v54 = vor.u32 %v13623_v50, %v11054_v4  ;;  %v13619_v8 = vld [vmem:[#allocation5 + $0x1274] sm:$0xf0]  ;;  %v11166_v52 = vld [vmem:[#allocation5 + $0x1368] sm:$0xf]  ;;  %v10911_v11 = vor.u32 %v13587_v3, %v10910_v53  ;;  %15092 = vst [vmem:[#allocation90_spill] sm:$0xff] %v14662_v30 }
 0x2af   :  { %7494 = vmatpush.bf16.msra.mxu2 %v11087_v5  ;;  %v10782_v5 = vld [vmem:[#allocation5 + $0x1068] sm:$0xf]  ;;  %v13651_v24 = vld [vmem:[#allocation5 + $0x1374] sm:$0xf0] }
 0x2b0   :  { %7508 = vmatpush.bf16.msra.mxu3 %v11215_v18  ;;  %v7209_v18 = vadd.f32 %v7208_v59, %v7195_v25  ;;  %v13551_v13 = vld [vmem:[#allocation5 + $0x1054] sm:$0xf0]  ;;  %v10894_v2 = vld [vmem:[#allocation5 + $0x1148] sm:$0xf]  ;;  %v11167_v61 = vor.u32 %v13651_v24, %v11166_v52 }
 0x2b1   :  { %7467 = vmatpush.bf16.msra.mxu0 %v10815_v57  ;;  %v10783_v57 = vor.u32 %v13555_v16, %v10782_v5  ;;  %v11022_v4 = vld [vmem:[#allocation5 + $0x1248] sm:$0xf]  ;;  %v13615_v50 = vld [vmem:[#allocation5 + $0x1254] sm:$0xf0] }
 0x2b2   :  { %7481 = vmatpush.bf16.msra.mxu1 %v10943_v14  ;;  %v11039_v14 = vor.u32 %v13619_v8, %v11038_v23  ;;  %v7223_v22 = vadd.f32 %v7222_v45, %v7209_v18  ;;  %v11150_v19 = vld [vmem:[#allocation5 + $0x1348] sm:$0xf]  ;;  %v13647_v25 = vld [vmem:[#allocation5 + $0x1354] sm:$0xf0] }
 0x2b3   :  { %7495 = vmatpush.bf16.msra.mxu2 %v11071_v15  ;;  %v10766_v15 = vld [vmem:[#allocation5 + $0x1048] sm:$0xf]  ;;  %v7236_v0 = vpop.f32.mrf.mxu3  ;;  %v13547_v16 = vld [vmem:[#allocation5 + $0x1034] sm:$0xf0] }
 0x2b4   :  { %7509 = vmatpush.bf16.msra.mxu3 %v11199_v6  ;;  %v13583_v6 = vld [vmem:[#allocation5 + $0x1154] sm:$0xf0]  ;;  %v14660_v59 = vadd.f32 %v7236_v0, %v7223_v22  ;;  %v10750_v5 = vld [vmem:[#allocation5 + $0x1028] sm:$0xf] }
 0x2b5   :  { %7468 = vmatpush.bf16.msra.mxu0 %v10799_v12  ;;  %v10767_v12 = vor.u32 %v13551_v13, %v10766_v15  ;;  %v10878_v53 = vld [vmem:[#allocation5 + $0x1128] sm:$0xf]  ;;  %v13579_v3 = vld [vmem:[#allocation5 + $0x1134] sm:$0xf0]  ;;  %v10751_v24 = vor.u32 %v13547_v16, %v10750_v5 }
 0x2b6   :  { %7482 = vmatpush.bf16.msra.mxu1 %v10927_v7  ;;  %15091 = vst [vmem:[#allocation89_spill] sm:$0xff] %v14660_v59  ;;  %v10895_v7 = vor.u32 %v13583_v6, %v10894_v2  ;;  %v11006_v23 = vld [vmem:[#allocation5 + $0x1228] sm:$0xf]  ;;  %v13611_v8 = vld [vmem:[#allocation5 + $0x1234] sm:$0xf0] }
 0x2b7   :  { %7496 = vmatpush.bf16.msra.mxu2 %v11055_v54  ;;  %v11023_v54 = vor.u32 %v13615_v50, %v11022_v4  ;;  %v11134_v18 = vld [vmem:[#allocation5 + $0x1328] sm:$0xf]  ;;  %v13643_v52 = vld [vmem:[#allocation5 + $0x1334] sm:$0xf0] }
 0x2b8   :  { %7510 = vmatpush.bf16.msra.mxu3 %v11183_v42  ;;  %v11151_v42 = vor.u32 %v13647_v25, %v11150_v19  ;;  %v13543_v15 = vld [vmem:[#allocation5 + $0x1014] sm:$0xf0]  ;;  %v10862_v13 = vld [vmem:[#allocation5 + $0x1108] sm:$0xf]  ;;  %v11135_v6 = vor.u32 %v13643_v52, %v11134_v18 }
 0x2b9   :  { %7469 = vmatpush.bf16.msra.mxu0 %v10783_v57  ;;  %v10734_v57 = vld [vmem:[#allocation5 + $0x1008] sm:$0xf]  ;;  %v13575_v2 = vld [vmem:[#allocation5 + $0x1114] sm:$0xf0] }
 0x2ba   :  { %7483 = vmatpush.bf16.msra.mxu1 %v10911_v11  ;;  %v10879_v11 = vor.u32 %v13579_v3, %v10878_v53  ;;  %v10990_v45 = vld [vmem:[#allocation5 + $0x1208] sm:$0xf]  ;;  %v13639_v50 = vld [vmem:[#allocation5 + $0x1314] sm:$0xf0]  ;;  %v10735_v25 = vor.u32 %v13543_v15, %v10734_v57 }
 0x2bb   :  { %7497 = vmatpush.bf16.msra.mxu2 %v11039_v14  ;;  %v11007_v14 = vor.u32 %v13611_v8, %v11006_v23  ;;  %v11118_v4 = vld [vmem:[#allocation5 + $0x1308] sm:$0xf]  ;;  %v13699_v0 = vld [vmem:[#allocation5 + $0x14f4] sm:$0xf0] }
 0x2bc   :  { %7511 = vmatpush.bf16.msra.mxu3 %v11167_v61  ;;  %v13607_v61 = vld [vmem:[#allocation5 + $0x1214] sm:$0xf0]  ;;  %v11358_v22 = vld [vmem:[#allocation5 + $0x14e8] sm:$0xf] }
 0x2bd   :  { %7470 = vmatpush.bf16.msra.mxu0 %v10767_v12  ;;  %v11486_v19 = vld [vmem:[#allocation5 + $0x15e8] sm:$0xf]  ;;  %v13731_v12 = vld [vmem:[#allocation5 + $0x15f4] sm:$0xf0]  ;;  %v11359_v23 = vor.u32 %v13699_v0, %v11358_v22 }
 0x2be   :  { %7484 = vmatpush.bf16.msra.mxu1 %v10895_v7  ;;  %v11614_v5 = vld [vmem:[#allocation5 + $0x16e8] sm:$0xf]  ;;  %v13763_v16 = vld [vmem:[#allocation5 + $0x16f4] sm:$0xf0]  ;;  %v10863_v7 = vor.u32 %v13575_v2, %v10862_v13  ;;  %v11487_v8 = vor.u32 %v13731_v12, %v11486_v19  ;;  %v14664_v13 = vpop.f32.mrf.mxu1 }
 0x2bf   :  { %7498 = vmatpush.bf16.msra.mxu2 %v11023_v54  ;;  %v10991_v54 = vor.u32 %v13607_v61, %v10990_v45  ;;  %v11742_v53 = vld [vmem:[#allocation5 + $0x17e8] sm:$0xf]  ;;  %v13795_v3 = vld [vmem:[#allocation5 + $0x17f4] sm:$0xf0]  ;;  %v11615_v18 = vor.u32 %v13763_v16, %v11614_v5  ;;  %15093 = vst [vmem:[#allocation91_spill] sm:$0xff] %v14664_v13 }
 0x2c0   :  { %7512 = vmatpush.bf16.msra.mxu3 %v11151_v42  ;;  %v11119_v42 = vor.u32 %v13639_v50, %v11118_v4  ;;  %v11342_v52 = vld [vmem:[#allocation5 + $0x14c8] sm:$0xf]  ;;  %v13695_v59 = vld [vmem:[#allocation5 + $0x14d4] sm:$0xf0] }
 0x2c1   :  { %7471 = vmatpush.bf16.msra.mxu0 %v10751_v24  ;;  %v11470_v21 = vld [vmem:[#allocation5 + $0x15c8] sm:$0xf]  ;;  %v11743_v24 = vor.u32 %v13795_v3, %v11742_v53  ;;  %v13727_v57 = vld [vmem:[#allocation5 + $0x15d4] sm:$0xf0]  ;;  %v11343_v2 = vor.u32 %v13695_v59, %v11342_v52 }
 0x2c2   :  { %7485 = vmatpush.bf16.msra.mxu1 %v10879_v11  ;;  %v11598_v15 = vld [vmem:[#allocation5 + $0x16c8] sm:$0xf]  ;;  %v13759_v20 = vld [vmem:[#allocation5 + $0x16d4] sm:$0xf0]  ;;  %v11471_v45 = vor.u32 %v13727_v57, %v11470_v21  ;;  %v14128_v21 = vld [vmem:[#allocation7] sm:$0xf] }
 0x2c3   :  { %7499 = vmatpush.bf16.msra.mxu2 %v11007_v14  ;;  %v11726_v11 = vld [vmem:[#allocation5 + $0x17c8] sm:$0xf]  ;;  %v13791_v14 = vld [vmem:[#allocation5 + $0x17d4] sm:$0xf0]  ;;  %v1219_v5 = vperm.slane %v14128_v21, 2 }
 0x2c4   :  { %7513 = vmatpush.bf16.msra.mxu3 %v11135_v6  ;;  %v11599_v6 = vor.u32 %v13759_v20, %v11598_v15  ;;  %v11326_v61 = vld [vmem:[#allocation5 + $0x14a8] sm:$0xf]  ;;  %v13691_v4 = vld [vmem:[#allocation5 + $0x14b4] sm:$0xf0]  ;;  %v11727_v22 = vor.u32 %v13791_v14, %v11726_v11 }
 0x2c5   :  { %7472 = vmatpush.bf16.msra.mxu0 %v10735_v25  ;;  %v11454_v50 = vld [vmem:[#allocation5 + $0x15a8] sm:$0xf]  ;;  %v13723_v0 = vld [vmem:[#allocation5 + $0x15b4] sm:$0xf0]  ;;  %v11327_v20 = vor.u32 %v13691_v4, %v11326_v61  ;;  %v7250_v11 = vpop.f32.mrf.mxu0 }
 0x2c6   :  { %7486 = vmatpush.bf16.msra.mxu1 %v10863_v7  ;;  %v11582_v19 = vld [vmem:[#allocation5 + $0x16a8] sm:$0xf]  ;;  %v13755_v25 = vld [vmem:[#allocation5 + $0x16b4] sm:$0xf0]  ;;  %v11455_v16 = vor.u32 %v13723_v0, %v11454_v50 }
 0x2c7   :  { %7500 = vmatpush.bf16.msra.mxu2 %v10991_v54  ;;  %v11710_v12 = vld [vmem:[#allocation5 + $0x17a8] sm:$0xf]  ;;  %v13787_v59 = vld [vmem:[#allocation5 + $0x17b4] sm:$0xf0]  ;;  %v11583_v7 = vor.u32 %v13755_v25, %v11582_v19 }
 0x2c8   :  { %7514 = vmatpush.bf16.msra.mxu3 %v11119_v42  ;;  %7473 = vmatmul.bf16.vlgmr.msra.gmra.mxu0 %v14390_v51  ;;  %v11310_v54 = vld [vmem:[#allocation5 + $0x1488] sm:$0xf]  ;;  %v13687_v53 = vld [vmem:[#allocation5 + $0x1494] sm:$0xf0]  ;;  %v14670_v42 = vpop.f32.mrf.mxu2 }
 0x2c9   :  { %7521 = vmatpush.bf16.msrb.mxu0 %v11359_v23  ;;  %7487 = vmatmul.bf16.vlgmr.msra.gmra.mxu1 %v14394_v56  ;;  %v11438_v3 = vld [vmem:[#allocation5 + $0x1588] sm:$0xf]  ;;  %15094 = vst [vmem:[#allocation92_spill] sm:$0xff] %v14670_v42  ;;  %v11711_v23 = vor.u32 %v13787_v59, %v11710_v12  ;;  %v13751_v52 = vld [vmem:[#allocation5 + $0x1694] sm:$0xf0]  ;;  %v11311_v14 = vor.u32 %v13687_v53, %v11310_v54 }
 0x2ca   :  { %7535 = vmatpush.bf16.msrb.mxu1 %v11487_v8  ;;  %7501 = vmatmul.bf16.vlgmr.msra.gmra.mxu2 %v14392_v55  ;;  %v13719_v8 = vld [vmem:[#allocation5 + $0x1594] sm:$0xf0]  ;;  %v11694_v57 = vld [vmem:[#allocation5 + $0x1788] sm:$0xf] }
 0x2cb   :  { %7549 = vmatpush.bf16.msrb.mxu2 %v11615_v18  ;;  %7515 = vmatmul.bf16.vlgmr.msra.gmra.mxu3 %v14396_v60  ;;  %v11566_v18 = vld [vmem:[#allocation5 + $0x1688] sm:$0xf]  ;;  %v13783_v15 = vld [vmem:[#allocation5 + $0x1794] sm:$0xf0] }
 0x2cc   :  { %7563 = vmatpush.bf16.msrb.mxu3 %v11743_v24  ;;  %v14672_v24 = vpop.f32.mrf.mxu3  ;;  %v11567_v61 = vor.u32 %v13751_v52, %v11566_v18  ;;  %v11294_v4 = vld [vmem:[#allocation5 + $0x1468] sm:$0xf]  ;;  %v13683_v50 = vld [vmem:[#allocation5 + $0x1474] sm:$0xf0]  ;;  %v11695_v0 = vor.u32 %v13783_v15, %v11694_v57 }
 0x2cd   :  { %7522 = vmatpush.bf16.msrb.mxu0 %v11343_v2  ;;  %15095 = vst [vmem:[#allocation93_spill] sm:$0xff] %v14672_v24  ;;  %v7251_v2 = vadd.f32 %v7250_v11, %v1219_v5  ;;  %v13715_v19 = vld [vmem:[#allocation5 + $0x1574] sm:$0xf0]  ;;  %v11550_v25 = vld [vmem:[#allocation5 + $0x1668] sm:$0xf] }
 0x2ce   :  { %7536 = vmatpush.bf16.msrb.mxu1 %v11471_v45  ;;  %v7264_v45 = vpop.f32.mrf.mxu1  ;;  %v13747_v12 = vld [vmem:[#allocation5 + $0x1674] sm:$0xf0]  ;;  %v11678_v21 = vld [vmem:[#allocation5 + $0x1768] sm:$0xf] }
 0x2cf   :  { %7550 = vmatpush.bf16.msrb.mxu2 %v11599_v6  ;;  %v11439_v6 = vor.u32 %v13719_v8, %v11438_v3  ;;  %v7265_v59 = vadd.f32 %v7264_v45, %v7251_v2  ;;  %v13779_v24 = vld [vmem:[#allocation5 + $0x1774] sm:$0xf0]  ;;  %v11406_v3 = vld [vmem:[#allocation5 + $0x1548] sm:$0xf]  ;;  %v7252_v45 = vpop.f32.mrf.mxu0 }
 0x2d0   :  { %7564 = vmatpush.bf16.msrb.mxu3 %v11727_v22  ;;  %v11422_v22 = vld [vmem:[#allocation5 + $0x1568] sm:$0xf]  ;;  %v13679_v53 = vld [vmem:[#allocation5 + $0x1454] sm:$0xf0]  ;;  %v11679_v8 = vor.u32 %v13779_v24, %v11678_v21  ;;  %v7278_v57 = vpop.f32.mrf.mxu2 }
 0x2d1   :  { %7523 = vmatpush.bf16.msrb.mxu0 %v11327_v20  ;;  %v11295_v20 = vor.u32 %v13683_v50, %v11294_v4  ;;  %v11423_v54 = vor.u32 %v13715_v19, %v11422_v22  ;;  %v13711_v18 = vld [vmem:[#allocation5 + $0x1554] sm:$0xf0]  ;;  %v11662_v15 = vld [vmem:[#allocation5 + $0x1748] sm:$0xf]  ;;  %v7279_v2 = vadd.f32 %v7278_v57, %v7265_v59 }
 0x2d2   :  { %7537 = vmatpush.bf16.msrb.mxu1 %v11455_v16  ;;  %v11551_v16 = vor.u32 %v13747_v12, %v11550_v25  ;;  %v13743_v52 = vld [vmem:[#allocation5 + $0x1654] sm:$0xf0]  ;;  %v11262_v50 = vld [vmem:[#allocation5 + $0x1428] sm:$0xf] }
 0x2d3   :  { %7551 = vmatpush.bf16.msrb.mxu2 %v11583_v7  ;;  %v11278_v7 = vld [vmem:[#allocation5 + $0x1448] sm:$0xf]  ;;  %v13775_v11 = vld [vmem:[#allocation5 + $0x1754] sm:$0xf0] }
 0x2d4   :  { %7565 = vmatpush.bf16.msrb.mxu3 %v11711_v23  ;;  %v11534_v23 = vld [vmem:[#allocation5 + $0x1648] sm:$0xf]  ;;  %v7292_v42 = vpop.f32.mrf.mxu3  ;;  %v13675_v22 = vld [vmem:[#allocation5 + $0x1434] sm:$0xf0]  ;;  %v11663_v25 = vor.u32 %v13775_v11, %v11662_v15 }
 0x2d5   :  { %7524 = vmatpush.bf16.msrb.mxu0 %v11311_v14  ;;  %v11279_v14 = vor.u32 %v13679_v53, %v11278_v7  ;;  %v11535_v4 = vor.u32 %v13743_v52, %v11534_v23  ;;  %v14674_v24 = vadd.f32 %v7292_v42, %v7279_v2  ;;  %v13707_v12 = vld [vmem:[#allocation5 + $0x1534] sm:$0xf0]  ;;  %v11518_v21 = vld [vmem:[#allocation5 + $0x1628] sm:$0xf] }
 0x2d6   :  { %7538 = vmatpush.bf16.msrb.mxu1 %v11439_v6  ;;  %v7253_v6 = vadd.f32 %v7252_v45, %v1219_v5  ;;  %v7266_v19 = vpop.f32.mrf.mxu1  ;;  %v13739_v59 = vld [vmem:[#allocation5 + $0x1634] sm:$0xf0]  ;;  %v11646_v13 = vld [vmem:[#allocation5 + $0x1728] sm:$0xf]  ;;  %v11263_v5 = vor.u32 %v13675_v22, %v11262_v50 }
 0x2d7   :  { %7552 = vmatpush.bf16.msrb.mxu2 %v11567_v61  ;;  %v11407_v61 = vor.u32 %v13711_v18, %v11406_v3  ;;  %v11519_v53 = vor.u32 %v13739_v59, %v11518_v21  ;;  %v11374_v3 = vld [vmem:[#allocation5 + $0x1508] sm:$0xf]  ;;  %v13703_v42 = vld [vmem:[#allocation5 + $0x1514] sm:$0xf0] }
 0x2d8   :  { %7566 = vmatpush.bf16.msrb.mxu3 %v11695_v0  ;;  %v11390_v0 = vld [vmem:[#allocation5 + $0x1528] sm:$0xf]  ;;  %v7267_v57 = vadd.f32 %v7266_v19, %v7253_v6  ;;  %v13735_v23 = vld [vmem:[#allocation5 + $0x1614] sm:$0xf0]  ;;  %v7280_v11 = vpop.f32.mrf.mxu2  ;;  %v11375_v19 = vor.u32 %v13703_v42, %v11374_v3 }
 0x2d9   :  { %7525 = vmatpush.bf16.msrb.mxu0 %v11295_v20  ;;  %v13771_v20 = vld [vmem:[#allocation5 + $0x1734] sm:$0xf0]  ;;  %v11391_v7 = vor.u32 %v13707_v12, %v11390_v0  ;;  %v11502_v18 = vld [vmem:[#allocation5 + $0x1608] sm:$0xf] }
 0x2da   :  { %7539 = vmatpush.bf16.msrb.mxu1 %v11423_v54  ;;  %v11246_v54 = vld [vmem:[#allocation5 + $0x1408] sm:$0xf]  ;;  %v13767_v15 = vld [vmem:[#allocation5 + $0x1714] sm:$0xf0]  ;;  %v11503_v12 = vor.u32 %v13735_v23, %v11502_v18 }
 0x2db   :  { %7553 = vmatpush.bf16.msrb.mxu2 %v11551_v16  ;;  %v13671_v16 = vld [vmem:[#allocation5 + $0x1414] sm:$0xf0]  ;;  %v11630_v52 = vld [vmem:[#allocation5 + $0x1708] sm:$0xf] }
 0x2dc   :  { %7567 = vmatpush.bf16.msrb.mxu3 %v11679_v8  ;;  %v11647_v8 = vor.u32 %v13771_v20, %v11646_v13  ;;  %v11870_v2 = vld [vmem:[#allocation5 + $0x18e8] sm:$0xf]  ;;  %v13827_v45 = vld [vmem:[#allocation5 + $0x18f4] sm:$0xf0]  ;;  %v11247_v50 = vor.u32 %v13671_v16, %v11246_v54  ;;  %v7294_v0 = vpop.f32.mrf.mxu3  ;;  %v11631_v59 = vor.u32 %v13767_v15, %v11630_v52 }
 0x2dd   :  { %7526 = vmatpush.bf16.msrb.mxu0 %v11279_v14  ;;  %v11998_v6 = vld [vmem:[#allocation5 + $0x19e8] sm:$0xf]  ;;  %v7281_v14 = vadd.f32 %v7280_v11, %v7267_v57  ;;  %v13859_v22 = vld [vmem:[#allocation5 + $0x19f4] sm:$0xf0]  ;;  %v11871_v20 = vor.u32 %v13827_v45, %v11870_v2 }
 0x2de   :  { %7540 = vmatpush.bf16.msrb.mxu1 %v11407_v61  ;;  %v12126_v61 = vld [vmem:[#allocation5 + $0x1ae8] sm:$0xf]  ;;  %v13923_v13 = vld [vmem:[#allocation5 + $0x1bf4] sm:$0xf0]  ;;  %v11999_v30 = vor.u32 %v13859_v22, %v11998_v6 }
 0x2df   :  { %7554 = vmatpush.bf16.msrb.mxu2 %v11535_v4  ;;  %v13891_v4 = vld [vmem:[#allocation5 + $0x1af4] sm:$0xf0]  ;;  %v14676_v21 = vadd.f32 %v7294_v0, %v7281_v14  ;;  %v11854_v57 = vld [vmem:[#allocation5 + $0x18c8] sm:$0xf] }
 0x2e0   :  { %7568 = vmatpush.bf16.msrb.mxu3 %v11663_v25  ;;  %v12254_v25 = vld [vmem:[#allocation5 + $0x1be8] sm:$0xf]  ;;  %v12127_v9 = vor.u32 %v13891_v4, %v12126_v61  ;;  %v13855_v11 = vld [vmem:[#allocation5 + $0x19d4] sm:$0xf0] }
 0x2e1   :  { %7527 = vmatpush.bf16.msrb.mxu0 %v11263_v5  ;;  %v13823_v5 = vld [vmem:[#allocation5 + $0x18d4] sm:$0xf0]  ;;  %v11982_v54 = vld [vmem:[#allocation5 + $0x19c8] sm:$0xf]  ;;  %v12255_v16 = vor.u32 %v13923_v13, %v12254_v25 }
 0x2e2   :  { %7541 = vmatpush.bf16.msrb.mxu1 %v11391_v7  ;;  %v12110_v60 = vld [vmem:[#allocation5 + $0x1ac8] sm:$0xf]  ;;  %v13887_v7 = vld [vmem:[#allocation5 + $0x1ad4] sm:$0xf0]  ;;  %v11855_v42 = vor.u32 %v13823_v5, %v11854_v57  ;;  %v11983_v18 = vor.u32 %v13855_v11, %v11982_v54 }
 0x2e3   :  { %7555 = vmatpush.bf16.msrb.mxu2 %v11519_v53  ;;  %v12238_v53 = vld [vmem:[#allocation5 + $0x1bc8] sm:$0xf]  ;;  %v13919_v3 = vld [vmem:[#allocation5 + $0x1bd4] sm:$0xf0] }
 0x2e4   :  { %7569 = vmatpush.bf16.msrb.mxu3 %v11647_v8  ;;  %v12111_v8 = vor.u32 %v13887_v7, %v12110_v60  ;;  %v11838_v23 = vld [vmem:[#allocation5 + $0x18a8] sm:$0xf]  ;;  %v13819_v52 = vld [vmem:[#allocation5 + $0x18b4] sm:$0xf0]  ;;  %v12239_v2 = vor.u32 %v13919_v3, %v12238_v53 }
 0x2e5   :  { %7528 = vmatpush.bf16.msrb.mxu0 %v11247_v50  ;;  %v11966_v15 = vld [vmem:[#allocation5 + $0x19a8] sm:$0xf]  ;;  %v13851_v45 = vld [vmem:[#allocation5 + $0x19b4] sm:$0xf0]  ;;  %v11839_v60 = vor.u32 %v13819_v52, %v11838_v23 }
 0x2e6   :  { %7542 = vmatpush.bf16.msrb.mxu1 %v11375_v19  ;;  %v12094_v6 = vld [vmem:[#allocation5 + $0x1aa8] sm:$0xf]  ;;  %v13883_v14 = vld [vmem:[#allocation5 + $0x1ab4] sm:$0xf0]  ;;  %v7320_v7 = vpop.f32.mrf.mxu1 }
 0x2e7   :  { %7556 = vmatpush.bf16.msrb.mxu2 %v11503_v12  ;;  %v12222_v50 = vld [vmem:[#allocation5 + $0x1ba8] sm:$0xf]  ;;  %v13915_v22 = vld [vmem:[#allocation5 + $0x1bb4] sm:$0xf0] }
 0x2e8   :  { %7570 = vmatpush.bf16.msrb.mxu3 %v11631_v59  ;;  %7529 = vmatmul.bf16.vlgmr.msrb.gmra.mxu0 %v14411_v26  ;;  %v11822_v61 = vld [vmem:[#allocation5 + $0x1888] sm:$0xf]  ;;  %v13815_v4 = vld [vmem:[#allocation5 + $0x1894] sm:$0xf0]  ;;  %v12223_v19 = vor.u32 %v13915_v22, %v12222_v50  ;;  %v7306_v59 = vpop.f32.mrf.mxu0 }
 0x2e9   :  { %7577 = vmatpush.bf16.msra.mxu0 %v11871_v20  ;;  %7543 = vmatmul.bf16.vlgmr.msrb.gmra.mxu1 %v14415_v34  ;;  %v11950_v0 = vld [vmem:[#allocation5 + $0x1988] sm:$0xf]  ;;  %v13847_v12 = vld [vmem:[#allocation5 + $0x1994] sm:$0xf0]  ;;  %v7307_v5 = vadd.f32 %v7306_v59, %v14674_v24  ;;  %v11823_v54 = vor.u32 %v13815_v4, %v11822_v61 }
 0x2ea   :  { %7591 = vmatpush.bf16.msra.mxu1 %v11999_v30  ;;  %7557 = vmatmul.bf16.vlgmr.msrb.gmra.mxu2 %v14413_v33  ;;  %v12095_v30 = vor.u32 %v13883_v14, %v12094_v6  ;;  %v12078_v25 = vld [vmem:[#allocation5 + $0x1a88] sm:$0xf]  ;;  %v13879_v13 = vld [vmem:[#allocation5 + $0x1a94] sm:$0xf0] }
 0x2eb   :  { %7605 = vmatpush.bf16.msra.mxu2 %v12127_v9  ;;  %7571 = vmatmul.bf16.vlgmr.msrb.gmra.mxu3 %v14419_v48  ;;  %v11967_v9 = vor.u32 %v13851_v45, %v11966_v15  ;;  %v12206_v20 = vld [vmem:[#allocation5 + $0x1b88] sm:$0xf]  ;;  %v13911_v57 = vld [vmem:[#allocation5 + $0x1b94] sm:$0xf0]  ;;  %v12079_v11 = vor.u32 %v13879_v13, %v12078_v25  ;;  %v13373_v48 = vld [vmem:[#allocation5 + $0xacc] sm:$0xf] }
 0x2ec   :  { %7619 = vmatpush.bf16.msra.mxu3 %v12255_v16  ;;  %v11951_v16 = vor.u32 %v13847_v12, %v11950_v0  ;;  %v11806_v53 = vld [vmem:[#allocation5 + $0x1868] sm:$0xf]  ;;  %v13811_v3 = vld [vmem:[#allocation5 + $0x1874] sm:$0xf0] }
 0x2ed   :  { %7578 = vmatpush.bf16.msra.mxu0 %v11855_v42  ;;  %v11934_v42 = vld [vmem:[#allocation5 + $0x1968] sm:$0xf]  ;;  %v13843_v23 = vld [vmem:[#allocation5 + $0x1974] sm:$0xf0]  ;;  %v11807_v6 = vor.u32 %v13811_v3, %v11806_v53 }
 0x2ee   :  { %7592 = vmatpush.bf16.msra.mxu1 %v11983_v18  ;;  %v12207_v18 = vor.u32 %v13911_v57, %v12206_v20  ;;  %v12062_v52 = vld [vmem:[#allocation5 + $0x1a68] sm:$0xf]  ;;  %v13875_v15 = vld [vmem:[#allocation5 + $0x1a74] sm:$0xf0]  ;;  %v11935_v24 = vor.u32 %v13843_v23, %v11934_v42  ;;  %v7348_v13 = vpop.f32.mrf.mxu3 }
 0x2ef   :  { %7606 = vmatpush.bf16.msra.mxu2 %v12111_v8  ;;  %v7321_v8 = vadd.f32 %v7320_v7, %v7307_v5  ;;  %v13907_v45 = vld [vmem:[#allocation5 + $0x1b74] sm:$0xf0]  ;;  %v12063_v14 = vor.u32 %v13875_v15, %v12062_v52  ;;  %v11790_v50 = vld [vmem:[#allocation5 + $0x1848] sm:$0xf] }
 0x2f0   :  { %7620 = vmatpush.bf16.msra.mxu3 %v12239_v2  ;;  %v12190_v2 = vld [vmem:[#allocation5 + $0x1b68] sm:$0xf]  ;;  %v13807_v22 = vld [vmem:[#allocation5 + $0x1854] sm:$0xf0] }
 0x2f1   :  { %7579 = vmatpush.bf16.msra.mxu0 %v11839_v60  ;;  %v11918_v60 = vld [vmem:[#allocation5 + $0x1948] sm:$0xf]  ;;  %v13839_v61 = vld [vmem:[#allocation5 + $0x1954] sm:$0xf0]  ;;  %v11791_v59 = vor.u32 %v13807_v22, %v11790_v50 }
 0x2f2   :  { %7593 = vmatpush.bf16.msra.mxu1 %v11967_v9  ;;  %v12191_v9 = vor.u32 %v13907_v45, %v12190_v2  ;;  %v12046_v4 = vld [vmem:[#allocation5 + $0x1a48] sm:$0xf]  ;;  %v13871_v0 = vld [vmem:[#allocation5 + $0x1a54] sm:$0xf0]  ;;  %v11919_v57 = vor.u32 %v13839_v61, %v11918_v60 }
 0x2f3   :  { %7607 = vmatpush.bf16.msra.mxu2 %v12095_v30  ;;  %v7334_v30 = vpop.f32.mrf.mxu2  ;;  %v12174_v12 = vld [vmem:[#allocation5 + $0x1b48] sm:$0xf]  ;;  %v13903_v25 = vld [vmem:[#allocation5 + $0x1b54] sm:$0xf0]  ;;  %v12047_v5 = vor.u32 %v13871_v0, %v12046_v4 }
 0x2f4   :  { %7621 = vmatpush.bf16.msra.mxu3 %v12223_v19  ;;  %v7335_v19 = vadd.f32 %v7334_v30, %v7321_v8  ;;  %v12175_v7 = vor.u32 %v13903_v25, %v12174_v12  ;;  %v13835_v53 = vld [vmem:[#allocation5 + $0x1934] sm:$0xf0]  ;;  %v12030_v3 = vld [vmem:[#allocation5 + $0x1a28] sm:$0xf] }
 0x2f5   :  { %7580 = vmatpush.bf16.msra.mxu0 %v11823_v54  ;;  %v11774_v54 = vld [vmem:[#allocation5 + $0x1828] sm:$0xf]  ;;  %v13867_v42 = vld [vmem:[#allocation5 + $0x1a34] sm:$0xf0] }
 0x2f6   :  { %7594 = vmatpush.bf16.msra.mxu1 %v11951_v16  ;;  %v14683_v20 = vadd.f32 %v7348_v13, %v7335_v19  ;;  %v13803_v16 = vld [vmem:[#allocation5 + $0x1834] sm:$0xf0]  ;;  %v11758_v52 = vld [vmem:[#allocation5 + $0x1808] sm:$0xf]  ;;  %v12031_v45 = vor.u32 %v13867_v42, %v12030_v3 }
 0x2f7   :  { %7608 = vmatpush.bf16.msra.mxu2 %v12079_v11  ;;  %v11902_v11 = vld [vmem:[#allocation5 + $0x1928] sm:$0xf]  ;;  %v13899_v8 = vld [vmem:[#allocation5 + $0x1b34] sm:$0xf0]  ;;  %v11775_v23 = vor.u32 %v13803_v16, %v11774_v54 }
 0x2f8   :  { %7622 = vmatpush.bf16.msra.mxu3 %v12207_v18  ;;  %v12158_v18 = vld [vmem:[#allocation5 + $0x1b28] sm:$0xf]  ;;  %v13799_v15 = vld [vmem:[#allocation5 + $0x1814] sm:$0xf0]  ;;  %v11903_v2 = vor.u32 %v13835_v53, %v11902_v11 }
 0x2f9   :  { %7581 = vmatpush.bf16.msra.mxu0 %v11807_v6  ;;  %v11886_v6 = vld [vmem:[#allocation5 + $0x1908] sm:$0xf]  ;;  %v12159_v50 = vor.u32 %v13899_v8, %v12158_v18  ;;  %v13863_v22 = vld [vmem:[#allocation5 + $0x1a14] sm:$0xf0]  ;;  %v11759_v0 = vor.u32 %v13799_v15, %v11758_v52 }
 0x2fa   :  { %7595 = vmatpush.bf16.msra.mxu1 %v11935_v24  ;;  %v13831_v24 = vld [vmem:[#allocation5 + $0x1914] sm:$0xf0]  ;;  %v12142_v60 = vld [vmem:[#allocation5 + $0x1b08] sm:$0xf] }
 0x2fb   :  { %7609 = vmatpush.bf16.msra.mxu2 %v12063_v14  ;;  %v12014_v14 = vld [vmem:[#allocation5 + $0x1a08] sm:$0xf]  ;;  %v13955_v61 = vld [vmem:[#allocation5 + $0x1cf4] sm:$0xf0]  ;;  %v11887_v13 = vor.u32 %v13831_v24, %v11886_v6 }
 0x2fc   :  { %7623 = vmatpush.bf16.msra.mxu3 %v12191_v9  ;;  %v13895_v9 = vld [vmem:[#allocation5 + $0x1b14] sm:$0xf0]  ;;  %v12382_v30 = vld [vmem:[#allocation5 + $0x1ce8] sm:$0xf] }
 0x2fd   :  { %7582 = vmatpush.bf16.msra.mxu0 %v11791_v59  ;;  %v12510_v4 = vld [vmem:[#allocation5 + $0x1de8] sm:$0xf]  ;;  %v13987_v19 = vld [vmem:[#allocation5 + $0x1df4] sm:$0xf0]  ;;  %v12015_v59 = vor.u32 %v13863_v22, %v12014_v14  ;;  %v12143_v54 = vor.u32 %v13895_v9, %v12142_v60  ;;  %v12383_v16 = vor.u32 %v13955_v61, %v12382_v30 }
 0x2fe   :  { %7596 = vmatpush.bf16.msra.mxu1 %v11919_v57  ;;  %v12638_v12 = vld [vmem:[#allocation5 + $0x1ee8] sm:$0xf]  ;;  %v14019_v25 = vld [vmem:[#allocation5 + $0x1ef4] sm:$0xf0]  ;;  %v12511_v11 = vor.u32 %v13987_v19, %v12510_v4 }
 0x2ff   :  { %7610 = vmatpush.bf16.msra.mxu2 %v12047_v5  ;;  %v12766_v57 = vld [vmem:[#allocation5 + $0x1fe8] sm:$0xf]  ;;  %v14051_v5 = vld [vmem:[#allocation5 + $0x1ff4] sm:$0xf0] }
 0x300   :  { %7624 = vmatpush.bf16.msra.mxu3 %v12175_v7  ;;  %v12639_v7 = vor.u32 %v14019_v25, %v12638_v12  ;;  %v12366_v53 = vld [vmem:[#allocation5 + $0x1cc8] sm:$0xf]  ;;  %v13951_v3 = vld [vmem:[#allocation5 + $0x1cd4] sm:$0xf0]  ;;  %v12767_v18 = vor.u32 %v14051_v5, %v12766_v57 }
 0x301   :  { %7583 = vmatpush.bf16.msra.mxu0 %v11775_v23  ;;  %v12494_v42 = vld [vmem:[#allocation5 + $0x1dc8] sm:$0xf]  ;;  %v13983_v8 = vld [vmem:[#allocation5 + $0x1dd4] sm:$0xf0] }
 0x302   :  { %7597 = vmatpush.bf16.msra.mxu1 %v11903_v2  ;;  %v12622_v23 = vld [vmem:[#allocation5 + $0x1ec8] sm:$0xf]  ;;  %v14015_v52 = vld [vmem:[#allocation5 + $0x1ed4] sm:$0xf0]  ;;  %v12495_v6 = vor.u32 %v13983_v8, %v12494_v42 }
 0x303   :  { %7611 = vmatpush.bf16.msra.mxu2 %v12031_v45  ;;  %v12750_v15 = vld [vmem:[#allocation5 + $0x1fc8] sm:$0xf]  ;;  %v14047_v2 = vld [vmem:[#allocation5 + $0x1fd4] sm:$0xf0]  ;;  %v12367_v45 = vor.u32 %v13951_v3, %v12366_v53  ;;  %v12623_v24 = vor.u32 %v14015_v52, %v12622_v23 }
 0x304   :  { %7625 = vmatpush.bf16.msra.mxu3 %v12159_v50  ;;  %v12350_v14 = vld [vmem:[#allocation5 + $0x1ca8] sm:$0xf]  ;;  %v13947_v50 = vld [vmem:[#allocation5 + $0x1cb4] sm:$0xf0]  ;;  %v12751_v60 = vor.u32 %v14047_v2, %v12750_v15 }
 0x305   :  { %7584 = vmatpush.bf16.msra.mxu0 %v11759_v0  ;;  %v12478_v22 = vld [vmem:[#allocation5 + $0x1da8] sm:$0xf]  ;;  %v13979_v9 = vld [vmem:[#allocation5 + $0x1db4] sm:$0xf0]  ;;  %v12351_v12 = vor.u32 %v13947_v50, %v12350_v14 }
 0x306   :  { %7598 = vmatpush.bf16.msra.mxu1 %v11887_v13  ;;  %v12606_v30 = vld [vmem:[#allocation5 + $0x1ea8] sm:$0xf]  ;;  %v14011_v61 = vld [vmem:[#allocation5 + $0x1eb4] sm:$0xf0]  ;;  %v12479_v25 = vor.u32 %v13979_v9, %v12478_v22 }
 0x307   :  { %7612 = vmatpush.bf16.msra.mxu2 %v12015_v59  ;;  %v12734_v4 = vld [vmem:[#allocation5 + $0x1fa8] sm:$0xf]  ;;  %v14043_v0 = vld [vmem:[#allocation5 + $0x1fb4] sm:$0xf0]  ;;  %v12607_v13 = vor.u32 %v14011_v61, %v12606_v30 }
 0x308   :  { %7626 = vmatpush.bf16.msra.mxu3 %v12143_v54  ;;  %7585 = vmatmul.bf16.vlgmr.msra.gmra.mxu0 %v14432_v29  ;;  %v15096_v19 = vld [vmem:[#allocation28_spill] sm:$0xff]  ;;  %v13943_v57 = vld [vmem:[#allocation5 + $0x1c94] sm:$0xf0]  ;;  %v12735_v54 = vor.u32 %v14043_v0, %v12734_v4  ;;  %v9936_v29 = vld [vmem:[#allocation5 + $0x9d8] sm:$0xf0] }
 0x309   :  { %7633 = vmatpush.bf16.msrb.mxu0 %v12383_v16  ;;  %7599 = vmatmul.bf16.vlgmr.msra.gmra.mxu1 %v14438_v63  ;;  %v12334_v59 = vld [vmem:[#allocation5 + $0x1c88] sm:$0xf]  ;;  %v13975_v16 = vld [vmem:[#allocation5 + $0x1d94] sm:$0xf0]  ;;  %v13341_v63 = vld [vmem:[#allocation5 + $0x9cc] sm:$0xf] }
 0x30a   :  { %7647 = vmatpush.bf16.msrb.mxu1 %v12511_v11  ;;  %7613 = vmatmul.bf16.vlgmr.msra.gmra.mxu2 %v14436_v62  ;;  %v12462_v5 = vld [vmem:[#allocation5 + $0x1d88] sm:$0xf]  ;;  %v14039_v3 = vld [vmem:[#allocation5 + $0x1f94] sm:$0xf0]  ;;  %v12335_v42 = vor.u32 %v13943_v57, %v12334_v59 }
 0x30b   :  { %7661 = vmatpush.bf16.msrb.mxu2 %v12639_v7  ;;  %7627 = vmatmul.bf16.vlgmr.msra.gmra.mxu3 %v15096_v19  ;;  %v12590_v11 = vld [vmem:[#allocation5 + $0x1e88] sm:$0xf]  ;;  %v14007_v7 = vld [vmem:[#allocation5 + $0x1e94] sm:$0xf0]  ;;  %v9808_v19 = vld [vmem:[#allocation5 + $0x8d8] sm:$0xf0] }
 0x30c   :  { %7675 = vmatpush.bf16.msrb.mxu3 %v12767_v18  ;;  %v12718_v53 = vld [vmem:[#allocation5 + $0x1f88] sm:$0xf]  ;;  %v12463_v18 = vor.u32 %v13975_v16, %v12462_v5  ;;  %v12591_v8 = vor.u32 %v14007_v7, %v12590_v11  ;;  %v13939_v52 = vld [vmem:[#allocation5 + $0x1c74] sm:$0xf0] }
 0x30d   :  { %7634 = vmatpush.bf16.msrb.mxu0 %v12367_v45  ;;  %v12318_v23 = vld [vmem:[#allocation5 + $0x1c68] sm:$0xf]  ;;  %v12719_v2 = vor.u32 %v14039_v3, %v12718_v53  ;;  %v13971_v45 = vld [vmem:[#allocation5 + $0x1d74] sm:$0xf0] }
 0x30e   :  { %7648 = vmatpush.bf16.msrb.mxu1 %v12495_v6  ;;  %v12446_v15 = vld [vmem:[#allocation5 + $0x1d68] sm:$0xf]  ;;  %v14035_v50 = vld [vmem:[#allocation5 + $0x1f74] sm:$0xf0]  ;;  %v12319_v22 = vor.u32 %v13939_v52, %v12318_v23 }
 0x30f   :  { %7662 = vmatpush.bf16.msrb.mxu2 %v12623_v24  ;;  %v12574_v6 = vld [vmem:[#allocation5 + $0x1e68] sm:$0xf]  ;;  %v14003_v24 = vld [vmem:[#allocation5 + $0x1e74] sm:$0xf0] }
 0x310   :  { %7676 = vmatpush.bf16.msrb.mxu3 %v12751_v60  ;;  %v12702_v14 = vld [vmem:[#allocation5 + $0x1f68] sm:$0xf]  ;;  %v12447_v60 = vor.u32 %v13971_v45, %v12446_v15  ;;  %v12575_v9 = vor.u32 %v14003_v24, %v12574_v6  ;;  %v13935_v61 = vld [vmem:[#allocation5 + $0x1c54] sm:$0xf0] }
 0x311   :  { %7635 = vmatpush.bf16.msrb.mxu0 %v12351_v12  ;;  %v12302_v30 = vld [vmem:[#allocation5 + $0x1c48] sm:$0xf]  ;;  %v12703_v0 = vor.u32 %v14035_v50, %v12702_v14  ;;  %v13967_v12 = vld [vmem:[#allocation5 + $0x1d54] sm:$0xf0] }
 0x312   :  { %7649 = vmatpush.bf16.msrb.mxu1 %v12479_v25  ;;  %v12430_v4 = vld [vmem:[#allocation5 + $0x1d48] sm:$0xf]  ;;  %v14031_v57 = vld [vmem:[#allocation5 + $0x1f54] sm:$0xf0]  ;;  %v12303_v5 = vor.u32 %v13935_v61, %v12302_v30 }
 0x313   :  { %7663 = vmatpush.bf16.msrb.mxu2 %v12607_v13  ;;  %v12558_v25 = vld [vmem:[#allocation5 + $0x1e48] sm:$0xf]  ;;  %v13999_v13 = vld [vmem:[#allocation5 + $0x1e54] sm:$0xf0] }
 0x314   :  { %7677 = vmatpush.bf16.msrb.mxu3 %v12735_v54  ;;  %v12686_v59 = vld [vmem:[#allocation5 + $0x1f48] sm:$0xf]  ;;  %v12431_v54 = vor.u32 %v13967_v12, %v12430_v4  ;;  %v12559_v16 = vor.u32 %v13999_v13, %v12558_v25  ;;  %v13931_v7 = vld [vmem:[#allocation5 + $0x1c34] sm:$0xf0]  ;;  %v13057_v4 = vld [vmem:[#allocation5 + $0xec] sm:$0xf] }
 0x315   :  { %7636 = vmatpush.bf16.msrb.mxu0 %v12335_v42  ;;  %v12286_v11 = vld [vmem:[#allocation5 + $0x1c28] sm:$0xf]  ;;  %v12687_v3 = vor.u32 %v14031_v57, %v12686_v59  ;;  %v13963_v42 = vld [vmem:[#allocation5 + $0x1d34] sm:$0xf0]  ;;  %v13089_v12 = vld [vmem:[#allocation5 + $0x1ec] sm:$0xf] }
 0x316   :  { %7650 = vmatpush.bf16.msrb.mxu1 %v12463_v18  ;;  %v12414_v53 = vld [vmem:[#allocation5 + $0x1d28] sm:$0xf]  ;;  %v14027_v52 = vld [vmem:[#allocation5 + $0x1f34] sm:$0xf0]  ;;  %v12287_v15 = vor.u32 %v13931_v7, %v12286_v11  ;;  %v8928_v13 = vld [vmem:[#allocation5 + $0x1f8] sm:$0xf0] }
 0x317   :  { %7664 = vmatpush.bf16.msrb.mxu2 %v12591_v8  ;;  %v12542_v18 = vld [vmem:[#allocation5 + $0x1e28] sm:$0xf]  ;;  %v13995_v8 = vld [vmem:[#allocation5 + $0x1e34] sm:$0xf0]  ;;  %v12415_v6 = vor.u32 %v13963_v42, %v12414_v53  ;;  %v13121_v59 = vld [vmem:[#allocation5 + $0x2ec] sm:$0xf] }
 0x318   :  { %7678 = vmatpush.bf16.msrb.mxu3 %v12719_v2  ;;  %v12670_v23 = vld [vmem:[#allocation5 + $0x1f28] sm:$0xf]  ;;  %v13927_v45 = vld [vmem:[#allocation5 + $0x1c14] sm:$0xf0]  ;;  %v12543_v24 = vor.u32 %v13995_v8, %v12542_v18  ;;  %v9056_v57 = vld [vmem:[#allocation5 + $0x2f8] sm:$0xf0] }
 0x319   :  { %7637 = vmatpush.bf16.msrb.mxu0 %v12319_v22  ;;  %v12270_v2 = vld [vmem:[#allocation5 + $0x1c08] sm:$0xf]  ;;  %v13959_v50 = vld [vmem:[#allocation5 + $0x1d14] sm:$0xf0]  ;;  %v9184_v11 = vld [vmem:[#allocation5 + $0x3f8] sm:$0xf0]  ;;  %v9059_v42 = vor.u32 %v13121_v59, %v9056_v57 }
 0x31a   :  { %7651 = vmatpush.bf16.msrb.mxu1 %v12447_v60  ;;  %v12398_v14 = vld [vmem:[#allocation5 + $0x1d08] sm:$0xf]  ;;  %v12671_v60 = vor.u32 %v14027_v52, %v12670_v23  ;;  %v14023_v61 = vld [vmem:[#allocation5 + $0x1f14] sm:$0xf0]  ;;  %v12271_v25 = vor.u32 %v13927_v45, %v12270_v2  ;;  %v13053_v18 = vld [vmem:[#allocation5 + $0xcc] sm:$0xf] }
 0x31b   :  { %7665 = vmatpush.bf16.msrb.mxu2 %v12575_v9  ;;  %v12526_v22 = vld [vmem:[#allocation5 + $0x1e08] sm:$0xf]  ;;  %v13991_v9 = vld [vmem:[#allocation5 + $0x1e14] sm:$0xf0]  ;;  %v8784_v8 = vld [vmem:[#allocation5 + $0xd8] sm:$0xf0] }
 0x31c   :  { %7679 = vmatpush.bf16.msrb.mxu3 %v12703_v0  ;;  %v12654_v30 = vld [vmem:[#allocation5 + $0x1f08] sm:$0xf]  ;;  %v8800_v0 = vld [vmem:[#allocation5 + $0xf8] sm:$0xf0]  ;;  %v13085_v23 = vld [vmem:[#allocation5 + $0x1cc] sm:$0xf] }
 0x31d   :  { %7638 = vmatpush.bf16.msrb.mxu0 %v12303_v5  ;;  %v12399_v5 = vor.u32 %v13959_v50, %v12398_v14  ;;  %v12655_v7 = vor.u32 %v14023_v61, %v12654_v30  ;;  %v8803_v53 = vor.u32 %v13057_v4, %v8800_v0  ;;  %v13117_v2 = vld [vmem:[#allocation5 + $0x2cc] sm:$0xf]  ;;  %v9040_v45 = vld [vmem:[#allocation5 + $0x2d8] sm:$0xf0]  ;;  %v8787_v14 = vor.u32 %v13053_v18, %v8784_v8 }
 0x31e   :  { %7652 = vmatpush.bf16.msrb.mxu1 %v12431_v54  ;;  %v12527_v54 = vor.u32 %v13991_v9, %v12526_v22  ;;  %v9043_v22 = vor.u32 %v13117_v2, %v9040_v45  ;;  %v8768_v9 = vld [vmem:[#allocation5 + $0xb8] sm:$0xf0]  ;;  %v13081_v30 = vld [vmem:[#allocation5 + $0x1ac] sm:$0xf] }
 0x31f   :  { %7666 = vmatpush.bf16.msrb.mxu2 %v12559_v16  ;;  %v13153_v16 = vld [vmem:[#allocation5 + $0x3ec] sm:$0xf]  ;;  %v8896_v4 = vld [vmem:[#allocation5 + $0x1b8] sm:$0xf0] }
 0x320   :  { %7680 = vmatpush.bf16.msrb.mxu3 %v12687_v3  ;;  %v8931_v3 = vor.u32 %v13089_v12, %v8928_v13  ;;  %v9187_v52 = vor.u32 %v13153_v16, %v9184_v11  ;;  %v13113_v0 = vld [vmem:[#allocation5 + $0x2ac] sm:$0xf]  ;;  %v9024_v12 = vld [vmem:[#allocation5 + $0x2b8] sm:$0xf0]  ;;  %v8899_v57 = vor.u32 %v13081_v30, %v8896_v4 }
 0x321   :  { %7639 = vmatpush.bf16.msrb.mxu0 %v12287_v15  ;;  %v8912_v15 = vld [vmem:[#allocation5 + $0x1d8] sm:$0xf0]  ;;  %v13077_v11 = vld [vmem:[#allocation5 + $0x18c] sm:$0xf] }
 0x322   :  { %7653 = vmatpush.bf16.msrb.mxu1 %v12415_v6  ;;  %v13149_v6 = vld [vmem:[#allocation5 + $0x3cc] sm:$0xf]  ;;  %v8915_v50 = vor.u32 %v13085_v23, %v8912_v15  ;;  %v9152_v13 = vld [vmem:[#allocation5 + $0x3b8] sm:$0xf0] }
 0x323   :  { %7667 = vmatpush.bf16.msrb.mxu2 %v12543_v24  ;;  %v9168_v24 = vld [vmem:[#allocation5 + $0x3d8] sm:$0xf0]  ;;  %v13141_v18 = vld [vmem:[#allocation5 + $0x38c] sm:$0xf] }
 0x324   :  { %7681 = vmatpush.bf16.msrb.mxu3 %v12671_v60  ;;  %v13049_v60 = vld [vmem:[#allocation5 + $0xac] sm:$0xf]  ;;  %v9171_v61 = vor.u32 %v13149_v6, %v9168_v24  ;;  %v8752_v16 = vld [vmem:[#allocation5 + $0x98] sm:$0xf0] }
 0x325   :  { %7640 = vmatpush.bf16.msrb.mxu0 %v12271_v25  ;;  %v13145_v25 = vld [vmem:[#allocation5 + $0x3ac] sm:$0xf]  ;;  %v8771_v59 = vor.u32 %v13049_v60, %v8768_v9  ;;  %v9136_v8 = vld [vmem:[#allocation5 + $0x398] sm:$0xf0] }
 0x326   :  { %7654 = vmatpush.bf16.msrb.mxu1 %v12399_v5  ;;  %v9027_v5 = vor.u32 %v13113_v0, %v9024_v12  ;;  %v13041_v2 = vld [vmem:[#allocation5 + $0x6c] sm:$0xf]  ;;  %v8736_v45 = vld [vmem:[#allocation5 + $0x78] sm:$0xf0]  ;;  %v9139_v24 = vor.u32 %v13141_v18, %v9136_v8 }
 0x327   :  { %7668 = vmatpush.bf16.msrb.mxu2 %v12527_v54  ;;  %v13045_v54 = vld [vmem:[#allocation5 + $0x8c] sm:$0xf]  ;;  %v9120_v9 = vld [vmem:[#allocation5 + $0x378] sm:$0xf0]  ;;  %v8739_v30 = vor.u32 %v13041_v2, %v8736_v45 }
 0x328   :  { %7682 = vmatpush.bf16.msrb.mxu3 %v12655_v7  ;;  %7641 = vmatmul.bf16.vlgmr.msrb.gmra.mxu0 %v14455_v27  ;;  %v9155_v7 = vor.u32 %v13145_v25, %v9152_v13  ;;  %v8755_v23 = vor.u32 %v13045_v54, %v8752_v16  ;;  %v13073_v6 = vld [vmem:[#allocation5 + $0x16c] sm:$0xf]  ;;  %v8720_v12 = vld [vmem:[#allocation5 + $0x58] sm:$0xf0] }
 0x329   :  { %7689 = vmatpush.bf16.msra.mxu0 %v8803_v53  ;;  %7655 = vmatmul.bf16.vlgmr.msrb.gmra.mxu1 %v14461_v49  ;;  %v8880_v53 = vld [vmem:[#allocation5 + $0x198] sm:$0xf0]  ;;  %v13137_v60 = vld [vmem:[#allocation5 + $0x36c] sm:$0xf] }
 0x32a   :  { %7703 = vmatpush.bf16.msra.mxu1 %v8931_v3  ;;  %7669 = vmatmul.bf16.vlgmr.msrb.gmra.mxu2 %v14459_v37  ;;  %v13109_v3 = vld [vmem:[#allocation5 + $0x28c] sm:$0xf]  ;;  %v9123_v13 = vor.u32 %v13137_v60, %v9120_v9  ;;  %v9104_v16 = vld [vmem:[#allocation5 + $0x358] sm:$0xf0] }
 0x32b   :  { %7717 = vmatpush.bf16.msra.mxu2 %v9059_v42  ;;  %7683 = vmatmul.bf16.vlgmr.msrb.gmra.mxu3 %v14465_v28  ;;  %v9008_v42 = vld [vmem:[#allocation5 + $0x298] sm:$0xf0]  ;;  %v13037_v0 = vld [vmem:[#allocation5 + $0x4c] sm:$0xf]  ;;  %v14693_v28 = vpop.f32.mrf.mxu0 }
 0x32c   :  { %7731 = vmatpush.bf16.msra.mxu3 %v9187_v52  ;;  %v8883_v52 = vor.u32 %v13077_v11, %v8880_v53  ;;  %v9011_v15 = vor.u32 %v13109_v3, %v9008_v42  ;;  %v13069_v25 = vld [vmem:[#allocation5 + $0x14c] sm:$0xf]  ;;  %v8723_v11 = vor.u32 %v13037_v0, %v8720_v12  ;;  %v8704_v42 = vld [vmem:[#allocation5 + $0x38] sm:$0xf0] }
 0x32d   :  { %7690 = vmatpush.bf16.msra.mxu0 %v8787_v14  ;;  %v8864_v14 = vld [vmem:[#allocation5 + $0x178] sm:$0xf0]  ;;  %v13133_v54 = vld [vmem:[#allocation5 + $0x34c] sm:$0xf] }
 0x32e   :  { %7704 = vmatpush.bf16.msra.mxu1 %v8915_v50  ;;  %v13105_v50 = vld [vmem:[#allocation5 + $0x26c] sm:$0xf]  ;;  %v9107_v8 = vor.u32 %v13133_v54, %v9104_v16  ;;  %v9088_v45 = vld [vmem:[#allocation5 + $0x338] sm:$0xf0] }
 0x32f   :  { %7718 = vmatpush.bf16.msra.mxu2 %v9043_v22  ;;  %v8992_v22 = vld [vmem:[#allocation5 + $0x278] sm:$0xf0]  ;;  %v13033_v3 = vld [vmem:[#allocation5 + $0x2c] sm:$0xf] }
 0x330   :  { %7732 = vmatpush.bf16.msra.mxu3 %v9171_v61  ;;  %v8867_v61 = vor.u32 %v13073_v6, %v8864_v14  ;;  %v8995_v4 = vor.u32 %v13105_v50, %v8992_v22  ;;  %v13065_v18 = vld [vmem:[#allocation5 + $0x12c] sm:$0xf]  ;;  %v8707_v6 = vor.u32 %v13033_v3, %v8704_v42  ;;  %v8688_v14 = vld [vmem:[#allocation5 + $0x18] sm:$0xf0] }
 0x331   :  { %7691 = vmatpush.bf16.msra.mxu0 %v8771_v59  ;;  %v8848_v59 = vld [vmem:[#allocation5 + $0x158] sm:$0xf0]  ;;  %v13129_v2 = vld [vmem:[#allocation5 + $0x32c] sm:$0xf] }
 0x332   :  { %7705 = vmatpush.bf16.msra.mxu1 %v8899_v57  ;;  %v13101_v57 = vld [vmem:[#allocation5 + $0x24c] sm:$0xf]  ;;  %v8816_v9 = vld [vmem:[#allocation5 + $0x118] sm:$0xf0] }
 0x333   :  { %7719 = vmatpush.bf16.msra.mxu2 %v9027_v5  ;;  %v8976_v5 = vld [vmem:[#allocation5 + $0x258] sm:$0xf0]  ;;  %v13061_v60 = vld [vmem:[#allocation5 + $0x10c] sm:$0xf] }
 0x334   :  { %7733 = vmatpush.bf16.msra.mxu3 %v9155_v7  ;;  %v8851_v7 = vor.u32 %v13069_v25, %v8848_v59  ;;  %v8979_v53 = vor.u32 %v13101_v57, %v8976_v5  ;;  %v13125_v0 = vld [vmem:[#allocation5 + $0x30c] sm:$0xf]  ;;  %v9072_v12 = vld [vmem:[#allocation5 + $0x318] sm:$0xf0] }
 0x335   :  { %7692 = vmatpush.bf16.msra.mxu0 %v8755_v23  ;;  %v8832_v23 = vld [vmem:[#allocation5 + $0x138] sm:$0xf0]  ;;  %v13185_v25 = vld [vmem:[#allocation5 + $0x4ec] sm:$0xf]  ;;  %v9075_v42 = vor.u32 %v13125_v0, %v9072_v12 }
 0x336   :  { %7706 = vmatpush.bf16.msra.mxu1 %v8883_v52  ;;  %v13097_v52 = vld [vmem:[#allocation5 + $0x22c] sm:$0xf]  ;;  %v8835_v50 = vor.u32 %v13065_v18, %v8832_v23  ;;  %v9440_v5 = vld [vmem:[#allocation5 + $0x5f8] sm:$0xf0] }
 0x337   :  { %7720 = vmatpush.bf16.msra.mxu2 %v9011_v15  ;;  %v8960_v15 = vld [vmem:[#allocation5 + $0x238] sm:$0xf0]  ;;  %v13217_v59 = vld [vmem:[#allocation5 + $0x5ec] sm:$0xf] }
 0x338   :  { %7734 = vmatpush.bf16.msra.mxu3 %v9139_v24  ;;  %v13029_v24 = vld [vmem:[#allocation5 + $0xc] sm:$0xf]  ;;  %v8963_v22 = vor.u32 %v13097_v52, %v8960_v15  ;;  %v9568_v16 = vld [vmem:[#allocation5 + $0x6f8] sm:$0xf0] }
 0x339   :  { %7693 = vmatpush.bf16.msra.mxu0 %v8739_v30  ;;  %v13093_v30 = vld [vmem:[#allocation5 + $0x20c] sm:$0xf]  ;;  %v8691_v57 = vor.u32 %v13029_v24, %v8688_v14  ;;  %v9696_v3 = vld [vmem:[#allocation5 + $0x7f8] sm:$0xf0] }
 0x33a   :  { %7707 = vmatpush.bf16.msra.mxu1 %v8867_v61  ;;  %v9091_v61 = vor.u32 %v13129_v2, %v9088_v45  ;;  %v13249_v54 = vld [vmem:[#allocation5 + $0x6ec] sm:$0xf]  ;;  %v9296_v15 = vld [vmem:[#allocation5 + $0x4d8] sm:$0xf0] }
 0x33b   :  { %7721 = vmatpush.bf16.msra.mxu2 %v8995_v4  ;;  %v8944_v4 = vld [vmem:[#allocation5 + $0x218] sm:$0xf0]  ;;  %v9571_v23 = vor.u32 %v13249_v54, %v9568_v16  ;;  %v13181_v52 = vld [vmem:[#allocation5 + $0x4cc] sm:$0xf] }
 0x33c   :  { %7735 = vmatpush.bf16.msra.mxu3 %v9123_v13  ;;  %v9312_v13 = vld [vmem:[#allocation5 + $0x4f8] sm:$0xf0]  ;;  %v13213_v2 = vld [vmem:[#allocation5 + $0x5cc] sm:$0xf] }
 0x33d   :  { %7694 = vmatpush.bf16.msra.mxu0 %v8723_v11  ;;  %v8819_v11 = vor.u32 %v13061_v60, %v8816_v9  ;;  %v9315_v18 = vor.u32 %v13185_v25, %v9312_v13  ;;  %v13245_v24 = vld [vmem:[#allocation5 + $0x6cc] sm:$0xf]  ;;  %v9552_v14 = vld [vmem:[#allocation5 + $0x6d8] sm:$0xf0]  ;;  %v14695_v60 = vpop.f32.mrf.mxu1  ;;  %v9299_v9 = vor.u32 %v13181_v52, %v9296_v15  ;;  %v14703_v52 = vpop.f32.mrf.mxu3 }
 0x33e   :  { %7708 = vmatpush.bf16.msra.mxu1 %v8851_v7  ;;  %v8947_v7 = vor.u32 %v13093_v30, %v8944_v4  ;;  %v13177_v4 = vld [vmem:[#allocation5 + $0x4ac] sm:$0xf]  ;;  %v9280_v0 = vld [vmem:[#allocation5 + $0x4b8] sm:$0xf0] }
 0x33f   :  { %7722 = vmatpush.bf16.msra.mxu2 %v8979_v53  ;;  %v13281_v53 = vld [vmem:[#allocation5 + $0x7ec] sm:$0xf]  ;;  %v9408_v13 = vld [vmem:[#allocation5 + $0x5b8] sm:$0xf0]  ;;  %v9283_v16 = vor.u32 %v13177_v4, %v9280_v0 }
 0x340   :  { %7736 = vmatpush.bf16.msra.mxu3 %v9107_v8  ;;  %v9443_v8 = vor.u32 %v13217_v59, %v9440_v5  ;;  %v9699_v45 = vor.u32 %v13281_v53, %v9696_v3  ;;  %v13209_v12 = vld [vmem:[#allocation5 + $0x5ac] sm:$0xf]  ;;  %v9664_v54 = vld [vmem:[#allocation5 + $0x7b8] sm:$0xf0] }
 0x341   :  { %7695 = vmatpush.bf16.msra.mxu0 %v8707_v6  ;;  %v9424_v6 = vld [vmem:[#allocation5 + $0x5d8] sm:$0xf0]  ;;  %v13241_v59 = vld [vmem:[#allocation5 + $0x6ac] sm:$0xf] }
 0x342   :  { %7709 = vmatpush.bf16.msra.mxu1 %v8835_v50  ;;  %v13277_v50 = vld [vmem:[#allocation5 + $0x7cc] sm:$0xf]  ;;  %v9427_v30 = vor.u32 %v13213_v2, %v9424_v6  ;;  %v9264_v3 = vld [vmem:[#allocation5 + $0x498] sm:$0xf0] }
 0x343   :  { %7723 = vmatpush.bf16.msra.mxu2 %v8963_v22  ;;  %v9680_v22 = vld [vmem:[#allocation5 + $0x7d8] sm:$0xf0]  ;;  %v13273_v5 = vld [vmem:[#allocation5 + $0x7ac] sm:$0xf] }
 0x344   :  { %7737 = vmatpush.bf16.msra.mxu3 %v9091_v61  ;;  %v9555_v61 = vor.u32 %v13245_v24, %v9552_v14  ;;  %v9683_v25 = vor.u32 %v13277_v50, %v9680_v22  ;;  %v13173_v53 = vld [vmem:[#allocation5 + $0x48c] sm:$0xf]  ;;  %v9248_v50 = vld [vmem:[#allocation5 + $0x478] sm:$0xf0] }
 0x345   :  { %7696 = vmatpush.bf16.msra.mxu0 %v8691_v57  ;;  %v9536_v57 = vld [vmem:[#allocation5 + $0x6b8] sm:$0xf0]  ;;  %v13269_v15 = vld [vmem:[#allocation5 + $0x78c] sm:$0xf]  ;;  %v14707_v2 = vpop.f32.mrf.mxu1 }
 0x346   :  { %7710 = vmatpush.bf16.msra.mxu1 %v8819_v11  ;;  %v9411_v11 = vor.u32 %v13209_v12, %v9408_v13  ;;  %v13169_v14 = vld [vmem:[#allocation5 + $0x46c] sm:$0xf]  ;;  %v9504_v4 = vld [vmem:[#allocation5 + $0x678] sm:$0xf0] }
 0x347   :  { %7724 = vmatpush.bf16.msra.mxu2 %v8947_v7  ;;  %v9539_v7 = vor.u32 %v13241_v59, %v9536_v57  ;;  %v13201_v22 = vld [vmem:[#allocation5 + $0x56c] sm:$0xf]  ;;  %v9632_v12 = vld [vmem:[#allocation5 + $0x778] sm:$0xf0] }
 0x348   :  { %7738 = vmatpush.bf16.msra.mxu3 %v9075_v42  ;;  %7697 = vmatmul.bf16.vlgmr.msra.gmra.mxu0 %v14342_v58  ;;  %v13205_v42 = vld [vmem:[#allocation5 + $0x58c] sm:$0xf]  ;;  %v9667_v58 = vor.u32 %v13273_v5, %v9664_v54  ;;  %v9232_v5 = vld [vmem:[#allocation5 + $0x458] sm:$0xf0] }
 0x349   :  { %7745 = vmatpush.bf16.msrb.mxu0 %v9315_v18  ;;  %7711 = vmatmul.bf16.vlgmr.msra.gmra.mxu1 %v14348_v10  ;;  %v14701_v18 = vpop.f32.mrf.mxu2  ;;  %v14705_v10 = vpop.f32.mrf.mxu0  ;;  %v13265_v0 = vld [vmem:[#allocation5 + $0x76c] sm:$0xf] }
 0x34a   :  { %7759 = vmatpush.bf16.msrb.mxu1 %v9443_v8  ;;  %7725 = vmatmul.bf16.vlgmr.msra.gmra.mxu2 %v14344_v1  ;;  %v9392_v8 = vld [vmem:[#allocation5 + $0x598] sm:$0xf0]  ;;  %v13165_v57 = vld [vmem:[#allocation5 + $0x44c] sm:$0xf] }
 0x34b   :  { %7773 = vmatpush.bf16.msrb.mxu2 %v9571_v23  ;;  %7739 = vmatmul.bf16.vlgmr.msra.gmra.mxu3 %v14350_v17  ;;  %v13237_v23 = vld [vmem:[#allocation5 + $0x68c] sm:$0xf]  ;;  %v9520_v1 = vld [vmem:[#allocation5 + $0x698] sm:$0xf0]  ;;  %v9395_v6 = vor.u32 %v13205_v42, %v9392_v8  ;;  %v14711_v42 = vpop.f32.mrf.mxu3 }
 0x34c   :  { %7787 = vmatpush.bf16.msrb.mxu3 %v9699_v45  ;;  %v9648_v17 = vld [vmem:[#allocation5 + $0x798] sm:$0xf0]  ;;  %v9267_v45 = vor.u32 %v13173_v53, %v9264_v3  ;;  %v9523_v24 = vor.u32 %v13237_v23, %v9520_v1  ;;  %v13197_v54 = vld [vmem:[#allocation5 + $0x54c] sm:$0xf]  ;;  %v9235_v23 = vor.u32 %v13165_v57, %v9232_v5 }
 0x34d   :  { %7746 = vmatpush.bf16.msrb.mxu0 %v9299_v9  ;;  %v9651_v9 = vor.u32 %v13269_v15, %v9648_v17  ;;  %v13229_v53 = vld [vmem:[#allocation5 + $0x64c] sm:$0xf]  ;;  %v9488_v3 = vld [vmem:[#allocation5 + $0x658] sm:$0xf0] }
 0x34e   :  { %7760 = vmatpush.bf16.msrb.mxu1 %v9427_v30  ;;  %v9376_v30 = vld [vmem:[#allocation5 + $0x578] sm:$0xf0]  ;;  %v9491_v17 = vor.u32 %v13229_v53, %v9488_v3  ;;  %v13189_v57 = vld [vmem:[#allocation5 + $0x50c] sm:$0xf] }
 0x34f   :  { %7774 = vmatpush.bf16.msrb.mxu2 %v9555_v61  ;;  %v13233_v61 = vld [vmem:[#allocation5 + $0x66c] sm:$0xf]  ;;  %v9379_v13 = vor.u32 %v13201_v22, %v9376_v30  ;;  %v9616_v8 = vld [vmem:[#allocation5 + $0x758] sm:$0xf0] }
 0x350   :  { %7788 = vmatpush.bf16.msrb.mxu3 %v9683_v25  ;;  %v9251_v25 = vor.u32 %v13169_v14, %v9248_v50  ;;  %v9507_v59 = vor.u32 %v13233_v61, %v9504_v4  ;;  %v14715_v14 = vpop.f32.mrf.mxu1  ;;  %v9344_v22 = vld [vmem:[#allocation5 + $0x538] sm:$0xf0]  ;;  %v13257_v61 = vld [vmem:[#allocation5 + $0x72c] sm:$0xf] }
 0x351   :  { %7747 = vmatpush.bf16.msrb.mxu0 %v9283_v16  ;;  %v14709_v16 = vpop.f32.mrf.mxu2  ;;  %v14713_v1 = vpop.f32.mrf.mxu0  ;;  %v9472_v30 = vld [vmem:[#allocation5 + $0x638] sm:$0xf0]  ;;  %v13253_v53 = vld [vmem:[#allocation5 + $0x70c] sm:$0xf] }
 0x352   :  { %7761 = vmatpush.bf16.msrb.mxu1 %v9411_v11  ;;  %v9635_v11 = vor.u32 %v13265_v0, %v9632_v12  ;;  %v9600_v4 = vld [vmem:[#allocation5 + $0x738] sm:$0xf0]  ;;  %v13157_v12 = vld [vmem:[#allocation5 + $0x40c] sm:$0xf] }
 0x353   :  { %7775 = vmatpush.bf16.msrb.mxu2 %v9539_v7  ;;  %v9360_v7 = vld [vmem:[#allocation5 + $0x558] sm:$0xf0]  ;;  %v13345_v37 = vld [vmem:[#allocation5 + $0x9ec] sm:$0xf] }
 0x354   :  { %7789 = vmatpush.bf16.msrb.mxu3 %v9667_v58  ;;  %v13261_v58 = vld [vmem:[#allocation5 + $0x74c] sm:$0xf]  ;;  %v9363_v15 = vor.u32 %v13197_v54, %v9360_v7  ;;  %v9328_v5 = vld [vmem:[#allocation5 + $0x518] sm:$0xf0]  ;;  %v9603_v7 = vor.u32 %v13257_v61, %v9600_v4 }
 0x355   :  { %7748 = vmatpush.bf16.msrb.mxu0 %v9267_v45  ;;  %v13161_v45 = vld [vmem:[#allocation5 + $0x42c] sm:$0xf]  ;;  %v9619_v50 = vor.u32 %v13261_v58, %v9616_v8  ;;  %v9584_v3 = vld [vmem:[#allocation5 + $0x718] sm:$0xf0] }
 0x356   :  { %7762 = vmatpush.bf16.msrb.mxu1 %v9395_v6  ;;  %v9216_v6 = vld [vmem:[#allocation5 + $0x438] sm:$0xf0]  ;;  %v13221_v54 = vld [vmem:[#allocation5 + $0x60c] sm:$0xf]  ;;  %v9587_v4 = vor.u32 %v13253_v53, %v9584_v3 }
 0x357   :  { %7776 = vmatpush.bf16.msrb.mxu2 %v9523_v24  ;;  %v13193_v24 = vld [vmem:[#allocation5 + $0x52c] sm:$0xf]  ;;  %v9219_v0 = vor.u32 %v13161_v45, %v9216_v6  ;;  %v9824_v8 = vld [vmem:[#allocation5 + $0x8f8] sm:$0xf0]  ;;  %v14719_v6 = vpop.f32.mrf.mxu3 }
 0x358   :  { %7790 = vmatpush.bf16.msrb.mxu3 %v9651_v9  ;;  %v13225_v9 = vld [vmem:[#allocation5 + $0x62c] sm:$0xf]  ;;  %v9952_v45 = vld [vmem:[#allocation5 + $0x9f8] sm:$0xf0]  ;;  %v14723_v61 = vpop.f32.mrf.mxu1 }
 0x359   :  { %7749 = vmatpush.bf16.msrb.mxu0 %v9251_v25  ;;  %v9200_v25 = vld [vmem:[#allocation5 + $0x418] sm:$0xf0]  ;;  %v13313_v58 = vld [vmem:[#allocation5 + $0x8ec] sm:$0xf]  ;;  %v14717_v49 = vpop.f32.mrf.mxu2 }
 0x35a   :  { %7763 = vmatpush.bf16.msrb.mxu1 %v9379_v13  ;;  %v9347_v13 = vor.u32 %v13193_v24, %v9344_v22  ;;  %v14721_v24 = vpop.f32.mrf.mxu0  ;;  %v9827_v27 = vor.u32 %v13313_v58, %v9824_v8  ;;  %v13337_v53 = vld [vmem:[#allocation5 + $0x9ac] sm:$0xf]  ;;  %v9920_v8 = vld [vmem:[#allocation5 + $0x9b8] sm:$0xf0] }
 0x35b   :  { %7777 = vmatpush.bf16.msrb.mxu2 %v9507_v59  ;;  %v9475_v59 = vor.u32 %v13225_v9, %v9472_v30  ;;  %v13409_v9 = vld [vmem:[#allocation5 + $0xbec] sm:$0xf]  ;;  %v10208_v30 = vld [vmem:[#allocation5 + $0xbf8] sm:$0xf0] }
 0x35c   :  { %7791 = vmatpush.bf16.msrb.mxu3 %v9635_v11  ;;  %v9456_v11 = vld [vmem:[#allocation5 + $0x618] sm:$0xf0]  ;;  %v10211_v62 = vor.u32 %v13409_v9, %v10208_v30 }
 0x35d   :  { %7750 = vmatpush.bf16.msrb.mxu0 %v9235_v23  ;;  %v9203_v23 = vor.u32 %v13157_v12, %v9200_v25  ;;  %v9459_v22 = vor.u32 %v13221_v54, %v9456_v11  ;;  %v13309_v25 = vld [vmem:[#allocation5 + $0x8cc] sm:$0xf]  ;;  %v9939_v54 = vor.u32 %v13341_v63, %v9936_v29  ;;  %v9792_v11 = vld [vmem:[#allocation5 + $0x8b8] sm:$0xf0] }
 0x35e   :  { %7764 = vmatpush.bf16.msrb.mxu1 %v9363_v15  ;;  %v13377_v15 = vld [vmem:[#allocation5 + $0xaec] sm:$0xf]  ;;  %v9904_v9 = vld [vmem:[#allocation5 + $0x998] sm:$0xf0] }
 0x35f   :  { %7778 = vmatpush.bf16.msrb.mxu2 %v9491_v17  ;;  %v10080_v17 = vld [vmem:[#allocation5 + $0xaf8] sm:$0xf0]  ;;  %v13401_v29 = vld [vmem:[#allocation5 + $0xbac] sm:$0xf] }
 0x360   :  { %7792 = vmatpush.bf16.msrb.mxu3 %v9619_v50  ;;  %v9331_v50 = vor.u32 %v13189_v57, %v9328_v5  ;;  %v10083_v12 = vor.u32 %v13377_v15, %v10080_v17  ;;  %v10192_v57 = vld [vmem:[#allocation5 + $0xbd8] sm:$0xf0]  ;;  %v9811_v5 = vor.u32 %v13309_v25, %v9808_v19  ;;  %v14728_v15 = vpop.f32.mrf.mxu3  ;;  %v13301_v17 = vld [vmem:[#allocation5 + $0x88c] sm:$0xf] }
 0x361   :  { %7751 = vmatpush.bf16.msrb.mxu0 %v9219_v0  ;;  %v9955_v0 = vor.u32 %v13345_v37, %v9952_v45  ;;  %v14725_v3 = vpop.f32.mrf.mxu2  ;;  %v10048_v45 = vld [vmem:[#allocation5 + $0xab8] sm:$0xf0] }
 0x362   :  { %7765 = vmatpush.bf16.msrb.mxu1 %v9347_v13  ;;  %v10064_v13 = vld [vmem:[#allocation5 + $0xad8] sm:$0xf0] }
 0x363   :  { %7779 = vmatpush.bf16.msrb.mxu2 %v9475_v59  ;;  %v13405_v59 = vld [vmem:[#allocation5 + $0xbcc] sm:$0xf]  ;;  %v10067_v37 = vor.u32 %v13373_v48, %v10064_v13  ;;  %v10176_v48 = vld [vmem:[#allocation5 + $0xbb8] sm:$0xf0] }
 0x364   :  { %7793 = vmatpush.bf16.msrb.mxu3 %v9603_v7  ;;  %v13305_v7 = vld [vmem:[#allocation5 + $0x8ac] sm:$0xf]  ;;  %v10195_v58 = vor.u32 %v13405_v59, %v10192_v57  ;;  %v10032_v30 = vld [vmem:[#allocation5 + $0xa98] sm:$0xf0] }
 0x365   :  { %7752 = vmatpush.bf16.msrb.mxu0 %v9203_v23  ;;  %v13369_v23 = vld [vmem:[#allocation5 + $0xaac] sm:$0xf]  ;;  %v9795_v63 = vor.u32 %v13305_v7, %v9792_v11  ;;  %v9760_v59 = vld [vmem:[#allocation5 + $0x878] sm:$0xf0] }
 0x366   :  { %7766 = vmatpush.bf16.msrb.mxu1 %v9331_v50  ;;  %v10051_v19 = vor.u32 %v13369_v23, %v10048_v45  ;;  %v9776_v50 = vld [vmem:[#allocation5 + $0x898] sm:$0xf0]  ;;  %v13297_v13 = vld [vmem:[#allocation5 + $0x86c] sm:$0xf] }
 0x367   :  { %7780 = vmatpush.bf16.msrb.mxu2 %v9459_v22  ;;  %v14737_v22 = vpop.f32.mrf.mxu1  ;;  %v13329_v57 = vld [vmem:[#allocation5 + $0x96c] sm:$0xf]  ;;  %v10016_v7 = vld [vmem:[#allocation5 + $0xa78] sm:$0xf0]  ;;  %v9763_v23 = vor.u32 %v13297_v13, %v9760_v59 }
 0x368   :  { %7794 = vmatpush.bf16.msrb.mxu3 %v9587_v4  ;;  %7753 = vmatmul.bf16.vlgmr.msrb.gmra.mxu0 %v14354_v39  ;;  %v14735_v39 = vpop.f32.mrf.mxu0  ;;  %v13397_v4 = vld [vmem:[#allocation5 + $0xb8c] sm:$0xf]  ;;  %v14745_v45 = vpop.f32.mrf.mxu3 }
 0x369   :  { %7801 = vmatpush.bf16.msra.mxu0 %v9827_v27  ;;  %7767 = vmatmul.bf16.vlgmr.msrb.gmra.mxu1 %v14358_v44  ;;  %v9923_v27 = vor.u32 %v13337_v53, %v9920_v8  ;;  %v10179_v44 = vor.u32 %v13401_v29, %v10176_v48  ;;  %v13393_v53 = vld [vmem:[#allocation5 + $0xb6c] sm:$0xf]  ;;  %v7363_v8 = vadd.f32 %v14705_v10, %v14683_v20  ;;  %v9872_v20 = vld [vmem:[#allocation5 + $0x958] sm:$0xf0] }
 0x36a   :  { %7815 = vmatpush.bf16.msra.mxu1 %v9955_v0  ;;  %7781 = vmatmul.bf16.vlgmr.msrb.gmra.mxu2 %v14356_v43  ;;  %v13333_v43 = vld [vmem:[#allocation5 + $0x98c] sm:$0xf]  ;;  %v10160_v0 = vld [vmem:[#allocation5 + $0xb98] sm:$0xf0] }
 0x36b   :  { %7829 = vmatpush.bf16.msra.mxu2 %v10083_v12  ;;  %7795 = vmatmul.bf16.vlgmr.msrb.gmra.mxu3 %v14360_v47  ;;  %v13365_v47 = vld [vmem:[#allocation5 + $0xa8c] sm:$0xf]  ;;  %v9907_v12 = vor.u32 %v13333_v43, %v9904_v9  ;;  %v10128_v9 = vld [vmem:[#allocation5 + $0xb58] sm:$0xf0] }
 0x36c   :  { %7843 = vmatpush.bf16.msra.mxu3 %v10211_v62  ;;  %v7309_v62 = vadd.f32 %v14693_v28, %v14676_v21  ;;  %v9779_v28 = vor.u32 %v13301_v17, %v9776_v50  ;;  %v10035_v25 = vor.u32 %v13365_v47, %v10032_v30  ;;  %v13357_v10 = vld [vmem:[#allocation5 + $0xa4c] sm:$0xf]  ;;  %v10000_v50 = vld [vmem:[#allocation5 + $0xa58] sm:$0xf0]  ;;  %v7377_v47 = vadd.f32 %v14707_v2, %v7363_v8 }
 0x36d   :  { %7802 = vmatpush.bf16.msra.mxu0 %v9811_v5  ;;  %v10163_v5 = vor.u32 %v13397_v4, %v10160_v0  ;;  %v10112_v2 = vld [vmem:[#allocation5 + $0xb38] sm:$0xf0] }
 0x36e   :  { %7816 = vmatpush.bf16.msra.mxu1 %v9939_v54  ;;  %v7323_v21 = vadd.f32 %v14695_v60, %v7309_v62  ;;  %v9888_v54 = vld [vmem:[#allocation5 + $0x978] sm:$0xf0]  ;;  %v14743_v60 = vpop.f32.mrf.mxu2  ;;  %v13293_v62 = vld [vmem:[#allocation5 + $0x84c] sm:$0xf]  ;;  %v7391_v13 = vadd.f32 %v14709_v16, %v7377_v47 }
 0x36f   :  { %7830 = vmatpush.bf16.msra.mxu2 %v10067_v37  ;;  %v13361_v37 = vld [vmem:[#allocation5 + $0xa6c] sm:$0xf]  ;;  %v9891_v48 = vor.u32 %v13329_v57, %v9888_v54 }
 0x370   :  { %7844 = vmatpush.bf16.msra.mxu3 %v10195_v58  ;;  %v7337_v11 = vadd.f32 %v14701_v18, %v7323_v21  ;;  %v10144_v58 = vld [vmem:[#allocation5 + $0xb78] sm:$0xf0]  ;;  %v14747_v29 = vpop.f32.mrf.mxu0  ;;  %v13325_v18 = vld [vmem:[#allocation5 + $0x94c] sm:$0xf] }
 0x371   :  { %7803 = vmatpush.bf16.msra.mxu0 %v9795_v63  ;;  %v10019_v63 = vor.u32 %v13361_v37, %v10016_v7  ;;  %v10147_v17 = vor.u32 %v13393_v53, %v10144_v58  ;;  %v9875_v0 = vor.u32 %v13325_v18, %v9872_v20  ;;  %v13289_v21 = vld [vmem:[#allocation5 + $0x82c] sm:$0xf]  ;;  %v14758_v58 = vpop.f32.mrf.mxu3  ;;  %v9968_v18 = vld [vmem:[#allocation5 + $0xa18] sm:$0xf0] }
 0x372   :  { %7817 = vmatpush.bf16.msra.mxu1 %v9923_v27  ;;  %v9744_v27 = vld [vmem:[#allocation5 + $0x858] sm:$0xf0]  ;;  %v7351_v43 = vadd.f32 %v14703_v52, %v7337_v11  ;;  %v13353_v57 = vld [vmem:[#allocation5 + $0xa2c] sm:$0xf] }
 0x373   :  { %7831 = vmatpush.bf16.msra.mxu2 %v10051_v19  ;;  %v14749_v19 = vpop.f32.mrf.mxu1  ;;  %v9747_v30 = vor.u32 %v13293_v62, %v9744_v27  ;;  %v9856_v52 = vld [vmem:[#allocation5 + $0x938] sm:$0xf0]  ;;  %v13385_v54 = vld [vmem:[#allocation5 + $0xb2c] sm:$0xf]  ;;  %v7405_v62 = vadd.f32 %v14711_v42, %v7391_v13 }
 0x374   :  { %7845 = vmatpush.bf16.msra.mxu3 %v10179_v44  ;;  %v13389_v44 = vld [vmem:[#allocation5 + $0xb4c] sm:$0xf]  ;;  %v7365_v4 = vadd.f32 %v14713_v1, %v7351_v43  ;;  %v9712_v11 = vld [vmem:[#allocation5 + $0x818] sm:$0xf0]  ;;  %v10115_v27 = vor.u32 %v13385_v54, %v10112_v2 }
 0x375   :  { %7804 = vmatpush.bf16.msra.mxu0 %v9779_v28  ;;  %v10003_v28 = vor.u32 %v13357_v10, %v10000_v50  ;;  %v10131_v59 = vor.u32 %v13389_v44, %v10128_v9  ;;  %v13285_v7 = vld [vmem:[#allocation5 + $0x80c] sm:$0xf]  ;;  %v10096_v20 = vld [vmem:[#allocation5 + $0xb18] sm:$0xf0]  ;;  %v7419_v9 = vadd.f32 %v14721_v24, %v7405_v62 }
 0x376   :  { %7818 = vmatpush.bf16.msra.mxu1 %v9907_v12  ;;  %v9728_v12 = vld [vmem:[#allocation5 + $0x838] sm:$0xf0]  ;;  %v14755_v37 = vpop.f32.mrf.mxu2  ;;  %v7379_v53 = vadd.f32 %v14715_v14, %v7365_v4  ;;  %v13441_v14 = vld [vmem:[#allocation5 + $0xcec] sm:$0xf] }
 0x377   :  { %7832 = vmatpush.bf16.msra.mxu2 %v10035_v25  ;;  %v13321_v25 = vld [vmem:[#allocation5 + $0x92c] sm:$0xf]  ;;  %v9731_v1 = vor.u32 %v13289_v21, %v9728_v12  ;;  %v10336_v43 = vld [vmem:[#allocation5 + $0xcf8] sm:$0xf0]  ;;  %v7433_v2 = vadd.f32 %v14723_v61, %v7419_v9 }
 0x378   :  { %7846 = vmatpush.bf16.msra.mxu3 %v10163_v5  ;;  %v9984_v5 = vld [vmem:[#allocation5 + $0xa38] sm:$0xf0]  ;;  %v9859_v16 = vor.u32 %v13321_v25, %v9856_v52  ;;  %v7393_v10 = vadd.f32 %v14717_v49, %v7379_v53  ;;  %v14762_v50 = vpop.f32.mrf.mxu0  ;;  %v13473_v44 = vld [vmem:[#allocation5 + $0xdec] sm:$0xf]  ;;  %v10339_v13 = vor.u32 %v13441_v14, %v10336_v43 }
 0x379   :  { %7805 = vmatpush.bf16.msra.mxu0 %v9763_v23  ;;  %v9987_v8 = vor.u32 %v13353_v57, %v9984_v5  ;;  %v13317_v23 = vld [vmem:[#allocation5 + $0x90c] sm:$0xf]  ;;  %v10464_v4 = vld [vmem:[#allocation5 + $0xdf8] sm:$0xf0]  ;;  %v14773_v62 = vpop.f32.mrf.mxu3 }
 0x37a   :  { %7819 = vmatpush.bf16.msra.mxu1 %v9891_v48  ;;  %v9840_v48 = vld [vmem:[#allocation5 + $0x918] sm:$0xf0]  ;;  %v13505_v42 = vld [vmem:[#allocation5 + $0xeec] sm:$0xf]  ;;  %v10467_v52 = vor.u32 %v13473_v44, %v10464_v4 }
 0x37b   :  { %7833 = vmatpush.bf16.msra.mxu2 %v10019_v63  ;;  %v13349_v63 = vld [vmem:[#allocation5 + $0xa0c] sm:$0xf]  ;;  %v14765_v47 = vpop.f32.mrf.mxu1  ;;  %v10720_v49 = vld [vmem:[#allocation5 + $0xff8] sm:$0xf0] }
 0x37c   :  { %7847 = vmatpush.bf16.msra.mxu3 %v10147_v17  ;;  %v13381_v17 = vld [vmem:[#allocation5 + $0xb0c] sm:$0xf]  ;;  %v9971_v21 = vor.u32 %v13349_v63, %v9968_v18  ;;  %v10320_v5 = vld [vmem:[#allocation5 + $0xcd8] sm:$0xf0] }
 0x37d   :  { %7806 = vmatpush.bf16.msra.mxu0 %v9747_v30  ;;  %v9715_v30 = vor.u32 %v13285_v7, %v9712_v11  ;;  %v13537_v12 = vld [vmem:[#allocation5 + $0xfec] sm:$0xf]  ;;  %v10099_v25 = vor.u32 %v13381_v17, %v10096_v20  ;;  %v10448_v7 = vld [vmem:[#allocation5 + $0xdd8] sm:$0xf0] }
 0x37e   :  { %7820 = vmatpush.bf16.msra.mxu1 %v9875_v0  ;;  %v10592_v0 = vld [vmem:[#allocation5 + $0xef8] sm:$0xf0]  ;;  %v13437_v57 = vld [vmem:[#allocation5 + $0xccc] sm:$0xf] }
 0x37f   :  { %7834 = vmatpush.bf16.msra.mxu2 %v10003_v28  ;;  %v9843_v28 = vor.u32 %v13317_v23, %v9840_v48  ;;  %v10595_v24 = vor.u32 %v13505_v42, %v10592_v0  ;;  %v13469_v54 = vld [vmem:[#allocation5 + $0xdcc] sm:$0xf]  ;;  %v10576_v53 = vld [vmem:[#allocation5 + $0xed8] sm:$0xf0]  ;;  %v14771_v48 = vpop.f32.mrf.mxu2  ;;  %v10323_v63 = vor.u32 %v13437_v57, %v10320_v5 }
 0x380   :  { %7848 = vmatpush.bf16.msra.mxu3 %v10131_v59  ;;  %v7407_v59 = vadd.f32 %v14719_v6, %v7393_v10  ;;  %v13501_v11 = vld [vmem:[#allocation5 + $0xecc] sm:$0xf]  ;;  %v10704_v23 = vld [vmem:[#allocation5 + $0xfd8] sm:$0xf0]  ;;  %v7447_v6 = vadd.f32 %v14725_v3, %v7433_v2  ;;  %v14775_v61 = vpop.f32.mrf.mxu0 }
 0x381   :  { %7807 = vmatpush.bf16.msra.mxu0 %v9731_v1  ;;  %v10723_v1 = vor.u32 %v13537_v12, %v10720_v49  ;;  %v10579_v18 = vor.u32 %v13501_v11, %v10576_v53  ;;  %v10304_v17 = vld [vmem:[#allocation5 + $0xcb8] sm:$0xf0]  ;;  %v13465_v20 = vld [vmem:[#allocation5 + $0xdac] sm:$0xf]  ;;  %v14790_v57 = vpop.f32.mrf.mxu3 }
 0x382   :  { %7821 = vmatpush.bf16.msra.mxu1 %v9859_v16  ;;  %v7421_v16 = vadd.f32 %v14735_v39, %v7407_v59  ;;  %v13433_v39 = vld [vmem:[#allocation5 + $0xcac] sm:$0xf]  ;;  %v10432_v14 = vld [vmem:[#allocation5 + $0xdb8] sm:$0xf0]  ;;  %v7461_v42 = vadd.f32 %v14728_v15, %v7447_v6 }
 0x383   :  { %7835 = vmatpush.bf16.msra.mxu2 %v9987_v8  ;;  %v13533_v8 = vld [vmem:[#allocation5 + $0xfcc] sm:$0xf]  ;;  %v14777_v10 = vpop.f32.mrf.mxu1  ;;  %v10560_v44 = vld [vmem:[#allocation5 + $0xeb8] sm:$0xf0]  ;;  %v10307_v0 = vor.u32 %v13433_v39, %v10304_v17 }
 0x384   :  { %7849 = vmatpush.bf16.msra.mxu3 %v10115_v27  ;;  %v10451_v27 = vor.u32 %v13469_v54, %v10448_v7  ;;  %v10707_v3 = vor.u32 %v13533_v8, %v10704_v23  ;;  %v13497_v43 = vld [vmem:[#allocation5 + $0xeac] sm:$0xf]  ;;  %v7435_v9 = vadd.f32 %v14737_v22, %v7421_v16  ;;  %v10688_v4 = vld [vmem:[#allocation5 + $0xfb8] sm:$0xf0] }
 0x385   :  { %7808 = vmatpush.bf16.msra.mxu0 %v9715_v30  ;;  %v13529_v30 = vld [vmem:[#allocation5 + $0xfac] sm:$0xf]  ;;  %v10288_v22 = vld [vmem:[#allocation5 + $0xc98] sm:$0xf0] }
 0x386   :  { %7822 = vmatpush.bf16.msra.mxu1 %v9843_v28  ;;  %v10435_v28 = vor.u32 %v13465_v20, %v10432_v14  ;;  %v13429_v12 = vld [vmem:[#allocation5 + $0xc8c] sm:$0xf]  ;;  %v10544_v15 = vld [vmem:[#allocation5 + $0xe98] sm:$0xf0] }
 0x387   :  { %7836 = vmatpush.bf16.msra.mxu2 %v9971_v21  ;;  %v10563_v21 = vor.u32 %v13497_v43, %v10560_v44  ;;  %v13461_v49 = vld [vmem:[#allocation5 + $0xd8c] sm:$0xf]  ;;  %v10272_v2 = vld [vmem:[#allocation5 + $0xc78] sm:$0xf0] }
 0x388   :  { %7850 = vmatpush.bf16.msra.mxu3 %v10099_v25  ;;  %7809 = vmatmul.bf16.vlgmr.msra.gmra.mxu0 %v14366_v31  ;;  %v7449_v31 = vadd.f32 %v14743_v60, %v7435_v9  ;;  %v10416_v25 = vld [vmem:[#allocation5 + $0xd98] sm:$0xf0]  ;;  %v13525_v59 = vld [vmem:[#allocation5 + $0xf8c] sm:$0xf]  ;;  %v10291_v60 = vor.u32 %v13429_v12, %v10288_v22  ;;  %v14794_v6 = vpop.f32.mrf.mxu0 }
 0x389   :  { %7857 = vmatpush.bf16.msrb.mxu0 %v10339_v13  ;;  %7823 = vmatmul.bf16.vlgmr.msra.gmra.mxu1 %v14370_v36  ;;  %v10691_v36 = vor.u32 %v13529_v30, %v10688_v4  ;;  %v13493_v13 = vld [vmem:[#allocation5 + $0xe8c] sm:$0xf]  ;;  %v10419_v5 = vor.u32 %v13461_v49, %v10416_v25  ;;  %v10400_v53 = vld [vmem:[#allocation5 + $0xd78] sm:$0xf0] }
 0x38a   :  { %7871 = vmatpush.bf16.msrb.mxu1 %v10467_v52  ;;  %7837 = vmatmul.bf16.vlgmr.msra.gmra.mxu2 %v14368_v35  ;;  %v7475_v35 = vadd.f32 %v14747_v29, %v7461_v42  ;;  %v14787_v52 = vpop.f32.mrf.mxu2  ;;  %v10547_v54 = vor.u32 %v13493_v13, %v10544_v15  ;;  %v13425_v29 = vld [vmem:[#allocation5 + $0xc6c] sm:$0xf]  ;;  %v10528_v8 = vld [vmem:[#allocation5 + $0xe78] sm:$0xf0]  ;;  %v14805_v15 = vpop.f32.mrf.mxu3 }
 0x38b   :  { %7885 = vmatpush.bf16.msrb.mxu2 %v10595_v24  ;;  %7851 = vmatmul.bf16.vlgmr.msra.gmra.mxu3 %v14372_v40  ;;  %v10672_v40 = vld [vmem:[#allocation5 + $0xf98] sm:$0xf0]  ;;  %v7463_v24 = vadd.f32 %v14745_v45, %v7449_v31  ;;  %v13489_v16 = vld [vmem:[#allocation5 + $0xe6c] sm:$0xf]  ;;  %v10275_v39 = vor.u32 %v13425_v29, %v10272_v2 }
 0x38c   :  { %7899 = vmatpush.bf16.msrb.mxu3 %v10723_v1  ;;  %v13457_v1 = vld [vmem:[#allocation5 + $0xd6c] sm:$0xf]  ;;  %v7489_v7 = vadd.f32 %v14749_v19, %v7475_v35  ;;  %v10675_v11 = vor.u32 %v13525_v59, %v10672_v40  ;;  %v10531_v17 = vor.u32 %v13489_v16, %v10528_v8  ;;  %v10512_v9 = vld [vmem:[#allocation5 + $0xe58] sm:$0xf0] }
 0x38d   :  { %7858 = vmatpush.bf16.msrb.mxu0 %v10323_v63  ;;  %v7477_v23 = vadd.f32 %v14762_v50, %v7463_v24  ;;  %v13521_v45 = vld [vmem:[#allocation5 + $0xf6c] sm:$0xf]  ;;  %v10656_v63 = vld [vmem:[#allocation5 + $0xf78] sm:$0xf0]  ;;  %v10403_v19 = vor.u32 %v13457_v1, %v10400_v53 }
 0x38e   :  { %7872 = vmatpush.bf16.msrb.mxu1 %v10451_v27  ;;  %v7503_v27 = vadd.f32 %v14755_v37, %v7489_v7  ;;  %v13421_v20 = vld [vmem:[#allocation5 + $0xc4c] sm:$0xf]  ;;  %v10659_v43 = vor.u32 %v13521_v45, %v10656_v63  ;;  %v10384_v50 = vld [vmem:[#allocation5 + $0xd58] sm:$0xf0] }
 0x38f   :  { %7886 = vmatpush.bf16.msrb.mxu2 %v10579_v18  ;;  %v14797_v18 = vpop.f32.mrf.mxu1  ;;  %v13453_v14 = vld [vmem:[#allocation5 + $0xd4c] sm:$0xf]  ;;  %v7491_v30 = vadd.f32 %v14765_v47, %v7477_v23  ;;  %v10640_v37 = vld [vmem:[#allocation5 + $0xf58] sm:$0xf0] }
 0x390   :  { %7900 = vmatpush.bf16.msrb.mxu3 %v10707_v3  ;;  %v10256_v3 = vld [vmem:[#allocation5 + $0xc58] sm:$0xf0]  ;;  %v13485_v44 = vld [vmem:[#allocation5 + $0xe4c] sm:$0xf]  ;;  %v7517_v42 = vadd.f32 %v14758_v58, %v7503_v27  ;;  %v14807_v59 = vpop.f32.mrf.mxu0 }
 0x391   :  { %7859 = vmatpush.bf16.msrb.mxu0 %v10307_v0  ;;  %v13517_v4 = vld [vmem:[#allocation5 + $0xf4c] sm:$0xf]  ;;  %v10259_v0 = vor.u32 %v13421_v20, %v10256_v3  ;;  %v7505_v31 = vadd.f32 %v14771_v48, %v7491_v30  ;;  %v10240_v22 = vld [vmem:[#allocation5 + $0xc38] sm:$0xf0] }
 0x392   :  { %7873 = vmatpush.bf16.msrb.mxu1 %v10435_v28  ;;  %v10387_v28 = vor.u32 %v13453_v14, %v10384_v50  ;;  %v13417_v12 = vld [vmem:[#allocation5 + $0xc2c] sm:$0xf]  ;;  %v14802_v35 = vpop.f32.mrf.mxu2  ;;  %v10368_v47 = vld [vmem:[#allocation5 + $0xd38] sm:$0xf0]  ;;  %v7531_v58 = vadd.f32 %v14775_v61, %v7517_v42 }
 0x393   :  { %7887 = vmatpush.bf16.msrb.mxu2 %v10563_v21  ;;  %v10515_v21 = vor.u32 %v13485_v44, %v10512_v9  ;;  %v13449_v49 = vld [vmem:[#allocation5 + $0xd2c] sm:$0xf]  ;;  %v10496_v13 = vld [vmem:[#allocation5 + $0xe38] sm:$0xf0]  ;;  %v10243_v24 = vor.u32 %v13417_v12, %v10240_v22  ;;  %v7519_v29 = vadd.f32 %v14773_v62, %v7505_v31 }
 0x394   :  { %7901 = vmatpush.bf16.msrb.mxu3 %v10691_v36  ;;  %v10643_v36 = vor.u32 %v13517_v4, %v10640_v37  ;;  %v13481_v25 = vld [vmem:[#allocation5 + $0xe2c] sm:$0xf]  ;;  %v10624_v40 = vld [vmem:[#allocation5 + $0xf38] sm:$0xf0]  ;;  %v10371_v2 = vor.u32 %v13449_v49, %v10368_v47  ;;  %v7545_v45 = vadd.f32 %v14777_v10, %v7531_v58  ;;  %v14818_v37 = vpop.f32.mrf.mxu3 }
 0x395   :  { %7860 = vmatpush.bf16.msrb.mxu0 %v10291_v60  ;;  %v13513_v48 = vld [vmem:[#allocation5 + $0xf2c] sm:$0xf]  ;;  %v10499_v1 = vor.u32 %v13481_v25, %v10496_v13  ;;  %v10352_v61 = vld [vmem:[#allocation5 + $0xd18] sm:$0xf0]  ;;  %v7533_v63 = vadd.f32 %v14794_v6, %v7519_v29 }
 0x396   :  { %7874 = vmatpush.bf16.msrb.mxu1 %v10419_v5  ;;  %v13413_v5 = vld [vmem:[#allocation5 + $0xc0c] sm:$0xf]  ;;  %v10627_v53 = vor.u32 %v13513_v48, %v10624_v40  ;;  %v10480_v16 = vld [vmem:[#allocation5 + $0xe18] sm:$0xf0]  ;;  %v7559_v14 = vadd.f32 %v14787_v52, %v7545_v45 }
 0x397   :  { %7888 = vmatpush.bf16.msrb.mxu2 %v10547_v54  ;;  %v14809_v60 = vpop.f32.mrf.mxu1  ;;  %v10224_v54 = vld [vmem:[#allocation5 + $0xc18] sm:$0xf0]  ;;  %v13445_v7 = vld [vmem:[#allocation5 + $0xd0c] sm:$0xf]  ;;  %v7547_v4 = vadd.f32 %v14797_v18, %v7533_v63 }
 0x398   :  { %7902 = vmatpush.bf16.msrb.mxu3 %v10675_v11  ;;  %v13477_v11 = vld [vmem:[#allocation5 + $0xe0c] sm:$0xf]  ;;  %v10608_v23 = vld [vmem:[#allocation5 + $0xf18] sm:$0xf0]  ;;  %v10227_v62 = vor.u32 %v13413_v5, %v10224_v54  ;;  %v7588_v25 = vpop.f32.mrf.mxu0 }
 0x399   :  { %7861 = vmatpush.bf16.msrb.mxu0 %v10275_v39  ;;  %v13509_v8 = vld [vmem:[#allocation5 + $0xf0c] sm:$0xf]  ;;  %v10848_v39 = vld [vmem:[#allocation5 + $0x10f8] sm:$0xf0]  ;;  %v10483_v50 = vor.u32 %v13477_v11, %v10480_v16  ;;  %v7561_v47 = vadd.f32 %v14802_v35, %v7547_v4 }
 0x39a   :  { %7875 = vmatpush.bf16.msrb.mxu1 %v10403_v19  ;;  %v13569_v27 = vld [vmem:[#allocation5 + $0x10ec] sm:$0xf]  ;;  %v11104_v3 = vld [vmem:[#allocation5 + $0x12f8] sm:$0xf0]  ;;  %v14815_v30 = vpop.f32.mrf.mxu2  ;;  %v10611_v10 = vor.u32 %v13509_v8, %v10608_v23 }
 0x39b   :  { %7889 = vmatpush.bf16.msrb.mxu2 %v10531_v17  ;;  %v13601_v19 = vld [vmem:[#allocation5 + $0x11ec] sm:$0xf]  ;;  %v10976_v17 = vld [vmem:[#allocation5 + $0x11f8] sm:$0xf0]  ;;  %v10851_v6 = vor.u32 %v13569_v27, %v10848_v39 }
 0x39c   :  { %7903 = vmatpush.bf16.msrb.mxu3 %v10659_v43  ;;  %v13633_v20 = vld [vmem:[#allocation5 + $0x12ec] sm:$0xf]  ;;  %v10355_v43 = vor.u32 %v13445_v7, %v10352_v61  ;;  %v11232_v9 = vld [vmem:[#allocation5 + $0x13f8] sm:$0xf0]  ;;  %v10979_v42 = vor.u32 %v13601_v19, %v10976_v17  ;;  %v7575_v61 = vadd.f32 %v14805_v15, %v7561_v47 }
 0x39d   :  { %7862 = vmatpush.bf16.msrb.mxu0 %v10259_v0  ;;  %v13665_v44 = vld [vmem:[#allocation5 + $0x13ec] sm:$0xf]  ;;  %v11107_v0 = vor.u32 %v13633_v20, %v11104_v3  ;;  %v10960_v12 = vld [vmem:[#allocation5 + $0x11d8] sm:$0xf0] }
 0x39e   :  { %7876 = vmatpush.bf16.msrb.mxu1 %v10387_v28  ;;  %v13565_v31 = vld [vmem:[#allocation5 + $0x10cc] sm:$0xf]  ;;  %v10832_v28 = vld [vmem:[#allocation5 + $0x10d8] sm:$0xf0]  ;;  %v7589_v23 = vadd.f32 %v7588_v25, %v7575_v61 }
 0x39f   :  { %7890 = vmatpush.bf16.msrb.mxu2 %v10515_v21  ;;  %v13597_v52 = vld [vmem:[#allocation5 + $0x11cc] sm:$0xf]  ;;  %v11235_v21 = vor.u32 %v13665_v44, %v11232_v9  ;;  %v11088_v49 = vld [vmem:[#allocation5 + $0x12d8] sm:$0xf0]  ;;  %v7602_v58 = vpop.f32.mrf.mxu1  ;;  %v10835_v48 = vor.u32 %v13565_v31, %v10832_v28 }
 0x3a0   :  { %7904 = vmatpush.bf16.msrb.mxu3 %v10643_v36  ;;  %v13629_v22 = vld [vmem:[#allocation5 + $0x12cc] sm:$0xf]  ;;  %v7573_v36 = vadd.f32 %v14790_v57, %v7559_v14  ;;  %v11216_v13 = vld [vmem:[#allocation5 + $0x13d8] sm:$0xf0]  ;;  %v10963_v5 = vor.u32 %v13597_v52, %v10960_v12 }
 0x3a1   :  { %7863 = vmatpush.bf16.msrb.mxu0 %v10243_v24  ;;  %v13661_v18 = vld [vmem:[#allocation5 + $0x13cc] sm:$0xf]  ;;  %v11091_v54 = vor.u32 %v13629_v22, %v11088_v49  ;;  %v10816_v29 = vld [vmem:[#allocation5 + $0x10b8] sm:$0xf0] }
 0x3a2   :  { %7877 = vmatpush.bf16.msrb.mxu1 %v10371_v2  ;;  %v13561_v40 = vld [vmem:[#allocation5 + $0x10ac] sm:$0xf]  ;;  %v7587_v24 = vadd.f32 %v14807_v59, %v7573_v36  ;;  %v10944_v2 = vld [vmem:[#allocation5 + $0x11b8] sm:$0xf0]  ;;  %v11219_v35 = vor.u32 %v13661_v18, %v11216_v13  ;;  %v7616_v27 = vpop.f32.mrf.mxu2 }
 0x3a3   :  { %7891 = vmatpush.bf16.msrb.mxu2 %v10499_v1  ;;  %v13593_v57 = vld [vmem:[#allocation5 + $0x11ac] sm:$0xf]  ;;  %v11072_v7 = vld [vmem:[#allocation5 + $0x12b8] sm:$0xf0] }
 0x3a4   :  { %7905 = vmatpush.bf16.msrb.mxu3 %v10627_v53  ;;  %v13625_v1 = vld [vmem:[#allocation5 + $0x12ac] sm:$0xf]  ;;  %v11200_v11 = vld [vmem:[#allocation5 + $0x13b8] sm:$0xf0]  ;;  %v10819_v53 = vor.u32 %v13561_v40, %v10816_v29  ;;  %v10947_v16 = vor.u32 %v13593_v57, %v10944_v2  ;;  %v7601_v8 = vadd.f32 %v14809_v60, %v7587_v24 }
 0x3a5   :  { %7864 = vmatpush.bf16.msrb.mxu0 %v10227_v62  ;;  %v13657_v59 = vld [vmem:[#allocation5 + $0x13ac] sm:$0xf]  ;;  %v10800_v63 = vld [vmem:[#allocation5 + $0x1098] sm:$0xf0]  ;;  %v7630_v62 = vpop.f32.mrf.mxu3  ;;  %v7642_v17 = vpop.f32.mrf.mxu0 }
 0x3a6   :  { %7878 = vmatpush.bf16.msrb.mxu1 %v10355_v43  ;;  %v13557_v45 = vld [vmem:[#allocation5 + $0x108c] sm:$0xf]  ;;  %v11056_v19 = vld [vmem:[#allocation5 + $0x1298] sm:$0xf0]  ;;  %v7603_v43 = vadd.f32 %v7602_v58, %v7589_v23 }
 0x3a7   :  { %7892 = vmatpush.bf16.msrb.mxu2 %v10483_v50  ;;  %v13589_v15 = vld [vmem:[#allocation5 + $0x118c] sm:$0xf]  ;;  %v11184_v3 = vld [vmem:[#allocation5 + $0x1398] sm:$0xf0]  ;;  %v10803_v60 = vor.u32 %v13557_v45, %v10800_v63  ;;  %v7656_v14 = vpop.f32.mrf.mxu1 }
 0x3a8   :  { %7906 = vmatpush.bf16.msrb.mxu3 %v10611_v10  ;;  %7865 = vmatmul.bf16.vlgmr.msrb.gmra.mxu0 %v14378_v32  ;;  %v11075_v32 = vor.u32 %v13625_v1, %v11072_v7  ;;  %v13621_v39 = vld [vmem:[#allocation5 + $0x128c] sm:$0xf]  ;;  %v10784_v10 = vld [vmem:[#allocation5 + $0x1078] sm:$0xf0]  ;;  %v7617_v28 = vadd.f32 %v7616_v27, %v7603_v43 }
 0x3a9   :  { %7913 = vmatpush.bf16.msra.mxu0 %v10851_v6  ;;  %7879 = vmatmul.bf16.vlgmr.msrb.gmra.mxu1 %v14382_v41  ;;  %v10928_v41 = vld [vmem:[#allocation5 + $0x1198] sm:$0xf0]  ;;  %v13653_v20 = vld [vmem:[#allocation5 + $0x138c] sm:$0xf]  ;;  %v11059_v44 = vor.u32 %v13621_v39, %v11056_v19 }
 0x3aa   :  { %7927 = vmatpush.bf16.msra.mxu1 %v10979_v42  ;;  %7893 = vmatmul.bf16.vlgmr.msrb.gmra.mxu2 %v14380_v38  ;;  %v11203_v38 = vor.u32 %v13657_v59, %v11200_v11  ;;  %v10931_v50 = vor.u32 %v13589_v15, %v10928_v41  ;;  %v13553_v9 = vld [vmem:[#allocation5 + $0x106c] sm:$0xf]  ;;  %v11187_v4 = vor.u32 %v13653_v20, %v11184_v3  ;;  %v10912_v42 = vld [vmem:[#allocation5 + $0x1178] sm:$0xf0] }
 0x3ab   :  { %7941 = vmatpush.bf16.msra.mxu2 %v11107_v0  ;;  %7907 = vmatmul.bf16.vlgmr.msrb.gmra.mxu3 %v14384_v46  ;;  %v7615_v46 = vadd.f32 %v14815_v30, %v7601_v8  ;;  %v13585_v6 = vld [vmem:[#allocation5 + $0x116c] sm:$0xf]  ;;  %v11040_v30 = vld [vmem:[#allocation5 + $0x1278] sm:$0xf0]  ;;  %v10787_v12 = vor.u32 %v13553_v9, %v10784_v10 }
 0x3ac   :  { %7955 = vmatpush.bf16.msra.mxu3 %v11235_v21  ;;  %v13617_v0 = vld [vmem:[#allocation5 + $0x126c] sm:$0xf]  ;;  %v11168_v21 = vld [vmem:[#allocation5 + $0x1378] sm:$0xf0]  ;;  %v10915_v36 = vor.u32 %v13585_v6, %v10912_v42 }
 0x3ad   :  { %7914 = vmatpush.bf16.msra.mxu0 %v10835_v48  ;;  %v7629_v31 = vadd.f32 %v14818_v37, %v7615_v46  ;;  %v13649_v52 = vld [vmem:[#allocation5 + $0x136c] sm:$0xf]  ;;  %v11043_v47 = vor.u32 %v13617_v0, %v11040_v30  ;;  %v10768_v25 = vld [vmem:[#allocation5 + $0x1058] sm:$0xf0]  ;;  %v7670_v48 = vpop.f32.mrf.mxu2  ;;  %v7631_v37 = vadd.f32 %v7630_v62, %v7617_v28 }
 0x3ae   :  { %7928 = vmatpush.bf16.msra.mxu1 %v10963_v5  ;;  %v13549_v22 = vld [vmem:[#allocation5 + $0x104c] sm:$0xf]  ;;  %v10896_v13 = vld [vmem:[#allocation5 + $0x1158] sm:$0xf0]  ;;  %v11171_v58 = vor.u32 %v13649_v52, %v11168_v21  ;;  %v7644_v5 = vpop.f32.mrf.mxu0 }
 0x3af   :  { %7942 = vmatpush.bf16.msra.mxu2 %v11091_v54  ;;  %v7643_v49 = vadd.f32 %v7642_v17, %v7629_v31  ;;  %v13581_v18 = vld [vmem:[#allocation5 + $0x114c] sm:$0xf]  ;;  %v11024_v24 = vld [vmem:[#allocation5 + $0x1258] sm:$0xf0]  ;;  %v7684_v54 = vpop.f32.mrf.mxu3  ;;  %v10771_v2 = vor.u32 %v13549_v22, %v10768_v25  ;;  %v7645_v7 = vadd.f32 %v7644_v5, %v7631_v37  ;;  %v7658_v8 = vpop.f32.mrf.mxu1 }
 0x3b0   :  { %7956 = vmatpush.bf16.msra.mxu3 %v11219_v35  ;;  %v13613_v40 = vld [vmem:[#allocation5 + $0x124c] sm:$0xf]  ;;  %v11152_v57 = vld [vmem:[#allocation5 + $0x1358] sm:$0xf0]  ;;  %v10899_v35 = vor.u32 %v13581_v18, %v10896_v13 }
 0x3b1   :  { %7915 = vmatpush.bf16.msra.mxu0 %v10819_v53  ;;  %v13645_v29 = vld [vmem:[#allocation5 + $0x134c] sm:$0xf]  ;;  %v7657_v1 = vadd.f32 %v7656_v14, %v7643_v49  ;;  %v11027_v61 = vor.u32 %v13613_v40, %v11024_v24  ;;  %v10752_v11 = vld [vmem:[#allocation5 + $0x1038] sm:$0xf0]  ;;  %v7659_v19 = vadd.f32 %v7658_v8, %v7645_v7 }
 0x3b2   :  { %7929 = vmatpush.bf16.msra.mxu1 %v10947_v16  ;;  %v13545_v59 = vld [vmem:[#allocation5 + $0x102c] sm:$0xf]  ;;  %v11155_v16 = vor.u32 %v13645_v29, %v11152_v57  ;;  %v10880_v23 = vld [vmem:[#allocation5 + $0x1138] sm:$0xf0] }
 0x3b3   :  { %7943 = vmatpush.bf16.msra.mxu2 %v11075_v32  ;;  %v13577_v53 = vld [vmem:[#allocation5 + $0x112c] sm:$0xf]  ;;  %v11008_v45 = vld [vmem:[#allocation5 + $0x1238] sm:$0xf0]  ;;  %v7671_v63 = vadd.f32 %v7670_v48, %v7657_v1 }
 0x3b4   :  { %7957 = vmatpush.bf16.msra.mxu3 %v11203_v38  ;;  %v13609_v32 = vld [vmem:[#allocation5 + $0x122c] sm:$0xf]  ;;  %v11136_v27 = vld [vmem:[#allocation5 + $0x1338] sm:$0xf0]  ;;  %v10755_v38 = vor.u32 %v13545_v59, %v10752_v11  ;;  %v10883_v46 = vor.u32 %v13577_v53, %v10880_v23 }
 0x3b5   :  { %7916 = vmatpush.bf16.msra.mxu0 %v10803_v60  ;;  %v13641_v15 = vld [vmem:[#allocation5 + $0x132c] sm:$0xf]  ;;  %v10736_v39 = vld [vmem:[#allocation5 + $0x1018] sm:$0xf0]  ;;  %v11011_v62 = vor.u32 %v13609_v32, %v11008_v45  ;;  %v7672_v14 = vpop.f32.mrf.mxu2  ;;  %v7685_v9 = vadd.f32 %v7684_v54, %v7671_v63 }
 0x3b6   :  { %7930 = vmatpush.bf16.msra.mxu1 %v10931_v50  ;;  %v13541_v41 = vld [vmem:[#allocation5 + $0x100c] sm:$0xf]  ;;  %v10864_v20 = vld [vmem:[#allocation5 + $0x1118] sm:$0xf0]  ;;  %v11139_v60 = vor.u32 %v13641_v15, %v11136_v27  ;;  %v7673_v10 = vadd.f32 %v7672_v14, %v7659_v19 }
 0x3b7   :  { %7944 = vmatpush.bf16.msra.mxu2 %v11059_v44  ;;  %v13573_v17 = vld [vmem:[#allocation5 + $0x110c] sm:$0xf]  ;;  %v10992_v43 = vld [vmem:[#allocation5 + $0x1218] sm:$0xf0]  ;;  %v7686_v6 = vpop.f32.mrf.mxu3  ;;  %v10739_v30 = vor.u32 %v13541_v41, %v10736_v39  ;;  %v8139_v13 = vmax.f32 %v7685_v9, 0.0 }
 0x3b8   :  { %7958 = vmatpush.bf16.msra.mxu3 %v11187_v4  ;;  %v13605_v3 = vld [vmem:[#allocation5 + $0x120c] sm:$0xf]  ;;  %v11120_v44 = vld [vmem:[#allocation5 + $0x1318] sm:$0xf0]  ;;  %v7687_v21 = vadd.f32 %v7686_v6, %v7673_v10  ;;  %v14837_v41 = vld [vmem:[#allocation7] sm:$0xf] }
 0x3b9   :  { %7917 = vmatpush.bf16.msra.mxu0 %v10787_v12  ;;  %v13637_v50 = vld [vmem:[#allocation5 + $0x130c] sm:$0xf]  ;;  %v11360_v42 = vld [vmem:[#allocation5 + $0x14f8] sm:$0xf0]  ;;  %v10867_v12 = vor.u32 %v13573_v17, %v10864_v20  ;;  %v10995_v22 = vor.u32 %v13605_v3, %v10992_v43  ;;  %v1220_v39 = vperm.slane %v14837_v41, 3 }
 0x3ba   :  { %7931 = vmatpush.bf16.msra.mxu1 %v10915_v36  ;;  %v13697_v4 = vld [vmem:[#allocation5 + $0x14ec] sm:$0xf]  ;;  %v11488_v31 = vld [vmem:[#allocation5 + $0x15f8] sm:$0xf0] }
 0x3bb   :  { %7945 = vmatpush.bf16.msra.mxu2 %v11043_v47  ;;  %v13729_v0 = vld [vmem:[#allocation5 + $0x15ec] sm:$0xf]  ;;  %v11616_v52 = vld [vmem:[#allocation5 + $0x16f8] sm:$0xf0]  ;;  %v11123_v47 = vor.u32 %v13637_v50, %v11120_v44  ;;  %v11363_v25 = vor.u32 %v13697_v4, %v11360_v42 }
 0x3bc   :  { %7959 = vmatpush.bf16.msra.mxu3 %v11171_v58  ;;  %v13761_v28 = vld [vmem:[#allocation5 + $0x16ec] sm:$0xf]  ;;  %v11744_v36 = vld [vmem:[#allocation5 + $0x17f8] sm:$0xf0]  ;;  %v8143_v58 = vmax.f32 %v7687_v21, 0.0  ;;  %v11491_v48 = vor.u32 %v13729_v0, %v11488_v31 }
 0x3bd   :  { %7918 = vmatpush.bf16.msra.mxu0 %v10771_v2  ;;  %v13793_v49 = vld [vmem:[#allocation5 + $0x17ec] sm:$0xf]  ;;  %v11619_v40 = vor.u32 %v13761_v28, %v11616_v52  ;;  %v11344_v24 = vld [vmem:[#allocation5 + $0x14d8] sm:$0xf0] }
 0x3be   :  { %7932 = vmatpush.bf16.msra.mxu1 %v10899_v35  ;;  %v13693_v18 = vld [vmem:[#allocation5 + $0x14cc] sm:$0xf]  ;;  %v11747_v5 = vor.u32 %v13793_v49, %v11744_v36  ;;  %v11472_v54 = vld [vmem:[#allocation5 + $0x15d8] sm:$0xf0]  ;;  %v14831_v2 = vpack.c.bf16 %v8143_v58, %v8139_v13 }
 0x3bf   :  { %7946 = vmatpush.bf16.msra.mxu2 %v11027_v61  ;;  %v13725_v37 = vld [vmem:[#allocation5 + $0x15cc] sm:$0xf]  ;;  %v11600_v57 = vld [vmem:[#allocation5 + $0x16d8] sm:$0xf0]  ;;  %v11347_v7 = vor.u32 %v13693_v18, %v11344_v24 }
 0x3c0   :  { %7960 = vmatpush.bf16.msra.mxu3 %v11155_v16  ;;  %v13757_v29 = vld [vmem:[#allocation5 + $0x16cc] sm:$0xf]  ;;  %v11728_v1 = vld [vmem:[#allocation5 + $0x17d8] sm:$0xf0]  ;;  %v11475_v61 = vor.u32 %v13725_v37, %v11472_v54 }
 0x3c1   :  { %7919 = vmatpush.bf16.msra.mxu0 %v10755_v38  ;;  %v13789_v35 = vld [vmem:[#allocation5 + $0x17cc] sm:$0xf]  ;;  %v11603_v59 = vor.u32 %v13757_v29, %v11600_v57  ;;  %v11328_v53 = vld [vmem:[#allocation5 + $0x14b8] sm:$0xf0] }
 0x3c2   :  { %7933 = vmatpush.bf16.msra.mxu1 %v10883_v46  ;;  %v13689_v11 = vld [vmem:[#allocation5 + $0x14ac] sm:$0xf]  ;;  %v11731_v8 = vor.u32 %v13789_v35, %v11728_v1  ;;  %v11456_v23 = vld [vmem:[#allocation5 + $0x15b8] sm:$0xf0] }
 0x3c3   :  { %7947 = vmatpush.bf16.msra.mxu2 %v11011_v62  ;;  %v13721_v16 = vld [vmem:[#allocation5 + $0x15ac] sm:$0xf]  ;;  %v11584_v45 = vld [vmem:[#allocation5 + $0x16b8] sm:$0xf0]  ;;  %v11331_v38 = vor.u32 %v13689_v11, %v11328_v53 }
 0x3c4   :  { %7961 = vmatpush.bf16.msra.mxu3 %v11139_v60  ;;  %v13753_v32 = vld [vmem:[#allocation5 + $0x16ac] sm:$0xf]  ;;  %v11712_v15 = vld [vmem:[#allocation5 + $0x17b8] sm:$0xf0] }
 0x3c5   :  { %7920 = vmatpush.bf16.msra.mxu0 %v10739_v30  ;;  %v13785_v63 = vld [vmem:[#allocation5 + $0x17ac] sm:$0xf]  ;;  %v11587_v19 = vor.u32 %v13753_v32, %v11584_v45  ;;  %v11312_v62 = vld [vmem:[#allocation5 + $0x1498] sm:$0xf0]  ;;  %v7698_v43 = vpop.f32.mrf.mxu0 }
 0x3c6   :  { %7934 = vmatpush.bf16.msra.mxu1 %v10867_v12  ;;  %v15097_v27 = vld [vmem:[#allocation16_spill] sm:$0xff]  ;;  %v11568_v3 = vld [vmem:[#allocation5 + $0x1698] sm:$0xf0]  ;;  %v7699_v44 = vadd.f32 %v7698_v43, %v1220_v39  ;;  %v7712_v0 = vpop.f32.mrf.mxu1  ;;  %v15098_v49 = vld [vmem:[#allocation17_spill] sm:$0xff] }
 0x3c7   :  { %7948 = vmatpush.bf16.msra.mxu2 %v10995_v22  ;;  %v13685_v46 = vld [vmem:[#allocation5 + $0x148c] sm:$0xf]  ;;  %v11696_v14 = vld [vmem:[#allocation5 + $0x1798] sm:$0xf0]  ;;  %v15099_v36 = vperm.slane %v15098_v49, 0 }
 0x3c8   :  { %7962 = vmatpush.bf16.msra.mxu3 %v11123_v47  ;;  %7921 = vmatmul.bf16.vlgmr.msra.gmra.mxu0 %v14390_v51  ;;  %v11459_v51 = vor.u32 %v13721_v16, %v11456_v23  ;;  %v13717_v17 = vld [vmem:[#allocation5 + $0x158c] sm:$0xf]  ;;  %v11315_v50 = vor.u32 %v13685_v46, %v11312_v62  ;;  %v11296_v4 = vld [vmem:[#allocation5 + $0x1478] sm:$0xf0]  ;;  %v7713_v21 = vadd.f32 %v7712_v0, %v7699_v44 }
 0x3c9   :  { %7969 = vmatpush.bf16.msrb.mxu0 %v11363_v25  ;;  %7935 = vmatmul.bf16.vlgmr.msra.gmra.mxu1 %v14394_v56  ;;  %v11440_v56 = vld [vmem:[#allocation5 + $0x1598] sm:$0xf0]  ;;  %v13749_v20 = vld [vmem:[#allocation5 + $0x168c] sm:$0xf] }
 0x3ca   :  { %7983 = vmatpush.bf16.msrb.mxu1 %v11491_v48  ;;  %7949 = vmatmul.bf16.vlgmr.msra.gmra.mxu2 %v14392_v55  ;;  %v11715_v55 = vor.u32 %v13785_v63, %v11712_v15  ;;  %v13781_v60 = vld [vmem:[#allocation5 + $0x178c] sm:$0xf]  ;;  %v11443_v9 = vor.u32 %v13717_v17, %v11440_v56  ;;  %v11571_v10 = vor.u32 %v13749_v20, %v11568_v3  ;;  %v11424_v31 = vld [vmem:[#allocation5 + $0x1578] sm:$0xf0] }
 0x3cb   :  { %7997 = vmatpush.bf16.msrb.mxu2 %v11619_v40  ;;  %7963 = vmatmul.bf16.vlgmr.msra.gmra.mxu3 %v15097_v27  ;;  %v13681_v6 = vld [vmem:[#allocation5 + $0x146c] sm:$0xf]  ;;  %v11699_v30 = vor.u32 %v13781_v60, %v11696_v14  ;;  %v11552_v52 = vld [vmem:[#allocation5 + $0x1678] sm:$0xf0] }
 0x3cc   :  { %8011 = vmatpush.bf16.msrb.mxu3 %v11747_v5  ;;  %v13713_v42 = vld [vmem:[#allocation5 + $0x156c] sm:$0xf]  ;;  %v11680_v22 = vld [vmem:[#allocation5 + $0x1778] sm:$0xf0]  ;;  %v11299_v18 = vor.u32 %v13681_v6, %v11296_v4 }
 0x3cd   :  { %7970 = vmatpush.bf16.msrb.mxu0 %v11347_v7  ;;  %v13745_v28 = vld [vmem:[#allocation5 + $0x166c] sm:$0xf]  ;;  %v15100_v47 = vld [vmem:[#allocation18_spill] sm:$0xff]  ;;  %v11427_v13 = vor.u32 %v13713_v42, %v11424_v31  ;;  %v15104_v16 = vld [vmem:[#allocation19_spill] sm:$0xff] }
 0x3ce   :  { %7984 = vmatpush.bf16.msrb.mxu1 %v11475_v61  ;;  %v13777_v12 = vld [vmem:[#allocation5 + $0x176c] sm:$0xf]  ;;  %v6357_v25 = vadd.f32 %v15100_v47, %v15099_v36  ;;  %v11555_v58 = vor.u32 %v13745_v28, %v11552_v52  ;;  %v11280_v40 = vld [vmem:[#allocation5 + $0x1458] sm:$0xf0]  ;;  %v7726_v61 = vpop.f32.mrf.mxu2  ;;  %v7740_v32 = vpop.f32.mrf.mxu3 }
 0x3cf   :  { %7998 = vmatpush.bf16.msrb.mxu2 %v11603_v59  ;;  %v13677_v48 = vld [vmem:[#allocation5 + $0x144c] sm:$0xf]  ;;  %v15101_v37 = vld [vmem:[#allocation58_spill] sm:$0xff]  ;;  %v11683_v57 = vor.u32 %v13777_v12, %v11680_v22  ;;  %v7727_v53 = vadd.f32 %v7726_v61, %v7713_v21  ;;  %v15107_v0 = vld [vmem:[#allocation63_spill] sm:$0xff] }
 0x3d0   :  { %8012 = vmatpush.bf16.msrb.mxu3 %v11731_v8  ;;  %v13709_v24 = vld [vmem:[#allocation5 + $0x154c] sm:$0xf]  ;;  %v15102_v5 = vperm.slane %v15101_v37, 1  ;;  %v11408_v35 = vld [vmem:[#allocation5 + $0x1558] sm:$0xf0]  ;;  %v6371_v8 = vadd.f32 %v15104_v16, %v6357_v25  ;;  %v11283_v23 = vor.u32 %v13677_v48, %v11280_v40 }
 0x3d1   :  { %7971 = vmatpush.bf16.msrb.mxu0 %v11331_v38  ;;  %v15103_v54 = vld [vmem:[#allocation61_spill] sm:$0xff]  ;;  %v11536_v7 = vld [vmem:[#allocation5 + $0x1658] sm:$0xf0]  ;;  %v11411_v45 = vor.u32 %v13709_v24, %v11408_v35 }
 0x3d2   :  { %7985 = vmatpush.bf16.msrb.mxu1 %v11459_v51  ;;  %v6805_v29 = vadd.f32 %v15103_v54, %v15102_v5  ;;  %v13741_v1 = vld [vmem:[#allocation5 + $0x164c] sm:$0xf]  ;;  %v11664_v11 = vld [vmem:[#allocation5 + $0x1758] sm:$0xf0]  ;;  %v14849_v51 = vadd.f32 %v7740_v32, %v7727_v53 }
 0x3d3   :  { %7999 = vmatpush.bf16.msrb.mxu2 %v11587_v19  ;;  %v13773_v59 = vld [vmem:[#allocation5 + $0x174c] sm:$0xf]  ;;  %v11539_v63 = vor.u32 %v13741_v1, %v11536_v7  ;;  %v11264_v27 = vld [vmem:[#allocation5 + $0x1438] sm:$0xf0] }
 0x3d4   :  { %8013 = vmatpush.bf16.msrb.mxu3 %v11715_v55  ;;  %v13673_v15 = vld [vmem:[#allocation5 + $0x142c] sm:$0xf]  ;;  %v15105_v19 = vld [vmem:[#allocation62_spill] sm:$0xff]  ;;  %v11667_v62 = vor.u32 %v13773_v59, %v11664_v11 }
 0x3d5   :  { %7972 = vmatpush.bf16.msrb.mxu0 %v11315_v50  ;;  %v13705_v38 = vld [vmem:[#allocation5 + $0x152c] sm:$0xf]  ;;  %v6819_v46 = vadd.f32 %v15105_v19, %v6805_v29  ;;  %v11392_v17 = vld [vmem:[#allocation5 + $0x1538] sm:$0xf0]  ;;  %v11267_v60 = vor.u32 %v13673_v15, %v11264_v27 }
 0x3d6   :  { %7986 = vmatpush.bf16.msrb.mxu1 %v11443_v9  ;;  %v13737_v55 = vld [vmem:[#allocation5 + $0x162c] sm:$0xf]  ;;  %v11520_v56 = vld [vmem:[#allocation5 + $0x1638] sm:$0xf0]  ;;  %v11395_v9 = vor.u32 %v13705_v38, %v11392_v17 }
 0x3d7   :  { %8000 = vmatpush.bf16.msrb.mxu2 %v11571_v10  ;;  %v13769_v20 = vld [vmem:[#allocation5 + $0x172c] sm:$0xf]  ;;  %v11648_v3 = vld [vmem:[#allocation5 + $0x1738] sm:$0xf0]  ;;  %v11523_v10 = vor.u32 %v13737_v55, %v11520_v56 }
 0x3d8   :  { %8014 = vmatpush.bf16.msrb.mxu3 %v11699_v30  ;;  %v13669_v14 = vld [vmem:[#allocation5 + $0x140c] sm:$0xf]  ;;  %v11248_v43 = vld [vmem:[#allocation5 + $0x1418] sm:$0xf0]  ;;  %v6833_v30 = vadd.f32 %v15107_v0, %v6819_v46  ;;  %v11651_v31 = vor.u32 %v13769_v20, %v11648_v3 }
 0x3d9   :  { %7973 = vmatpush.bf16.msrb.mxu0 %v11299_v18  ;;  %v15106_v50 = vld [vmem:[#allocation21_spill] sm:$0xff]  ;;  %v11376_v4 = vld [vmem:[#allocation5 + $0x1518] sm:$0xf0]  ;;  %v11251_v36 = vor.u32 %v13669_v14, %v11248_v43  ;;  %v15109_v5 = vld [vmem:[#allocation64_spill] sm:$0xff] }
 0x3da   :  { %7987 = vmatpush.bf16.msrb.mxu1 %v11427_v13  ;;  %v6385_v44 = vadd.f32 %v15106_v50, %v6371_v8  ;;  %v13701_v6 = vld [vmem:[#allocation5 + $0x150c] sm:$0xf]  ;;  %v11504_v28 = vld [vmem:[#allocation5 + $0x1618] sm:$0xf0]  ;;  %v6847_v54 = vadd.f32 %v15109_v5, %v6833_v30 }
 0x3db   :  { %8001 = vmatpush.bf16.msrb.mxu2 %v11555_v58  ;;  %v13733_v42 = vld [vmem:[#allocation5 + $0x160c] sm:$0xf]  ;;  %v11632_v21 = vld [vmem:[#allocation5 + $0x1718] sm:$0xf0]  ;;  %v11379_v48 = vor.u32 %v13701_v6, %v11376_v4 }
 0x3dc   :  { %8015 = vmatpush.bf16.msrb.mxu3 %v11683_v57  ;;  %v13765_v52 = vld [vmem:[#allocation5 + $0x170c] sm:$0xf]  ;;  %v11872_v22 = vld [vmem:[#allocation5 + $0x18f8] sm:$0xf0]  ;;  %v11507_v40 = vor.u32 %v13733_v42, %v11504_v28 }
 0x3dd   :  { %7974 = vmatpush.bf16.msrb.mxu0 %v11283_v23  ;;  %v13825_v12 = vld [vmem:[#allocation5 + $0x18ec] sm:$0xf]  ;;  %v12000_v47 = vld [vmem:[#allocation5 + $0x19f8] sm:$0xf0]  ;;  %v11635_v29 = vor.u32 %v13765_v52, %v11632_v21 }
 0x3de   :  { %7988 = vmatpush.bf16.msrb.mxu1 %v11411_v45  ;;  %v13857_v49 = vld [vmem:[#allocation5 + $0x19ec] sm:$0xf]  ;;  %v12128_v18 = vld [vmem:[#allocation5 + $0x1af8] sm:$0xf0]  ;;  %v11875_v57 = vor.u32 %v13825_v12, %v11872_v22 }
 0x3df   :  { %8002 = vmatpush.bf16.msrb.mxu2 %v11539_v63  ;;  %v13889_v25 = vld [vmem:[#allocation5 + $0x1aec] sm:$0xf]  ;;  %v15108_v13 = vld [vmem:[#allocation22_spill] sm:$0xff]  ;;  %v12003_v35 = vor.u32 %v13857_v49, %v12000_v47  ;;  %v15112_v14 = vld [vmem:[#allocation27_spill] sm:$0xff] }
 0x3e0   :  { %8016 = vmatpush.bf16.msrb.mxu3 %v11667_v62  ;;  %v6399_v58 = vadd.f32 %v15108_v13, %v6385_v44  ;;  %v13921_v24 = vld [vmem:[#allocation5 + $0x1bec] sm:$0xf]  ;;  %v12256_v37 = vld [vmem:[#allocation5 + $0x1bf8] sm:$0xf0]  ;;  %v12131_v1 = vor.u32 %v13889_v25, %v12128_v18 }
 0x3e1   :  { %7975 = vmatpush.bf16.msrb.mxu0 %v11267_v60  ;;  %v13821_v7 = vld [vmem:[#allocation5 + $0x18cc] sm:$0xf]  ;;  %v11856_v61 = vld [vmem:[#allocation5 + $0x18d8] sm:$0xf0]  ;;  %v12259_v11 = vor.u32 %v13921_v24, %v12256_v37 }
 0x3e2   :  { %7989 = vmatpush.bf16.msrb.mxu1 %v11395_v9  ;;  %v13853_v59 = vld [vmem:[#allocation5 + $0x19cc] sm:$0xf]  ;;  %v11984_v53 = vld [vmem:[#allocation5 + $0x19d8] sm:$0xf0]  ;;  %v11859_v38 = vor.u32 %v13821_v7, %v11856_v61 }
 0x3e3   :  { %8003 = vmatpush.bf16.msrb.mxu2 %v11523_v10  ;;  %v13885_v16 = vld [vmem:[#allocation5 + $0x1acc] sm:$0xf]  ;;  %v12112_v8 = vld [vmem:[#allocation5 + $0x1ad8] sm:$0xf0]  ;;  %v11987_v19 = vor.u32 %v13853_v59, %v11984_v53 }
 0x3e4   :  { %8017 = vmatpush.bf16.msrb.mxu3 %v11651_v31  ;;  %v15110_v23 = vld [vmem:[#allocation24_spill] sm:$0xff]  ;;  %v12240_v63 = vld [vmem:[#allocation5 + $0x1bd8] sm:$0xf0]  ;;  %v15111_v15 = vld [vmem:[#allocation65_spill] sm:$0xff]  ;;  %v12115_v46 = vor.u32 %v13885_v16, %v12112_v8 }
 0x3e5   :  { %7976 = vmatpush.bf16.msrb.mxu0 %v11251_v36  ;;  %v6413_v32 = vadd.f32 %v15110_v23, %v6399_v58  ;;  %v13917_v45 = vld [vmem:[#allocation5 + $0x1bcc] sm:$0xf]  ;;  %v6861_v27 = vadd.f32 %v15111_v15, %v6847_v54  ;;  %v11840_v17 = vld [vmem:[#allocation5 + $0x18b8] sm:$0xf0] }
 0x3e6   :  { %7990 = vmatpush.bf16.msrb.mxu1 %v11379_v48  ;;  %v13817_v62 = vld [vmem:[#allocation5 + $0x18ac] sm:$0xf]  ;;  %v12243_v56 = vor.u32 %v13917_v45, %v12240_v63  ;;  %v11968_v20 = vld [vmem:[#allocation5 + $0x19b8] sm:$0xf0] }
 0x3e7   :  { %8004 = vmatpush.bf16.msrb.mxu2 %v11507_v40  ;;  %v13849_v55 = vld [vmem:[#allocation5 + $0x19ac] sm:$0xf]  ;;  %v12096_v60 = vld [vmem:[#allocation5 + $0x1ab8] sm:$0xf0]  ;;  %v6427_v43 = vadd.f32 %v15112_v14, %v6413_v32  ;;  %v11843_v4 = vor.u32 %v13817_v62, %v11840_v17 }
 0x3e8   :  { %8018 = vmatpush.bf16.msrb.mxu3 %v11635_v29  ;;  %7977 = vmatmul.bf16.vlgmr.msrb.gmra.mxu0 %v14411_v26  ;;  %v13881_v3 = vld [vmem:[#allocation5 + $0x1aac] sm:$0xf]  ;;  %v12224_v44 = vld [vmem:[#allocation5 + $0x1bb8] sm:$0xf0]  ;;  %v11971_v0 = vor.u32 %v13849_v55, %v11968_v20 }
 0x3e9   :  { %8025 = vmatpush.bf16.msra.mxu0 %v11875_v57  ;;  %7991 = vmatmul.bf16.vlgmr.msrb.gmra.mxu1 %v14415_v34  ;;  %v13913_v50 = vld [vmem:[#allocation5 + $0x1bac] sm:$0xf]  ;;  %v15113_v9 = vld [vmem:[#allocation66_spill] sm:$0xff]  ;;  %v12099_v30 = vor.u32 %v13881_v3, %v12096_v60  ;;  %v15121_v62 = vld [vmem:[#allocation35_spill] sm:$0xff] }
 0x3ea   :  { %8039 = vmatpush.bf16.msra.mxu1 %v12003_v35  ;;  %8005 = vmatmul.bf16.vlgmr.msrb.gmra.mxu2 %v14413_v33  ;;  %v6875_v10 = vadd.f32 %v15113_v9, %v6861_v27  ;;  %v15114_v6 = vld [vmem:[#allocation20_spill] sm:$0xff]  ;;  %v15115_v42 = vld [vmem:[#allocation29_spill] sm:$0xff]  ;;  %v11824_v28 = vld [vmem:[#allocation5 + $0x1898] sm:$0xf0]  ;;  %v12227_v34 = vor.u32 %v13913_v50, %v12224_v44 }
 0x3eb   :  { %8053 = vmatpush.bf16.msra.mxu2 %v12131_v1  ;;  %8019 = vmatmul.bf16.vlgmr.msrb.gmra.mxu3 %v15114_v6  ;;  %v6441_v26 = vadd.f32 %v15115_v42, %v6427_v43  ;;  %v13813_v31 = vld [vmem:[#allocation5 + $0x188c] sm:$0xf]  ;;  %v15116_v33 = vld [vmem:[#allocation67_spill] sm:$0xff]  ;;  %v15117_v18 = vld [vmem:[#allocation30_spill] sm:$0xff] }
 0x3ec   :  { %8067 = vmatpush.bf16.msra.mxu3 %v12259_v11  ;;  %v13845_v52 = vld [vmem:[#allocation5 + $0x198c] sm:$0xf]  ;;  %v6889_v21 = vadd.f32 %v15116_v33, %v6875_v10  ;;  %v11952_v12 = vld [vmem:[#allocation5 + $0x1998] sm:$0xf0]  ;;  %v11827_v25 = vor.u32 %v13813_v31, %v11824_v28 }
 0x3ed   :  { %8026 = vmatpush.bf16.msra.mxu0 %v11859_v38  ;;  %v13877_v22 = vld [vmem:[#allocation5 + $0x1a8c] sm:$0xf]  ;;  %v12080_v49 = vld [vmem:[#allocation5 + $0x1a98] sm:$0xf0]  ;;  %v6455_v13 = vadd.f32 %v15117_v18, %v6441_v26  ;;  %v11955_v58 = vor.u32 %v13845_v52, %v11952_v12 }
 0x3ee   :  { %8040 = vmatpush.bf16.msra.mxu1 %v11987_v19  ;;  %v13909_v36 = vld [vmem:[#allocation5 + $0x1b8c] sm:$0xf]  ;;  %v12208_v47 = vld [vmem:[#allocation5 + $0x1b98] sm:$0xf0]  ;;  %v12083_v48 = vor.u32 %v13877_v22, %v12080_v49 }
 0x3ef   :  { %8054 = vmatpush.bf16.msra.mxu2 %v12115_v46  ;;  %v13809_v40 = vld [vmem:[#allocation5 + $0x186c] sm:$0xf]  ;;  %v11808_v24 = vld [vmem:[#allocation5 + $0x1878] sm:$0xf0]  ;;  %v12211_v29 = vor.u32 %v13909_v36, %v12208_v47 }
 0x3f0   :  { %8068 = vmatpush.bf16.msra.mxu3 %v12243_v56  ;;  %v13841_v37 = vld [vmem:[#allocation5 + $0x196c] sm:$0xf]  ;;  %v11936_v57 = vld [vmem:[#allocation5 + $0x1978] sm:$0xf0]  ;;  %v11811_v8 = vor.u32 %v13809_v40, %v11808_v24 }
 0x3f1   :  { %8027 = vmatpush.bf16.msra.mxu0 %v11843_v4  ;;  %v15118_v5 = vld [vmem:[#allocation68_spill] sm:$0xff]  ;;  %v12064_v1 = vld [vmem:[#allocation5 + $0x1a78] sm:$0xf0]  ;;  %v15120_v53 = vld [vmem:[#allocation69_spill] sm:$0xff]  ;;  %v11939_v23 = vor.u32 %v13841_v37, %v11936_v57 }
 0x3f2   :  { %8041 = vmatpush.bf16.msra.mxu1 %v11971_v0  ;;  %v6903_v54 = vadd.f32 %v15118_v5, %v6889_v21  ;;  %v13873_v35 = vld [vmem:[#allocation5 + $0x1a6c] sm:$0xf]  ;;  %v12192_v11 = vld [vmem:[#allocation5 + $0x1b78] sm:$0xf0] }
 0x3f3   :  { %8055 = vmatpush.bf16.msra.mxu2 %v12099_v30  ;;  %v15119_v7 = vld [vmem:[#allocation32_spill] sm:$0xff]  ;;  %v12067_v32 = vor.u32 %v13873_v35, %v12064_v1  ;;  %v11792_v63 = vld [vmem:[#allocation5 + $0x1858] sm:$0xf0]  ;;  %v15123_v14 = vld [vmem:[#allocation37_spill] sm:$0xff] }
 0x3f4   :  { %8069 = vmatpush.bf16.msra.mxu3 %v12227_v34  ;;  %v6469_v61 = vadd.f32 %v15119_v7, %v6455_v13  ;;  %v13905_v59 = vld [vmem:[#allocation5 + $0x1b6c] sm:$0xf]  ;;  %v6917_v16 = vadd.f32 %v15120_v53, %v6903_v54  ;;  %v11920_v38 = vld [vmem:[#allocation5 + $0x1958] sm:$0xf0] }
 0x3f5   :  { %8028 = vmatpush.bf16.msra.mxu0 %v11827_v25  ;;  %v13805_v45 = vld [vmem:[#allocation5 + $0x184c] sm:$0xf]  ;;  %v12195_v27 = vor.u32 %v13905_v59, %v12192_v11  ;;  %v12048_v46 = vld [vmem:[#allocation5 + $0x1a58] sm:$0xf0] }
 0x3f6   :  { %8042 = vmatpush.bf16.msra.mxu1 %v11955_v58  ;;  %v13837_v15 = vld [vmem:[#allocation5 + $0x194c] sm:$0xf]  ;;  %v6483_v17 = vadd.f32 %v15121_v62, %v6469_v61  ;;  %v12176_v56 = vld [vmem:[#allocation5 + $0x1b58] sm:$0xf0]  ;;  %v11795_v60 = vor.u32 %v13805_v45, %v11792_v63 }
 0x3f7   :  { %8056 = vmatpush.bf16.msra.mxu2 %v12083_v48  ;;  %v13869_v19 = vld [vmem:[#allocation5 + $0x1a4c] sm:$0xf]  ;;  %v15122_v20 = vld [vmem:[#allocation70_spill] sm:$0xff]  ;;  %v11923_v50 = vor.u32 %v13837_v15, %v11920_v38  ;;  %v15124_v4 = vld [vmem:[#allocation71_spill] sm:$0xff] }
 0x3f8   :  { %8070 = vmatpush.bf16.msra.mxu3 %v12211_v29  ;;  %v13901_v55 = vld [vmem:[#allocation5 + $0x1b4c] sm:$0xf]  ;;  %v6931_v3 = vadd.f32 %v15122_v20, %v6917_v16  ;;  %v6497_v43 = vadd.f32 %v15123_v14, %v6483_v17  ;;  %v12051_v44 = vor.u32 %v13869_v19, %v12048_v46  ;;  %v11776_v10 = vld [vmem:[#allocation5 + $0x1838] sm:$0xf0] }
 0x3f9   :  { %8029 = vmatpush.bf16.msra.mxu0 %v11811_v8  ;;  %v13801_v9 = vld [vmem:[#allocation5 + $0x182c] sm:$0xf]  ;;  %v12179_v26 = vor.u32 %v13901_v55, %v12176_v56  ;;  %v11904_v0 = vld [vmem:[#allocation5 + $0x1938] sm:$0xf0] }
 0x3fa   :  { %8043 = vmatpush.bf16.msra.mxu1 %v11939_v23  ;;  %v13833_v6 = vld [vmem:[#allocation5 + $0x192c] sm:$0xf]  ;;  %v6945_v42 = vadd.f32 %v15124_v4, %v6931_v3  ;;  %v12032_v31 = vld [vmem:[#allocation5 + $0x1a38] sm:$0xf0]  ;;  %v11779_v33 = vor.u32 %v13801_v9, %v11776_v10 }
 0x3fb   :  { %8057 = vmatpush.bf16.msra.mxu2 %v12067_v32  ;;  %v13865_v30 = vld [vmem:[#allocation5 + $0x1a2c] sm:$0xf]  ;;  %v12160_v52 = vld [vmem:[#allocation5 + $0x1b38] sm:$0xf0]  ;;  %v11907_v49 = vor.u32 %v13833_v6, %v11904_v0 }
 0x3fc   :  { %8071 = vmatpush.bf16.msra.mxu3 %v12195_v27  ;;  %v13897_v28 = vld [vmem:[#allocation5 + $0x1b2c] sm:$0xf]  ;;  %v11760_v34 = vld [vmem:[#allocation5 + $0x1818] sm:$0xf0]  ;;  %v12035_v36 = vor.u32 %v13865_v30, %v12032_v31 }
 0x3fd   :  { %8030 = vmatpush.bf16.msra.mxu0 %v11795_v60  ;;  %v13797_v21 = vld [vmem:[#allocation5 + $0x180c] sm:$0xf]  ;;  %v15125_v12 = vld [vmem:[#allocation38_spill] sm:$0xff]  ;;  %v12163_v48 = vor.u32 %v13897_v28, %v12160_v52  ;;  %v15127_v5 = vld [vmem:[#allocation39_spill] sm:$0xff] }
 0x3fe   :  { %v6511_v22 = vadd.f32 %v15125_v12, %v6497_v43  ;;  %8044 = vmatpush.bf16.msra.mxu1 %v11923_v50  ;;  %v13829_v47 = vld [vmem:[#allocation5 + $0x190c] sm:$0xf]  ;;  %v11888_v25 = vld [vmem:[#allocation5 + $0x1918] sm:$0xf0]  ;;  %v11763_v61 = vor.u32 %v13797_v21, %v11760_v34 }
 0x3ff   :  { %8058 = vmatpush.bf16.msra.mxu2 %v12051_v44  ;;  %v13861_v18 = vld [vmem:[#allocation5 + $0x1a0c] sm:$0xf]  ;;  %v12016_v40 = vld [vmem:[#allocation5 + $0x1a18] sm:$0xf0]  ;;  %v11891_v16 = vor.u32 %v13829_v47, %v11888_v25 }
 0x400   :  { %v15126_v13 = vld [vmem:[#allocation72_spill] sm:$0xff]  ;;  %8072 = vmatpush.bf16.msra.mxu3 %v12179_v26  ;;  %v12144_v37 = vld [vmem:[#allocation5 + $0x1b18] sm:$0xf0]  ;;  %v6525_v54 = vadd.f32 %v15127_v5, %v6511_v22  ;;  %v15128_v1 = vld [vmem:[#allocation73_spill] sm:$0xff]  ;;  %v12019_v8 = vor.u32 %v13861_v18, %v12016_v40 }
 0x401   :  { %v6959_v58 = vadd.f32 %v15126_v13, %v6945_v42  ;;  %v13893_v24 = vld [vmem:[#allocation5 + $0x1b0c] sm:$0xf]  ;;  %v12384_v57 = vld [vmem:[#allocation5 + $0x1cf8] sm:$0xf0]  ;;  %8031 = vmatpush.bf16.msra.mxu0 %v11779_v33 }
 0x402   :  { %v13953_v29 = vld [vmem:[#allocation5 + $0x1cec] sm:$0xf]  ;;  %v12512_v59 = vld [vmem:[#allocation5 + $0x1df8] sm:$0xf0]  ;;  %8045 = vmatpush.bf16.msra.mxu1 %v11907_v49  ;;  %v12147_v45 = vor.u32 %v13893_v24, %v12144_v37 }
 0x403   :  { %v13985_v35 = vld [vmem:[#allocation5 + $0x1dec] sm:$0xf]  ;;  %v6973_v7 = vadd.f32 %v15128_v1, %v6959_v58  ;;  %v12640_v53 = vld [vmem:[#allocation5 + $0x1ef8] sm:$0xf0]  ;;  %8059 = vmatpush.bf16.msra.mxu2 %v12035_v36  ;;  %v12387_v63 = vor.u32 %v13953_v29, %v12384_v57 }
 0x404   :  { %v14017_v11 = vld [vmem:[#allocation5 + $0x1eec] sm:$0xf]  ;;  %v12768_v32 = vld [vmem:[#allocation5 + $0x1ff8] sm:$0xf0]  ;;  %8073 = vmatpush.bf16.msra.mxu3 %v12163_v48  ;;  %v12515_v38 = vor.u32 %v13985_v35, %v12512_v59 }
 0x405   :  { %v14049_v23 = vld [vmem:[#allocation5 + $0x1fec] sm:$0xf]  ;;  %v12643_v19 = vor.u32 %v14017_v11, %v12640_v53  ;;  %v12368_v62 = vld [vmem:[#allocation5 + $0x1cd8] sm:$0xf0]  ;;  %8032 = vmatpush.bf16.msra.mxu0 %v11763_v61 }
 0x406   :  { %v15129_v15 = vld [vmem:[#allocation40_spill] sm:$0xff]  ;;  %v15130_v55 = vld [vmem:[#allocation74_spill] sm:$0xff]  ;;  %v12771_v20 = vor.u32 %v14049_v23, %v12768_v32  ;;  %v15131_v43 = vld [vmem:[#allocation41_spill] sm:$0xff]  ;;  %8046 = vmatpush.bf16.msra.mxu1 %v11891_v16 }
 0x407   :  { %v6539_v27 = vadd.f32 %v15129_v15, %v6525_v54  ;;  %v13949_v46 = vld [vmem:[#allocation5 + $0x1ccc] sm:$0xf]  ;;  %v6987_v56 = vadd.f32 %v15130_v55, %v6973_v7  ;;  %v12496_v3 = vld [vmem:[#allocation5 + $0x1dd8] sm:$0xf0]  ;;  %8060 = vmatpush.bf16.msra.mxu2 %v12019_v8 }
 0x408   :  { %v13981_v17 = vld [vmem:[#allocation5 + $0x1dcc] sm:$0xf]  ;;  %v12624_v14 = vld [vmem:[#allocation5 + $0x1ed8] sm:$0xf0]  ;;  %8074 = vmatpush.bf16.msra.mxu3 %v12147_v45  ;;  %v12371_v4 = vor.u32 %v13949_v46, %v12368_v62 }
 0x409   :  { %v14013_v60 = vld [vmem:[#allocation5 + $0x1ecc] sm:$0xf]  ;;  %v6553_v50 = vadd.f32 %v15131_v43, %v6539_v27  ;;  %v12752_v9 = vld [vmem:[#allocation5 + $0x1fd8] sm:$0xf0]  ;;  %8081 = vmatpush.bf16.msrb.mxu0 %v12387_v63  ;;  %v12499_v42 = vor.u32 %v13981_v17, %v12496_v3 }
 0x40a   :  { %v14045_v44 = vld [vmem:[#allocation5 + $0x1fcc] sm:$0xf]  ;;  %v15132_v10 = vld [vmem:[#allocation75_spill] sm:$0xff]  ;;  %8095 = vmatpush.bf16.msrb.mxu1 %v12515_v38  ;;  %v12627_v26 = vor.u32 %v14013_v60, %v12624_v14  ;;  %v15134_v12 = vld [vmem:[#allocation42_spill] sm:$0xff] }
 0x40b   :  { %v7001_v6 = vadd.f32 %v15132_v10, %v6987_v56  ;;  %8109 = vmatpush.bf16.msrb.mxu2 %v12643_v19  ;;  %v13945_v0 = vld [vmem:[#allocation5 + $0x1cac] sm:$0xf]  ;;  %v12352_v30 = vld [vmem:[#allocation5 + $0x1cb8] sm:$0xf0]  ;;  %v12755_v52 = vor.u32 %v14045_v44, %v12752_v9  ;;  %v6567_v22 = vadd.f32 %v15134_v12, %v6553_v50 }
 0x40c   :  { %v13977_v31 = vld [vmem:[#allocation5 + $0x1dac] sm:$0xf]  ;;  %8123 = vmatpush.bf16.msrb.mxu3 %v12771_v20  ;;  %v15133_v28 = vld [vmem:[#allocation23_spill] sm:$0xff]  ;;  %v15136_v36 = vld [vmem:[#allocation26_spill] sm:$0xff]  ;;  %v12355_v48 = vor.u32 %v13945_v0, %v12352_v30 }
 0x40d   :  { %8033 = vmatmul.bf16.vlgmr.msra.gmra.mxu0 %v15133_v28  ;;  %v12480_v33 = vld [vmem:[#allocation5 + $0x1db8] sm:$0xf0]  ;;  %v14009_v21 = vld [vmem:[#allocation5 + $0x1eac] sm:$0xf]  ;;  %8047 = vmatmul.bf16.vlgmr.msra.gmra.mxu1 %v15136_v36 }
 0x40e   :  { %v12608_v34 = vld [vmem:[#allocation5 + $0x1eb8] sm:$0xf0]  ;;  %v15135_v49 = vld [vmem:[#allocation25_spill] sm:$0xff]  ;;  %v15137_v18 = vld [vmem:[#allocation76_spill] sm:$0xff]  ;;  %8082 = vmatpush.bf16.msrb.mxu0 %v12371_v4  ;;  %8096 = vmatpush.bf16.msrb.mxu1 %v12499_v42  ;;  %v12483_v37 = vor.u32 %v13977_v31, %v12480_v33 }
 0x40f   :  { %8061 = vmatmul.bf16.vlgmr.msra.gmra.mxu2 %v15135_v49  ;;  %v14041_v47 = vld [vmem:[#allocation5 + $0x1fac] sm:$0xf]  ;;  %v12736_v25 = vld [vmem:[#allocation5 + $0x1fb8] sm:$0xf0]  ;;  %v7015_v13 = vadd.f32 %v15137_v18, %v7001_v6  ;;  %v12611_v5 = vor.u32 %v14009_v21, %v12608_v34 }
 0x410   :  { %v15138_v58 = vld [vmem:[#allocation28_spill] sm:$0xff]  ;;  %v15139_v40 = vld [vmem:[#allocation43_spill] sm:$0xff]  ;;  %8110 = vmatpush.bf16.msrb.mxu2 %v12627_v26  ;;  %v15140_v35 = vld [vmem:[#allocation77_spill] sm:$0xff]  ;;  %8124 = vmatpush.bf16.msrb.mxu3 %v12755_v52  ;;  %v12739_v7 = vor.u32 %v14041_v47, %v12736_v25 }
 0x411   :  { %8075 = vmatmul.bf16.vlgmr.msra.gmra.mxu3 %v15138_v58  ;;  %v6581_v24 = vadd.f32 %v15139_v40, %v6567_v22  ;;  %v13941_v54 = vld [vmem:[#allocation5 + $0x1c8c] sm:$0xf]  ;;  %v12336_v29 = vld [vmem:[#allocation5 + $0x1c98] sm:$0xf0]  ;;  %v7029_v1 = vadd.f32 %v15140_v35, %v7015_v13 }
 0x412   :  { %v13973_v57 = vld [vmem:[#allocation5 + $0x1d8c] sm:$0xf]  ;;  %v12464_v61 = vld [vmem:[#allocation5 + $0x1d98] sm:$0xf0]  ;;  %8083 = vmatpush.bf16.msrb.mxu0 %v12355_v48  ;;  %v12339_v8 = vor.u32 %v13941_v54, %v12336_v29  ;;  %8097 = vmatpush.bf16.msrb.mxu1 %v12483_v37 }
 0x413   :  { %v14005_v59 = vld [vmem:[#allocation5 + $0x1e8c] sm:$0xf]  ;;  %v12592_v11 = vld [vmem:[#allocation5 + $0x1e98] sm:$0xf0]  ;;  %v12467_v45 = vor.u32 %v13973_v57, %v12464_v61 }
 0x414   :  { %v14037_v53 = vld [vmem:[#allocation5 + $0x1f8c] sm:$0xf]  ;;  %v12720_v16 = vld [vmem:[#allocation5 + $0x1f98] sm:$0xf0]  ;;  %8111 = vmatpush.bf16.msrb.mxu2 %v12611_v5  ;;  %v12595_v63 = vor.u32 %v14005_v59, %v12592_v11  ;;  %8125 = vmatpush.bf16.msrb.mxu3 %v12739_v7 }
 0x415   :  { %v15141_v23 = vld [vmem:[#allocation44_spill] sm:$0xff]  ;;  %v12320_v27 = vld [vmem:[#allocation5 + $0x1c78] sm:$0xf0]  ;;  %v12723_v62 = vor.u32 %v14037_v53, %v12720_v16  ;;  %v15143_v20 = vld [vmem:[#allocation45_spill] sm:$0xff] }
 0x416   :  { %v6595_v32 = vadd.f32 %v15141_v23, %v6581_v24  ;;  %v13937_v15 = vld [vmem:[#allocation5 + $0x1c6c] sm:$0xf]  ;;  %v15142_v19 = vld [vmem:[#allocation78_spill] sm:$0xff]  ;;  %v15144_v43 = vld [vmem:[#allocation79_spill] sm:$0xff]  ;;  %8084 = vmatpush.bf16.msrb.mxu0 %v12339_v8  ;;  %8098 = vmatpush.bf16.msrb.mxu1 %v12467_v45 }
 0x417   :  { %v13969_v38 = vld [vmem:[#allocation5 + $0x1d6c] sm:$0xf]  ;;  %v7043_v46 = vadd.f32 %v15142_v19, %v7029_v1  ;;  %v12448_v17 = vld [vmem:[#allocation5 + $0x1d78] sm:$0xf0]  ;;  %v12323_v44 = vor.u32 %v13937_v15, %v12320_v27 }
 0x418   :  { %v14001_v55 = vld [vmem:[#allocation5 + $0x1e6c] sm:$0xf]  ;;  %v12576_v56 = vld [vmem:[#allocation5 + $0x1e78] sm:$0xf0]  ;;  %v6609_v3 = vadd.f32 %v15143_v20, %v6595_v32  ;;  %8112 = vmatpush.bf16.msrb.mxu2 %v12595_v63  ;;  %v12451_v9 = vor.u32 %v13969_v38, %v12448_v17  ;;  %8126 = vmatpush.bf16.msrb.mxu3 %v12723_v62  ;;  %v12830_v62 = vld [vmem:[#allocation8 + $0x70] sm:$0xf] }
 0x419   :  { %v14033_v60 = vld [vmem:[#allocation5 + $0x1f6c] sm:$0xf]  ;;  %v12704_v14 = vld [vmem:[#allocation5 + $0x1f78] sm:$0xf0]  ;;  %v7057_v50 = vadd.f32 %v15144_v43, %v7043_v46  ;;  %v12579_v10 = vor.u32 %v14001_v55, %v12576_v56  ;;  %v12894_v55 = vld [vmem:[#allocation8 + $0xf0] sm:$0xf] }
 0x41a   :  { %v13933_v6 = vld [vmem:[#allocation5 + $0x1c4c] sm:$0xf]  ;;  %v12304_v4 = vld [vmem:[#allocation5 + $0x1c58] sm:$0xf0]  ;;  %v12707_v26 = vor.u32 %v14033_v60, %v12704_v14  ;;  %8085 = vmatpush.bf16.msrb.mxu0 %v12323_v44  ;;  %8099 = vmatpush.bf16.msrb.mxu1 %v12451_v9  ;;  %v12958_v14 = vld [vmem:[#allocation8 + $0x170] sm:$0xf] }
 0x41b   :  { %v13965_v42 = vld [vmem:[#allocation5 + $0x1d4c] sm:$0xf]  ;;  %v12432_v0 = vld [vmem:[#allocation5 + $0x1d58] sm:$0xf0]  ;;  %v12307_v22 = vor.u32 %v13933_v6, %v12304_v4 }
 0x41c   :  { %v13997_v30 = vld [vmem:[#allocation5 + $0x1e4c] sm:$0xf]  ;;  %v12560_v31 = vld [vmem:[#allocation5 + $0x1e58] sm:$0xf0]  ;;  %8113 = vmatpush.bf16.msrb.mxu2 %v12579_v10  ;;  %v12435_v47 = vor.u32 %v13965_v42, %v12432_v0  ;;  %8127 = vmatpush.bf16.msrb.mxu3 %v12707_v26  ;;  %v12822_v0 = vld [vmem:[#allocation8 + $0x60] sm:$0xf] }
 0x41d   :  { %v15145_v28 = vld [vmem:[#allocation46_spill] sm:$0xff]  ;;  %v14029_v33 = vld [vmem:[#allocation5 + $0x1f4c] sm:$0xf]  ;;  %v15147_v49 = vld [vmem:[#allocation47_spill] sm:$0xff]  ;;  %v12563_v25 = vor.u32 %v13997_v30, %v12560_v31 }
 0x41e   :  { %v6623_v52 = vadd.f32 %v15145_v28, %v6609_v3  ;;  %v12688_v21 = vld [vmem:[#allocation5 + $0x1f58] sm:$0xf0]  ;;  %v15146_v34 = vld [vmem:[#allocation80_spill] sm:$0xff]  ;;  %v15148_v48 = vld [vmem:[#allocation81_spill] sm:$0xff]  ;;  %8086 = vmatpush.bf16.msrb.mxu0 %v12307_v22  ;;  %8100 = vmatpush.bf16.msrb.mxu1 %v12435_v47 }
 0x41f   :  { %v7071_v12 = vadd.f32 %v15146_v34, %v7057_v50  ;;  %v13929_v18 = vld [vmem:[#allocation5 + $0x1c2c] sm:$0xf]  ;;  %v12288_v13 = vld [vmem:[#allocation5 + $0x1c38] sm:$0xf0]  ;;  %v12691_v24 = vor.u32 %v14029_v33, %v12688_v21  ;;  %v12886_v31 = vld [vmem:[#allocation8 + $0xe0] sm:$0xf] }
 0x420   :  { %v6637_v36 = vadd.f32 %v15147_v49, %v6623_v52  ;;  %v13961_v58 = vld [vmem:[#allocation5 + $0x1d2c] sm:$0xf]  ;;  %v12416_v37 = vld [vmem:[#allocation5 + $0x1d38] sm:$0xf0]  ;;  %v12291_v35 = vor.u32 %v13929_v18, %v12288_v13  ;;  %8114 = vmatpush.bf16.msrb.mxu2 %v12563_v25  ;;  %v12950_v21 = vld [vmem:[#allocation8 + $0x160] sm:$0xf] }
 0x421   :  { %v7085_v40 = vadd.f32 %v15148_v48, %v7071_v12  ;;  %v13993_v5 = vld [vmem:[#allocation5 + $0x1e2c] sm:$0xf]  ;;  %v12544_v54 = vld [vmem:[#allocation5 + $0x1e38] sm:$0xf0]  ;;  %v12419_v11 = vor.u32 %v13961_v58, %v12416_v37  ;;  %8128 = vmatpush.bf16.msrb.mxu3 %v12691_v24  ;;  %v12814_v13 = vld [vmem:[#allocation8 + $0x50] sm:$0xf] }
 0x422   :  { %v14025_v29 = vld [vmem:[#allocation5 + $0x1f2c] sm:$0xf]  ;;  %v12672_v57 = vld [vmem:[#allocation5 + $0x1f38] sm:$0xf0]  ;;  %v12547_v53 = vor.u32 %v13993_v5, %v12544_v54  ;;  %8087 = vmatpush.bf16.msrb.mxu0 %v12291_v35  ;;  %v12878_v48 = vld [vmem:[#allocation8 + $0xd0] sm:$0xf] }
 0x423   :  { %v13925_v1 = vld [vmem:[#allocation5 + $0x1c0c] sm:$0xf]  ;;  %v12272_v7 = vld [vmem:[#allocation5 + $0x1c18] sm:$0xf0]  ;;  %v12675_v63 = vor.u32 %v14025_v29, %v12672_v57  ;;  %8101 = vmatpush.bf16.msrb.mxu1 %v12419_v11  ;;  %v12942_v5 = vld [vmem:[#allocation8 + $0x150] sm:$0xf] }
 0x424   :  { %v15149_v61 = vld [vmem:[#allocation48_spill] sm:$0xff]  ;;  %v12400_v8 = vld [vmem:[#allocation5 + $0x1d18] sm:$0xf0]  ;;  %v15151_v19 = vld [vmem:[#allocation49_spill] sm:$0xff]  ;;  %v12275_v3 = vor.u32 %v13925_v1, %v12272_v7  ;;  %8115 = vmatpush.bf16.msrb.mxu2 %v12547_v53 }
 0x425   :  { %v6651_v59 = vadd.f32 %v15149_v61, %v6637_v36  ;;  %v13957_v16 = vld [vmem:[#allocation5 + $0x1d0c] sm:$0xf]  ;;  %v15150_v32 = vld [vmem:[#allocation82_spill] sm:$0xff]  ;;  %v15152_v56 = vld [vmem:[#allocation83_spill] sm:$0xff]  ;;  %8129 = vmatpush.bf16.msrb.mxu3 %v12675_v63 }
 0x426   :  { %v13989_v23 = vld [vmem:[#allocation5 + $0x1e0c] sm:$0xf]  ;;  %v7099_v45 = vadd.f32 %v15150_v32, %v7085_v40  ;;  %v12528_v15 = vld [vmem:[#allocation5 + $0x1e18] sm:$0xf0]  ;;  %v12403_v50 = vor.u32 %v13957_v16, %v12400_v8  ;;  %8088 = vmatpush.bf16.msrb.mxu0 %v12275_v3  ;;  %v12798_v3 = vld [vmem:[#allocation8 + $0x30] sm:$0xf] }
 0x427   :  { %v14021_v27 = vld [vmem:[#allocation5 + $0x1f0c] sm:$0xf]  ;;  %v12656_v38 = vld [vmem:[#allocation5 + $0x1f18] sm:$0xf0]  ;;  %v6665_v46 = vadd.f32 %v15151_v19, %v6651_v59  ;;  %v12531_v44 = vor.u32 %v13989_v23, %v12528_v15  ;;  %v12806_v23 = vld [vmem:[#allocation8 + $0x40] sm:$0xf] }
 0x428   :  { %v14067_v17 = vld [vmem:[#allocation8 + $0x74] sm:$0xf0]  ;;  %v7113_v20 = vadd.f32 %v15152_v56, %v7099_v45  ;;  %v12659_v9 = vor.u32 %v14021_v27, %v12656_v38  ;;  %v14065_v30 = vld [vmem:[#allocation8 + $0x64] sm:$0xf0]  ;;  %8102 = vmatpush.bf16.msrb.mxu1 %v12403_v50  ;;  %v12870_v45 = vld [vmem:[#allocation8 + $0xc0] sm:$0xf] }
 0x429   :  { %v14083_v60 = vld [vmem:[#allocation8 + $0xf4] sm:$0xf0]  ;;  %v12831_v10 = vor.u32 %v14067_v17, %v12830_v62  ;;  %v15154_v28 = vld [vmem:[#allocation84_spill] sm:$0xff]  ;;  %8116 = vmatpush.bf16.msrb.mxu2 %v12531_v44  ;;  %v15156_v49 = vld [vmem:[#allocation85_spill] sm:$0xff]  ;;  %v12823_v47 = vor.u32 %v14065_v30, %v12822_v0  ;;  %v14920_v0 = vpop.f32.mrf.mxu1 }
 0x42a   :  { %v14099_v43 = vld [vmem:[#allocation8 + $0x174] sm:$0xf0]  ;;  %v12895_v42 = vor.u32 %v14083_v60, %v12894_v55  ;;  %v7127_v52 = vadd.f32 %v15154_v28, %v7113_v20  ;;  %v14081_v33 = vld [vmem:[#allocation8 + $0xe4] sm:$0xf0]  ;;  %8130 = vmatpush.bf16.msrb.mxu3 %v12659_v9  ;;  %v12934_v38 = vld [vmem:[#allocation8 + $0x140] sm:$0xf]  ;;  %v14915_v55 = vpop.f32.mrf.mxu0 }
 0x42b   :  { %v15153_v6 = vld [vmem:[#allocation50_spill] sm:$0xff]  ;;  %v12959_v26 = vor.u32 %v14099_v43, %v12958_v14  ;;  %v14097_v34 = vld [vmem:[#allocation8 + $0x164] sm:$0xf0]  ;;  %v15155_v12 = vld [vmem:[#allocation51_spill] sm:$0xff]  ;;  %8539 = vmatpush.bf16.msra.mxu0 %v12831_v10  ;;  %v12887_v25 = vor.u32 %v14081_v33, %v12886_v31 }
 0x42c   :  { %v6679_v4 = vadd.f32 %v15153_v6, %v6665_v46  ;;  %v7141_v36 = vadd.f32 %v15156_v49, %v7127_v52  ;;  %8553 = vmatpush.bf16.msra.mxu1 %v12895_v42  ;;  %v12951_v18 = vor.u32 %v14097_v34, %v12950_v21  ;;  %v14063_v58 = vld [vmem:[#allocation8 + $0x54] sm:$0xf0]  ;;  %v15159_v29 = vld [vmem:[#allocation52_spill] sm:$0xff]  ;;  %v15160_v35 = vld [vmem:[#allocation33_spill] sm:$0xff] }
 0x42d   :  { %8567 = vmatpush.bf16.msra.mxu2 %v12959_v26  ;;  %v15157_v40 = vld [vmem:[#allocation31_spill] sm:$0xff]  ;;  %v15158_v24 = vld [vmem:[#allocation34_spill] sm:$0xff]  ;;  %v15161_v1 = vld [vmem:[#allocation36_spill] sm:$0xff]  ;;  %v12815_v59 = vor.u32 %v14063_v58, %v12814_v13  ;;  %v14926_v13 = vpop.f32.mrf.mxu3 }
 0x42e   :  { %v6693_v22 = vadd.f32 %v15155_v12, %v6679_v4  ;;  %8089 = vmatmul.bf16.vlgmr.msrb.gmra.mxu0 %v15157_v40  ;;  %8103 = vmatmul.bf16.vlgmr.msrb.gmra.mxu1 %v15158_v24  ;;  %v14079_v37 = vld [vmem:[#allocation8 + $0xd4] sm:$0xf0]  ;;  %v15163_v11 = vld [vmem:[#allocation53_spill] sm:$0xff]  ;;  %v15166_v43 = vld [vmem:[#allocation88_spill] sm:$0xff] }
 0x42f   :  { %v14095_v54 = vld [vmem:[#allocation8 + $0x154] sm:$0xf0]  ;;  %8117 = vmatmul.bf16.vlgmr.msrb.gmra.mxu2 %v15160_v35  ;;  %8131 = vmatmul.bf16.vlgmr.msrb.gmra.mxu3 %v15161_v1  ;;  %v12879_v16 = vor.u32 %v14079_v37, %v12878_v48  ;;  %v14061_v32 = vld [vmem:[#allocation8 + $0x44] sm:$0xf0]  ;;  %v12862_v14 = vld [vmem:[#allocation8 + $0xb0] sm:$0xf] }
 0x430   :  { %v6707_v57 = vadd.f32 %v15159_v29, %v6693_v22  ;;  %v15162_v7 = vld [vmem:[#allocation86_spill] sm:$0xff]  ;;  %8540 = vmatpush.bf16.msra.mxu0 %v12823_v47  ;;  %8554 = vmatpush.bf16.msra.mxu1 %v12887_v25  ;;  %v12943_v8 = vor.u32 %v14095_v54, %v12942_v5  ;;  %v15164_v63 = vld [vmem:[#allocation87_spill] sm:$0xff]  ;;  %v14077_v27 = vld [vmem:[#allocation8 + $0xc4] sm:$0xf0]  ;;  %v12807_v46 = vor.u32 %v14061_v32, %v12806_v23 }
 0x431   :  { %v7155_v61 = vadd.f32 %v15162_v7, %v7141_v36  ;;  %8568 = vmatpush.bf16.msra.mxu2 %v12951_v18  ;;  %v14093_v19 = vld [vmem:[#allocation8 + $0x144] sm:$0xf0]  ;;  %v15165_v62 = vld [vmem:[#allocation54_spill] sm:$0xff]  ;;  %v12871_v56 = vor.u32 %v14077_v27, %v12870_v45  ;;  %v12790_v52 = vld [vmem:[#allocation8 + $0x20] sm:$0xf]  ;;  %v14924_v18 = vpop.f32.mrf.mxu2 }
 0x432   :  { %v6721_v53 = vadd.f32 %v15163_v11, %v6707_v57  ;;  %v12935_v20 = vor.u32 %v14093_v19, %v12934_v38  ;;  %v14059_v60 = vld [vmem:[#allocation8 + $0x34] sm:$0xf0]  ;;  %v12926_v9 = vld [vmem:[#allocation8 + $0x130] sm:$0xf]  ;;  %v15167_v6 = vld [vmem:[#allocation56_spill] sm:$0xff]  ;;  %v14934_v19 = vpop.f32.mrf.mxu1 }
 0x433   :  { %v7169_v15 = vadd.f32 %v15164_v63, %v7155_v61  ;;  %v14075_v44 = vld [vmem:[#allocation8 + $0xb4] sm:$0xf0]  ;;  %v12799_v30 = vor.u32 %v14059_v60, %v12798_v3  ;;  %v14057_v33 = vld [vmem:[#allocation8 + $0x24] sm:$0xf0]  ;;  %v12854_v21 = vld [vmem:[#allocation8 + $0xa0] sm:$0xf] }
 0x434   :  { %8541 = vmatpush.bf16.msra.mxu0 %v12815_v59  ;;  %v6735_v17 = vadd.f32 %v15165_v62, %v6721_v53  ;;  %8555 = vmatpush.bf16.msra.mxu1 %v12879_v16  ;;  %v14091_v10 = vld [vmem:[#allocation8 + $0x134] sm:$0xf0]  ;;  %v12863_v31 = vor.u32 %v14075_v44, %v12862_v14  ;;  %v14073_v34 = vld [vmem:[#allocation8 + $0xa4] sm:$0xf0]  ;;  %v12918_v12 = vld [vmem:[#allocation8 + $0x120] sm:$0xf]  ;;  %v12791_v58 = vor.u32 %v14057_v33, %v12790_v52  ;;  %v14930_v59 = vpop.f32.mrf.mxu0 }
 0x435   :  { %8569 = vmatpush.bf16.msra.mxu2 %v12943_v8  ;;  %v7183_v50 = vadd.f32 %v15166_v43, %v7169_v15  ;;  %v15168_v42 = vld [vmem:[#allocation90_spill] sm:$0xff]  ;;  %v12927_v28 = vor.u32 %v14091_v10, %v12926_v9  ;;  %v14089_v22 = vld [vmem:[#allocation8 + $0x124] sm:$0xf0]  ;;  %v15170_v47 = vld [vmem:[#allocation91_spill] sm:$0xff]  ;;  %v12855_v24 = vor.u32 %v14073_v34, %v12854_v21 }
 0x436   :  { %v6749_v4 = vadd.f32 %v15167_v6, %v6735_v17  ;;  %v15169_v49 = vld [vmem:[#allocation57_spill] sm:$0xff]  ;;  %v15171_v48 = vld [vmem:[#allocation59_spill] sm:$0xff]  ;;  %v12919_v37 = vor.u32 %v14089_v22, %v12918_v12  ;;  %v15172_v57 = vld [vmem:[#allocation92_spill] sm:$0xff] }
 0x437   :  { %v7197_v26 = vadd.f32 %v15168_v42, %v7183_v50  ;;  %v12782_v5 = vld [vmem:[#allocation8 + $0x10] sm:$0xf]  ;;  %v14055_v54 = vld [vmem:[#allocation8 + $0x14] sm:$0xf0]  ;;  %v12774_v53 = vld [vmem:[#allocation8] sm:$0xf] }
 0x438   :  { %8542 = vmatpush.bf16.msra.mxu0 %v12807_v46  ;;  %8556 = vmatpush.bf16.msra.mxu1 %v12871_v56  ;;  %v6763_v36 = vadd.f32 %v15169_v49, %v6749_v4  ;;  %v12846_v29 = vld [vmem:[#allocation8 + $0x90] sm:$0xf]  ;;  %v14071_v1 = vld [vmem:[#allocation8 + $0x94] sm:$0xf0]  ;;  %v12783_v11 = vor.u32 %v14055_v54, %v12782_v5  ;;  %v15173_v16 = vld [vmem:[#allocation60_spill] sm:$0xff] }
 0x439   :  { %8570 = vmatpush.bf16.msra.mxu2 %v12935_v20  ;;  %v7211_v25 = vadd.f32 %v15170_v47, %v7197_v26  ;;  %v12910_v7 = vld [vmem:[#allocation8 + $0x110] sm:$0xf]  ;;  %v14087_v61 = vld [vmem:[#allocation8 + $0x114] sm:$0xf0]  ;;  %v12847_v23 = vor.u32 %v14071_v1, %v12846_v29  ;;  %v14053_v45 = vld [vmem:[#allocation8 + $0x4] sm:$0xf0]  ;;  %v14937_v42 = vpop.f32.mrf.mxu2  ;;  %v14939_v26 = vpop.f32.mrf.mxu3 }
 0x43a   :  { %v6777_v40 = vadd.f32 %v15171_v48, %v6763_v36  ;;  %v12911_v32 = vor.u32 %v14087_v61, %v12910_v7  ;;  %v12838_v63 = vld [vmem:[#allocation8 + $0x80] sm:$0xf]  ;;  %v14069_v15 = vld [vmem:[#allocation8 + $0x84] sm:$0xf0]  ;;  %v14066_v17 = vld [vmem:[#allocation8 + $0x74] sm:$0xf]  ;;  %v12775_v60 = vor.u32 %v14053_v45, %v12774_v53 }
 0x43b   :  { %v7225_v35 = vadd.f32 %v15172_v57, %v7211_v25  ;;  %v15174_v27 = vld [vmem:[#allocation93_spill] sm:$0xff]  ;;  %v12902_v46 = vld [vmem:[#allocation8 + $0x100] sm:$0xf]  ;;  %v12832_v56 = vld [vmem:[#allocation8 + $0x78] sm:$0xf0]  ;;  %v12839_v44 = vor.u32 %v14069_v15, %v12838_v63  ;;  %v14949_v57 = vpop.f32.mrf.mxu1 }
 0x43c   :  { %8543 = vmatpush.bf16.msra.mxu0 %v12799_v30  ;;  %8557 = vmatpush.bf16.msra.mxu1 %v12863_v31  ;;  %v6791_v8 = vadd.f32 %v15173_v16, %v6777_v40  ;;  %v14085_v62 = vld [vmem:[#allocation8 + $0x104] sm:$0xf0]  ;;  %v14082_v20 = vld [vmem:[#allocation8 + $0xf4] sm:$0xf]  ;;  %v12896_v3 = vld [vmem:[#allocation8 + $0xf8] sm:$0xf0]  ;;  %v12835_v30 = vor.u32 %v14066_v17, %v12832_v56  ;;  %v14944_v25 = vpop.f32.mrf.mxu0 }
 0x43d   :  { %8571 = vmatpush.bf16.msra.mxu2 %v12927_v28  ;;  %v7239_v38 = vadd.f32 %v15174_v27, %v7225_v35  ;;  %v14098_v14 = vld [vmem:[#allocation8 + $0x174] sm:$0xf]  ;;  %v12960_v43 = vld [vmem:[#allocation8 + $0x178] sm:$0xf0]  ;;  %v12903_v9 = vor.u32 %v14085_v62, %v12902_v46  ;;  %v12899_v31 = vor.u32 %v14082_v20, %v12896_v3  ;;  %v14064_v28 = vld [vmem:[#allocation8 + $0x64] sm:$0xf] }
 0x43e   :  { %v8141_v50 = vmax.f32 %v6791_v8, 0.0  ;;  %v15175_v10 = vld [vmem:[#allocation55_spill] sm:$0xff]  ;;  %v12963_v52 = vor.u32 %v14098_v14, %v12960_v43  ;;  %v12824_v33 = vld [vmem:[#allocation8 + $0x68] sm:$0xf0]  ;;  %v14080_v21 = vld [vmem:[#allocation8 + $0xe4] sm:$0xf] }
 0x43f   :  { %v8137_v6 = vmax.f32 %v15175_v10, 0.0  ;;  %v8142_v4 = vmax.f32 %v7239_v38, 0.0  ;;  %v12888_v34 = vld [vmem:[#allocation8 + $0xe8] sm:$0xf0]  ;;  %v14096_v49 = vld [vmem:[#allocation8 + $0x164] sm:$0xf]  ;;  %v12827_v48 = vor.u32 %v14064_v28, %v12824_v33 }
 0x440   :  { %8544 = vmatpush.bf16.msra.mxu0 %v12791_v58  ;;  %8558 = vmatpush.bf16.msra.mxu1 %v12855_v24  ;;  %v15176_v12 = vld [vmem:[#allocation89_spill] sm:$0xff]  ;;  %v12891_v40 = vor.u32 %v14080_v21, %v12888_v34  ;;  %v14062_v24 = vld [vmem:[#allocation8 + $0x54] sm:$0xf]  ;;  %v12816_v5 = vld [vmem:[#allocation8 + $0x58] sm:$0xf0] }
 0x441   :  { %8572 = vmatpush.bf16.msra.mxu2 %v12919_v37  ;;  %v8138_v22 = vmax.f32 %v15176_v12, 0.0  ;;  %v12952_v36 = vld [vmem:[#allocation8 + $0x168] sm:$0xf0]  ;;  %v14942_v47 = vpack.c.bf16 %v8141_v50, %v8137_v6  ;;  %v14078_v54 = vld [vmem:[#allocation8 + $0xd4] sm:$0xf]  ;;  %v12819_v7 = vor.u32 %v14062_v24, %v12816_v5  ;;  %v14955_v45 = vpop.f32.mrf.mxu3  ;;  %v7701_v5 = vadd.f32 %v14915_v55, %v1220_v39 }
 0x442   :  { %v12955_v37 = vor.u32 %v14096_v49, %v12952_v36  ;;  %v12880_v29 = vld [vmem:[#allocation8 + $0xd8] sm:$0xf0]  ;;  %v14094_v35 = vld [vmem:[#allocation8 + $0x154] sm:$0xf]  ;;  %v12808_v16 = vld [vmem:[#allocation8 + $0x48] sm:$0xf0] }
 0x443   :  { %v14946_v58 = vpack.c.bf16 %v8142_v4, %v8138_v22  ;;  %v12944_v1 = vld [vmem:[#allocation8 + $0x158] sm:$0xf0]  ;;  %v12883_v61 = vor.u32 %v14078_v54, %v12880_v29  ;;  %v14076_v8 = vld [vmem:[#allocation8 + $0xc4] sm:$0xf]  ;;  %v12936_v15 = vld [vmem:[#allocation8 + $0x148] sm:$0xf0] }
 0x444   :  { %8545 = vmatpush.bf16.msra.mxu0 %v12783_v11  ;;  %8559 = vmatpush.bf16.msra.mxu1 %v12847_v23  ;;  %v14060_v11 = vld [vmem:[#allocation8 + $0x44] sm:$0xf]  ;;  %v12947_v53 = vor.u32 %v14094_v35, %v12944_v1  ;;  %v12872_v23 = vld [vmem:[#allocation8 + $0xc8] sm:$0xf0]  ;;  %v14957_v27 = vpop.f32.mrf.mxu0  ;;  %v14058_v62 = vld [vmem:[#allocation8 + $0x34] sm:$0xf] }
 0x445   :  { %8573 = vmatpush.bf16.msra.mxu2 %v12911_v32  ;;  %v14953_v32 = vpop.f32.mrf.mxu2  ;;  %v14092_v63 = vld [vmem:[#allocation8 + $0x144] sm:$0xf]  ;;  %v12811_v38 = vor.u32 %v14060_v11, %v12808_v16  ;;  %v12875_v46 = vor.u32 %v14076_v8, %v12872_v23  ;;  %v12800_v56 = vld [vmem:[#allocation8 + $0x38] sm:$0xf0]  ;;  %v14074_v20 = vld [vmem:[#allocation8 + $0xb4] sm:$0xf]  ;;  %v7715_v23 = vadd.f32 %v14920_v0, %v7701_v5 }
 0x446   :  { %v12939_v17 = vor.u32 %v14092_v63, %v12936_v15  ;;  %v12864_v3 = vld [vmem:[#allocation8 + $0xb8] sm:$0xf0]  ;;  %v14090_v14 = vld [vmem:[#allocation8 + $0x134] sm:$0xf]  ;;  %v12803_v50 = vor.u32 %v14058_v62, %v12800_v56  ;;  %v12792_v6 = vld [vmem:[#allocation8 + $0x28] sm:$0xf0] }
 0x447   :  { %v12928_v43 = vld [vmem:[#allocation8 + $0x138] sm:$0xf0]  ;;  %v14072_v4 = vld [vmem:[#allocation8 + $0xa4] sm:$0xf]  ;;  %v12920_v33 = vld [vmem:[#allocation8 + $0x128] sm:$0xf0] }
 0x448   :  { %8546 = vmatpush.bf16.msra.mxu0 %v12775_v60  ;;  %8560 = vmatpush.bf16.msra.mxu1 %v12839_v44  ;;  %v14959_v60 = vpop.f32.mrf.mxu1  ;;  %v12867_v44 = vor.u32 %v14074_v20, %v12864_v3  ;;  %v12931_v10 = vor.u32 %v14090_v14, %v12928_v43  ;;  %v14054_v12 = vld [vmem:[#allocation8 + $0x14] sm:$0xf]  ;;  %v12784_v36 = vld [vmem:[#allocation8 + $0x18] sm:$0xf0]  ;;  %v14052_v1 = vld [vmem:[#allocation8 + $0x4] sm:$0xf] }
 0x449   :  { %8574 = vmatpush.bf16.msra.mxu2 %v12903_v9  ;;  %v14056_v9 = vld [vmem:[#allocation8 + $0x24] sm:$0xf]  ;;  %v14963_v28 = vpop.f32.mrf.mxu3  ;;  %v14086_v24 = vld [vmem:[#allocation8 + $0x114] sm:$0xf]  ;;  %v12787_v29 = vor.u32 %v14054_v12, %v12784_v36  ;;  %v12904_v8 = vld [vmem:[#allocation8 + $0x108] sm:$0xf0] }
 0x44a   :  { %v12795_v21 = vor.u32 %v14056_v9, %v12792_v6  ;;  %v14068_v11 = vld [vmem:[#allocation8 + $0x84] sm:$0xf] }
 0x44b   :  { %8547 = vmatmul.bf16.vlgmr.msra.gmra.mxu0 %v14942_v47  ;;  %8561 = vmatmul.bf16.vlgmr.msra.gmra.mxu1 %v14946_v58  ;;  %v14084_v16 = vld [vmem:[#allocation8 + $0x104] sm:$0xf] }
 0x44c   :  { %8595 = vmatpush.bf16.msrb.mxu0 %v12835_v30  ;;  %8609 = vmatpush.bf16.msrb.mxu1 %v12899_v31  ;;  %v12856_v30 = vld [vmem:[#allocation8 + $0xa8] sm:$0xf0]  ;;  %v14965_v22 = vpop.f32.mrf.mxu0 }
 0x44d   :  { %8623 = vmatpush.bf16.msrb.mxu2 %v12963_v52  ;;  %v14961_v31 = vpop.f32.mrf.mxu2  ;;  %v14088_v52 = vld [vmem:[#allocation8 + $0x124] sm:$0xf]  ;;  %v12859_v34 = vor.u32 %v14072_v4, %v12856_v30  ;;  %v14113_v4 = vld [vmem:[#allocation8 + $0x1e4] sm:$0xf0] }
 0x44e   :  { %8575 = vmatmul.bf16.vlgmr.msra.gmra.mxu2 %v14831_v2  ;;  %v12923_v49 = vor.u32 %v14088_v52, %v12920_v33 }
 0x450   :  { %8596 = vmatpush.bf16.msrb.mxu0 %v12827_v48  ;;  %8610 = vmatpush.bf16.msrb.mxu1 %v12891_v40  ;;  %v14070_v48 = vld [vmem:[#allocation8 + $0x94] sm:$0xf]  ;;  %v12848_v40 = vld [vmem:[#allocation8 + $0x98] sm:$0xf0]  ;;  %v7826_v54 = vpop.f32.mrf.mxu1 }
 0x451   :  { %8624 = vmatpush.bf16.msrb.mxu2 %v12955_v37  ;;  %v12912_v37 = vld [vmem:[#allocation8 + $0x118] sm:$0xf0]  ;;  %v12851_v35 = vor.u32 %v14070_v48, %v12848_v40  ;;  %v7854_v15 = vpop.f32.mrf.mxu3  ;;  %v12998_v48 = vld [vmem:[#allocation8 + $0x1c0] sm:$0xf]  ;;  %v14109_v40 = vld [vmem:[#allocation8 + $0x1c4] sm:$0xf0] }
 0x454   :  { %8597 = vmatpush.bf16.msrb.mxu0 %v12819_v7  ;;  %8611 = vmatpush.bf16.msrb.mxu1 %v12883_v61  ;;  %v12915_v7 = vor.u32 %v14086_v24, %v12912_v37  ;;  %v12776_v61 = vld [vmem:[#allocation8 + $0x8] sm:$0xf0]  ;;  %v7866_v55 = vpop.f32.mrf.mxu0  ;;  %v14107_v37 = vld [vmem:[#allocation8 + $0x1b4] sm:$0xf0] }
 0x455   :  { %8625 = vmatpush.bf16.msrb.mxu2 %v12947_v53  ;;  %v12840_v53 = vld [vmem:[#allocation8 + $0x88] sm:$0xf0]  ;;  %v7840_v63 = vpop.f32.mrf.mxu2  ;;  %v12779_v41 = vor.u32 %v14052_v1, %v12776_v61  ;;  %v12982_v1 = vld [vmem:[#allocation8 + $0x1a0] sm:$0xf] }
 0x456   :  { %v12843_v39 = vor.u32 %v14068_v11, %v12840_v53 }
 0x458   :  { %8598 = vmatpush.bf16.msrb.mxu0 %v12811_v38  ;;  %8612 = vmatpush.bf16.msrb.mxu1 %v12875_v46  ;;  %v12907_v38 = vor.u32 %v14084_v16, %v12904_v8  ;;  %v7729_v46 = vadd.f32 %v14924_v18, %v7715_v23  ;;  %v7880_v62 = vpop.f32.mrf.mxu1 }
 0x459   :  { %8626 = vmatpush.bf16.msrb.mxu2 %v12939_v17  ;;  %v7755_v17 = vadd.f32 %v14930_v59, %v14849_v51  ;;  %v7908_v20 = vpop.f32.mrf.mxu3 }
 0x45a   :  { %v7743_v0 = vadd.f32 %v14926_v13, %v7729_v46 }
 0x45b   :  { %v7769_v3 = vadd.f32 %v14934_v19, %v7755_v17 }
 0x45c   :  { %8599 = vmatpush.bf16.msrb.mxu0 %v12803_v50  ;;  %8613 = vmatpush.bf16.msrb.mxu1 %v12867_v44  ;;  %v7757_v18 = vadd.f32 %v14944_v25, %v7743_v0  ;;  %v7868_v14 = vpop.f32.mrf.mxu0 }
 0x45d   :  { %8627 = vmatpush.bf16.msrb.mxu2 %v12931_v10  ;;  %v7894_v56 = vpop.f32.mrf.mxu2  ;;  %v7783_v43 = vadd.f32 %v14937_v42, %v7769_v3  ;;  %v14115_v10 = vld [vmem:[#allocation8 + $0x1f4] sm:$0xf0]  ;;  %v13014_v42 = vld [vmem:[#allocation8 + $0x1e0] sm:$0xf] }
 0x45e   :  { %v7771_v51 = vadd.f32 %v14949_v57, %v7757_v18  ;;  %v13015_v30 = vor.u32 %v14113_v4, %v13014_v42  ;;  %v14110_v4 = vld [vmem:[#allocation8 + $0x1d4] sm:$0xf] }
 0x45f   :  { %v7797_v13 = vadd.f32 %v14939_v26, %v7783_v43 }
 0x460   :  { %8600 = vmatpush.bf16.msrb.mxu0 %v12795_v21  ;;  %8614 = vmatpush.bf16.msrb.mxu1 %v12859_v34  ;;  %v7882_v50 = vpop.f32.mrf.mxu1  ;;  %v7785_v59 = vadd.f32 %v14953_v32, %v7771_v51  ;;  %v13006_v21 = vld [vmem:[#allocation8 + $0x1d0] sm:$0xf]  ;;  %v14111_v34 = vld [vmem:[#allocation8 + $0x1d4] sm:$0xf0]  ;;  %v14114_v51 = vld [vmem:[#allocation8 + $0x1f4] sm:$0xf] }
 0x461   :  { %8628 = vmatpush.bf16.msrb.mxu2 %v12923_v49  ;;  %v7811_v44 = vadd.f32 %v14957_v27, %v7797_v13  ;;  %v13007_v12 = vor.u32 %v14111_v34, %v13006_v21  ;;  %v14108_v21 = vld [vmem:[#allocation8 + $0x1c4] sm:$0xf]  ;;  %v13000_v34 = vld [vmem:[#allocation8 + $0x1c8] sm:$0xf0] }
 0x462   :  { %v7799_v25 = vadd.f32 %v14955_v45, %v7785_v59 }
 0x463   :  { %v7825_v57 = vadd.f32 %v14959_v60, %v7811_v44  ;;  %v12999_v60 = vor.u32 %v14109_v40, %v12998_v48  ;;  %v14112_v44 = vld [vmem:[#allocation8 + $0x1e4] sm:$0xf]  ;;  %v14106_v48 = vld [vmem:[#allocation8 + $0x1b4] sm:$0xf]  ;;  %v12992_v40 = vld [vmem:[#allocation8 + $0x1b8] sm:$0xf0] }
 0x464   :  { %8601 = vmatpush.bf16.msrb.mxu0 %v12787_v29  ;;  %8615 = vmatpush.bf16.msrb.mxu1 %v12851_v35  ;;  %v7922_v9 = vpop.f32.mrf.mxu0  ;;  %v7813_v26 = vadd.f32 %v14965_v22, %v7799_v25  ;;  %v12990_v22 = vld [vmem:[#allocation8 + $0x1b0] sm:$0xf] }
 0x465   :  { %8629 = vmatpush.bf16.msrb.mxu2 %v12915_v7  ;;  %v7839_v32 = vadd.f32 %v14961_v31, %v7825_v57  ;;  %v12991_v29 = vor.u32 %v14107_v37, %v12990_v22  ;;  %v14105_v7 = vld [vmem:[#allocation8 + $0x1a4] sm:$0xf0]  ;;  %v13008_v57 = vld [vmem:[#allocation8 + $0x1d8] sm:$0xf0]  ;;  %v12995_v37 = vor.u32 %v14106_v48, %v12992_v40 }
 0x466   :  { %v7827_v27 = vadd.f32 %v7826_v54, %v7813_v26  ;;  %v12983_v16 = vor.u32 %v14105_v7, %v12982_v1 }
 0x467   :  { %v7853_v45 = vadd.f32 %v14963_v28, %v7839_v32 }
 0x468   :  { %8602 = vmatpush.bf16.msrb.mxu0 %v12779_v41  ;;  %8616 = vmatpush.bf16.msrb.mxu1 %v12843_v39  ;;  %v7936_v6 = vpop.f32.mrf.mxu1  ;;  %v7841_v49 = vadd.f32 %v7840_v63, %v7827_v27 }
 0x469   :  { %8630 = vmatpush.bf16.msrb.mxu2 %v12907_v38  ;;  %v7867_v24 = vadd.f32 %v7866_v55, %v7853_v45  ;;  %v12974_v55 = vld [vmem:[#allocation8 + $0x190] sm:$0xf]  ;;  %v13003_v45 = vor.u32 %v14108_v21, %v13000_v34 }
 0x46a   :  { %v7855_v31 = vadd.f32 %v7854_v15, %v7841_v49  ;;  %v14103_v15 = vld [vmem:[#allocation8 + $0x194] sm:$0xf0] }
 0x46b   :  { %8603 = vmatmul.bf16.vlgmr.msrb.gmra.mxu0 %v14942_v47  ;;  %8617 = vmatmul.bf16.vlgmr.msrb.gmra.mxu1 %v14946_v58  ;;  %v7896_v47 = vpop.f32.mrf.mxu2  ;;  %v7910_v58 = vpop.f32.mrf.mxu3  ;;  %v7881_v35 = vadd.f32 %v7880_v62, %v7867_v24  ;;  %v12975_v62 = vor.u32 %v14103_v15, %v12974_v55  ;;  %v14100_v55 = vld [vmem:[#allocation8 + $0x184] sm:$0xf]  ;;  %v12968_v15 = vld [vmem:[#allocation8 + $0x188] sm:$0xf0] }
 0x46c   :  { %8631 = vmatmul.bf16.vlgmr.msrb.gmra.mxu2 %v14831_v2  ;;  %v13022_v2 = vld [vmem:[#allocation8 + $0x1f0] sm:$0xf]  ;;  %v7924_v36 = vpop.f32.mrf.mxu0  ;;  %v7869_v54 = vadd.f32 %v7868_v14, %v7855_v31  ;;  %v14101_v14 = vld [vmem:[#allocation8 + $0x184] sm:$0xf0]  ;;  %v12984_v31 = vld [vmem:[#allocation8 + $0x1a8] sm:$0xf0] }
 0x46d   :  { %v13023_v19 = vor.u32 %v14115_v10, %v13022_v2  ;;  %v7895_v28 = vadd.f32 %v7894_v56, %v7881_v35  ;;  %v12966_v56 = vld [vmem:[#allocation8 + $0x180] sm:$0xf] }
 0x46e   :  { %v7883_v8 = vadd.f32 %v7882_v50, %v7869_v54  ;;  %v12967_v43 = vor.u32 %v14101_v14, %v12966_v56  ;;  %v13024_v50 = vld [vmem:[#allocation8 + $0x1f8] sm:$0xf0] }
 0x46f   :  { %8581 = vmatpush.bf16.msra.mxu3 %v13023_v19  ;;  %v7909_v63 = vadd.f32 %v7908_v20, %v7895_v28  ;;  %v13027_v20 = vor.u32 %v14114_v51, %v13024_v50 }
 0x470   :  { %v7938_v5 = vpop.f32.mrf.mxu1  ;;  %v7897_v41 = vadd.f32 %v7896_v47, %v7883_v8 }
 0x471   :  { %v7923_v39 = vadd.f32 %v7922_v9, %v7909_v63  ;;  %v13016_v9 = vld [vmem:[#allocation8 + $0x1e8] sm:$0xf0] }
 0x472   :  { %v7911_v17 = vadd.f32 %v7910_v58, %v7897_v41  ;;  %v13019_v58 = vor.u32 %v14112_v44, %v13016_v9 }
 0x473   :  { %v7950_v52 = vpop.f32.mrf.mxu2  ;;  %v7964_v33 = vpop.f32.mrf.mxu3  ;;  %8582 = vmatpush.bf16.msra.mxu3 %v13015_v30  ;;  %v7937_v0 = vadd.f32 %v7936_v6, %v7923_v39  ;;  %v13011_v30 = vor.u32 %v14110_v4, %v13008_v57 }
 0x474   :  { %v7978_v53 = vpop.f32.mrf.mxu0  ;;  %v7925_v3 = vadd.f32 %v7924_v36, %v7911_v17 }
 0x475   :  { %v7951_v13 = vadd.f32 %v7950_v52, %v7937_v0 }
 0x476   :  { %v7939_v47 = vadd.f32 %v7938_v5, %v7925_v3  ;;  %v14104_v5 = vld [vmem:[#allocation8 + $0x1a4] sm:$0xf] }
 0x477   :  { %8583 = vmatpush.bf16.msra.mxu3 %v13007_v12  ;;  %v7965_v2 = vadd.f32 %v7964_v33, %v7951_v13  ;;  %v12987_v35 = vor.u32 %v14104_v5, %v12984_v31 }
 0x478   :  { %v7992_v23 = vpop.f32.mrf.mxu1 }
 0x479   :  { %v7979_v6 = vadd.f32 %v7978_v53, %v7965_v2  ;;  %v14102_v53 = vld [vmem:[#allocation8 + $0x194] sm:$0xf] }
 0x47b   :  { %8584 = vmatpush.bf16.msra.mxu3 %v12999_v60  ;;  %v7952_v61 = vpop.f32.mrf.mxu2  ;;  %v7966_v11 = vpop.f32.mrf.mxu3  ;;  %v7993_v52 = vadd.f32 %v7992_v23, %v7979_v6 }
 0x47c   :  { %v7980_v18 = vpop.f32.mrf.mxu0  ;;  %v7953_v10 = vadd.f32 %v7952_v61, %v7939_v47 }
 0x47e   :  { %v7967_v26 = vadd.f32 %v7966_v11, %v7953_v10 }
 0x47f   :  { %8585 = vmatpush.bf16.msra.mxu3 %v12991_v29 }
 0x480   :  { %v7994_v59 = vpop.f32.mrf.mxu1  ;;  %v7981_v27 = vadd.f32 %v7980_v18, %v7967_v26 }
 0x482   :  { %v7995_v36 = vadd.f32 %v7994_v59, %v7981_v27 }
 0x483   :  { %8586 = vmatpush.bf16.msra.mxu3 %v12983_v16  ;;  %v8006_v38 = vpop.f32.mrf.mxu2  ;;  %v8020_v46 = vpop.f32.mrf.mxu3  ;;  %v12976_v16 = vld [vmem:[#allocation8 + $0x198] sm:$0xf0] }
 0x484   :  { %v8007_v12 = vadd.f32 %v8006_v38, %v7993_v52  ;;  %v12979_v63 = vor.u32 %v14102_v53, %v12976_v16 }
 0x486   :  { %v8021_v60 = vadd.f32 %v8020_v46, %v8007_v12 }
 0x487   :  { %8587 = vmatpush.bf16.msra.mxu3 %v12975_v62  ;;  %v12971_v62 = vor.u32 %v14100_v55, %v12968_v15 }
 0x48a   :  { %v8034_v42 = vpop.f32.mrf.mxu0  ;;  %v8048_v32 = vpop.f32.mrf.mxu1 }
 0x48b   :  { %8588 = vmatpush.bf16.msra.mxu3 %v12967_v43  ;;  %v8008_v19 = vpop.f32.mrf.mxu2  ;;  %v8022_v25 = vpop.f32.mrf.mxu3  ;;  %v8035_v29 = vadd.f32 %v8034_v42, %v8021_v60 }
 0x48c   :  { %v8009_v24 = vadd.f32 %v8008_v19, %v7995_v36  ;;  %v8213_v19 = vld [vmem:[#allocation10] sm:$0x3] }
 0x48d   :  { %v8049_v7 = vadd.f32 %v8048_v32, %v8035_v29  ;;  %v8215_v6 = vperm.slane %v8213_v19, 0 }
 0x48e   :  { %v8023_v1 = vadd.f32 %v8022_v25, %v8009_v24 }
 0x48f   :  { %8637 = vmatpush.bf16.msrb.mxu3 %v13027_v20 }
 0x492   :  { %v8036_v22 = vpop.f32.mrf.mxu0  ;;  %v8050_v54 = vpop.f32.mrf.mxu1 }
 0x493   :  { %8638 = vmatpush.bf16.msrb.mxu3 %v13019_v58  ;;  %v8062_v33 = vpop.f32.mrf.mxu2  ;;  %v8037_v61 = vadd.f32 %v8036_v22, %v8023_v1 }
 0x494   :  { %v8076_v49 = vpop.f32.mrf.mxu3  ;;  %v8063_v8 = vadd.f32 %v8062_v33, %v8049_v7 }
 0x495   :  { %v8051_v41 = vadd.f32 %v8050_v54, %v8037_v61 }
 0x496   :  { %v8077_v38 = vadd.f32 %v8076_v49, %v8063_v8  ;;  %v8216_v49 = vperm.slane %v8213_v19, 1 }
 0x497   :  { %8639 = vmatpush.bf16.msrb.mxu3 %v13011_v30 }
 0x49b   :  { %8640 = vmatpush.bf16.msrb.mxu3 %v13003_v45  ;;  %v8064_v11 = vpop.f32.mrf.mxu2 }
 0x49c   :  { %v8078_v28 = vpop.f32.mrf.mxu3  ;;  %v8065_v46 = vadd.f32 %v8064_v11, %v8051_v41 }
 0x49e   :  { %v8079_v18 = vadd.f32 %v8078_v28, %v8065_v46 }
 0x49f   :  { %8641 = vmatpush.bf16.msrb.mxu3 %v12995_v37 }
 0x4a3   :  { %8642 = vmatpush.bf16.msrb.mxu3 %v12987_v35 }
 0x4a7   :  { %8643 = vmatpush.bf16.msrb.mxu3 %v12979_v63 }
 0x4ab   :  { %v8090_v23 = vpop.f32.mrf.mxu0  ;;  %v8104_v39 = vpop.f32.mrf.mxu1  ;;  %8644 = vmatpush.bf16.msrb.mxu3 %v12971_v62 }
 0x4ac   :  { %v8091_v17 = vadd.f32 %v8090_v23, %v8077_v38 }
 0x4ae   :  { %v8105_v14 = vadd.f32 %v8104_v39, %v8091_v17 }
 0x4b2   :  { %v8118_v0 = vpop.f32.mrf.mxu2  ;;  %v8132_v3 = vpop.f32.mrf.mxu3 }
 0x4b3   :  { %v8092_v56 = vpop.f32.mrf.mxu0  ;;  %v8119_v51 = vadd.f32 %v8118_v0, %v8105_v14  ;;  %v8106_v50 = vpop.f32.mrf.mxu1 }
 0x4b4   :  { %v8093_v43 = vadd.f32 %v8092_v56, %v8079_v18 }
 0x4b5   :  { %v8133_v59 = vadd.f32 %v8132_v3, %v8119_v51 }
 0x4b6   :  { %v8107_v13 = vadd.f32 %v8106_v50, %v8093_v43 }
 0x4b7   :  { %v8140_v2 = vmax.f32 %v8133_v59, 0.0 }
 0x4ba   :  { %v8120_v20 = vpop.f32.mrf.mxu2  ;;  %v8134_v44 = vpop.f32.mrf.mxu3 }
 0x4bb   :  { %v8121_v47 = vadd.f32 %v8120_v20, %v8107_v13 }
 0x4bd   :  { %v8135_v9 = vadd.f32 %v8134_v44, %v8121_v47 }
 0x4bf   :  { %v8144_v10 = vmax.f32 %v8135_v9, 0.0 }
 0x4c1   :  { %v8148_v58 = vpack.c.bf16 %v8144_v10, %v8140_v2 }
 0x4c3   :  { %8589 = vmatmul.bf16.vlgmr.msra.gmra.mxu3 %v8148_v58 }
 0x4c8   :  { %v8548_v25 = vpop.f32.mrf.mxu0  ;;  %v8562_v42 = vpop.f32.mrf.mxu1 }
 0x4c9   :  { %v8549_v57 = vadd.f32 %v8548_v25, %v8215_v6 }
 0x4cb   :  { %v8563_v30 = vadd.f32 %v8562_v42, %v8549_v57 }
 0x4d0   :  { %v8550_v26 = vpop.f32.mrf.mxu0  ;;  %v8564_v34 = vpop.f32.mrf.mxu1 }
 0x4d1   :  { %v8576_v4 = vpop.f32.mrf.mxu2  ;;  %v8551_v27 = vadd.f32 %v8550_v26, %v8215_v6 }
 0x4d2   :  { %v8577_v32 = vadd.f32 %v8576_v4, %v8563_v30 }
 0x4d3   :  { %8645 = vmatmul.bf16.vlgmr.msrb.gmra.mxu3 %v8148_v58  ;;  %v8565_v33 = vadd.f32 %v8564_v34, %v8551_v27 }
 0x4d9   :  { %v8578_v12 = vpop.f32.mrf.mxu2 }
 0x4da   :  { %v8579_v36 = vadd.f32 %v8578_v12, %v8565_v33 }
 0x4e8   :  { %v8604_v45 = vpop.f32.mrf.mxu0  ;;  %v8618_v24 = vpop.f32.mrf.mxu1 }
 0x4e9   :  { %v8605_v40 = vadd.f32 %v8604_v45, %v8216_v49 }
 0x4eb   :  { %v8619_v37 = vadd.f32 %v8618_v24, %v8605_v40 }
 0x4ef   :  { %v8632_v22 = vpop.f32.mrf.mxu2 }
 0x4f0   :  { %v8606_v5 = vpop.f32.mrf.mxu0  ;;  %v8633_v31 = vadd.f32 %v8632_v22, %v8619_v37  ;;  %v8620_v1 = vpop.f32.mrf.mxu1 }
 0x4f1   :  { %v8607_v35 = vadd.f32 %v8606_v5, %v8216_v49 }
 0x4f3   :  { %v8621_v61 = vadd.f32 %v8620_v1, %v8607_v35 }
 0x4f7   :  { %v8634_v7 = vpop.f32.mrf.mxu2 }
 0x4f8   :  { %v8635_v11 = vadd.f32 %v8634_v7, %v8621_v61 }
 0x546   :  { %v8590_v52 = vpop.f32.mrf.mxu3 }
 0x547   :  { %v8591_v21 = vadd.f32 %v8590_v52, %v8577_v32 }
 0x549   :  { %8651 = vst [vmem:[#allocation11] sm:$0xff] %v8591_v21 }
 0x54e   :  { %v8592_v48 = vpop.f32.mrf.mxu3 }
 0x54f   :  { %v8593_v60 = vadd.f32 %v8592_v48, %v8579_v36 }
 0x551   :  { %8653 = vst [vmem:[#allocation11 + $0x10] sm:$0xff] %v8593_v60 }
 0x556   :  { %v8646_v29 = vpop.f32.mrf.mxu3 }
 0x557   :  { %v8647_v54 = vadd.f32 %v8646_v29, %v8633_v31 }
 0x559   :  { %8652 = vst [vmem:[#allocation11 + $0x8] sm:$0xff] %v8647_v54 }
 0x55e   :  { %v8648_v28 = vpop.f32.mrf.mxu3 }
 0x55f   :  { %v8649_v53 = vadd.f32 %v8648_v28, %v8635_v11 }
 0x561   :  { %8654 = vst [vmem:[#allocation11 + $0x18] sm:$0xff] %v8649_v53 }
 0x562   :  { %8667 = dma.vmem_to_hbm [thread:$0]  %s8660_s4, 512, %s8662_s22, [#allocation4], %s14283_s26, %s14283_s26, %s14284_s27  }
 0x563   :  { %14280 = dma.done.wait [#allocation4], 512  }
 0x564   :  { %14281 = vsyncadd [#allocation4], 4294966784 }
 0x565   :  { %8672 = vsyncpa [#allocation3], 1 }
 0x566   :  { %8673 = vsyncpa [#allocation6], 1 }
 0x567   :  { %8674 = vsyncpa [#allocation9], 1 }
 0x568   :  { %8675 = vsyncpa [#allocation4], 1 }

</bundles_post_ra>
